<compile_context>
chip_gen: v5e
topology: v5e:2x2
jax: 0.10.0
libtpu: 0.0.40
codegen_flags: <defaults>
</compile_context>

<pallas_src>
import functools

import jax
import jax.numpy as jnp
import numpy as np
from jax.experimental import pallas as pl
from jax.experimental.pallas import tpu as pltpu

SELU_ALPHA = 1.6732632423543772
SELU_SCALE = 1.0507009873554805

_H1 = 1024   # encoder L1 / decoder L2 width
_H2 = 512    # encoder L2 / decoder L1 width
_H3 = 128    # encoder L3 / decoder_input width


def _round_up(x, m):
    return ((x + m - 1) // m) * m


def _tpu_vmem_bytes():
    try:
        return int(pltpu.get_tpu_info().vmem_capacity_bytes)
    except Exception:
        return None


_PHYS_VMEM = _tpu_vmem_bytes()


def _vmem_limit_bytes():
    if _PHYS_VMEM is None:
        return 56 * 1024 * 1024                       # unknown: assume 64 MiB/TC
    if _PHYS_VMEM <= 80 * 1024 * 1024:                # v7x: 64 MiB per TensorCore
        return min(_PHYS_VMEM - 8 * 1024 * 1024, 56 * 1024 * 1024)
    # 128 MiB parts (v5e / v6e): allow ~96 MiB of the physical capacity.
    return min(_PHYS_VMEM * 3 // 4, 100 * 1024 * 1024)


_VMEM_LIMIT = _vmem_limit_bytes()


def _default_tile():
    """Default streaming tile along the flattened voxel dim."""
    if _PHYS_VMEM is not None and _PHYS_VMEM > 80 * 1024 * 1024:
        return 8192     # 128 MiB parts: 16 MiB bf16 W1/Wd3 slabs
    return 4096         # 64 MiB / unknown parts: 8 MiB slabs


def _selu(x):
    # Clamp the exp argument so the unselected branch never produces inf.
    neg = SELU_ALPHA * (jnp.exp(jnp.minimum(x, 0.0)) - 1.0)
    return SELU_SCALE * jnp.where(x > 0.0, x, neg)


def _mm(a_f32, w_ref, b_ref):
    """bf16 MXU matmul with f32 accumulation, f32 bias add."""
    return (
        jnp.dot(a_f32.astype(w_ref.dtype), w_ref[...],
                preferred_element_type=jnp.float32)
        + b_ref[...]
    )


# ---------------------------------------------------------------------------
# Kernel 1: encoder L1 (tiled over K) + middle layers -> [mu|logvar|z], d_act.
# ---------------------------------------------------------------------------
def _vae_trunk_kernel(
    x_ref, eps_ref,
    w1_ref, b1_ref, w2_ref, b2_ref, w3_ref, b3_ref,
    wmu_ref, bmu_ref, wvar_ref, bvar_ref,
    wdi_ref, bdi_ref, wd1_ref, bd1_ref, wd2_ref, bd2_ref,
    stats_ref, d_ref,
    acc_ref,
):
    k = pl.program_id(0)

    @pl.when(k == 0)
    def _():
        acc_ref[...] = jnp.zeros_like(acc_ref)

    # Stream one K slab of the flattened voxels (f32 -> bf16 cast on the VPU,
    # hidden under the W1 DMA) and one K slab of the pre-converted bf16 W1.
    acc_ref[...] += jnp.dot(x_ref[...].astype(w1_ref.dtype), w1_ref[...],
                            preferred_element_type=jnp.float32)

    @pl.when(k == pl.num_programs(0) - 1)
    def _():
        lat = eps_ref.shape[-1]
        h = _selu(acc_ref[...] + b1_ref[...])            # encoder L1 (+SELU)
        h = _selu(_mm(h, w2_ref, b2_ref))                # encoder L2
        h = _selu(_mm(h, w3_ref, b3_ref))                # encoder L3
        mu = _mm(h, wmu_ref, bmu_ref)                    # fc_mu
        logvar = _mm(h, wvar_ref, bvar_ref)              # fc_var
        z = mu + eps_ref[...] * jnp.exp(0.5 * logvar)    # reparameterize
        d = _selu(_mm(z, wdi_ref, bdi_ref))              # decoder_input + SELU
        d = _selu(_mm(d, wd1_ref, bd1_ref))              # decoder L1
        d = _selu(_mm(d, wd2_ref, bd2_ref))              # decoder L2
        # Packed small outputs [mu | log_var | z] -> one lane-dense slab.
        stats_ref[:, 0 * lat:1 * lat] = mu
        stats_ref[:, 1 * lat:2 * lat] = logvar
        stats_ref[:, 2 * lat:3 * lat] = z
        d_ref[...] = d.astype(d_ref.dtype)


# ---------------------------------------------------------------------------
# Kernel 2: decoder head Linear(1024, flattened) + Sigmoid, tiled over N.
# ---------------------------------------------------------------------------
def _decoder_head_kernel(d_ref, wd3_ref, bd3_ref, recon_ref):
    logits = jnp.dot(d_ref[...], wd3_ref[...],
                     preferred_element_type=jnp.float32) + bd3_ref[...]
    # sigmoid(x) = 1 / (1 + exp(-x)); exp + approx reciprocal live on the EUP.
    recon_ref[...] = pl.reciprocal(1.0 + jnp.exp(-logits), approx=True)


# ---------------------------------------------------------------------------
# Parameter construction / one-time preparation
# ---------------------------------------------------------------------------
def init_params(key, flattened_size, latent_dim):
    """PyTorch-style Linear init: U(-1/sqrt(fan_in), 1/sqrt(fan_in)).

    Weights are stored transposed, (fan_in, fan_out), so kernels do x @ W.
    Biases are (1, fan_out) for clean TPU broadcasting.
    """
    dims = [
        (flattened_size, _H1),   # encoder L1
        (_H1, _H2),              # encoder L2
        (_H2, _H3),              # encoder L3
        (_H3, latent_dim),       # fc_mu
        (_H3, latent_dim),       # fc_var
        (latent_dim, _H3),       # decoder_input
        (_H3, _H2),              # decoder L1
        (_H2, _H1),              # decoder L2
        (_H1, flattened_size),   # decoder L3
    ]
    params = []
    for fan_in, fan_out in dims:
        key, kw, kb = jax.random.split(key, 3)
        bound = 1.0 / np.sqrt(fan_in)
        w = jax.random.uniform(kw, (fan_in, fan_out), jnp.float32, -bound, bound)
        b = jax.random.uniform(kb, (1, fan_out), jnp.float32, -bound, bound)
        params += [w, b]
    return tuple(params)


def prepare_params(params, *, tile_k=None, tile_n=None):
    """One-time weight preparation — call OUTSIDE the per-step forward path.

    * Casts every weight matrix to bf16 once (biases stay f32), so the hot
      forward never re-converts (no per-call f32 read + bf16 write).
    * Zero-pads W1 rows and W_dec3 / b_dec3 columns to a multiple of the
      streaming tile, so the gridded kernels never fall back to a single
      giant block for awkward S^3 sizes.  Zero padding is numerically exact.

    Returns (prepared_params, tile_k, tile_n).
    """
    (w1, b1, w2, b2, w3, b3, wmu, bmu, wvar, bvar,
     wdi, bdi, wd1, bd1, wd2, bd2, wd3, bd3) = params
    flattened = w1.shape[0]

    tk = tile_k if tile_k is not None else _default_tile()
    tn = tile_n if tile_n is not None else _default_tile()
    tk = max(128, _round_up(tk, 128))
    tn = max(128, _round_up(tn, 128))
    tk = min(tk, _round_up(flattened, 128))
    tn = min(tn, _round_up(flattened, 128))
    padded_k = _round_up(flattened, tk)
    padded_n = _round_up(flattened, tn)

    bf = lambda a: a.astype(jnp.bfloat16)

    w1p = bf(w1)
    if padded_k > flattened:
        w1p = jnp.zeros((padded_k, _H1), jnp.bfloat16).at[:flattened].set(w1p)

    wd3p = bf(wd3)
    bd3p = bd3.astype(jnp.float32)
    if padded_n > flattened:
        wd3p = jnp.zeros((_H1, padded_n), jnp.bfloat16).at[:, :flattened].set(wd3p)
        bd3p = jnp.zeros((1, padded_n), jnp.float32).at[:, :flattened].set(bd3p)

    prepared = (w1p, b1, bf(w2), b2, bf(w3), b3,
                bf(wmu), bmu, bf(wvar), bvar,
                bf(wdi), bdi, bf(wd1), bd1, bf(wd2), bd2,
                wd3p, bd3p)
    return prepared, tk, tn


# ---------------------------------------------------------------------------
# Forward
# ---------------------------------------------------------------------------
@functools.partial(jax.jit, static_argnames=("tile_k", "tile_n"))
def voxel_beta_vae_mlp_forward(x, eps, prepared, *, tile_k, tile_n):
    (w1, b1, w2, b2, w3, b3, wmu, bmu, wvar, bvar,
     wdi, bdi, wd1, bd1, wd2, bd2, wd3, bd3) = prepared

    B = x.shape[0]
    S = x.shape[-1]
    x_flat = x.reshape(B, -1).astype(jnp.float32)     # nn.Flatten
    flattened = x_flat.shape[1]
    latent = eps.shape[1]
    eps = eps.astype(jnp.float32)

    padded_k = w1.shape[0]
    padded_n = wd3.shape[1]
    if padded_k > flattened:
        x_flat = jnp.pad(x_flat, ((0, 0), (0, padded_k - flattened)))

    const = lambda k: (0, 0)
    grid_k = padded_k // tile_k
    grid_n = padded_n // tile_n

    # ---- kernel 1: encoder (K-tiled) + middle layers -> stats, d_act ----
    stats, d_act = pl.pallas_call(
        _vae_trunk_kernel,
        grid=(grid_k,),
        in_specs=[
            pl.BlockSpec((B, tile_k), lambda k: (0, k)),     # x slab   (streamed)
            pl.BlockSpec((B, latent), const),                # eps      (resident)
            pl.BlockSpec((tile_k, _H1), lambda k: (k, 0)),   # W1 slab  (streamed)
            pl.BlockSpec((1, _H1), const),                   # b1
            pl.BlockSpec((_H1, _H2), const),                 # W2       (resident)
            pl.BlockSpec((1, _H2), const),
            pl.BlockSpec((_H2, _H3), const),                 # W3
            pl.BlockSpec((1, _H3), const),
            pl.BlockSpec((_H3, latent), const),              # W_mu
            pl.BlockSpec((1, latent), const),
            pl.BlockSpec((_H3, latent), const),              # W_var
            pl.BlockSpec((1, latent), const),
            pl.BlockSpec((latent, _H3), const),              # W_dec_in
            pl.BlockSpec((1, _H3), const),
            pl.BlockSpec((_H3, _H2), const),                 # W_dec1
            pl.BlockSpec((1, _H2), const),
            pl.BlockSpec((_H2, _H1), const),                 # W_dec2
            pl.BlockSpec((1, _H1), const),
        ],
        out_specs=(
            pl.BlockSpec((B, 3 * latent), const),            # [mu|logvar|z]
            pl.BlockSpec((B, _H1), const),                   # decoder activation
        ),
        out_shape=(
            jax.ShapeDtypeStruct((B, 3 * latent), jnp.float32),
            jax.ShapeDtypeStruct((B, _H1), jnp.bfloat16),
        ),
        scratch_shapes=[pltpu.VMEM((B, _H1), jnp.float32)],
        compiler_params=pltpu.CompilerParams(
            dimension_semantics=("arbitrary",),              # K reduction axis
            vmem_limit_bytes=_VMEM_LIMIT,
        ),
    )(x_flat, eps,
      w1, b1, w2, b2, w3, b3, wmu, bmu, wvar, bvar,
      wdi, bdi, wd1, bd1, wd2, bd2)

    # ---- kernel 2: decoder head (N-tiled) -> reconstruction ----
    recon_pad = pl.pallas_call(
        _decoder_head_kernel,
        grid=(grid_n,),
        in_specs=[
            pl.BlockSpec((B, _H1), lambda j: (0, 0)),        # d        (resident)
            pl.BlockSpec((_H1, tile_n), lambda j: (0, j)),   # W_dec3   (streamed)
            pl.BlockSpec((1, tile_n), lambda j: (0, j)),     # b_dec3 tile
        ],
        out_specs=pl.BlockSpec((B, tile_n), lambda j: (0, j)),
        out_shape=jax.ShapeDtypeStruct((B, padded_n), jnp.float32),
        compiler_params=pltpu.CompilerParams(
            dimension_semantics=("parallel",),               # megacore sharding
            vmem_limit_bytes=_VMEM_LIMIT,
        ),
    )(d_act, wd3, bd3)

    mu = stats[:, :latent]
    logvar = stats[:, latent:2 * latent]
    z = stats[:, 2 * latent:]
    recon = recon_pad[:, :flattened].reshape(-1, 1, S, S, S)
    return recon, mu, logvar, z


# ---------------------------------------------------------------------------
# Pure-JAX reference (same precision policy: bf16 matmul inputs, f32 accum).
# ---------------------------------------------------------------------------
def _reference_forward(x, eps, params, input_size):
    (w1, b1, w2, b2, w3, b3, wmu, bmu, wvar, bvar,
     wdi, bdi, wd1, bd1, wd2, bd2, wd3, bd3) = params
    bf = lambda a: a.astype(jnp.bfloat16)
    mm = lambda a, w, b: jnp.dot(bf(a), bf(w),
                                 preferred_element_type=jnp.float32) + b

    B = x.shape[0]
    h = x.reshape(B, -1).astype(jnp.float32)
    h = jax.nn.selu(mm(h, w1, b1))
    h = jax.nn.selu(mm(h, w2, b2))
    h = jax.nn.selu(mm(h, w3, b3))
    mu = mm(h, wmu, bmu)
    logvar = mm(h, wvar, bvar)
    z = mu + eps * jnp.exp(0.5 * logvar)
    d = jax.nn.selu(mm(z, wdi, bdi))
    d = jax.nn.selu(mm(d, wd1, bd1))
    d = jax.nn.selu(mm(d, wd2, bd2))
    recon = jax.nn.sigmoid(mm(d, wd3, bd3))
    return (recon.reshape(-1, 1, input_size, input_size, input_size),
            mu, logvar, z)


if __name__ == "__main__":
    # Small, forward-consistent shapes: batch=2, in_channels=1, input_size=8,
    # latent_dim=64 -> flattened_size = 1 * 8**3 = 512.
    B, in_channels, input_size, latent_dim = 2, 1, 8, 64
    flattened_size = in_channels * input_size ** 3

    key = jax.random.PRNGKey(0)
    k_params, k_x, k_eps = jax.random.split(key, 3)

    params = init_params(k_params, flattened_size, latent_dim)
    # Binary-ish occupancy voxels in [0, 1] (module uses sigmoid + BCE on them).
    x = (jax.random.uniform(
        k_x, (B, in_channels, input_size, input_size, input_size)) > 0.5
         ).astype(jnp.float32)
    eps = jax.random.normal(k_eps, (B, latent_dim), jnp.float32)

    # tile 384 at flattened=512 exercises BOTH the multi-step grid (2 K steps,
    # 2 N steps) and the zero-padding path (512 -> 768 padded columns).
    prepared, tk, tn = prepare_params(params, tile_k=384, tile_n=384)

    recon, mu, logvar, z = voxel_beta_vae_mlp_forward(
        x, eps, prepared, tile_k=tk, tile_n=tn)
    jax.block_until_ready((recon, mu, logvar, z))

    # Validate against the pure-JAX reference.
    r_recon, r_mu, r_logvar, r_z = _reference_forward(x, eps, params, input_size)
    np.testing.assert_allclose(np.asarray(recon), np.asarray(r_recon),
                               atol=5e-3, rtol=5e-3)
    np.testing.assert_allclose(np.asarray(mu), np.asarray(r_mu),
                               atol=5e-3, rtol=5e-3)
    np.testing.assert_allclose(np.asarray(logvar), np.asarray(r_logvar),
                               atol=5e-3, rtol=5e-3)
    np.testing.assert_allclose(np.asarray(z), np.asarray(r_z),
                               atol=5e-3, rtol=5e-3)

    assert recon.shape == (B, 1, input_size, input_size, input_size)
    assert mu.shape == (B, latent_dim)
    assert logvar.shape == (B, latent_dim)
    assert z.shape == (B, latent_dim)

    print("KERNEL_OK")
</pallas_src>

<mosaic_0001>
module attributes {stable_mosaic.version = 11 : i64} {
  func.func @_vae_trunk_kernel(%arg0: i32, %arg1: memref<2x384xf32, #tpu.memory_space<vmem>>, %arg2: memref<2x64xf32, #tpu.memory_space<vmem>>, %arg3: memref<384x1024xbf16, #tpu.memory_space<vmem>>, %arg4: memref<1x1024xf32, #tpu.memory_space<vmem>>, %arg5: memref<1024x512xbf16, #tpu.memory_space<vmem>>, %arg6: memref<1x512xf32, #tpu.memory_space<vmem>>, %arg7: memref<512x128xbf16, #tpu.memory_space<vmem>>, %arg8: memref<1x128xf32, #tpu.memory_space<vmem>>, %arg9: memref<128x64xbf16, #tpu.memory_space<vmem>>, %arg10: memref<1x64xf32, #tpu.memory_space<vmem>>, %arg11: memref<128x64xbf16, #tpu.memory_space<vmem>>, %arg12: memref<1x64xf32, #tpu.memory_space<vmem>>, %arg13: memref<64x128xbf16, #tpu.memory_space<vmem>>, %arg14: memref<1x128xf32, #tpu.memory_space<vmem>>, %arg15: memref<128x512xbf16, #tpu.memory_space<vmem>>, %arg16: memref<1x512xf32, #tpu.memory_space<vmem>>, %arg17: memref<512x1024xbf16, #tpu.memory_space<vmem>>, %arg18: memref<1x1024xf32, #tpu.memory_space<vmem>>, %arg19: memref<2x192xf32, #tpu.memory_space<vmem>>, %arg20: memref<2x1024xbf16, #tpu.memory_space<vmem>>, %arg21: memref<2x1024xf32, #tpu.memory_space<vmem>>) attributes {dimension_semantics = [#tpu.dimension_semantics<arbitrary>], iteration_bounds = array<i64: 2>, scalar_prefetch = 0 : i64, scratch_operands = 1 : i64, tpu.core_type = #tpu.core_type<tc>, window_params = [{transform_indices = @transform_0, window_bounds = array<i64: 2, 384>}, {pipeline_mode = #tpu.pipeline_mode<synchronous>, transform_indices = @transform_1, window_bounds = array<i64: 2, 64>}, {transform_indices = @transform_2, window_bounds = array<i64: 384, 1024>}, {pipeline_mode = #tpu.pipeline_mode<synchronous>, transform_indices = @transform_3, window_bounds = array<i64: 1, 1024>}, {pipeline_mode = #tpu.pipeline_mode<synchronous>, transform_indices = @transform_4, window_bounds = array<i64: 1024, 512>}, {pipeline_mode = #tpu.pipeline_mode<synchronous>, transform_indices = @transform_5, window_bounds = array<i64: 1, 512>}, {pipeline_mode = #tpu.pipeline_mode<synchronous>, transform_indices = @transform_6, window_bounds = array<i64: 512, 128>}, {pipeline_mode = #tpu.pipeline_mode<synchronous>, transform_indices = @transform_7, window_bounds = array<i64: 1, 128>}, {pipeline_mode = #tpu.pipeline_mode<synchronous>, transform_indices = @transform_8, window_bounds = array<i64: 128, 64>}, {pipeline_mode = #tpu.pipeline_mode<synchronous>, transform_indices = @transform_9, window_bounds = array<i64: 1, 64>}, {pipeline_mode = #tpu.pipeline_mode<synchronous>, transform_indices = @transform_10, window_bounds = array<i64: 128, 64>}, {pipeline_mode = #tpu.pipeline_mode<synchronous>, transform_indices = @transform_11, window_bounds = array<i64: 1, 64>}, {pipeline_mode = #tpu.pipeline_mode<synchronous>, transform_indices = @transform_12, window_bounds = array<i64: 64, 128>}, {pipeline_mode = #tpu.pipeline_mode<synchronous>, transform_indices = @transform_13, window_bounds = array<i64: 1, 128>}, {pipeline_mode = #tpu.pipeline_mode<synchronous>, transform_indices = @transform_14, window_bounds = array<i64: 128, 512>}, {pipeline_mode = #tpu.pipeline_mode<synchronous>, transform_indices = @transform_15, window_bounds = array<i64: 1, 512>}, {pipeline_mode = #tpu.pipeline_mode<synchronous>, transform_indices = @transform_16, window_bounds = array<i64: 512, 1024>}, {pipeline_mode = #tpu.pipeline_mode<synchronous>, transform_indices = @transform_17, window_bounds = array<i64: 1, 1024>}, {pipeline_mode = #tpu.pipeline_mode<synchronous>, transform_indices = @transform_18, window_bounds = array<i64: 2, 192>}, {pipeline_mode = #tpu.pipeline_mode<synchronous>, transform_indices = @transform_19, window_bounds = array<i64: 2, 1024>}]} {
    %c0_i32 = arith.constant 0 : i32
    %0 = arith.cmpi eq, %arg0, %c0_i32 : i32
    %1 = arith.extui %0 : i1 to i32
    %c0_i32_0 = arith.constant 0 : i32
    %2 = arith.cmpi ne, %1, %c0_i32_0 : i32
    scf.if %2 {
      %cst_9 = arith.constant 0.000000e+00 : f32
      %13 = vector.broadcast %cst_9 : f32 to vector<2x1024xf32>
      %c0_10 = arith.constant 0 : index
      %c0_11 = arith.constant 0 : index
      %14 = vector.load %arg21[%c0_10, %c0_11] : memref<2x1024xf32, #tpu.memory_space<vmem>>, vector<2x1024xf32>
      tpu.vector_store %arg21[%c0_10, %c0_11], %13 {strides = array<i32>} : memref<2x1024xf32, #tpu.memory_space<vmem>>, vector<2x1024xf32>,
    } else {
    }
    %c0 = arith.constant 0 : index
    %c0_1 = arith.constant 0 : index
    %3 = vector.load %arg21[%c0, %c0_1] : memref<2x1024xf32, #tpu.memory_space<vmem>>, vector<2x1024xf32>
    %c0_2 = arith.constant 0 : index
    %c0_3 = arith.constant 0 : index
    %4 = vector.load %arg1[%c0_2, %c0_3] : memref<2x384xf32, #tpu.memory_space<vmem>>, vector<2x384xf32>
    %5 = arith.truncf %4 : vector<2x384xf32> to vector<2x384xbf16>
    %c0_4 = arith.constant 0 : index
    %c0_5 = arith.constant 0 : index
    %6 = vector.load %arg3[%c0_4, %c0_5] : memref<384x1024xbf16, #tpu.memory_space<vmem>>, vector<384x1024xbf16>
    %cst = arith.constant dense<0.000000e+00> : vector<2x1024xf32>
    %7 = tpu.matmul %5, %6, %cst {dimension_numbers = #tpu.dot_dimension_numbers<[1], [0], [0], [1], [0, 0, 1, 1], [], []>} : vector<2x384xbf16>, vector<384x1024xbf16>, vector<2x1024xf32> -> vector<2x1024xf32>
    %8 = arith.addf %3, %7 : vector<2x1024xf32>
    %c0_6 = arith.constant 0 : index
    %c0_7 = arith.constant 0 : index
    %9 = vector.load %arg21[%c0_6, %c0_7] : memref<2x1024xf32, #tpu.memory_space<vmem>>, vector<2x1024xf32>
    tpu.vector_store %arg21[%c0_6, %c0_7], %8 {strides = array<i32>} : memref<2x1024xf32, #tpu.memory_space<vmem>>, vector<2x1024xf32>,
    %c1_i32 = arith.constant 1 : i32
    %10 = arith.cmpi eq, %arg0, %c1_i32 : i32
    %11 = arith.extui %10 : i1 to i32
    %c0_i32_8 = arith.constant 0 : i32
    %12 = arith.cmpi ne, %11, %c0_i32_8 : i32
    scf.if %12 {
      %c0_9 = arith.constant 0 : index
      %c0_10 = arith.constant 0 : index
      %13 = vector.load %arg21[%c0_9, %c0_10] : memref<2x1024xf32, #tpu.memory_space<vmem>>, vector<2x1024xf32>
      %c0_11 = arith.constant 0 : index
      %c0_12 = arith.constant 0 : index
      %14 = vector.load %arg4[%c0_11, %c0_12] : memref<1x1024xf32, #tpu.memory_space<vmem>>, vector<1x1024xf32>
      %15 = vector.broadcast %14 : vector<1x1024xf32> to vector<2x1024xf32>
      %16 = arith.addf %13, %15 : vector<2x1024xf32>
      %cst_13 = arith.constant 0.000000e+00 : f32
      %17 = vector.broadcast %cst_13 : f32 to vector<2x1024xf32>
      %18 = arith.minimumf %16, %17 : vector<2x1024xf32>
      %19 = math.exp %18 : vector<2x1024xf32>
      %cst_14 = arith.constant 1.000000e+00 : f32
      %20 = vector.broadcast %cst_14 : f32 to vector<2x1024xf32>
      %21 = arith.subf %19, %20 : vector<2x1024xf32>
      %cst_15 = arith.constant 1.67326319 : f32
      %22 = vector.broadcast %cst_15 : f32 to vector<2x1024xf32>
      %23 = arith.mulf %22, %21 : vector<2x1024xf32>
      %cst_16 = arith.constant 0.000000e+00 : f32
      %24 = vector.broadcast %cst_16 : f32 to vector<2x1024xf32>
      %25 = arith.cmpf ogt, %16, %24 : vector<2x1024xf32>
      %26 = arith.select %25, %16, %23 : vector<2x1024xi1>, vector<2x1024xf32>
      %cst_17 = arith.constant 1.05070102 : f32
      %27 = vector.broadcast %cst_17 : f32 to vector<2x1024xf32>
      %28 = arith.mulf %27, %26 : vector<2x1024xf32>
      %29 = arith.truncf %28 : vector<2x1024xf32> to vector<2x1024xbf16>
      %c0_18 = arith.constant 0 : index
      %c0_19 = arith.constant 0 : index
      %30 = vector.load %arg5[%c0_18, %c0_19] : memref<1024x512xbf16, #tpu.memory_space<vmem>>, vector<1024x512xbf16>
      %cst_20 = arith.constant dense<0.000000e+00> : vector<2x512xf32>
      %31 = tpu.matmul %29, %30, %cst_20 {dimension_numbers = #tpu.dot_dimension_numbers<[1], [0], [0], [1], [0, 0, 1, 1], [], []>} : vector<2x1024xbf16>, vector<1024x512xbf16>, vector<2x512xf32> -> vector<2x512xf32>
      %c0_21 = arith.constant 0 : index
      %c0_22 = arith.constant 0 : index
      %32 = vector.load %arg6[%c0_21, %c0_22] : memref<1x512xf32, #tpu.memory_space<vmem>>, vector<1x512xf32>
      %33 = vector.broadcast %32 : vector<1x512xf32> to vector<2x512xf32>
      %34 = arith.addf %31, %33 : vector<2x512xf32>
      %cst_23 = arith.constant 0.000000e+00 : f32
      %35 = vector.broadcast %cst_23 : f32 to vector<2x512xf32>
      %36 = arith.minimumf %34, %35 : vector<2x512xf32>
      %37 = math.exp %36 : vector<2x512xf32>
      %cst_24 = arith.constant 1.000000e+00 : f32
      %38 = vector.broadcast %cst_24 : f32 to vector<2x512xf32>
      %39 = arith.subf %37, %38 : vector<2x512xf32>
      %cst_25 = arith.constant 1.67326319 : f32
      %40 = vector.broadcast %cst_25 : f32 to vector<2x512xf32>
      %41 = arith.mulf %40, %39 : vector<2x512xf32>
      %cst_26 = arith.constant 0.000000e+00 : f32
      %42 = vector.broadcast %cst_26 : f32 to vector<2x512xf32>
      %43 = arith.cmpf ogt, %34, %42 : vector<2x512xf32>
      %44 = arith.select %43, %34, %41 : vector<2x512xi1>, vector<2x512xf32>
      %cst_27 = arith.constant 1.05070102 : f32
      %45 = vector.broadcast %cst_27 : f32 to vector<2x512xf32>
      %46 = arith.mulf %45, %44 : vector<2x512xf32>
      %47 = arith.truncf %46 : vector<2x512xf32> to vector<2x512xbf16>
      %c0_28 = arith.constant 0 : index
      %c0_29 = arith.constant 0 : index
      %48 = vector.load %arg7[%c0_28, %c0_29] : memref<512x128xbf16, #tpu.memory_space<vmem>>, vector<512x128xbf16>
      %cst_30 = arith.constant dense<0.000000e+00> : vector<2x128xf32>
      %49 = tpu.matmul %47, %48, %cst_30 {dimension_numbers = #tpu.dot_dimension_numbers<[1], [0], [0], [1], [0, 0, 1, 1], [], []>} : vector<2x512xbf16>, vector<512x128xbf16>, vector<2x128xf32> -> vector<2x128xf32>
      %c0_31 = arith.constant 0 : index
      %c0_32 = arith.constant 0 : index
      %50 = vector.load %arg8[%c0_31, %c0_32] : memref<1x128xf32, #tpu.memory_space<vmem>>, vector<1x128xf32>
      %51 = vector.broadcast %50 : vector<1x128xf32> to vector<2x128xf32>
      %52 = arith.addf %49, %51 : vector<2x128xf32>
      %cst_33 = arith.constant 0.000000e+00 : f32
      %53 = vector.broadcast %cst_33 : f32 to vector<2x128xf32>
      %54 = arith.minimumf %52, %53 : vector<2x128xf32>
      %55 = math.exp %54 : vector<2x128xf32>
      %cst_34 = arith.constant 1.000000e+00 : f32
      %56 = vector.broadcast %cst_34 : f32 to vector<2x128xf32>
      %57 = arith.subf %55, %56 : vector<2x128xf32>
      %cst_35 = arith.constant 1.67326319 : f32
      %58 = vector.broadcast %cst_35 : f32 to vector<2x128xf32>
      %59 = arith.mulf %58, %57 : vector<2x128xf32>
      %cst_36 = arith.constant 0.000000e+00 : f32
      %60 = vector.broadcast %cst_36 : f32 to vector<2x128xf32>
      %61 = arith.cmpf ogt, %52, %60 : vector<2x128xf32>
      %62 = arith.select %61, %52, %59 : vector<2x128xi1>, vector<2x128xf32>
      %cst_37 = arith.constant 1.05070102 : f32
      %63 = vector.broadcast %cst_37 : f32 to vector<2x128xf32>
      %64 = arith.mulf %63, %62 : vector<2x128xf32>
      %65 = arith.truncf %64 : vector<2x128xf32> to vector<2x128xbf16>
      %c0_38 = arith.constant 0 : index
      %c0_39 = arith.constant 0 : index
      %66 = vector.load %arg9[%c0_38, %c0_39] : memref<128x64xbf16, #tpu.memory_space<vmem>>, vector<128x64xbf16>
      %cst_40 = arith.constant dense<0.000000e+00> : vector<2x64xf32>
      %67 = tpu.matmul %65, %66, %cst_40 {dimension_numbers = #tpu.dot_dimension_numbers<[1], [0], [0], [1], [0, 0, 1, 1], [], []>} : vector<2x128xbf16>, vector<128x64xbf16>, vector<2x64xf32> -> vector<2x64xf32>
      %c0_41 = arith.constant 0 : index
      %c0_42 = arith.constant 0 : index
      %68 = vector.load %arg10[%c0_41, %c0_42] : memref<1x64xf32, #tpu.memory_space<vmem>>, vector<1x64xf32>
      %69 = vector.broadcast %68 : vector<1x64xf32> to vector<2x64xf32>
      %70 = arith.addf %67, %69 : vector<2x64xf32>
      %71 = arith.truncf %64 : vector<2x128xf32> to vector<2x128xbf16>
      %c0_43 = arith.constant 0 : index
      %c0_44 = arith.constant 0 : index
      %72 = vector.load %arg11[%c0_43, %c0_44] : memref<128x64xbf16, #tpu.memory_space<vmem>>, vector<128x64xbf16>
      %cst_45 = arith.constant dense<0.000000e+00> : vector<2x64xf32>
      %73 = tpu.matmul %71, %72, %cst_45 {dimension_numbers = #tpu.dot_dimension_numbers<[1], [0], [0], [1], [0, 0, 1, 1], [], []>} : vector<2x128xbf16>, vector<128x64xbf16>, vector<2x64xf32> -> vector<2x64xf32>
      %c0_46 = arith.constant 0 : index
      %c0_47 = arith.constant 0 : index
      %74 = vector.load %arg12[%c0_46, %c0_47] : memref<1x64xf32, #tpu.memory_space<vmem>>, vector<1x64xf32>
      %75 = vector.broadcast %74 : vector<1x64xf32> to vector<2x64xf32>
      %76 = arith.addf %73, %75 : vector<2x64xf32>
      %c0_48 = arith.constant 0 : index
      %c0_49 = arith.constant 0 : index
      %77 = vector.load %arg2[%c0_48, %c0_49] : memref<2x64xf32, #tpu.memory_space<vmem>>, vector<2x64xf32>
      %cst_50 = arith.constant 5.000000e-01 : f32
      %78 = vector.broadcast %cst_50 : f32 to vector<2x64xf32>
      %79 = arith.mulf %78, %76 : vector<2x64xf32>
      %80 = math.exp %79 : vector<2x64xf32>
      %81 = arith.mulf %77, %80 : vector<2x64xf32>
      %82 = arith.addf %70, %81 : vector<2x64xf32>
      %83 = arith.truncf %82 : vector<2x64xf32> to vector<2x64xbf16>
      %c0_51 = arith.constant 0 : index
      %c0_52 = arith.constant 0 : index
      %84 = vector.load %arg13[%c0_51, %c0_52] : memref<64x128xbf16, #tpu.memory_space<vmem>>, vector<64x128xbf16>
      %cst_53 = arith.constant dense<0.000000e+00> : vector<2x128xf32>
      %85 = tpu.matmul %83, %84, %cst_53 {dimension_numbers = #tpu.dot_dimension_numbers<[1], [0], [0], [1], [0, 0, 1, 1], [], []>} : vector<2x64xbf16>, vector<64x128xbf16>, vector<2x128xf32> -> vector<2x128xf32>
      %c0_54 = arith.constant 0 : index
      %c0_55 = arith.constant 0 : index
      %86 = vector.load %arg14[%c0_54, %c0_55] : memref<1x128xf32, #tpu.memory_space<vmem>>, vector<1x128xf32>
      %87 = vector.broadcast %86 : vector<1x128xf32> to vector<2x128xf32>
      %88 = arith.addf %85, %87 : vector<2x128xf32>
      %cst_56 = arith.constant 0.000000e+00 : f32
      %89 = vector.broadcast %cst_56 : f32 to vector<2x128xf32>
      %90 = arith.minimumf %88, %89 : vector<2x128xf32>
      %91 = math.exp %90 : vector<2x128xf32>
      %cst_57 = arith.constant 1.000000e+00 : f32
      %92 = vector.broadcast %cst_57 : f32 to vector<2x128xf32>
      %93 = arith.subf %91, %92 : vector<2x128xf32>
      %cst_58 = arith.constant 1.67326319 : f32
      %94 = vector.broadcast %cst_58 : f32 to vector<2x128xf32>
      %95 = arith.mulf %94, %93 : vector<2x128xf32>
      %cst_59 = arith.constant 0.000000e+00 : f32
      %96 = vector.broadcast %cst_59 : f32 to vector<2x128xf32>
      %97 = arith.cmpf ogt, %88, %96 : vector<2x128xf32>
      %98 = arith.select %97, %88, %95 : vector<2x128xi1>, vector<2x128xf32>
      %cst_60 = arith.constant 1.05070102 : f32
      %99 = vector.broadcast %cst_60 : f32 to vector<2x128xf32>
      %100 = arith.mulf %99, %98 : vector<2x128xf32>
      %101 = arith.truncf %100 : vector<2x128xf32> to vector<2x128xbf16>
      %c0_61 = arith.constant 0 : index
      %c0_62 = arith.constant 0 : index
      %102 = vector.load %arg15[%c0_61, %c0_62] : memref<128x512xbf16, #tpu.memory_space<vmem>>, vector<128x512xbf16>
      %cst_63 = arith.constant dense<0.000000e+00> : vector<2x512xf32>
      %103 = tpu.matmul %101, %102, %cst_63 {dimension_numbers = #tpu.dot_dimension_numbers<[1], [0], [0], [1], [0, 0, 1, 1], [], []>} : vector<2x128xbf16>, vector<128x512xbf16>, vector<2x512xf32> -> vector<2x512xf32>
      %c0_64 = arith.constant 0 : index
      %c0_65 = arith.constant 0 : index
      %104 = vector.load %arg16[%c0_64, %c0_65] : memref<1x512xf32, #tpu.memory_space<vmem>>, vector<1x512xf32>
      %105 = vector.broadcast %104 : vector<1x512xf32> to vector<2x512xf32>
      %106 = arith.addf %103, %105 : vector<2x512xf32>
      %cst_66 = arith.constant 0.000000e+00 : f32
      %107 = vector.broadcast %cst_66 : f32 to vector<2x512xf32>
      %108 = arith.minimumf %106, %107 : vector<2x512xf32>
      %109 = math.exp %108 : vector<2x512xf32>
      %cst_67 = arith.constant 1.000000e+00 : f32
      %110 = vector.broadcast %cst_67 : f32 to vector<2x512xf32>
      %111 = arith.subf %109, %110 : vector<2x512xf32>
      %cst_68 = arith.constant 1.67326319 : f32
      %112 = vector.broadcast %cst_68 : f32 to vector<2x512xf32>
      %113 = arith.mulf %112, %111 : vector<2x512xf32>
      %cst_69 = arith.constant 0.000000e+00 : f32
      %114 = vector.broadcast %cst_69 : f32 to vector<2x512xf32>
      %115 = arith.cmpf ogt, %106, %114 : vector<2x512xf32>
      %116 = arith.select %115, %106, %113 : vector<2x512xi1>, vector<2x512xf32>
      %cst_70 = arith.constant 1.05070102 : f32
      %117 = vector.broadcast %cst_70 : f32 to vector<2x512xf32>
      %118 = arith.mulf %117, %116 : vector<2x512xf32>
      %119 = arith.truncf %118 : vector<2x512xf32> to vector<2x512xbf16>
      %c0_71 = arith.constant 0 : index
      %c0_72 = arith.constant 0 : index
      %120 = vector.load %arg17[%c0_71, %c0_72] : memref<512x1024xbf16, #tpu.memory_space<vmem>>, vector<512x1024xbf16>
      %cst_73 = arith.constant dense<0.000000e+00> : vector<2x1024xf32>
      %121 = tpu.matmul %119, %120, %cst_73 {dimension_numbers = #tpu.dot_dimension_numbers<[1], [0], [0], [1], [0, 0, 1, 1], [], []>} : vector<2x512xbf16>, vector<512x1024xbf16>, vector<2x1024xf32> -> vector<2x1024xf32>
      %c0_74 = arith.constant 0 : index
      %c0_75 = arith.constant 0 : index
      %122 = vector.load %arg18[%c0_74, %c0_75] : memref<1x1024xf32, #tpu.memory_space<vmem>>, vector<1x1024xf32>
      %123 = vector.broadcast %122 : vector<1x1024xf32> to vector<2x1024xf32>
      %124 = arith.addf %121, %123 : vector<2x1024xf32>
      %cst_76 = arith.constant 0.000000e+00 : f32
      %125 = vector.broadcast %cst_76 : f32 to vector<2x1024xf32>
      %126 = arith.minimumf %124, %125 : vector<2x1024xf32>
      %127 = math.exp %126 : vector<2x1024xf32>
      %cst_77 = arith.constant 1.000000e+00 : f32
      %128 = vector.broadcast %cst_77 : f32 to vector<2x1024xf32>
      %129 = arith.subf %127, %128 : vector<2x1024xf32>
      %cst_78 = arith.constant 1.67326319 : f32
      %130 = vector.broadcast %cst_78 : f32 to vector<2x1024xf32>
      %131 = arith.mulf %130, %129 : vector<2x1024xf32>
      %cst_79 = arith.constant 0.000000e+00 : f32
      %132 = vector.broadcast %cst_79 : f32 to vector<2x1024xf32>
      %133 = arith.cmpf ogt, %124, %132 : vector<2x1024xf32>
      %134 = arith.select %133, %124, %131 : vector<2x1024xi1>, vector<2x1024xf32>
      %cst_80 = arith.constant 1.05070102 : f32
      %135 = vector.broadcast %cst_80 : f32 to vector<2x1024xf32>
      %136 = arith.mulf %135, %134 : vector<2x1024xf32>
      %c0_81 = arith.constant 0 : index
      %c0_82 = arith.constant 0 : index
      %137 = vector.load %arg19[%c0_81, %c0_82] : memref<2x192xf32, #tpu.memory_space<vmem>>, vector<2x64xf32>
      tpu.vector_store %arg19[%c0_81, %c0_82], %70 {strides = array<i32>} : memref<2x192xf32, #tpu.memory_space<vmem>>, vector<2x64xf32>,
      %c0_83 = arith.constant 0 : index
      %c64 = arith.constant 64 : index
      %138 = vector.load %arg19[%c0_83, %c64] : memref<2x192xf32, #tpu.memory_space<vmem>>, vector<2x64xf32>
      tpu.vector_store %arg19[%c0_83, %c64], %76 {strides = array<i32>} : memref<2x192xf32, #tpu.memory_space<vmem>>, vector<2x64xf32>,
      %c0_84 = arith.constant 0 : index
      %c128 = arith.constant 128 : index
      %139 = vector.load %arg19[%c0_84, %c128] : memref<2x192xf32, #tpu.memory_space<vmem>>, vector<2x64xf32>
      tpu.vector_store %arg19[%c0_84, %c128], %82 {strides = array<i32>} : memref<2x192xf32, #tpu.memory_space<vmem>>, vector<2x64xf32>,
      %140 = arith.truncf %136 : vector<2x1024xf32> to vector<2x1024xbf16>
      %c0_85 = arith.constant 0 : index
      %c0_86 = arith.constant 0 : index
      %141 = vector.load %arg20[%c0_85, %c0_86] : memref<2x1024xbf16, #tpu.memory_space<vmem>>, vector<2x1024xbf16>
      tpu.vector_store %arg20[%c0_85, %c0_86], %140 {strides = array<i32>} : memref<2x1024xbf16, #tpu.memory_space<vmem>>, vector<2x1024xbf16>,
    } else {
    }
    return
  }
  func.func @transform_0(%arg0: i32) -> (i32, i32) {
    %c0_i32 = arith.constant 0 : i32
    %c0_i32_0 = arith.constant 0 : i32
    return %c0_i32, %arg0 : i32, i32
  }
  func.func @transform_1(%arg0: i32) -> (i32, i32) {
    %c0_i32 = arith.constant 0 : i32
    %c0_i32_0 = arith.constant 0 : i32
    %c0_i32_1 = arith.constant 0 : i32
    return %c0_i32, %c0_i32_0 : i32, i32
  }
  func.func @transform_2(%arg0: i32) -> (i32, i32) {
    %c0_i32 = arith.constant 0 : i32
    %c0_i32_0 = arith.constant 0 : i32
    return %arg0, %c0_i32 : i32, i32
  }
  func.func @transform_3(%arg0: i32) -> (i32, i32) {
    %c0_i32 = arith.constant 0 : i32
    %c0_i32_0 = arith.constant 0 : i32
    %c0_i32_1 = arith.constant 0 : i32
    return %c0_i32, %c0_i32_0 : i32, i32
  }
  func.func @transform_4(%arg0: i32) -> (i32, i32) {
    %c0_i32 = arith.constant 0 : i32
    %c0_i32_0 = arith.constant 0 : i32
    %c0_i32_1 = arith.constant 0 : i32
    return %c0_i32, %c0_i32_0 : i32, i32
  }
  func.func @transform_5(%arg0: i32) -> (i32, i32) {
    %c0_i32 = arith.constant 0 : i32
    %c0_i32_0 = arith.constant 0 : i32
    %c0_i32_1 = arith.constant 0 : i32
    return %c0_i32, %c0_i32_0 : i32, i32
  }
  func.func @transform_6(%arg0: i32) -> (i32, i32) {
    %c0_i32 = arith.constant 0 : i32
    %c0_i32_0 = arith.constant 0 : i32
    %c0_i32_1 = arith.constant 0 : i32
    return %c0_i32, %c0_i32_0 : i32, i32
  }
  func.func @transform_7(%arg0: i32) -> (i32, i32) {
    %c0_i32 = arith.constant 0 : i32
    %c0_i32_0 = arith.constant 0 : i32
    %c0_i32_1 = arith.constant 0 : i32
    return %c0_i32, %c0_i32_0 : i32, i32
  }
  func.func @transform_8(%arg0: i32) -> (i32, i32) {
    %c0_i32 = arith.constant 0 : i32
    %c0_i32_0 = arith.constant 0 : i32
    %c0_i32_1 = arith.constant 0 : i32
    return %c0_i32, %c0_i32_0 : i32, i32
  }
  func.func @transform_9(%arg0: i32) -> (i32, i32) {
    %c0_i32 = arith.constant 0 : i32
    %c0_i32_0 = arith.constant 0 : i32
    %c0_i32_1 = arith.constant 0 : i32
    return %c0_i32, %c0_i32_0 : i32, i32
  }
  func.func @transform_10(%arg0: i32) -> (i32, i32) {
    %c0_i32 = arith.constant 0 : i32
    %c0_i32_0 = arith.constant 0 : i32
    %c0_i32_1 = arith.constant 0 : i32
    return %c0_i32, %c0_i32_0 : i32, i32
  }
  func.func @transform_11(%arg0: i32) -> (i32, i32) {
    %c0_i32 = arith.constant 0 : i32
    %c0_i32_0 = arith.constant 0 : i32
    %c0_i32_1 = arith.constant 0 : i32
    return %c0_i32, %c0_i32_0 : i32, i32
  }
  func.func @transform_12(%arg0: i32) -> (i32, i32) {
    %c0_i32 = arith.constant 0 : i32
    %c0_i32_0 = arith.constant 0 : i32
    %c0_i32_1 = arith.constant 0 : i32
    return %c0_i32, %c0_i32_0 : i32, i32
  }
  func.func @transform_13(%arg0: i32) -> (i32, i32) {
    %c0_i32 = arith.constant 0 : i32
    %c0_i32_0 = arith.constant 0 : i32
    %c0_i32_1 = arith.constant 0 : i32
    return %c0_i32, %c0_i32_0 : i32, i32
  }
  func.func @transform_14(%arg0: i32) -> (i32, i32) {
    %c0_i32 = arith.constant 0 : i32
    %c0_i32_0 = arith.constant 0 : i32
    %c0_i32_1 = arith.constant 0 : i32
    return %c0_i32, %c0_i32_0 : i32, i32
  }
  func.func @transform_15(%arg0: i32) -> (i32, i32) {
    %c0_i32 = arith.constant 0 : i32
    %c0_i32_0 = arith.constant 0 : i32
    %c0_i32_1 = arith.constant 0 : i32
    return %c0_i32, %c0_i32_0 : i32, i32
  }
  func.func @transform_16(%arg0: i32) -> (i32, i32) {
    %c0_i32 = arith.constant 0 : i32
    %c0_i32_0 = arith.constant 0 : i32
    %c0_i32_1 = arith.constant 0 : i32
    return %c0_i32, %c0_i32_0 : i32, i32
  }
  func.func @transform_17(%arg0: i32) -> (i32, i32) {
    %c0_i32 = arith.constant 0 : i32
    %c0_i32_0 = arith.constant 0 : i32
    %c0_i32_1 = arith.constant 0 : i32
    return %c0_i32, %c0_i32_0 : i32, i32
  }
  func.func @transform_18(%arg0: i32) -> (i32, i32) {
    %c0_i32 = arith.constant 0 : i32
    %c0_i32_0 = arith.constant 0 : i32
    %c0_i32_1 = arith.constant 0 : i32
    return %c0_i32, %c0_i32_0 : i32, i32
  }
  func.func @transform_19(%arg0: i32) -> (i32, i32) {
    %c0_i32 = arith.constant 0 : i32
    %c0_i32_0 = arith.constant 0 : i32
    %c0_i32_1 = arith.constant 0 : i32
    return %c0_i32, %c0_i32_0 : i32, i32
  }
}

module attributes {stable_mosaic.version = 11 : i64} {
  func.func @_decoder_head_kernel(%arg0: i32, %arg1: memref<2x1024xbf16, #tpu.memory_space<vmem>>, %arg2: memref<1024x384xbf16, #tpu.memory_space<vmem>>, %arg3: memref<1x384xf32, #tpu.memory_space<vmem>>, %arg4: memref<2x384xf32, #tpu.memory_space<vmem>>) attributes {dimension_semantics = [#tpu.dimension_semantics<parallel>], iteration_bounds = array<i64: 2>, scalar_prefetch = 0 : i64, scratch_operands = 0 : i64, tpu.core_type = #tpu.core_type<tc>, window_params = [{pipeline_mode = #tpu.pipeline_mode<synchronous>, transform_indices = @transform_0, window_bounds = array<i64: 2, 1024>}, {transform_indices = @transform_1, window_bounds = array<i64: 1024, 384>}, {transform_indices = @transform_2, window_bounds = array<i64: 1, 384>}, {transform_indices = @transform_3, window_bounds = array<i64: 2, 384>}]} {
    %c0 = arith.constant 0 : index
    %c0_0 = arith.constant 0 : index
    %0 = vector.load %arg1[%c0, %c0_0] : memref<2x1024xbf16, #tpu.memory_space<vmem>>, vector<2x1024xbf16>
    %c0_1 = arith.constant 0 : index
    %c0_2 = arith.constant 0 : index
    %1 = vector.load %arg2[%c0_1, %c0_2] : memref<1024x384xbf16, #tpu.memory_space<vmem>>, vector<1024x384xbf16>
    %cst = arith.constant dense<0.000000e+00> : vector<2x384xf32>
    %2 = tpu.matmul %0, %1, %cst {dimension_numbers = #tpu.dot_dimension_numbers<[1], [0], [0], [1], [0, 0, 1, 1], [], []>} : vector<2x1024xbf16>, vector<1024x384xbf16>, vector<2x384xf32> -> vector<2x384xf32>
    %c0_3 = arith.constant 0 : index
    %c0_4 = arith.constant 0 : index
    %3 = vector.load %arg3[%c0_3, %c0_4] : memref<1x384xf32, #tpu.memory_space<vmem>>, vector<1x384xf32>
    %4 = vector.broadcast %3 : vector<1x384xf32> to vector<2x384xf32>
    %5 = arith.addf %2, %4 : vector<2x384xf32>
    %cst_5 = arith.constant 0.000000e+00 : f32
    %6 = vector.broadcast %cst_5 : f32 to vector<2x384xf32>
    %7 = arith.subf %6, %5 : vector<2x384xf32>
    %8 = math.exp %7 : vector<2x384xf32>
    %cst_6 = arith.constant 1.000000e+00 : f32
    %9 = vector.broadcast %cst_6 : f32 to vector<2x384xf32>
    %10 = arith.addf %9, %8 : vector<2x384xf32>
    %11 = tpu.reciprocal %10 {approx = true} : vector<2x384xf32> -> vector<2x384xf32>
    %c0_7 = arith.constant 0 : index
    %c0_8 = arith.constant 0 : index
    %12 = vector.load %arg4[%c0_7, %c0_8] : memref<2x384xf32, #tpu.memory_space<vmem>>, vector<2x384xf32>
    tpu.vector_store %arg4[%c0_7, %c0_8], %11 {strides = array<i32>} : memref<2x384xf32, #tpu.memory_space<vmem>>, vector<2x384xf32>,
    return
  }
  func.func @transform_0(%arg0: i32) -> (i32, i32) {
    %c0_i32 = arith.constant 0 : i32
    %c0_i32_0 = arith.constant 0 : i32
    %c0_i32_1 = arith.constant 0 : i32
    return %c0_i32, %c0_i32_0 : i32, i32
  }
  func.func @transform_1(%arg0: i32) -> (i32, i32) {
    %c0_i32 = arith.constant 0 : i32
    %c0_i32_0 = arith.constant 0 : i32
    return %c0_i32, %arg0 : i32, i32
  }
  func.func @transform_2(%arg0: i32) -> (i32, i32) {
    %c0_i32 = arith.constant 0 : i32
    %c0_i32_0 = arith.constant 0 : i32
    return %c0_i32, %arg0 : i32, i32
  }
  func.func @transform_3(%arg0: i32) -> (i32, i32) {
    %c0_i32 = arith.constant 0 : i32
    %c0_i32_0 = arith.constant 0 : i32
    return %c0_i32, %arg0 : i32, i32
  }
}

</mosaic_0001>

<bundles_post_ra>
// kernel: voxel_beta_vae_mlp_forward.3
= control target key start
LH: loop header
LB: loop body
LE: loop exit
PB: predicated region body
PF: predicated region fallthrough
CT: control target
= control target key end

     0   :  { %8 = vsyncpa [#allocation3], 0  ;;  %s3680_s0 = inlined_call_operand.vmem [shape: bf16[2,1024], index: 0, kind: input, shape index: {}]   ;;  %s3681_s1 = inlined_call_operand.hbm [shape: bf16[1024,768], index: 1, kind: input, shape index: {}]   ;;  %s3682_s2 = inlined_call_operand.hbm [shape: f32[1,768], index: 2, kind: input, shape index: {}]   ;;  %s3683_s3 = inlined_call_operand.vmem [shape: f32[2,768], index: 3, kind: output, shape index: {}]  }
   0x1   :  { %10 = vsyncpa [#allocation3 + $0x1], 0 }
   0x2   :  { %11 = vsyncpa [#allocation5], 0 }
   0x3   :  { %13 = vsyncpa [#allocation5 + $0x1], 0  ;;  %s3130_s12 = smov 0   ;;  %s3132_s13 = smov 0  }
   0x4   :  { %s3134_s14 = smov 0   ;;  %s3136_s15 = smov 0  }
   0x5 LB: > { %s1970_s16 = sadd.s32 4294967295, %s3105_s15   ;;  %s3150_s17 = sadd.s32 1, %s3105_s15   ;;  %s3105_s15 = sphi %s3136_s15, %s3690_s15   ;;  %s3101_s14 = sphi %s3134_s14, %s3689_s14   ;;  %s3097_s13 = sphi %s3132_s13, %s3688_s13   ;;  %s3093_s12 = sphi %s3130_s12, %s3687_s12  }
   0x6   : > { %s44_s18 = ssub.s32 %s3105_s15, %s3150_s17  ;;  %s47_s19 = sadd.s32 1, %s3101_s14 }
   0x7   : > { %p45_p0 = scmp.eq.s32.totalorder %s44_s18, 0  ;;  %p54_p1 = scmp.ne.s32.totalorder %s3101_s14, %s3097_s13 }
   0x8   : > { %p55_p2 = scmp.eq.s32.totalorder %s3105_s15, 0  ;;  %p60_p3 = scmp.ne.s32.totalorder %s3097_s13, %s3093_s12 }
   0x9   : > { %s3160_s20 = scalar_select %p45_p0, %s3101_s14, %s47_s19  }
   0xa   : > { %p56_p4 = por %p55_p2, %p54_p1  ;;  %p61_p5 = scmp.eq.s32.totalorder %s1970_s16, 0 }
   0xb   : > { %p2955_p6 = scmp.lt.s32.totalorder %s3105_s15, 2  ;;  %s3170_s22 = sand.u32 1, %s3101_s14  }
   0xc   : > { %p3165_p7 = por %p61_p5, %p60_p3  ;;  %s2940_s23 = smul.u32 1536, %s3170_s22 }
   0xd   : > { %s2747_s24 = smul.u32 12, %s3105_s15  ;;  %p3174_p8 = pnand %p2955_p6, %p56_p4 }
   0xe   : > { %s143_s29 = scalar_lea.vmem [#allocation2], %s2940_s23  ;;  %s140_s5 = scalar_lea.sflag [#allocation3], %s3170_s22 }
   0xf   : > { %s148_s28 = scalar_lea.hbm %s3681_s1, %s2747_s24  ;;  %s151_s30 = sshll.u32 %s143_s29, 4  ;;  %s152_s30 = int_to_ptr.vmem [resolvable:$true] %s151_s30 }
  0x10   : > { %s149_s4 = sshll.u32 %s148_s28, 4  ;;  %p3011_p10 = pneg %p3174_p8  ;;  %s150_s4 = int_to_ptr.hbm [resolvable:$true] %s149_s4 }
  0x11   : > { %s3007_s6 = sshra.s32 %s150_s4, 4  ;;  %s3014_s10 = scalar_lea.hbm %s3681_s1, 3072  ;;  %s3008_s6 = int_to_ptr.hbm [resolvable:$true] %s3007_s6 }
  0x12   : > { %s3009_s7 = scalar_lea.hbm %s3008_s6, 1536  ;;  %p3015_p13 = scmp.lt.s32.totalorder %s3008_s6, %s3681_s1 }
  0x13   : > { %p3010_p9 = scmp.ne.s32.totalorder %s3008_s6, %s3009_s7  ;;  %p3016_p0 = scmp.lt.s32.totalorder %s3014_s10, %s3009_s7 }
  0x15   : > { %p3012_p11 = pnand %p3011_p10, %p3010_p9  ;;  %p3017_p1 = por %p3016_p0, %p3015_p13 }
  0x17   : > { %p3013_p12 = pneg %p3012_p11 }
  0x19   : > { %p3018_p2 = pnand %p3017_p1, %p3013_p12 }
  0x1b   : > { %3021 = shalt.err (!%p3018_p2)
}
  0x1c   : > { %s3107_s18 = smov 384   ;;  %s3108_s19 = smov 192  }
  0x1d   : > { %s3109_s23 = smov 12   ;;  %p1975_p3 = scmp.ge.s32.totalorder %s3105_s15, 1 }
  0x1e   : > { %2951 = dma.hbm_to_vmem [thread:$0]  (!%p3174_p8), %s150_s4, 24576, %s152_s30, %s140_s5, %s3107_s18, %s3108_s19, %s3109_s23  }
  0x1f   : > { %p178_p4 = scmp.lt.s32.totalorder %s3105_s15, 3  ;;  %s2941_s24 = smul.u32 3, %s3170_s22 }
  0x20   : > { %s166_s27 = smul.u32 3, %s3105_s15  ;;  %s162_s10 = scalar_lea.sflag [#allocation5], %s3170_s22 }
  0x21   : > { %p3198_p5 = pnand %p1975_p3, %p178_p4  ;;  %s165_s7 = scalar_lea.vmem [#allocation4], %s2941_s24 }
  0x22   : > { %s169_s6 = scalar_lea.hbm %s3682_s2, %s166_s27  ;;  %s173_s8 = sshll.u32 %s165_s7, 4  ;;  %s174_s8 = int_to_ptr.vmem [resolvable:$true] %s173_s8 }
  0x23   : > { %s171_s9 = sshll.u32 %s169_s6, 4  ;;  %s3044_s12 = scalar_lea.hbm %s3682_s2, 6  ;;  %s172_s9 = int_to_ptr.hbm [resolvable:$true] %s171_s9 }
  0x24   : > { %s3037_s30 = sshra.s32 %s172_s9, 4  ;;  %s3038_s30 = int_to_ptr.hbm [resolvable:$true] %s3037_s30 }
  0x25   : > { %s3039_s4 = scalar_lea.hbm %s3038_s30, 3  ;;  %p3045_p12 = scmp.lt.s32.totalorder %s3038_s30, %s3682_s2 }
  0x26   : > { %p3040_p6 = scmp.ne.s32.totalorder %s3038_s30, %s3039_s4  ;;  %p3046_p13 = scmp.lt.s32.totalorder %s3044_s12, %s3039_s4 }
  0x28   : > { %p3042_p9 = pnand %p3040_p6, %p3011_p10  ;;  %p3047_p0 = por %p3046_p13, %p3045_p12 }
  0x2a   : > { %p3043_p11 = pneg %p3042_p9 }
  0x2c   : > { %p3048_p1 = pnand %p3047_p0, %p3043_p11 }
  0x2e   : > { %3051 = shalt.err (!%p3048_p1)
}
  0x2f   : > { %2954 = dma.hbm_to_vmem [thread:$0]  (!%p3174_p8), %s172_s9, 48, %s174_s8, %s162_s10  }
  0x30   : > { %182 = sbr.rel (%p3198_p5) target bundleno = 414 (0x19e), region = 32  ;;  %s184_s22 = sand.u32 (!%p3198_p5), 1, %s3097_s13  }
  0x31   : > { %s2942_s23 = smul.u32 (!%p3198_p5), 1536, %s184_s22  ;;  %s185_s24 = scalar_lea.sflag (!%p3198_p5), [#allocation3], %s184_s22 }
  0x33   : > { %s3221_s27 = scalar_lea.vmem (!%p3198_p5), [#allocation2], %s2942_s23 }
  0x35   : > { %3084 = dma.done.wait (%p3165_p7), %s185_s24, 24576  }
  0x36   : > { %3086 = vsyncadd (%p3165_p7), %s185_s24, 4294942720  ;;  %s2943_s28 = smul.u32 3, %s184_s22  ;;  %s195_s29 = scalar_lea.sflag [#allocation5], %s184_s22 }
  0x38   : > { %s3227_s25 = scalar_lea.vmem [#allocation4], %s2943_s28 }
  0x39   : > { %3088 = dma.done.wait (%p3165_p7), %s195_s29, 48  }
  0x3a   : > { %3090 = vsyncadd (%p3165_p7), %s195_s29, 4294967248  ;;  %v2063_v0 = vld [vmem:[%s3221_s27 + $0xa8] sm:$0xf]  ;;  %v2770_v1 = vld [vmem:[%s3221_s27 + $0xb0] sm:$0xf0]  ;;  %vm1874_vm0 = vcmask 1041408  }
  0x3b   : > { %v2159_v2 = vld [vmem:[%s3221_s27 + $0x168] sm:$0xf]  ;;  %v2064_v3 = vor.u32 %v2770_v1, %v2063_v0  ;;  %v2794_v4 = vld [vmem:[%s3221_s27 + $0x170] sm:$0xf0]  ;;  %v2051_v11 = vld [vmem:[%s3221_s27 + $0x90] sm:$0xf] }
  0x3c   : > { %v2255_v5 = vld [vmem:[%s3221_s27 + $0x228] sm:$0xf]  ;;  %v2818_v6 = vld [vmem:[%s3221_s27 + $0x230] sm:$0xf0]  ;;  %v2160_v7 = vor.u32 %v2794_v4, %v2159_v2  ;;  %v2767_v13 = vld [vmem:[%s3221_s27 + $0x98] sm:$0xf0] }
  0x3d   : > { %v2256_v8 = vor.u32 %v2818_v6, %v2255_v5  ;;  %v2351_v9 = vld [vmem:[%s3221_s27 + $0x2e8] sm:$0xf]  ;;  %v2842_v10 = vld [vmem:[%s3221_s27 + $0x2f0] sm:$0xf0]  ;;  %1542 = vmatpush.bf16.msra.mxu0 %v2064_v3  ;;  %v2147_v14 = vld [vmem:[%s3221_s27 + $0x150] sm:$0xf]  ;;  %v2052_v16 = vor.u32 %v2767_v13, %v2051_v11 }
  0x3e   : > { %v2352_v12 = vor.u32 %v2842_v10, %v2351_v9  ;;  %v2791_v15 = vld [vmem:[%s3221_s27 + $0x158] sm:$0xf0]  ;;  %1555 = vmatpush.bf16.msra.mxu1 %v2160_v7  ;;  %v2243_v18 = vld [vmem:[%s3221_s27 + $0x210] sm:$0xf]  ;;  %v2039_v23 = vld [vmem:[%s3221_s27 + $0x78] sm:$0xf] }
  0x3f   : > { %1568 = vmatpush.bf16.msra.mxu2 %v2256_v8  ;;  %v2148_v17 = vor.u32 %v2791_v15, %v2147_v14  ;;  %v2815_v19 = vld [vmem:[%s3221_s27 + $0x218] sm:$0xf0]  ;;  %v2339_v20 = vld [vmem:[%s3221_s27 + $0x2d0] sm:$0xf]  ;;  %v2764_v24 = vld [vmem:[%s3221_s27 + $0x80] sm:$0xf0] }
  0x40   : > { %1581 = vmatpush.bf16.msra.mxu3 %v2352_v12  ;;  %v2244_v21 = vor.u32 %v2815_v19, %v2243_v18  ;;  %v2839_v22 = vld [vmem:[%s3221_s27 + $0x2d8] sm:$0xf0]  ;;  %v2135_v26 = vld [vmem:[%s3221_s27 + $0x138] sm:$0xf]  ;;  %v2788_v27 = vld [vmem:[%s3221_s27 + $0x140] sm:$0xf0]  ;;  %v2040_v29 = vor.u32 %v2764_v24, %v2039_v23 }
  0x41   : > { %v2340_v25 = vor.u32 %v2839_v22, %v2339_v20  ;;  %v2231_v28 = vld [vmem:[%s3221_s27 + $0x1f8] sm:$0xf]  ;;  %1543 = vmatpush.bf16.msra.mxu0 %v2052_v16  ;;  %v2812_v30 = vld [vmem:[%s3221_s27 + $0x200] sm:$0xf0]  ;;  %v2136_v33 = vor.u32 %v2788_v27, %v2135_v26  ;;  %v2027_v35 = vld [vmem:[%s3221_s27 + $0x60] sm:$0xf] }
  0x42   : > { %v2327_v31 = vld [vmem:[%s3221_s27 + $0x2b8] sm:$0xf]  ;;  %v2836_v32 = vld [vmem:[%s3221_s27 + $0x2c0] sm:$0xf0]  ;;  %1556 = vmatpush.bf16.msra.mxu1 %v2148_v17  ;;  %v2232_v34 = vor.u32 %v2812_v30, %v2231_v28  ;;  %v2761_v36 = vld [vmem:[%s3221_s27 + $0x68] sm:$0xf0] }
  0x43   : > { %1569 = vmatpush.bf16.msra.mxu2 %v2244_v21  ;;  %v2123_v37 = vld [vmem:[%s3221_s27 + $0x120] sm:$0xf]  ;;  %v2328_v38 = vor.u32 %v2836_v32, %v2327_v31  ;;  %v2785_v39 = vld [vmem:[%s3221_s27 + $0x128] sm:$0xf0]  ;;  %v2028_v44 = vor.u32 %v2761_v36, %v2027_v35  ;;  %v2015_v47 = vld [vmem:[%s3221_s27 + $0x48] sm:$0xf] }
  0x44   : > { %1582 = vmatpush.bf16.msra.mxu3 %v2340_v25  ;;  %v2219_v40 = vld [vmem:[%s3221_s27 + $0x1e0] sm:$0xf]  ;;  %v2809_v41 = vld [vmem:[%s3221_s27 + $0x1e8] sm:$0xf0]  ;;  %v2124_v45 = vor.u32 %v2785_v39, %v2123_v37  ;;  %v2758_v48 = vld [vmem:[%s3221_s27 + $0x50] sm:$0xf0] }
  0x45   : > { %v2315_v42 = vld [vmem:[%s3221_s27 + $0x2a0] sm:$0xf]  ;;  %v2833_v43 = vld [vmem:[%s3221_s27 + $0x2a8] sm:$0xf0]  ;;  %1544 = vmatpush.bf16.msra.mxu0 %v2040_v29  ;;  %v2220_v46 = vor.u32 %v2809_v41, %v2219_v40  ;;  %v2111_v49 = vld [vmem:[%s3221_s27 + $0x108] sm:$0xf]  ;;  %v2016_v56 = vor.u32 %v2758_v48, %v2015_v47 }
  0x46   : > { %1557 = vmatpush.bf16.msra.mxu1 %v2136_v33  ;;  %v2316_v50 = vor.u32 %v2833_v43, %v2315_v42  ;;  %v2782_v51 = vld [vmem:[%s3221_s27 + $0x110] sm:$0xf0]  ;;  %v2207_v52 = vld [vmem:[%s3221_s27 + $0x1c8] sm:$0xf]  ;;  %v2003_v59 = vld [vmem:[%s3221_s27 + $0x30] sm:$0xf] }
  0x47   : > { %1570 = vmatpush.bf16.msra.mxu2 %v2232_v34  ;;  %v2806_v53 = vld [vmem:[%s3221_s27 + $0x1d0] sm:$0xf0]  ;;  %v2303_v54 = vld [vmem:[%s3221_s27 + $0x288] sm:$0xf]  ;;  %v2112_v57 = vor.u32 %v2782_v51, %v2111_v49  ;;  %v2755_v60 = vld [vmem:[%s3221_s27 + $0x38] sm:$0xf0] }
  0x48   : > { %1583 = vmatpush.bf16.msra.mxu3 %v2328_v38  ;;  %v2830_v55 = vld [vmem:[%s3221_s27 + $0x290] sm:$0xf0]  ;;  %v2208_v58 = vor.u32 %v2806_v53, %v2207_v52  ;;  %v2099_v61 = vld [vmem:[%s3221_s27 + $0xf0] sm:$0xf]  ;;  %v2779_v63 = vld [vmem:[%s3221_s27 + $0xf8] sm:$0xf0]  ;;  %v2004_v4 = vor.u32 %v2755_v60, %v2003_v59 }
  0x49   : > { %1545 = vmatpush.bf16.msra.mxu0 %v2028_v44  ;;  %v2304_v62 = vor.u32 %v2830_v55, %v2303_v54  ;;  %v2195_v0 = vld [vmem:[%s3221_s27 + $0x1b0] sm:$0xf]  ;;  %v2803_v1 = vld [vmem:[%s3221_s27 + $0x1b8] sm:$0xf0]  ;;  %v2100_v5 = vor.u32 %v2779_v63, %v2099_v61  ;;  %v1991_v7 = vld [vmem:[%s3221_s27 + $0x18] sm:$0xf] }
  0x4a   : > { %1558 = vmatpush.bf16.msra.mxu1 %v2124_v45  ;;  %v2291_v2 = vld [vmem:[%s3221_s27 + $0x270] sm:$0xf]  ;;  %v2827_v3 = vld [vmem:[%s3221_s27 + $0x278] sm:$0xf0]  ;;  %v2196_v6 = vor.u32 %v2803_v1, %v2195_v0  ;;  %v2752_v8 = vld [vmem:[%s3221_s27 + $0x20] sm:$0xf0] }
  0x4b   : > { %1571 = vmatpush.bf16.msra.mxu2 %v2220_v46  ;;  %v2087_v9 = vld [vmem:[%s3221_s27 + $0xd8] sm:$0xf]  ;;  %v2292_v10 = vor.u32 %v2827_v3, %v2291_v2  ;;  %v2776_v11 = vld [vmem:[%s3221_s27 + $0xe0] sm:$0xf0]  ;;  %v1992_v16 = vor.u32 %v2752_v8, %v1991_v7  ;;  %v1979_v17 = vld [vmem:[%s3221_s27] sm:$0xf] }
  0x4c   : > { %1584 = vmatpush.bf16.msra.mxu3 %v2316_v50  ;;  %v2183_v12 = vld [vmem:[%s3221_s27 + $0x198] sm:$0xf]  ;;  %v2800_v13 = vld [vmem:[%s3221_s27 + $0x1a0] sm:$0xf0]  ;;  %v2749_v18 = vld [vmem:[%s3221_s27 + $0x8] sm:$0xf0]  ;;  %v2088_v19 = vor.u32 %v2776_v11, %v2087_v9 }
  0x4d   : > { %1546 = vmatpush.bf16.msra.mxu0 %v2016_v56  ;;  %v2279_v14 = vld [vmem:[%s3221_s27 + $0x258] sm:$0xf]  ;;  %v2824_v15 = vld [vmem:[%s3221_s27 + $0x260] sm:$0xf0]  ;;  %v2184_v20 = vor.u32 %v2800_v13, %v2183_v12  ;;  %v2075_v21 = vld [vmem:[%s3221_s27 + $0xc0] sm:$0xf]  ;;  %v1980_v31 = vor.u32 %v2749_v18, %v1979_v17 }
  0x4e   : > { %1559 = vmatpush.bf16.msra.mxu1 %v2112_v57  ;;  %v2773_v22 = vld [vmem:[%s3221_s27 + $0xc8] sm:$0xf0]  ;;  %v2171_v23 = vld [vmem:[%s3221_s27 + $0x180] sm:$0xf]  ;;  %v2280_v24 = vor.u32 %v2824_v15, %v2279_v14  ;;  %v2447_v28 = vld [vmem:[%s3221_s27 + $0x3a8] sm:$0xf] }
  0x4f   : > { %1572 = vmatpush.bf16.msra.mxu2 %v2208_v58  ;;  %v2797_v25 = vld [vmem:[%s3221_s27 + $0x188] sm:$0xf0]  ;;  %v2267_v26 = vld [vmem:[%s3221_s27 + $0x240] sm:$0xf]  ;;  %v2866_v29 = vld [vmem:[%s3221_s27 + $0x3b0] sm:$0xf0]  ;;  %v2076_v35 = vor.u32 %v2773_v22, %v2075_v21 }
  0x50   : > { %1585 = vmatpush.bf16.msra.mxu3 %v2304_v62  ;;  %v2821_v27 = vld [vmem:[%s3221_s27 + $0x248] sm:$0xf0]  ;;  %v2543_v30 = vld [vmem:[%s3221_s27 + $0x468] sm:$0xf]  ;;  %v2890_v32 = vld [vmem:[%s3221_s27 + $0x470] sm:$0xf0]  ;;  %v2172_v36 = vor.u32 %v2797_v25, %v2171_v23  ;;  %v2448_v40 = vor.u32 %v2866_v29, %v2447_v28 }
  0x51   : > { %1547 = vmatpush.bf16.msra.mxu0 %v2004_v4  ;;  %v2639_v33 = vld [vmem:[%s3221_s27 + $0x528] sm:$0xf]  ;;  %v2914_v34 = vld [vmem:[%s3221_s27 + $0x530] sm:$0xf0]  ;;  %v2268_v39 = vor.u32 %v2821_v27, %v2267_v26  ;;  %v2544_v41 = vor.u32 %v2890_v32, %v2543_v30  ;;  %v2435_v43 = vld [vmem:[%s3221_s27 + $0x390] sm:$0xf] }
  0x52   : > { %1560 = vmatpush.bf16.msra.mxu1 %v2100_v5  ;;  %v2735_v37 = vld [vmem:[%s3221_s27 + $0x5e8] sm:$0xf]  ;;  %v2938_v38 = vld [vmem:[%s3221_s27 + $0x5f0] sm:$0xf0]  ;;  %v2640_v42 = vor.u32 %v2914_v34, %v2639_v33  ;;  %v2863_v44 = vld [vmem:[%s3221_s27 + $0x398] sm:$0xf0] }
  0x53   : > { %1573 = vmatpush.bf16.msra.mxu2 %v2196_v6  ;;  %v2531_v45 = vld [vmem:[%s3221_s27 + $0x450] sm:$0xf]  ;;  %v2736_v46 = vor.u32 %v2938_v38, %v2735_v37  ;;  %v2887_v47 = vld [vmem:[%s3221_s27 + $0x458] sm:$0xf0]  ;;  %v2436_v52 = vor.u32 %v2863_v44, %v2435_v43  ;;  %v2423_v55 = vld [vmem:[%s3221_s27 + $0x378] sm:$0xf] }
  0x54   : > { %1586 = vmatpush.bf16.msra.mxu3 %v2292_v10  ;;  %v2627_v48 = vld [vmem:[%s3221_s27 + $0x510] sm:$0xf]  ;;  %v2911_v49 = vld [vmem:[%s3221_s27 + $0x518] sm:$0xf0]  ;;  %v2532_v53 = vor.u32 %v2887_v47, %v2531_v45  ;;  %v2860_v56 = vld [vmem:[%s3221_s27 + $0x380] sm:$0xf0] }
  0x55   : > { %1548 = vmatpush.bf16.msra.mxu0 %v1992_v16  ;;  %v2723_v50 = vld [vmem:[%s3221_s27 + $0x5d0] sm:$0xf]  ;;  %v2935_v51 = vld [vmem:[%s3221_s27 + $0x5d8] sm:$0xf0]  ;;  %v2628_v54 = vor.u32 %v2911_v49, %v2627_v48  ;;  %v2519_v57 = vld [vmem:[%s3221_s27 + $0x438] sm:$0xf]  ;;  %v2424_v0 = vor.u32 %v2860_v56, %v2423_v55 }
  0x56   : > { %1561 = vmatpush.bf16.msra.mxu1 %v2088_v19  ;;  %v2724_v58 = vor.u32 %v2935_v51, %v2723_v50  ;;  %v2884_v59 = vld [vmem:[%s3221_s27 + $0x440] sm:$0xf0]  ;;  %v2615_v60 = vld [vmem:[%s3221_s27 + $0x4f8] sm:$0xf]  ;;  %v2411_v1 = vld [vmem:[%s3221_s27 + $0x360] sm:$0xf] }
  0x57   : > { %1574 = vmatpush.bf16.msra.mxu2 %v2184_v20  ;;  %v2908_v61 = vld [vmem:[%s3221_s27 + $0x500] sm:$0xf0]  ;;  %v2711_v62 = vld [vmem:[%s3221_s27 + $0x5b8] sm:$0xf]  ;;  %v2520_v3 = vor.u32 %v2884_v59, %v2519_v57  ;;  %v2857_v5 = vld [vmem:[%s3221_s27 + $0x368] sm:$0xf0] }
  0x58   : > { %1587 = vmatpush.bf16.msra.mxu3 %v2280_v24  ;;  %v2932_v63 = vld [vmem:[%s3221_s27 + $0x5c0] sm:$0xf0]  ;;  %v235_v2 = vld [vmem:[%s3680_s0] sm:$0xff]  ;;  %v2616_v4 = vor.u32 %v2908_v61, %v2615_v60  ;;  %v2507_v6 = vld [vmem:[%s3221_s27 + $0x420] sm:$0xf]  ;;  %v2412_v13 = vor.u32 %v2857_v5, %v2411_v1  ;;  %s229_s6 = smul.u32 3, %s1970_s16 }
  0x59   : > { %1549 = vmatpush.bf16.msra.mxu0 %v1980_v31  ;;  %501 = vst [vmem:[#allocation1] ss:$9 sm:$0xff] %v235_v2  ;;  %v2712_v7 = vor.u32 %v2932_v63, %v2711_v62  ;;  %v2881_v8 = vld [vmem:[%s3221_s27 + $0x428] sm:$0xf0]  ;;  %v2603_v9 = vld [vmem:[%s3221_s27 + $0x4e0] sm:$0xf] }
  0x5a   : > { %1562 = vmatpush.bf16.msra.mxu1 %v2076_v35  ;;  %v2905_v10 = vld [vmem:[%s3221_s27 + $0x4e8] sm:$0xf0]  ;;  %v2699_v11 = vld [vmem:[%s3221_s27 + $0x5a0] sm:$0xf]  ;;  %v2508_v14 = vor.u32 %v2881_v8, %v2507_v6  ;;  %v2399_v16 = vld [vmem:[%s3221_s27 + $0x348] sm:$0xf] }
  0x5b   : > { %1575 = vmatpush.bf16.msra.mxu2 %v2172_v36  ;;  %v2929_v12 = vld [vmem:[%s3221_s27 + $0x5a8] sm:$0xf0]  ;;  %v2604_v15 = vor.u32 %v2905_v10, %v2603_v9  ;;  %v2854_v17 = vld [vmem:[%s3221_s27 + $0x350] sm:$0xf0]  ;;  %v2495_v18 = vld [vmem:[%s3221_s27 + $0x408] sm:$0xf] }
  0x5c   : > { %1588 = vmatpush.bf16.msra.mxu3 %v2268_v39  ;;  %v2700_v19 = vor.u32 %v2929_v12, %v2699_v11  ;;  %v2878_v20 = vld [vmem:[%s3221_s27 + $0x410] sm:$0xf0]  ;;  %v2591_v21 = vld [vmem:[%s3221_s27 + $0x4c8] sm:$0xf]  ;;  %v2387_v25 = vld [vmem:[%s3221_s27 + $0x330] sm:$0xf]  ;;  %v2400_v26 = vor.u32 %v2854_v17, %v2399_v16 }
  0x5d   : > { %1594 = vmatpush.bf16.msrb.mxu0 %v2448_v40  ;;  %v2902_v22 = vld [vmem:[%s3221_s27 + $0x4d0] sm:$0xf0]  ;;  %v2687_v23 = vld [vmem:[%s3221_s27 + $0x588] sm:$0xf]  ;;  %v2496_v30 = vor.u32 %v2878_v20, %v2495_v18  ;;  %v2851_v32 = vld [vmem:[%s3221_s27 + $0x338] sm:$0xf0] }
  0x5e   : > { %1607 = vmatpush.bf16.msrb.mxu1 %v2544_v41  ;;  %v2926_v24 = vld [vmem:[%s3221_s27 + $0x590] sm:$0xf0]  ;;  %v2592_v31 = vor.u32 %v2902_v22, %v2591_v21  ;;  %v2483_v33 = vld [vmem:[%s3221_s27 + $0x3f0] sm:$0xf]  ;;  %v2875_v36 = vld [vmem:[%s3221_s27 + $0x3f8] sm:$0xf0]  ;;  %v2388_v41 = vor.u32 %v2851_v32, %v2387_v25 }
  0x5f   : > { %1620 = vmatpush.bf16.msrb.mxu2 %v2640_v42  ;;  %v2688_v35 = vor.u32 %v2926_v24, %v2687_v23  ;;  %v2579_v37 = vld [vmem:[%s3221_s27 + $0x4b0] sm:$0xf]  ;;  %v2899_v38 = vld [vmem:[%s3221_s27 + $0x4b8] sm:$0xf0]  ;;  %v2484_v42 = vor.u32 %v2875_v36, %v2483_v33  ;;  %v2375_v44 = vld [vmem:[%s3221_s27 + $0x318] sm:$0xf] }
  0x60   : > { %1633 = vmatpush.bf16.msrb.mxu3 %v2736_v46  ;;  %v3341_v27 = vld [vmem:[#allocation1 + $0x12] sm:$0xff]  ;;  %v3343_v28 = vld [vmem:[#allocation1] sm:$0xff]  ;;  %v3349_v34 = vld [vmem:[#allocation1 + $0x9] sm:$0xff]  ;;  %v2580_v43 = vor.u32 %v2899_v38, %v2579_v37  ;;  %p230_p7 = scmp.lt.s32.totalorder %s229_s6, 5  ;;  %vm1876_vm1 = vcmask 1043456  }
  0x61   : > { %1595 = vmatpush.bf16.msrb.mxu0 %v2436_v52  ;;  %v3345_v29 = vld [vmem:[#allocation1 + $0x1b] sm:$0xff]  ;;  %1576 = vmatmul.bf16.vlgmr.msra.gmra.mxu2 %v3341_v27  ;;  %v2923_v40 = vld [vmem:[%s3221_s27 + $0x578] sm:$0xf0]  ;;  %v2848_v45 = vld [vmem:[%s3221_s27 + $0x320] sm:$0xf0] }
  0x62   : > { %1608 = vmatpush.bf16.msrb.mxu1 %v2532_v53  ;;  %v2675_v39 = vld [vmem:[%s3221_s27 + $0x570] sm:$0xf]  ;;  %1550 = vmatmul.bf16.vlgmr.msra.gmra.mxu0 %v3343_v28  ;;  %v2471_v46 = vld [vmem:[%s3221_s27 + $0x3d8] sm:$0xf]  ;;  %v2872_v48 = vld [vmem:[%s3221_s27 + $0x3e0] sm:$0xf0]  ;;  %v2376_v53 = vor.u32 %v2848_v45, %v2375_v44 }
  0x63   : > { %1621 = vmatpush.bf16.msrb.mxu2 %v2628_v54  ;;  %1589 = vmatmul.bf16.vlgmr.msra.gmra.mxu3 %v3345_v29  ;;  %v2676_v47 = vor.u32 %v2923_v40, %v2675_v39  ;;  %v2567_v49 = vld [vmem:[%s3221_s27 + $0x498] sm:$0xf]  ;;  %v2896_v50 = vld [vmem:[%s3221_s27 + $0x4a0] sm:$0xf0]  ;;  %v2363_v54 = vld [vmem:[%s3221_s27 + $0x300] sm:$0xf]  ;;  %v2472_v56 = vor.u32 %v2872_v48, %v2471_v46 }
  0x64   : > { %1634 = vmatpush.bf16.msrb.mxu3 %v2724_v58  ;;  %1563 = vmatmul.bf16.vlgmr.msra.gmra.mxu1 %v3349_v34  ;;  %v2663_v51 = vld [vmem:[%s3221_s27 + $0x558] sm:$0xf]  ;;  %v2920_v52 = vld [vmem:[%s3221_s27 + $0x560] sm:$0xf0]  ;;  %v2845_v55 = vld [vmem:[%s3221_s27 + $0x308] sm:$0xf0]  ;;  %v2568_v57 = vor.u32 %v2896_v50, %v2567_v49 }
  0x65   : > { %1596 = vmatpush.bf16.msrb.mxu0 %v2424_v0  ;;  %v2459_v58 = vld [vmem:[%s3221_s27 + $0x3c0] sm:$0xf]  ;;  %v2869_v59 = vld [vmem:[%s3221_s27 + $0x3c8] sm:$0xf0]  ;;  %v2664_v61 = vor.u32 %v2920_v52, %v2663_v51  ;;  %v2065_v2 = vld [vmem:[%s3221_s27 + $0xb4] sm:$0xf0] }
  0x66   : > { %1609 = vmatpush.bf16.msrb.mxu1 %v2520_v3  ;;  %v2555_v60 = vld [vmem:[%s3221_s27 + $0x480] sm:$0xf]  ;;  %v2893_v62 = vld [vmem:[%s3221_s27 + $0x488] sm:$0xf0]  ;;  %v2161_v5 = vld [vmem:[%s3221_s27 + $0x174] sm:$0xf0]  ;;  %v2460_v8 = vor.u32 %v2869_v59, %v2459_v58 }
  0x67   : > { %1622 = vmatpush.bf16.msrb.mxu2 %v2616_v4  ;;  %v2651_v63 = vld [vmem:[%s3221_s27 + $0x540] sm:$0xf]  ;;  %v2917_v0 = vld [vmem:[%s3221_s27 + $0x548] sm:$0xf0]  ;;  %v2364_v4 = vor.u32 %v2845_v55, %v2363_v54  ;;  %v2556_v9 = vor.u32 %v2893_v62, %v2555_v60  ;;  %v2353_v11 = vld [vmem:[%s3221_s27 + $0x2f4] sm:$0xf0] }
  0x68   : > { %1635 = vmatpush.bf16.msrb.mxu3 %v2712_v7  ;;  %v2769_v1 = vld [vmem:[%s3221_s27 + $0xac] sm:$0xf]  ;;  %v2257_v7 = vld [vmem:[%s3221_s27 + $0x234] sm:$0xf0]  ;;  %v2652_v12 = vor.u32 %v2917_v0, %v2651_v63  ;;  %v2766_v16 = vld [vmem:[%s3221_s27 + $0x94] sm:$0xf] }
  0x69   : > { %1597 = vmatpush.bf16.msrb.mxu0 %v2412_v13  ;;  %v2793_v3 = vld [vmem:[%s3221_s27 + $0x16c] sm:$0xf]  ;;  %v2068_v13 = vor.u32 %v2769_v1, %v2065_v2  ;;  %v2053_v17 = vld [vmem:[%s3221_s27 + $0x9c] sm:$0xf0]  ;;  %v2790_v18 = vld [vmem:[%s3221_s27 + $0x154] sm:$0xf] }
  0x6a   : > { %1610 = vmatpush.bf16.msrb.mxu1 %v2508_v14  ;;  %v2817_v6 = vld [vmem:[%s3221_s27 + $0x22c] sm:$0xf]  ;;  %v2164_v14 = vor.u32 %v2793_v3, %v2161_v5  ;;  %v2149_v20 = vld [vmem:[%s3221_s27 + $0x15c] sm:$0xf0]  ;;  %v2814_v21 = vld [vmem:[%s3221_s27 + $0x214] sm:$0xf] }
  0x6b   : > { %1623 = vmatpush.bf16.msrb.mxu2 %v2604_v15  ;;  %v2841_v10 = vld [vmem:[%s3221_s27 + $0x2ec] sm:$0xf]  ;;  %v2260_v15 = vor.u32 %v2817_v6, %v2257_v7  ;;  %v2245_v22 = vld [vmem:[%s3221_s27 + $0x21c] sm:$0xf0]  ;;  %v2838_v23 = vld [vmem:[%s3221_s27 + $0x2d4] sm:$0xf]  ;;  %v2152_v33 = vor.u32 %v2790_v18, %v2149_v20 }
  0x6c   : > { %1636 = vmatpush.bf16.msrb.mxu3 %v2700_v19  ;;  %v2356_v19 = vor.u32 %v2841_v10, %v2353_v11  ;;  %v2341_v24 = vld [vmem:[%s3221_s27 + $0x2dc] sm:$0xf0]  ;;  %v3392_v25 = vld [vmem:[#allocation1 + $0x36] sm:$0xff]  ;;  %v3397_v32 = vld [vmem:[#allocation1 + $0x3f] sm:$0xff]  ;;  %s3692_s6 = smov (!%p230_p7, %s229_s6), 5 }
  0x6d   : > { %1598 = vmatpush.bf16.msrb.mxu0 %v2400_v26  ;;  %v2056_v26 = vor.u32 %v2766_v16, %v2053_v17  ;;  %v2041_v36 = vld [vmem:[%s3221_s27 + $0x84] sm:$0xf0]  ;;  %v2787_v37 = vld [vmem:[%s3221_s27 + $0x13c] sm:$0xf]  ;;  %v2344_v39 = vor.u32 %v2838_v23, %v2341_v24  ;;  %v2760_v48 = vld [vmem:[%s3221_s27 + $0x64] sm:$0xf] }
  0x6e   : > { %1611 = vmatpush.bf16.msrb.mxu1 %v2496_v30  ;;  %v2763_v30 = vld [vmem:[%s3221_s27 + $0x7c] sm:$0xf]  ;;  %v3401_v38 = vld [vmem:[#allocation1 + $0x2d] sm:$0xff]  ;;  %v2029_v49 = vld [vmem:[%s3221_s27 + $0x6c] sm:$0xf0]  ;;  %s1976_s7 = sshll.u32 %s3692_s6, 1 }
  0x6f   : > { %1624 = vmatpush.bf16.msrb.mxu2 %v2592_v31  ;;  %v3395_v31 = vld [vmem:[#allocation1 + $0x24] sm:$0xff]  ;;  %v2137_v40 = vld [vmem:[%s3221_s27 + $0x144] sm:$0xf0]  ;;  %v2044_v45 = vor.u32 %v2763_v30, %v2041_v36  ;;  %v2784_v50 = vld [vmem:[%s3221_s27 + $0x124] sm:$0xf]  ;;  %s233_s10 = scalar_lea.vmem %s3683_s3, %s1976_s7 }
  0x70   : > { %1637 = vmatpush.bf16.msrb.mxu3 %v2688_v35  ;;  %v2248_v35 = vor.u32 %v2814_v21, %v2245_v22  ;;  %v2329_v44 = vld [vmem:[%s3221_s27 + $0x2c4] sm:$0xf0]  ;;  %v2140_v46 = vor.u32 %v2787_v37, %v2137_v40  ;;  %v2125_v52 = vld [vmem:[%s3221_s27 + $0x12c] sm:$0xf0]  ;;  %v2832_v55 = vld [vmem:[%s3221_s27 + $0x2a4] sm:$0xf] }
  0x71   : > { %1599 = vmatpush.bf16.msrb.mxu0 %v2388_v41  ;;  %v2811_v41 = vld [vmem:[%s3221_s27 + $0x1fc] sm:$0xf]  ;;  %v2221_v54 = vld [vmem:[%s3221_s27 + $0x1ec] sm:$0xf0]  ;;  %v2128_v58 = vor.u32 %v2784_v50, %v2125_v52  ;;  %v2757_v60 = vld [vmem:[%s3221_s27 + $0x4c] sm:$0xf] }
  0x72   : > { %1612 = vmatpush.bf16.msrb.mxu1 %v2484_v42  ;;  %v2233_v42 = vld [vmem:[%s3221_s27 + $0x204] sm:$0xf0]  ;;  %v2781_v62 = vld [vmem:[%s3221_s27 + $0x10c] sm:$0xf]  ;;  %v2113_v0 = vld [vmem:[%s3221_s27 + $0x114] sm:$0xf0] }
  0x73   : > { %1625 = vmatpush.bf16.msrb.mxu2 %v2580_v43  ;;  %v2835_v43 = vld [vmem:[%s3221_s27 + $0x2bc] sm:$0xf]  ;;  %v2805_v1 = vld [vmem:[%s3221_s27 + $0x1cc] sm:$0xf]  ;;  %v2209_v2 = vld [vmem:[%s3221_s27 + $0x1d4] sm:$0xf0]  ;;  %v2116_v6 = vor.u32 %v2781_v62, %v2113_v0 }
  0x74   : > { %1638 = vmatpush.bf16.msrb.mxu3 %v2676_v47  ;;  %v2236_v47 = vor.u32 %v2811_v41, %v2233_v42  ;;  %v2332_v51 = vor.u32 %v2835_v43, %v2329_v44  ;;  %v2829_v3 = vld [vmem:[%s3221_s27 + $0x28c] sm:$0xf]  ;;  %v2212_v7 = vor.u32 %v2805_v1, %v2209_v2  ;;  %v2778_v10 = vld [vmem:[%s3221_s27 + $0xf4] sm:$0xf]  ;;  %v2293_v16 = vld [vmem:[%s3221_s27 + $0x27c] sm:$0xf0] }
  0x75   : > { %1600 = vmatpush.bf16.msrb.mxu0 %v2376_v53  ;;  %v2808_v53 = vld [vmem:[%s3221_s27 + $0x1e4] sm:$0xf]  ;;  %v2751_v20 = vld [vmem:[%s3221_s27 + $0x1c] sm:$0xf]  ;;  %v1993_v21 = vld [vmem:[%s3221_s27 + $0x24] sm:$0xf0] }
  0x76   : > { %1613 = vmatpush.bf16.msrb.mxu1 %v2472_v56  ;;  %v2317_v56 = vld [vmem:[%s3221_s27 + $0x2ac] sm:$0xf0]  ;;  %v2224_v59 = vor.u32 %v2808_v53, %v2221_v54  ;;  %v2775_v22 = vld [vmem:[%s3221_s27 + $0xdc] sm:$0xf]  ;;  %v2089_v24 = vld [vmem:[%s3221_s27 + $0xe4] sm:$0xf0]  ;;  %v1996_v36 = vor.u32 %v2751_v20, %v1993_v21 }
  0x77   : > { %1626 = vmatpush.bf16.msrb.mxu2 %v2568_v57  ;;  %v2032_v57 = vor.u32 %v2760_v48, %v2029_v49  ;;  %v2320_v63 = vor.u32 %v2832_v55, %v2317_v56  ;;  %v2185_v30 = vld [vmem:[%s3221_s27 + $0x1a4] sm:$0xf0]  ;;  %v2748_v37 = vld [vmem:[%s3221_s27 + $0x4] sm:$0xf]  ;;  %v2092_v40 = vor.u32 %v2775_v22, %v2089_v24  ;;  %v2077_v43 = vld [vmem:[%s3221_s27 + $0xcc] sm:$0xf0] }
  0x78   : > { %1639 = vmatpush.bf16.msrb.mxu3 %v2664_v61  ;;  %v2017_v61 = vld [vmem:[%s3221_s27 + $0x54] sm:$0xf0]  ;;  %v2772_v42 = vld [vmem:[%s3221_s27 + $0xc4] sm:$0xf]  ;;  %v2269_v48 = vld [vmem:[%s3221_s27 + $0x24c] sm:$0xf0] }
  0x79   : > { %1601 = vmatpush.bf16.msrb.mxu0 %v2364_v4  ;;  %v2305_v4 = vld [vmem:[%s3221_s27 + $0x294] sm:$0xf0]  ;;  %v2020_v5 = vor.u32 %v2757_v60, %v2017_v61  ;;  %v2796_v44 = vld [vmem:[%s3221_s27 + $0x184] sm:$0xf]  ;;  %v2865_v49 = vld [vmem:[%s3221_s27 + $0x3ac] sm:$0xf]  ;;  %v2080_v56 = vor.u32 %v2772_v42, %v2077_v43 }
  0x7a   : > { %1614 = vmatpush.bf16.msrb.mxu1 %v2460_v8  ;;  %v2754_v8 = vld [vmem:[%s3221_s27 + $0x34] sm:$0xf]  ;;  %v2308_v11 = vor.u32 %v2829_v3, %v2305_v4  ;;  %v2449_v50 = vld [vmem:[%s3221_s27 + $0x3b4] sm:$0xf0]  ;;  %v2913_v54 = vld [vmem:[%s3221_s27 + $0x52c] sm:$0xf] }
  0x7b   : > { %1627 = vmatpush.bf16.msrb.mxu2 %v2556_v9  ;;  %v2005_v9 = vld [vmem:[%s3221_s27 + $0x3c] sm:$0xf0]  ;;  %v2545_v53 = vld [vmem:[%s3221_s27 + $0x474] sm:$0xf0]  ;;  %v2452_v61 = vor.u32 %v2865_v49, %v2449_v50  ;;  %v2862_v0 = vld [vmem:[%s3221_s27 + $0x394] sm:$0xf] }
  0x7c   : > { %1640 = vmatpush.bf16.msrb.mxu3 %v2652_v12  ;;  %1602 = vmatmul.bf16.vlgmr.msrb.gmra.mxu0 %v3395_v31  ;;  %v2101_v12 = vld [vmem:[%s3221_s27 + $0xfc] sm:$0xf0]  ;;  %v2008_v17 = vor.u32 %v2754_v8, %v2005_v9  ;;  %v2641_v55 = vld [vmem:[%s3221_s27 + $0x534] sm:$0xf0]  ;;  %v2886_v2 = vld [vmem:[%s3221_s27 + $0x454] sm:$0xf] }
  0x7d   : > { %1646 = vmatpush.bf16.msra.mxu0 %v2068_v13  ;;  %1615 = vmatmul.bf16.vlgmr.msrb.gmra.mxu1 %v3401_v38  ;;  %v2802_v13 = vld [vmem:[%s3221_s27 + $0x1b4] sm:$0xf]  ;;  %v2104_v18 = vor.u32 %v2778_v10, %v2101_v12  ;;  %v2437_v1 = vld [vmem:[%s3221_s27 + $0x39c] sm:$0xf0]  ;;  %v2859_v12 = vld [vmem:[%s3221_s27 + $0x37c] sm:$0xf] }
  0x7e   : > { %1659 = vmatpush.bf16.msra.mxu1 %v2164_v14  ;;  %1628 = vmatmul.bf16.vlgmr.msrb.gmra.mxu2 %v3392_v25  ;;  %v2197_v14 = vld [vmem:[%s3221_s27 + $0x1bc] sm:$0xf0]  ;;  %v2440_v9 = vor.u32 %v2862_v0, %v2437_v1  ;;  %v2713_v20 = vld [vmem:[%s3221_s27 + $0x5c4] sm:$0xf0]  ;;  %v2856_v24 = vld [vmem:[%s3221_s27 + $0x364] sm:$0xf] }
  0x7f   : > { %1672 = vmatpush.bf16.msra.mxu2 %v2260_v15  ;;  %1641 = vmatmul.bf16.vlgmr.msrb.gmra.mxu3 %v3397_v32  ;;  %v2826_v15 = vld [vmem:[%s3221_s27 + $0x274] sm:$0xf]  ;;  %v2533_v4 = vld [vmem:[%s3221_s27 + $0x45c] sm:$0xf0]  ;;  %v2901_v49 = vld [vmem:[%s3221_s27 + $0x4cc] sm:$0xf] }
  0x80   : > { %1685 = vmatpush.bf16.msra.mxu3 %v2356_v19  ;;  %v2200_v19 = vor.u32 %v2802_v13, %v2197_v14  ;;  %v2296_v23 = vor.u32 %v2826_v15, %v2293_v16  ;;  %v2725_v8 = vld [vmem:[%s3221_s27 + $0x5dc] sm:$0xf0]  ;;  %v2536_v10 = vor.u32 %v2886_v2, %v2533_v4  ;;  %v2425_v13 = vld [vmem:[%s3221_s27 + $0x384] sm:$0xf0]  ;;  %v2883_v14 = vld [vmem:[%s3221_s27 + $0x43c] sm:$0xf] }
  0x81   : > { %1647 = vmatpush.bf16.msra.mxu0 %v2056_v26  ;;  %v2799_v26 = vld [vmem:[%s3221_s27 + $0x19c] sm:$0xf]  ;;  %v2521_v16 = vld [vmem:[%s3221_s27 + $0x444] sm:$0xf0]  ;;  %v2428_v21 = vor.u32 %v2859_v12, %v2425_v13  ;;  %v2593_v50 = vld [vmem:[%s3221_s27 + $0x4d4] sm:$0xf0] }
  0x82   : > { %1660 = vmatpush.bf16.msra.mxu1 %v2152_v33  ;;  %v2823_v33 = vld [vmem:[%s3221_s27 + $0x25c] sm:$0xf]  ;;  %v2188_v41 = vor.u32 %v2799_v26, %v2185_v30  ;;  %v2524_v22 = vor.u32 %v2883_v14, %v2521_v16  ;;  %v2413_v26 = vld [vmem:[%s3221_s27 + $0x36c] sm:$0xf0]  ;;  %v2880_v30 = vld [vmem:[%s3221_s27 + $0x424] sm:$0xf] }
  0x83   : > { %1673 = vmatpush.bf16.msra.mxu2 %v2248_v35  ;;  %v2281_v35 = vld [vmem:[%s3221_s27 + $0x264] sm:$0xf0]  ;;  %v2677_v0 = vld [vmem:[%s3221_s27 + $0x57c] sm:$0xf0]  ;;  %v2847_v4 = vld [vmem:[%s3221_s27 + $0x31c] sm:$0xf] }
  0x84   : > { %1686 = vmatpush.bf16.msra.mxu3 %v2344_v39  ;;  %v1981_v39 = vld [vmem:[%s3221_s27 + $0xc] sm:$0xf0]  ;;  %v2665_v12 = vld [vmem:[%s3221_s27 + $0x564] sm:$0xf0]  ;;  %v2844_v14 = vld [vmem:[%s3221_s27 + $0x304] sm:$0xf] }
  0x85   : > { %1648 = vmatpush.bf16.msra.mxu0 %v2044_v45  ;;  %v2284_v45 = vor.u32 %v2823_v33, %v2281_v35  ;;  %v1984_v52 = vor.u32 %v2748_v37, %v1981_v39  ;;  %v2509_v35 = vld [vmem:[%s3221_s27 + $0x42c] sm:$0xf0]  ;;  %v2928_v39 = vld [vmem:[%s3221_s27 + $0x5a4] sm:$0xf] }
  0x86   : > { %1661 = vmatpush.bf16.msra.mxu1 %v2140_v46  ;;  %v2173_v46 = vld [vmem:[%s3221_s27 + $0x18c] sm:$0xf0]  ;;  %v2512_v42 = vor.u32 %v2880_v30, %v2509_v35  ;;  %v2771_v30 = vld [vmem:[%s3221_s27 + $0xb8] sm:$0xf0] }
  0x87   : > { %1674 = vmatpush.bf16.msra.mxu2 %v2236_v47  ;;  %v2820_v47 = vld [vmem:[%s3221_s27 + $0x244] sm:$0xf]  ;;  %v2605_v37 = vld [vmem:[%s3221_s27 + $0x4ec] sm:$0xf0] }
  0x88   : > { %1687 = vmatpush.bf16.msra.mxu3 %v2332_v51  ;;  %v2889_v51 = vld [vmem:[%s3221_s27 + $0x46c] sm:$0xf]  ;;  %v2272_v60 = vor.u32 %v2820_v47, %v2269_v48  ;;  %v2497_v48 = vld [vmem:[%s3221_s27 + $0x414] sm:$0xf0] }
  0x89   : > { %1649 = vmatpush.bf16.msra.mxu0 %v2032_v57  ;;  %v2176_v57 = vor.u32 %v2796_v44, %v2173_v46  ;;  %v2548_v62 = vor.u32 %v2889_v51, %v2545_v53  ;;  %v2853_v44 = vld [vmem:[%s3221_s27 + $0x34c] sm:$0xf] }
  0x8a   : > { %1662 = vmatpush.bf16.msra.mxu1 %v2128_v58  ;;  %v2937_v58 = vld [vmem:[%s3221_s27 + $0x5ec] sm:$0xf] }
  0x8b   : > { %1675 = vmatpush.bf16.msra.mxu2 %v2224_v59  ;;  %v2737_v59 = vld [vmem:[%s3221_s27 + $0x5f4] sm:$0xf0]  ;;  %v2877_v46 = vld [vmem:[%s3221_s27 + $0x40c] sm:$0xf] }
  0x8c   : > { %1688 = vmatpush.bf16.msra.mxu3 %v2320_v63  ;;  %v2644_v63 = vor.u32 %v2913_v54, %v2641_v55  ;;  %v2740_v3 = vor.u32 %v2937_v58, %v2737_v59  ;;  %v2925_v51 = vld [vmem:[%s3221_s27 + $0x58c] sm:$0xf]  ;;  %v2500_v54 = vor.u32 %v2877_v46, %v2497_v48  ;;  %v2596_v55 = vor.u32 %v2901_v49, %v2593_v50  ;;  %v2874_v58 = vld [vmem:[%s3221_s27 + $0x3f4] sm:$0xf]  ;;  %v2059_v48 = vld [vmem:[%s3221_s27 + $0x98] sm:$0xf] }
  0x8d   : > { %1650 = vmatpush.bf16.msra.mxu0 %v2020_v5  ;;  %v2910_v5 = vld [vmem:[%s3221_s27 + $0x514] sm:$0xf]  ;;  %v2768_v49 = vld [vmem:[%s3221_s27 + $0xa0] sm:$0xf0]  ;;  %v2155_v50 = vld [vmem:[%s3221_s27 + $0x158] sm:$0xf] }
  0x8e   : > { %1663 = vmatpush.bf16.msra.mxu1 %v2116_v6  ;;  %v2629_v6 = vld [vmem:[%s3221_s27 + $0x51c] sm:$0xf0] }
  0x8f   : > { %1676 = vmatpush.bf16.msra.mxu2 %v2212_v7  ;;  %v2934_v7 = vld [vmem:[%s3221_s27 + $0x5d4] sm:$0xf] }
  0x90   : > { %1689 = vmatpush.bf16.msra.mxu3 %v2308_v11  ;;  %v2632_v11 = vor.u32 %v2910_v5, %v2629_v6  ;;  %v2728_v15 = vor.u32 %v2934_v7, %v2725_v8  ;;  %v2377_v5 = vld [vmem:[%s3221_s27 + $0x324] sm:$0xf0]  ;;  %v2871_v6 = vld [vmem:[%s3221_s27 + $0x3dc] sm:$0xf] }
  0x91   : > { %1651 = vmatpush.bf16.msra.mxu0 %v2008_v17  ;;  %v2907_v17 = vld [vmem:[%s3221_s27 + $0x4fc] sm:$0xf]  ;;  %v2473_v8 = vld [vmem:[%s3221_s27 + $0x3e4] sm:$0xf0]  ;;  %v2380_v13 = vor.u32 %v2847_v4, %v2377_v5  ;;  %v2837_v4 = vld [vmem:[%s3221_s27 + $0x2c8] sm:$0xf0] }
  0x92   : > { %1664 = vmatpush.bf16.msra.mxu1 %v2104_v18  ;;  %v2617_v18 = vld [vmem:[%s3221_s27 + $0x504] sm:$0xf0]  ;;  %v2476_v16 = vor.u32 %v2871_v6, %v2473_v8 }
  0x93   : > { %1677 = vmatpush.bf16.msra.mxu2 %v2200_v19  ;;  %v2931_v19 = vld [vmem:[%s3221_s27 + $0x5bc] sm:$0xf]  ;;  %v2131_v8 = vld [vmem:[%s3221_s27 + $0x128] sm:$0xf] }
  0x94   : > { %1690 = vmatpush.bf16.msra.mxu3 %v2296_v23  ;;  %v2620_v23 = vor.u32 %v2907_v17, %v2617_v18  ;;  %v2716_v33 = vor.u32 %v2931_v19, %v2713_v20  ;;  %v2868_v18 = vld [vmem:[%s3221_s27 + $0x3c4] sm:$0xf]  ;;  %v2461_v19 = vld [vmem:[%s3221_s27 + $0x3cc] sm:$0xf0] }
  0x95   : > { %1652 = vmatpush.bf16.msra.mxu0 %v1996_v36  ;;  %v2904_v36 = vld [vmem:[%s3221_s27 + $0x4e4] sm:$0xf] }
  0x96   : > { %1665 = vmatpush.bf16.msra.mxu1 %v2092_v40  ;;  %v2701_v40 = vld [vmem:[%s3221_s27 + $0x5ac] sm:$0xf0]  ;;  %v2608_v43 = vor.u32 %v2904_v36, %v2605_v37  ;;  %v2892_v20 = vld [vmem:[%s3221_s27 + $0x484] sm:$0xf]  ;;  %v2795_v36 = vld [vmem:[%s3221_s27 + $0x178] sm:$0xf0] }
  0x97   : > { %1678 = vmatpush.bf16.msra.mxu2 %v2188_v41  ;;  %v2416_v41 = vor.u32 %v2856_v24, %v2413_v26  ;;  %v2704_v47 = vor.u32 %v2928_v39, %v2701_v40  ;;  %v2653_v24 = vld [vmem:[%s3221_s27 + $0x54c] sm:$0xf0]  ;;  %v2819_v39 = vld [vmem:[%s3221_s27 + $0x238] sm:$0xf0]  ;;  %v2464_v40 = vor.u32 %v2868_v18, %v2461_v19 }
  0x98   : > { %1691 = vmatpush.bf16.msra.mxu3 %v2284_v45  ;;  %v2401_v45 = vld [vmem:[%s3221_s27 + $0x354] sm:$0xf0]  ;;  %v2071_v26 = vld [vmem:[%s3221_s27 + $0xb0] sm:$0xf] }
  0x99   : > { %1653 = vmatpush.bf16.msra.mxu0 %v1984_v52  ;;  %v2689_v52 = vld [vmem:[%s3221_s27 + $0x594] sm:$0xf0]  ;;  %v2404_v53 = vor.u32 %v2853_v44, %v2401_v45  ;;  %v2263_v37 = vld [vmem:[%s3221_s27 + $0x230] sm:$0xf]  ;;  %v2072_v45 = vor.u32 %v2771_v30, %v2071_v26 }
  0x9a   : > { %1666 = vmatpush.bf16.msra.mxu1 %v2080_v56  ;;  %v2850_v56 = vld [vmem:[%s3221_s27 + $0x334] sm:$0xf]  ;;  %v2692_v59 = vor.u32 %v2925_v51, %v2689_v52  ;;  %v2792_v52 = vld [vmem:[%s3221_s27 + $0x160] sm:$0xf0]  ;;  %v2119_v18 = vld [vmem:[%s3221_s27 + $0x110] sm:$0xf] }
  0x9b   : > { %1679 = vmatpush.bf16.msra.mxu2 %v2176_v57  ;;  %v2389_v57 = vld [vmem:[%s3221_s27 + $0x33c] sm:$0xf0] }
  0x9c   : > { %1692 = vmatpush.bf16.msra.mxu3 %v2272_v60  ;;  %1654 = vmatmul.bf16.vlgmr.msra.gmra.mxu0 %v3343_v28  ;;  %v2485_v60 = vld [vmem:[%s3221_s27 + $0x3fc] sm:$0xf0]  ;;  %v2392_v1 = vor.u32 %v2850_v56, %v2389_v57  ;;  %v2840_v56 = vld [vmem:[%s3221_s27 + $0x2e0] sm:$0xf0]  ;;  %v2060_v57 = vor.u32 %v2768_v49, %v2059_v48  ;;  %v2753_v49 = vld [vmem:[%s3221_s27 + $0x28] sm:$0xf0] }
  0x9d   : > { %1698 = vmatpush.bf16.msrb.mxu0 %v2452_v61  ;;  %1667 = vmatmul.bf16.vlgmr.msra.gmra.mxu1 %v3349_v34  ;;  %v2898_v61 = vld [vmem:[%s3221_s27 + $0x4b4] sm:$0xf]  ;;  %v2488_v2 = vor.u32 %v2874_v58, %v2485_v60  ;;  %v2156_v58 = vor.u32 %v2792_v52, %v2155_v50  ;;  %v2047_v60 = vld [vmem:[%s3221_s27 + $0x80] sm:$0xf]  ;;  %v2777_v52 = vld [vmem:[%s3221_s27 + $0xe8] sm:$0xf0] }
  0x9e   : > { %1711 = vmatpush.bf16.msrb.mxu1 %v2548_v62  ;;  %1680 = vmatmul.bf16.vlgmr.msra.gmra.mxu2 %v3341_v27  ;;  %v2581_v62 = vld [vmem:[%s3221_s27 + $0x4bc] sm:$0xf0] }
  0x9f   : > { %1724 = vmatpush.bf16.msrb.mxu2 %v2644_v63  ;;  %1693 = vmatmul.bf16.vlgmr.msra.gmra.mxu3 %v3345_v29  ;;  %v2922_v63 = vld [vmem:[%s3221_s27 + $0x574] sm:$0xf]  ;;  %v1999_v48 = vld [vmem:[%s3221_s27 + $0x20] sm:$0xf] }
  0xa0   : > { %1737 = vmatpush.bf16.msrb.mxu3 %v2740_v3  ;;  %v2584_v3 = vor.u32 %v2898_v61, %v2581_v62  ;;  %v2680_v7 = vor.u32 %v2922_v63, %v2677_v0  ;;  %v2765_v61 = vld [vmem:[%s3221_s27 + $0x88] sm:$0xf0]  ;;  %v2143_v62 = vld [vmem:[%s3221_s27 + $0x140] sm:$0xf] }
  0xa1   : > { %1699 = vmatpush.bf16.msrb.mxu0 %v2440_v9  ;;  %v2895_v9 = vld [vmem:[%s3221_s27 + $0x49c] sm:$0xf]  ;;  %v2789_v0 = vld [vmem:[%s3221_s27 + $0x148] sm:$0xf0]  ;;  %v2095_v50 = vld [vmem:[%s3221_s27 + $0xe0] sm:$0xf] }
  0xa2   : > { %1712 = vmatpush.bf16.msrb.mxu1 %v2536_v10  ;;  %v2569_v10 = vld [vmem:[%s3221_s27 + $0x4a4] sm:$0xf0]  ;;  %v2144_v5 = vor.u32 %v2789_v0, %v2143_v62 }
  0xa3   : > { %1725 = vmatpush.bf16.msrb.mxu2 %v2632_v11  ;;  %v2919_v11 = vld [vmem:[%s3221_s27 + $0x55c] sm:$0xf]  ;;  %v2572_v17 = vor.u32 %v2895_v9, %v2569_v10  ;;  %v2786_v9 = vld [vmem:[%s3221_s27 + $0x130] sm:$0xf0]  ;;  %v2227_v10 = vld [vmem:[%s3221_s27 + $0x1e8] sm:$0xf] }
  0xa4   : > { %1738 = vmatpush.bf16.msrb.mxu3 %v2728_v15  ;;  %v2365_v15 = vld [vmem:[%s3221_s27 + $0x30c] sm:$0xf0]  ;;  %v2083_v62 = vld [vmem:[%s3221_s27 + $0xc8] sm:$0xf] }
  0xa5   : > { %1700 = vmatpush.bf16.msrb.mxu0 %v2428_v21  ;;  %v2668_v21 = vor.u32 %v2919_v11, %v2665_v12  ;;  %v2368_v35 = vor.u32 %v2844_v14, %v2365_v15  ;;  %v2810_v11 = vld [vmem:[%s3221_s27 + $0x1f0] sm:$0xf0]  ;;  %v2132_v14 = vor.u32 %v2786_v9, %v2131_v8  ;;  %v2179_v0 = vld [vmem:[%s3221_s27 + $0x188] sm:$0xf]  ;;  %v2647_v8 = vld [vmem:[%s3221_s27 + $0x530] sm:$0xf] }
  0xa6   : > { %1713 = vmatpush.bf16.msrb.mxu1 %v2524_v22  ;;  %v2557_v22 = vld [vmem:[%s3221_s27 + $0x48c] sm:$0xf0]  ;;  %v2834_v12 = vld [vmem:[%s3221_s27 + $0x2b0] sm:$0xf0]  ;;  %v2228_v15 = vor.u32 %v2810_v11, %v2227_v10 }
  0xa7   : > { %1726 = vmatpush.bf16.msrb.mxu2 %v2620_v23  ;;  %v2916_v23 = vld [vmem:[%s3221_s27 + $0x544] sm:$0xf]  ;;  %v2743_v11 = vld [vmem:[%s3221_s27 + $0x5f0] sm:$0xf] }
  0xa8   : > { %1739 = vmatpush.bf16.msrb.mxu3 %v2716_v33  ;;  %v2167_v33 = vld [vmem:[%s3221_s27 + $0x170] sm:$0xf]  ;;  %v2656_v44 = vor.u32 %v2916_v23, %v2653_v24  ;;  %v2831_v24 = vld [vmem:[%s3221_s27 + $0x298] sm:$0xf0] }
  0xa9   : > { %1701 = vmatpush.bf16.msrb.mxu0 %v2416_v41  ;;  %v2560_v41 = vor.u32 %v2892_v20, %v2557_v22  ;;  %v2168_v46 = vor.u32 %v2795_v36, %v2167_v33  ;;  %v2783_v20 = vld [vmem:[%s3221_s27 + $0x118] sm:$0xf0]  ;;  %v2311_v23 = vld [vmem:[%s3221_s27 + $0x290] sm:$0xf]  ;;  %v2756_v36 = vld [vmem:[%s3221_s27 + $0x40] sm:$0xf0] }
  0xaa   : > { %1714 = vmatpush.bf16.msrb.mxu1 %v2512_v42  ;;  %v2359_v42 = vld [vmem:[%s3221_s27 + $0x2f0] sm:$0xf]  ;;  %v2807_v22 = vld [vmem:[%s3221_s27 + $0x1d8] sm:$0xf0]  ;;  %v2120_v30 = vor.u32 %v2783_v20, %v2119_v18  ;;  %v2539_v18 = vld [vmem:[%s3221_s27 + $0x458] sm:$0xf] }
  0xab   : > { %1727 = vmatpush.bf16.msrb.mxu2 %v2608_v43  ;;  %v2843_v43 = vld [vmem:[%s3221_s27 + $0x2f8] sm:$0xf0]  ;;  %v2888_v20 = vld [vmem:[%s3221_s27 + $0x460] sm:$0xf0] }
  0xac   : > { %1740 = vmatpush.bf16.msrb.mxu3 %v2704_v47  ;;  %v2264_v47 = vor.u32 %v2819_v39, %v2263_v37  ;;  %v2360_v51 = vor.u32 %v2843_v43, %v2359_v42  ;;  %v2107_v37 = vld [vmem:[%s3221_s27 + $0xf8] sm:$0xf]  ;;  %v2312_v39 = vor.u32 %v2831_v24, %v2311_v23  ;;  %v2804_v42 = vld [vmem:[%s3221_s27 + $0x1c0] sm:$0xf0] }
  0xad   : > { %1702 = vmatpush.bf16.msrb.mxu0 %v2404_v53  ;;  %v2251_v53 = vld [vmem:[%s3221_s27 + $0x218] sm:$0xf]  ;;  %v2936_v24 = vld [vmem:[%s3221_s27 + $0x5e0] sm:$0xf0] }
  0xae   : > { %1715 = vmatpush.bf16.msrb.mxu1 %v2500_v54  ;;  %v2816_v54 = vld [vmem:[%s3221_s27 + $0x220] sm:$0xf0]  ;;  %v2299_v43 = vld [vmem:[%s3221_s27 + $0x278] sm:$0xf] }
  0xaf   : > { %1728 = vmatpush.bf16.msrb.mxu2 %v2596_v55  ;;  %v2347_v55 = vld [vmem:[%s3221_s27 + $0x2d8] sm:$0xf] }
  0xb0   : > { %1741 = vmatpush.bf16.msrb.mxu3 %v2692_v59  ;;  %v2252_v59 = vor.u32 %v2816_v54, %v2251_v53  ;;  %v2348_v63 = vor.u32 %v2840_v56, %v2347_v55  ;;  %v2191_v53 = vld [vmem:[%s3221_s27 + $0x1a0] sm:$0xf]  ;;  %v2801_v54 = vld [vmem:[%s3221_s27 + $0x1a8] sm:$0xf0]  ;;  %v2731_v23 = vld [vmem:[%s3221_s27 + $0x5d8] sm:$0xf] }
  0xb1   : > { %1703 = vmatpush.bf16.msrb.mxu0 %v2392_v1  ;;  %v2239_v1 = vld [vmem:[%s3221_s27 + $0x200] sm:$0xf]  ;;  %v2825_v56 = vld [vmem:[%s3221_s27 + $0x268] sm:$0xf0] }
  0xb2   : > { %1716 = vmatpush.bf16.msrb.mxu1 %v2488_v2  ;;  %v2813_v2 = vld [vmem:[%s3221_s27 + $0x208] sm:$0xf0]  ;;  %v2287_v55 = vld [vmem:[%s3221_s27 + $0x260] sm:$0xf] }
  0xb3   : > { %1729 = vmatpush.bf16.msrb.mxu2 %v2584_v3  ;;  %v2335_v3 = vld [vmem:[%s3221_s27 + $0x2c0] sm:$0xf]  ;;  %v2240_v6 = vor.u32 %v2813_v2, %v2239_v1  ;;  %v2288_v1 = vor.u32 %v2825_v56, %v2287_v55  ;;  %v2798_v2 = vld [vmem:[%s3221_s27 + $0x190] sm:$0xf0]  ;;  %v2407_v56 = vld [vmem:[%s3221_s27 + $0x350] sm:$0xf] }
  0xb4   : > { %1742 = vmatpush.bf16.msrb.mxu3 %v2680_v7  ;;  %v2035_v7 = vld [vmem:[%s3221_s27 + $0x68] sm:$0xf]  ;;  %v2180_v10 = vor.u32 %v2798_v2, %v2179_v0  ;;  %v2927_v0 = vld [vmem:[%s3221_s27 + $0x598] sm:$0xf0]  ;;  %v2395_v2 = vld [vmem:[%s3221_s27 + $0x338] sm:$0xf] }
  0xb5   : > { %1704 = vmatpush.bf16.msrb.mxu0 %v2380_v13 }
  0xb6   : > { %1717 = vmatpush.bf16.msrb.mxu1 %v2476_v16  ;;  %v2023_v16 = vld [vmem:[%s3221_s27 + $0x50] sm:$0xf] }
  0xb7   : > { %1730 = vmatpush.bf16.msrb.mxu2 %v2572_v17  ;;  %v2759_v17 = vld [vmem:[%s3221_s27 + $0x58] sm:$0xf0] }
  0xb8   : > { %1743 = vmatpush.bf16.msrb.mxu3 %v2668_v21  ;;  %v2215_v21 = vld [vmem:[%s3221_s27 + $0x1d0] sm:$0xf]  ;;  %v2024_v26 = vor.u32 %v2759_v17, %v2023_v16  ;;  %v2443_v16 = vld [vmem:[%s3221_s27 + $0x398] sm:$0xf]  ;;  %v2864_v17 = vld [vmem:[%s3221_s27 + $0x3a0] sm:$0xf0] }
  0xb9   : > { %1705 = vmatpush.bf16.msrb.mxu0 %v2368_v35  ;;  %v2216_v33 = vor.u32 %v2807_v22, %v2215_v21  ;;  %v2011_v35 = vld [vmem:[%s3221_s27 + $0x38] sm:$0xf]  ;;  %v2912_v22 = vld [vmem:[%s3221_s27 + $0x520] sm:$0xf0] }
  0xba   : > { %1718 = vmatpush.bf16.msrb.mxu1 %v2464_v40  ;;  %v2780_v40 = vld [vmem:[%s3221_s27 + $0x100] sm:$0xf0]  ;;  %v2635_v21 = vld [vmem:[%s3221_s27 + $0x518] sm:$0xf] }
  0xbb   : > { %1731 = vmatpush.bf16.msrb.mxu2 %v2560_v41  ;;  %v2203_v41 = vld [vmem:[%s3221_s27 + $0x1b8] sm:$0xf] }
  0xbc   : > { %1744 = vmatpush.bf16.msrb.mxu3 %v2656_v44  ;;  %1706 = vmatmul.bf16.vlgmr.msrb.gmra.mxu0 %v3395_v31  ;;  %v2762_v31 = vld [vmem:[%s3221_s27 + $0x70] sm:$0xf0]  ;;  %v2828_v44 = vld [vmem:[%s3221_s27 + $0x280] sm:$0xf0] }
  0xbd   : > { %1750 = vmatpush.bf16.msra.mxu0 %v2072_v45  ;;  %1719 = vmatmul.bf16.vlgmr.msrb.gmra.mxu1 %v3401_v38  ;;  %v2323_v38 = vld [vmem:[%s3221_s27 + $0x2a8] sm:$0xf]  ;;  %v2036_v13 = vor.u32 %v2762_v31, %v2035_v7  ;;  %v2012_v45 = vor.u32 %v2756_v36, %v2011_v35  ;;  %v2891_v31 = vld [vmem:[%s3221_s27 + $0x478] sm:$0xf0]  ;;  %v2431_v35 = vld [vmem:[%s3221_s27 + $0x380] sm:$0xf] }
  0xbe   : > { %1763 = vmatpush.bf16.msra.mxu1 %v2168_v46  ;;  %1732 = vmatmul.bf16.vlgmr.msrb.gmra.mxu2 %v3392_v25  ;;  %v2048_v25 = vor.u32 %v2765_v61, %v2047_v60  ;;  %v2324_v19 = vor.u32 %v2834_v12, %v2323_v38  ;;  %v2108_v46 = vor.u32 %v2780_v40, %v2107_v37  ;;  %v2939_v38 = vld [vmem:[%s3221_s27 + $0x5f8] sm:$0xf0]  ;;  %v2861_v36 = vld [vmem:[%s3221_s27 + $0x388] sm:$0xf0]  ;;  %v2527_v37 = vld [vmem:[%s3221_s27 + $0x440] sm:$0xf] }
  0xbf   : > { %1776 = vmatpush.bf16.msra.mxu2 %v2264_v47  ;;  %1745 = vmatmul.bf16.vlgmr.msrb.gmra.mxu3 %v3397_v32  ;;  %v2336_v32 = vor.u32 %v2837_v4, %v2335_v3  ;;  %v2204_v47 = vor.u32 %v2804_v42, %v2203_v41  ;;  %v2096_v60 = vor.u32 %v2777_v52, %v2095_v50  ;;  %v2275_v3 = vld [vmem:[%s3221_s27 + $0x248] sm:$0xf]  ;;  %v2822_v4 = vld [vmem:[%s3221_s27 + $0x250] sm:$0xf0]  ;;  %v2885_v40 = vld [vmem:[%s3221_s27 + $0x448] sm:$0xf0] }
  0xc0   : > { %1789 = vmatpush.bf16.msra.mxu3 %v2360_v51  ;;  %v2300_v51 = vor.u32 %v2828_v44, %v2299_v43  ;;  %v2192_v61 = vor.u32 %v2801_v54, %v2191_v53  ;;  %v2276_v12 = vor.u32 %v2822_v4, %v2275_v3  ;;  %v2623_v41 = vld [vmem:[%s3221_s27 + $0x500] sm:$0xf]  ;;  %v2909_v42 = vld [vmem:[%s3221_s27 + $0x508] sm:$0xf0]  ;;  %v2882_v50 = vld [vmem:[%s3221_s27 + $0x430] sm:$0xf0] }
  0xc1   : > { %1751 = vmatpush.bf16.msra.mxu0 %v2060_v57  ;;  %v2000_v57 = vor.u32 %v2753_v49, %v1999_v48  ;;  %v2719_v43 = vld [vmem:[%s3221_s27 + $0x5c0] sm:$0xf]  ;;  %v2933_v44 = vld [vmem:[%s3221_s27 + $0x5c8] sm:$0xf0]  ;;  %v2858_v48 = vld [vmem:[%s3221_s27 + $0x370] sm:$0xf0] }
  0xc2   : > { %1764 = vmatpush.bf16.msra.mxu1 %v2156_v58  ;;  %v1987_v58 = vld [vmem:[%s3221_s27 + $0x8] sm:$0xf] }
  0xc3   : > { %1777 = vmatpush.bf16.msra.mxu2 %v2252_v59  ;;  %v2750_v59 = vld [vmem:[%s3221_s27 + $0x10] sm:$0xf0]  ;;  %v2515_v49 = vld [vmem:[%s3221_s27 + $0x428] sm:$0xf] }
  0xc4   : > { %1790 = vmatpush.bf16.msra.mxu3 %v2348_v63  ;;  %v2774_v63 = vld [vmem:[%s3221_s27 + $0xd0] sm:$0xf0]  ;;  %v1988_v7 = vor.u32 %v2750_v59, %v1987_v58  ;;  %v2707_v52 = vld [vmem:[%s3221_s27 + $0x5a8] sm:$0xf]  ;;  %v2516_v54 = vor.u32 %v2882_v50, %v2515_v49  ;;  %v2503_v58 = vld [vmem:[%s3221_s27 + $0x410] sm:$0xf] }
  0xc5   : > { %1752 = vmatpush.bf16.msra.mxu0 %v2048_v25  ;;  %v2455_v25 = vld [vmem:[%s3221_s27 + $0x3b0] sm:$0xf]  ;;  %v2084_v9 = vor.u32 %v2774_v63, %v2083_v62  ;;  %v2903_v62 = vld [vmem:[%s3221_s27 + $0x4d8] sm:$0xf0] }
  0xc6   : > { %1765 = vmatpush.bf16.msra.mxu1 %v2144_v5  ;;  %v2867_v5 = vld [vmem:[%s3221_s27 + $0x3b8] sm:$0xf0]  ;;  %v2695_v63 = vld [vmem:[%s3221_s27 + $0x590] sm:$0xf] }
  0xc7   : > { %1778 = vmatpush.bf16.msra.mxu2 %v2240_v6  ;;  %v2551_v6 = vld [vmem:[%s3221_s27 + $0x470] sm:$0xf] }
  0xc8   : > { %1791 = vmatpush.bf16.msra.mxu3 %v2336_v32  ;;  %v2915_v32 = vld [vmem:[%s3221_s27 + $0x538] sm:$0xf0] }
  0xc9   : > { %1753 = vmatpush.bf16.msra.mxu0 %v2036_v13  ;;  %v2456_v13 = vor.u32 %v2867_v5, %v2455_v25  ;;  %v2852_v25 = vld [vmem:[%s3221_s27 + $0x340] sm:$0xf0]  ;;  %v2491_v5 = vld [vmem:[%s3221_s27 + $0x3f8] sm:$0xf] }
  0xca   : > { %1766 = vmatpush.bf16.msra.mxu1 %v2132_v14  ;;  %v2552_v14 = vor.u32 %v2891_v31, %v2551_v6  ;;  %v2876_v6 = vld [vmem:[%s3221_s27 + $0x400] sm:$0xf0]  ;;  %v2587_v31 = vld [vmem:[%s3221_s27 + $0x4b8] sm:$0xf] }
  0xcb   : > { %1779 = vmatpush.bf16.msra.mxu2 %v2228_v15  ;;  %v2648_v15 = vor.u32 %v2915_v32, %v2647_v8  ;;  %v2900_v8 = vld [vmem:[%s3221_s27 + $0x4c0] sm:$0xf0] }
  0xcc   : > { %1792 = vmatpush.bf16.msra.mxu3 %v2324_v19  ;;  %v2744_v19 = vor.u32 %v2939_v38, %v2743_v11  ;;  %v3639_v32 = vld [vmem:[%s3227_s25] sm:$0x7]  ;;  %v2396_v11 = vor.u32 %v2852_v25, %v2395_v2 }
  0xcd   : > { %1754 = vmatpush.bf16.msra.mxu0 %v2024_v26  ;;  %v2444_v26 = vor.u32 %v2864_v17, %v2443_v16  ;;  %v2383_v38 = vld [vmem:[%s3221_s27 + $0x320] sm:$0xf]  ;;  %v494_v16 = vperm.slane %v3639_v32, 0 }
  0xce   : > { %1767 = vmatpush.bf16.msra.mxu1 %v2120_v30  ;;  %v2540_v30 = vor.u32 %v2888_v20, %v2539_v18  ;;  %v2873_v18 = vld [vmem:[%s3221_s27 + $0x3e8] sm:$0xf0] }
  0xcf   : > { %1780 = vmatpush.bf16.msra.mxu2 %v2216_v33  ;;  %v2636_v33 = vor.u32 %v2912_v22, %v2635_v21  ;;  %v2897_v20 = vld [vmem:[%s3221_s27 + $0x4a8] sm:$0xf0]  ;;  %v2671_v21 = vld [vmem:[%s3221_s27 + $0x560] sm:$0xf] }
  0xd0   : > { %1793 = vmatpush.bf16.msra.mxu3 %v2312_v39  ;;  %v2732_v39 = vor.u32 %v2936_v24, %v2731_v23  ;;  %v2921_v22 = vld [vmem:[%s3221_s27 + $0x568] sm:$0xf0] }
  0xd1   : > { %1755 = vmatpush.bf16.msra.mxu0 %v2012_v45  ;;  %v2432_v45 = vor.u32 %v2861_v36, %v2431_v35  ;;  %v2846_v35 = vld [vmem:[%s3221_s27 + $0x310] sm:$0xf0]  ;;  %v2467_v36 = vld [vmem:[%s3221_s27 + $0x3c8] sm:$0xf] }
  0xd2   : > { %1768 = vmatpush.bf16.msra.mxu1 %v2108_v46  ;;  %v2624_v46 = vor.u32 %v2909_v42, %v2623_v41  ;;  %v2870_v41 = vld [vmem:[%s3221_s27 + $0x3d0] sm:$0xf0]  ;;  %v2563_v42 = vld [vmem:[%s3221_s27 + $0x488] sm:$0xf] }
  0xd3   : > { %1781 = vmatpush.bf16.msra.mxu2 %v2204_v47  ;;  %v2419_v47 = vld [vmem:[%s3221_s27 + $0x368] sm:$0xf] }
  0xd4   : > { %1794 = vmatpush.bf16.msra.mxu3 %v2300_v51  ;;  %v2906_v51 = vld [vmem:[%s3221_s27 + $0x4f0] sm:$0xf0]  ;;  %v2420_v53 = vor.u32 %v2858_v48, %v2419_v47  ;;  %v2468_v47 = vor.u32 %v2870_v41, %v2467_v36 }
  0xd5   : > { %1756 = vmatpush.bf16.msra.mxu0 %v2000_v57  ;;  %v2855_v57 = vld [vmem:[%s3221_s27 + $0x358] sm:$0xf0] }
  0xd6   : > { %1769 = vmatpush.bf16.msra.mxu1 %v2096_v60  ;;  %v2879_v60 = vld [vmem:[%s3221_s27 + $0x418] sm:$0xf0] }
  0xd7   : > { %1782 = vmatpush.bf16.msra.mxu2 %v2192_v61  ;;  %v2599_v61 = vld [vmem:[%s3221_s27 + $0x4d0] sm:$0xf]  ;;  %v2504_v3 = vor.u32 %v2879_v60, %v2503_v58 }
  0xd8   : > { %1795 = vmatpush.bf16.msra.mxu3 %v2288_v1  ;;  %v2408_v1 = vor.u32 %v2855_v57, %v2407_v56  ;;  %v2600_v4 = vor.u32 %v2903_v62, %v2599_v61  ;;  %v3006_v56 = vld [vmem:[#allocation1 + $0x3f] sm:$0xff] }
  0xd9   : > { %1757 = vmatpush.bf16.msra.mxu0 %v1988_v7  ;;  %v2696_v7 = vor.u32 %v2927_v0, %v2695_v63 }
  0xda   : > { %1770 = vmatpush.bf16.msra.mxu1 %v2084_v9  ;;  %v2683_v9 = vld [vmem:[%s3221_s27 + $0x578] sm:$0xf] }
  0xdb   : > { %1783 = vmatpush.bf16.msra.mxu2 %v2180_v10  ;;  %v2924_v10 = vld [vmem:[%s3221_s27 + $0x580] sm:$0xf0] }
  0xdc   : > { %1796 = vmatpush.bf16.msra.mxu3 %v2276_v12  ;;  %1758 = vmatmul.bf16.vlgmr.msra.gmra.mxu0 %v3343_v28  ;;  %v2720_v28 = vor.u32 %v2933_v44, %v2719_v43  ;;  %v2492_v12 = vor.u32 %v2876_v6, %v2491_v5  ;;  %v2684_v17 = vor.u32 %v2924_v10, %v2683_v9  ;;  %v2894_v43 = vld [vmem:[%s3221_s27 + $0x490] sm:$0xf0]  ;;  %v2659_v44 = vld [vmem:[%s3221_s27 + $0x548] sm:$0xf]  ;;  %v495_v6 = vperm.slane %v3639_v32, 1 }
  0xdd   : > { %1802 = vmatpush.bf16.msrb.mxu0 %v2456_v13  ;;  %1771 = vmatmul.bf16.vlgmr.msra.gmra.mxu1 %v3349_v34  ;;  %v2930_v34 = vld [vmem:[%s3221_s27 + $0x5b0] sm:$0xf0]  ;;  %v2588_v13 = vor.u32 %v2900_v8, %v2587_v31  ;;  %v2564_v48 = vor.u32 %v2894_v43, %v2563_v42 }
  0xde   : > { %1815 = vmatpush.bf16.msrb.mxu1 %v2552_v14  ;;  %1784 = vmatmul.bf16.vlgmr.msra.gmra.mxu2 %v3341_v27  ;;  %v2528_v27 = vor.u32 %v2885_v40, %v2527_v37  ;;  %v2708_v59 = vor.u32 %v2930_v34, %v2707_v52  ;;  %v2849_v14 = vld [vmem:[%s3221_s27 + $0x328] sm:$0xf0]  ;;  %v2672_v40 = vor.u32 %v2921_v22, %v2671_v21 }
  0xdf   : > { %1828 = vmatpush.bf16.msrb.mxu2 %v2648_v15  ;;  %1797 = vmatmul.bf16.vlgmr.msra.gmra.mxu3 %v3345_v29  ;;  %v2611_v29 = vld [vmem:[%s3221_s27 + $0x4e8] sm:$0xf]  ;;  %v2479_v15 = vld [vmem:[%s3221_s27 + $0x3e0] sm:$0xf]  ;;  %v2384_v23 = vor.u32 %v2849_v14, %v2383_v38  ;;  %v1551_v24 = vpop.f32.mrf.mxu0 }
  0xe0   : > { %1841 = vmatpush.bf16.msrb.mxu3 %v2744_v19  ;;  %v2612_v55 = vor.u32 %v2906_v51, %v2611_v29  ;;  %v2575_v19 = vld [vmem:[%s3221_s27 + $0x4a0] sm:$0xf]  ;;  %v1552_v37 = vadd.f32 %v1551_v24, %v494_v16 }
  0xe1   : > { %1803 = vmatpush.bf16.msrb.mxu0 %v2444_v26  ;;  %v2480_v26 = vor.u32 %v2873_v18, %v2479_v15 }
  0xe2   : > { %1816 = vmatpush.bf16.msrb.mxu1 %v2540_v30  ;;  %v2576_v30 = vor.u32 %v2897_v20, %v2575_v19 }
  0xe3   : > { %1829 = vmatpush.bf16.msrb.mxu2 %v2636_v33  ;;  %v2371_v33 = vld [vmem:[%s3221_s27 + $0x308] sm:$0xf] }
  0xe4   : > { %1842 = vmatpush.bf16.msrb.mxu3 %v2732_v39  ;;  %v1564_v39 = vpop.f32.mrf.mxu1  ;;  %v1577_v49 = vpop.f32.mrf.mxu2 }
  0xe5   : > { %1804 = vmatpush.bf16.msrb.mxu0 %v2432_v45  ;;  %v2918_v45 = vld [vmem:[%s3221_s27 + $0x550] sm:$0xf0] }
  0xe6   : > { %1817 = vmatpush.bf16.msrb.mxu1 %v2528_v27  ;;  %v1565_v27 = vadd.f32 %v1564_v39, %v1552_v37  ;;  %v1590_v29 = vpop.f32.mrf.mxu3 }
  0xe7   : > { %1830 = vmatpush.bf16.msrb.mxu2 %v2624_v46  ;;  %v2372_v46 = vor.u32 %v2846_v35, %v2371_v33  ;;  %v1553_v52 = vpop.f32.mrf.mxu0 }
  0xe8   : > { %1843 = vmatpush.bf16.msrb.mxu3 %v2720_v28  ;;  %v2660_v28 = vor.u32 %v2918_v45, %v2659_v44  ;;  %v1578_v50 = vadd.f32 %v1577_v49, %v1565_v27  ;;  %v496_v52 = vperm.slane %v3639_v32, 2 }
  0xe9   : > { %1805 = vmatpush.bf16.msrb.mxu0 %v2420_v53  ;;  %v3003_v53 = vld [vmem:[#allocation1 + $0x24] sm:$0xff] }
  0xea   : > { %1818 = vmatpush.bf16.msrb.mxu1 %v2516_v54  ;;  %v1591_v51 = vadd.f32 %v1590_v29, %v1578_v50  ;;  %v3004_v54 = vld [vmem:[#allocation1 + $0x2d] sm:$0xff] }
  0xeb   : > { %1831 = vmatpush.bf16.msrb.mxu2 %v2612_v55  ;;  %v3005_v55 = vld [vmem:[#allocation1 + $0x36] sm:$0xff] }
  0xec   : > { %1844 = vmatpush.bf16.msrb.mxu3 %v2708_v59  ;;  %v1566_v34 = vpop.f32.mrf.mxu1  ;;  %v1579_v57 = vpop.f32.mrf.mxu2 }
  0xed   : > { %1806 = vmatpush.bf16.msrb.mxu0 %v2408_v1 }
  0xee   : > { %1819 = vmatpush.bf16.msrb.mxu1 %v2504_v3  ;;  %v1592_v58 = vpop.f32.mrf.mxu3 }
  0xef   : > { %1832 = vmatpush.bf16.msrb.mxu2 %v2600_v4 }
  0xf0   : > { %1845 = vmatpush.bf16.msrb.mxu3 %v2696_v7 }
  0xf1   : > { %1807 = vmatpush.bf16.msrb.mxu0 %v2396_v11 }
  0xf2   : > { %1820 = vmatpush.bf16.msrb.mxu1 %v2492_v12 }
  0xf3   : > { %1833 = vmatpush.bf16.msrb.mxu2 %v2588_v13 }
  0xf4   : > { %1846 = vmatpush.bf16.msrb.mxu3 %v2684_v17 }
  0xf5   : > { %1808 = vmatpush.bf16.msrb.mxu0 %v2384_v23 }
  0xf6   : > { %1821 = vmatpush.bf16.msrb.mxu1 %v2480_v26 }
  0xf7   : > { %1834 = vmatpush.bf16.msrb.mxu2 %v2576_v30 }
  0xf8   : > { %1847 = vmatpush.bf16.msrb.mxu3 %v2672_v40 }
  0xf9   : > { %1809 = vmatpush.bf16.msrb.mxu0 %v2372_v46  ;;  %v1603_v59 = vpop.f32.mrf.mxu0 }
  0xfa   : > { %1822 = vmatpush.bf16.msrb.mxu1 %v2468_v47  ;;  %v1604_v60 = vadd.f32 %v1603_v59, %v1591_v51  ;;  %v1616_v61 = vpop.f32.mrf.mxu1 }
  0xfb   : > { %1835 = vmatpush.bf16.msrb.mxu2 %v2564_v48 }
  0xfc   : > { %1848 = vmatpush.bf16.msrb.mxu3 %v2660_v28  ;;  %1810 = vmatmul.bf16.vlgmr.msrb.gmra.mxu0 %v3003_v53  ;;  %v1617_v62 = vadd.f32 %v1616_v61, %v1604_v60 }
  0xfd   : > { %1823 = vmatmul.bf16.vlgmr.msrb.gmra.mxu1 %v3004_v54 }
  0xfe   : > { %1836 = vmatmul.bf16.vlgmr.msrb.gmra.mxu2 %v3005_v55 }
  0xff   : > { %1849 = vmatmul.bf16.vlgmr.msrb.gmra.mxu3 %v3006_v56 }
 0x101   : > { %v1629_v63 = vpop.f32.mrf.mxu2  ;;  %v1605_v3 = vpop.f32.mrf.mxu0 }
 0x102   : > { %v1630_v0 = vadd.f32 %v1629_v63, %v1617_v62  ;;  %v1642_v1 = vpop.f32.mrf.mxu3  ;;  %v1618_v4 = vpop.f32.mrf.mxu1 }
 0x104   : > { %v1643_v2 = vadd.f32 %v1642_v1, %v1630_v0 }
 0x106   : > { %v1854_v21 = vsub.f32 0.0, %v1643_v2 }
 0x108   : > { %v1857_v26 = vmul.f32 1.442695, %v1854_v21 }
 0x109   : > { %v1631_v25 = vpop.f32.mrf.mxu2 }
 0x10a   : > { %v1644_v5 = vpop.f32.mrf.mxu3  ;;  %2991 = vpow2.f32 %v1857_v26 }
 0x110   : > { %v2992_v41 = vpop.eup %2991 }
 0x111   : > { %v1863_v43 = vadd.f32 1.0, %v2992_v41 }
 0x119   : > { %v1655_v7 = vpop.f32.mrf.mxu0 }
 0x11a   : > { %v1656_v31 = vadd.f32 %v1655_v7, %v495_v6  ;;  %v1668_v8 = vpop.f32.mrf.mxu1 }
 0x11c   : > { %v1669_v9 = vadd.f32 %v1668_v8, %v1656_v31 }
 0x121   : > { %v1681_v10 = vpop.f32.mrf.mxu2  ;;  %v1657_v13 = vpop.f32.mrf.mxu0 }
 0x122   : > { %v1682_v11 = vadd.f32 %v1681_v10, %v1669_v9  ;;  %v1694_v38 = vpop.f32.mrf.mxu3  ;;  %v1670_v14 = vpop.f32.mrf.mxu1 }
 0x124   : > { %v1695_v12 = vadd.f32 %v1694_v38, %v1682_v11 }
 0x129   : > { %v1683_v15 = vpop.f32.mrf.mxu2 }
 0x12a   : > { %v1696_v16 = vpop.f32.mrf.mxu3 }
 0x139   : > { %v1707_v17 = vpop.f32.mrf.mxu0 }
 0x13a   : > { %v1708_v18 = vadd.f32 %v1707_v17, %v1695_v12  ;;  %v1720_v19 = vpop.f32.mrf.mxu1 }
 0x13c   : > { %v1721_v20 = vadd.f32 %v1720_v19, %v1708_v18 }
 0x141   : > { %v1733_v22 = vpop.f32.mrf.mxu2  ;;  %v1709_v33 = vpop.f32.mrf.mxu0 }
 0x142   : > { %v1734_v23 = vadd.f32 %v1733_v22, %v1721_v20  ;;  %v1746_v24 = vpop.f32.mrf.mxu3  ;;  %v1722_v35 = vpop.f32.mrf.mxu1 }
 0x144   : > { %v1747_v30 = vadd.f32 %v1746_v24, %v1734_v23 }
 0x146   : > { %v1855_v36 = vsub.f32 0.0, %v1747_v30 }
 0x148   : > { %v1859_v37 = vmul.f32 1.442695, %v1855_v36 }
 0x149   : > { %v1735_v39 = vpop.f32.mrf.mxu2 }
 0x14a   : > { %2993 = vpow2.f32 %v1859_v37  ;;  %v1748_v40 = vpop.f32.mrf.mxu3 }
 0x150   : > { %v2994_v42 = vpop.eup %2993 }
 0x151   : > { %v1864_v44 = vadd.f32 1.0, %v2994_v42 }
 0x153   : > { %2995 = vrcp.f32 %v1864_v44 }
 0x154   : > { %2997 = vrcp.f32 %v1863_v43 }
 0x159   : > { %v2996_v45 = vpop.eup %2995  ;;  %v1759_v46 = vpop.f32.mrf.mxu0 }
 0x15a   : > { %v1872_v27 = vrot.slane %v2996_v45, 6  ;;  %v2998_v47 = vpop.eup %2997  ;;  %v1772_v48 = vpop.f32.mrf.mxu1  ;;  %v1760_v54 = vadd.f32 %v1759_v46, %v496_v52 }
 0x15c   : > { %v1875_v49 = vsel %vm1874_vm0, %v2998_v47, %v1872_v27  ;;  %v1773_v55 = vadd.f32 %v1772_v48, %v1760_v54 }
 0x161   : > { %v1785_v28 = vpop.f32.mrf.mxu2  ;;  %v1761_v29 = vpop.f32.mrf.mxu0 }
 0x162   : > { %v1798_v50 = vpop.f32.mrf.mxu3  ;;  %v1774_v51 = vpop.f32.mrf.mxu1  ;;  %v1786_v56 = vadd.f32 %v1785_v28, %v1773_v55 }
 0x164   : > { %v1799_v57 = vadd.f32 %v1798_v50, %v1786_v56 }
 0x169   : > { %v1787_v34 = vpop.f32.mrf.mxu2 }
 0x16a   : > { %v1800_v53 = vpop.f32.mrf.mxu3 }
 0x179   : > { %v1811_v58 = vpop.f32.mrf.mxu0 }
 0x17a   : > { %v1824_v59 = vpop.f32.mrf.mxu1  ;;  %v1812_v60 = vadd.f32 %v1811_v58, %v1799_v57 }
 0x17c   : > { %v1825_v61 = vadd.f32 %v1824_v59, %v1812_v60 }
 0x181   : > { %v1837_v62 = vpop.f32.mrf.mxu2  ;;  %v1813_v1 = vpop.f32.mrf.mxu0 }
 0x182   : > { %v1838_v63 = vadd.f32 %v1837_v62, %v1825_v61  ;;  %v1850_v0 = vpop.f32.mrf.mxu3  ;;  %v1826_v2 = vpop.f32.mrf.mxu1 }
 0x184   : > { %v1851_v3 = vadd.f32 %v1850_v0, %v1838_v63 }
 0x186   : > { %v1856_v4 = vsub.f32 0.0, %v1851_v3 }
 0x188   : > { %v1861_v25 = vmul.f32 1.442695, %v1856_v4 }
 0x189   : > { %v1839_v32 = vpop.f32.mrf.mxu2 }
 0x18a   : > { %2999 = vpow2.f32 %v1861_v25  ;;  %v1852_v5 = vpop.f32.mrf.mxu3 }
 0x190   : > { %v3000_v6 = vpop.eup %2999 }
 0x191   : > { %v1865_v7 = vadd.f32 1.0, %v3000_v6 }
 0x193   : > { %3001 = vrcp.f32 %v1865_v7 }
 0x199   : > { %v3002_v31 = vpop.eup %3001 }
 0x19a   : > { %v1873_v8 = vrot.slane %v3002_v31, 4 }
 0x19c   : > { %v1877_v9 = vsel %vm1876_vm1, %v1875_v49, %v1873_v8 }
 0x19d   : > { %1879 = vst [vmem:[%s233_s10] sm:$0x3f] %v1877_v9 }
 0x19e PF: > { %p16_p8 = scmp.ge.s32.totalorder %s3150_s17, 4   ;;  %s3687_s12 = smov %s3097_s13 }
 0x19f   : > { %s3688_s13 = smov %s3101_s14  ;;  %s3689_s14 = smov %s3160_s20 }
 0x1a0   : > { %s3690_s15 = smov %s3150_s17  ;;  %18 = sbr.rel (!%p16_p8) target bundleno = 5 (0x5), region = 85 }
 0x1a5   :  { %1902 = vsyncpa [#allocation3], 1 }
 0x1a6   :  { %1904 = vsyncpa [#allocation3 + $0x1], 1 }
 0x1a7   :  { %1905 = vsyncpa [#allocation5], 1 }
 0x1a8   :  { %1907 = vsyncpa [#allocation5 + $0x1], 1 }

// kernel: voxel_beta_vae_mlp_forward.2
= control target key start
LH: loop header
LB: loop body
LE: loop exit
PB: predicated region body
PF: predicated region fallthrough
CT: control target
= control target key end

     0   :  { %s13353_s0 = inlined_call_operand.vmem [shape: f32[2,768], index: 0, kind: input, shape index: {}]   ;;  %s13354_s1 = inlined_call_operand.hbm [shape: f32[2,64], index: 1, kind: input, shape index: {}]   ;;  %s13355_s2 = inlined_call_operand.hbm [shape: bf16[768,1024], index: 2, kind: input, shape index: {}]   ;;  %s13356_s3 = inlined_call_operand.hbm [shape: f32[1,1024], index: 3, kind: input, shape index: {}]   ;;  %s13357_s4 = inlined_call_operand.hbm [shape: bf16[1024,512], index: 4, kind: input, shape index: {}]   ;;  %s13358_s5 = inlined_call_operand.hbm [shape: f32[1,512], index: 5, kind: input, shape index: {}]   ;;  %s13359_s6 = inlined_call_operand.hbm [shape: bf16[512,128], index: 6, kind: input, shape index: {}]   ;;  %s13360_s7 = inlined_call_operand.hbm [shape: f32[1,128], index: 7, kind: input, shape index: {}]   ;;  %s13361_s8 = inlined_call_operand.vmem [shape: bf16[128,64], index: 8, kind: input, shape index: {}]   ;;  %s13362_s9 = inlined_call_operand.hbm [shape: f32[1,64], index: 9, kind: input, shape index: {}]   ;;  %s13363_s10 = inlined_call_operand.vmem [shape: bf16[128,64], index: 10, kind: input, shape index: {}]   ;;  %s13364_s11 = inlined_call_operand.hbm [shape: f32[1,64], index: 11, kind: input, shape index: {}]   ;;  %s13365_s12 = inlined_call_operand.hbm [shape: bf16[64,128], index: 12, kind: input, shape index: {}]   ;;  %s13366_s13 = inlined_call_operand.hbm [shape: f32[1,128], index: 13, kind: input, shape index: {}]   ;;  %s13367_s14 = inlined_call_operand.hbm [shape: bf16[128,512], index: 14, kind: input, shape index: {}]   ;;  %s13368_s15 = inlined_call_operand.hbm [shape: f32[1,512], index: 15, kind: input, shape index: {}]   ;;  %s13369_s16 = inlined_call_operand.hbm [shape: bf16[512,1024], index: 16, kind: input, shape index: {}]   ;;  %s13370_s17 = inlined_call_operand.hbm [shape: f32[1,1024], index: 17, kind: input, shape index: {}]   ;;  %s13371_s18 = inlined_call_operand.vmem [shape: f32[2,192], index: 18, kind: output, shape index: {0}]   ;;  %s13372_s19 = inlined_call_operand.vmem [shape: bf16[2,1024], index: 19, kind: output, shape index: {1}]  }
   0x1   :  { %13382 = sst [smem:[#allocation36_spill]] %s13353_s0 }
   0x2   :  { %13383 = sst [smem:[#allocation37_spill]] %s13354_s1 }
   0x3   :  { %13384 = sst [smem:[#allocation38_spill]] %s13355_s2 }
   0x4   :  { %13385 = sst [smem:[#allocation39_spill]] %s13356_s3 }
   0x5   :  { %13386 = sst [smem:[#allocation40_spill]] %s13357_s4 }
   0x6   :  { %13387 = sst [smem:[#allocation41_spill]] %s13358_s5 }
   0x7   :  { %13388 = sst [smem:[#allocation42_spill]] %s13359_s6 }
   0x8   :  { %13389 = sst [smem:[#allocation43_spill]] %s13361_s8 }
   0x9   :  { %13390 = sst [smem:[#allocation44_spill]] %s13362_s9 }
   0xa   :  { %13391 = sst [smem:[#allocation45_spill]] %s13363_s10 }
   0xb   :  { %13392 = sst [smem:[#allocation46_spill]] %s13371_s18 }
   0xc   :  { %13393 = sst [smem:[#allocation47_spill]] %s13372_s19 }
   0xd   :  { %25 = vsyncpa [#allocation4], 0 }
   0xe   :  { %26 = vsyncpa [#allocation6], 0 }
   0xf   :  { %28 = vsyncpa [#allocation6 + $0x1], 0 }
  0x10   :  { %29 = vsyncpa [#allocation9], 0 }
  0x11   :  { %30 = vsyncpa [#allocation12], 0 }
  0x12   :  { %31 = vsyncpa [#allocation15], 0 }
  0x13   :  { %32 = vsyncpa [#allocation18], 0 }
  0x14   :  { %33 = vsyncpa [#allocation21], 0 }
  0x15   :  { %34 = vsyncpa [#allocation24], 0  ;;  %s12426_s0 = smov 0   ;;  %s12428_s30 = smov 0  }
  0x16   :  { %s12430_s20 = smov 0   ;;  %s12432_s21 = smov 0  }
  0x17 LB: > { %s13394_s2 = sld [smem:[#allocation39_spill]]  ;;  %s12450_s24 = sadd.s32 4294967295, %s12302_s21   ;;  %s12302_s21 = sphi %s12432_s21, %s13420_s21   ;;  %s12298_s20 = sphi %s12430_s20, %s13419_s20   ;;  %s12294_s30 = sphi %s12428_s30, %s13418_s30   ;;  %s12290_s0 = sphi %s12426_s0, %s13417_s0  }
  0x18   : > { %p7548_p0 = scmp.ge.s32.totalorder %s12302_s21, 1  ;;  %p108_p1 = scmp.eq.s32.totalorder %s12450_s24, 0 }
  0x19   : > { %p475_p2 = scmp.lt.s32.totalorder %s12302_s21, 3  ;;  %p7549_p3 = scmp.ne.s32.totalorder %s12450_s24, 0 }
  0x1a   : > { %s12304_s3 = smov [#allocation7]   ;;  %s13397_s4 = sld [smem:[#allocation40_spill]] }
  0x1b   : > { %p12456_p4 = pnand %p7548_p0, %p475_p2  ;;  %s501_s26 = sshll.u32 %s12304_s3, 4  ;;  %s502_s26 = int_to_ptr.vmem [resolvable:$true] %s501_s26 }
  0x1c   : > { %s12305_s22 = smov [#allocation8]   ;;  %s13378_s3 = smov 256  }
  0x1d   : > { %s499_s23 = sshll.u32 %s13394_s2, 4  ;;  %p11610_p5 = pneg %p12456_p4  ;;  %s500_s23 = int_to_ptr.hbm [resolvable:$true] %s499_s23 }
  0x1e   : > { %s13395_s25 = scalar_select %p12456_p4, 1, 0 }
  0x1f   : > { %p12467_p6 = pnand %p11610_p5, %p108_p1  ;;  %s512_s2 = sshll.u32 %s12305_s22, 4  ;;  %s513_s2 = int_to_ptr.vmem [resolvable:$true] %s512_s2 }
  0x20   : > { %13396 = sst [smem:[#allocation35_spill]] %s13395_s25  ;;  %s510_s29 = sshll.u32 %s13397_s4, 4  ;;  %s511_s29 = int_to_ptr.hbm [resolvable:$true] %s510_s29 }
  0x21   : > { %11616 = dma.hbm_to_vmem [thread:$0]  (!%p12467_p6), %s500_s23, 128, %s502_s26, [#allocation6]  }
  0x22   : > { %s13379_s19 = smov 16   ;;  %s13399_s6 = sld [smem:[#allocation42_spill]] }
  0x23   : > { %11619 = dma.hbm_to_vmem [thread:$0]  (!%p12467_p6), %s511_s29, 32768, %s513_s2, [#allocation9], %s13378_s3, %s13378_s3, %s13379_s19  }
  0x24   : > { %s12308_s18 = smov [#allocation11]   ;;  %s13400_s9 = sld [smem:[#allocation44_spill]] }
  0x25   : > { %s538_s10 = sshll.u32 %s12308_s18, 4  ;;  %s12309_s26 = smov 64   ;;  %s539_s10 = int_to_ptr.vmem [resolvable:$true] %s538_s10 }
  0x26   : > { %s12310_s25 = smov 4   ;;  %s12311_s29 = smov [#allocation14]  }
  0x27   : > { %s568_s2 = sshll.u32 %s12311_s29, 4  ;;  %s592_s28 = sshll.u32 %s13365_s12, 4  ;;  %s569_s2 = int_to_ptr.vmem [resolvable:$true] %s568_s2  ;;  %s593_s28 = int_to_ptr.hbm [resolvable:$true] %s592_s28 }
  0x28   : > { %s536_s4 = sshll.u32 %s13399_s6, 4  ;;  %s618_s22 = sshll.u32 %s13367_s14, 4  ;;  %s537_s4 = int_to_ptr.hbm [resolvable:$true] %s536_s4  ;;  %s619_s22 = int_to_ptr.hbm [resolvable:$true] %s618_s22 }
  0x29   : > { %11625 = dma.hbm_to_vmem [thread:$0]  (!%p12467_p6), %s537_s4, 4096, %s539_s10, [#allocation12], %s12309_s26, %s12309_s26, %s12310_s25  }
  0x2a   : > { %s566_s23 = sshll.u32 %s13400_s9, 4  ;;  %s12312_s19 = smov [#allocation17]   ;;  %s567_s23 = int_to_ptr.hbm [resolvable:$true] %s566_s23 }
  0x2b   : > { %11631 = dma.hbm_to_vmem [thread:$0]  (!%p12467_p6), %s567_s23, 16, %s569_s2, [#allocation15]  }
  0x2c   : > { %s594_s6 = sshll.u32 %s12312_s19, 4  ;;  %s12313_s4 = smov [#allocation20]   ;;  %s595_s6 = int_to_ptr.vmem [resolvable:$true] %s594_s6 }
  0x2d   : > { %11637 = dma.hbm_to_vmem [thread:$0]  (!%p12467_p6), %s593_s28, 512, %s595_s6, [#allocation18], %s12309_s26, %s12309_s26, %s12310_s25  }
  0x2e   : > { %s620_s10 = sshll.u32 %s12313_s4, 4  ;;  %s644_s27 = sshll.u32 %s13369_s16, 4  ;;  %s621_s10 = int_to_ptr.vmem [resolvable:$true] %s620_s10  ;;  %s645_s27 = int_to_ptr.hbm [resolvable:$true] %s644_s27 }
  0x2f   : > { %s13401_s23 = smov 16   ;;  %s13402_s2 = smov 256  }
  0x30   : > { %11643 = dma.hbm_to_vmem [thread:$0]  (!%p12467_p6), %s619_s22, 4096, %s621_s10, [#allocation21], %s13402_s2, %s13402_s2, %s13401_s23  }
  0x31   : > { %s12314_s19 = smov [#allocation23]   ;;  %s13403_s6 = sld [smem:[#allocation37_spill]] }
  0x32   : > { %s646_s18 = sshll.u32 %s12314_s19, 4  ;;  %s13380_s26 = smov 512   ;;  %s647_s18 = int_to_ptr.vmem [resolvable:$true] %s646_s18 }
  0x33   : > { %s13381_s28 = smov 32   ;;  %s12317_s4 = smov [#allocation3]  }
  0x34   : > { %11649 = dma.hbm_to_vmem [thread:$0]  (!%p12467_p6), %s645_s27, 32768, %s647_s18, [#allocation24], %s13380_s26, %s13380_s26, %s13381_s28  }
  0x35   : > { %s489_s3 = sshll.u32 %s12317_s4, 4  ;;  %s13404_s5 = sld [smem:[#allocation41_spill]]  ;;  %s490_s3 = int_to_ptr.vmem [resolvable:$true] %s489_s3 }
  0x36   : > { %s551_s2 = sshll.u32 %s13360_s7, 4  ;;  %s12318_s19 = smov [#allocation10]   ;;  %s552_s2 = int_to_ptr.hbm [resolvable:$true] %s551_s2 }
  0x37   : > { %s487_s25 = sshll.u32 %s13403_s6, 4  ;;  %s527_s8 = sshll.u32 %s12318_s19, 4  ;;  %s488_s25 = int_to_ptr.hbm [resolvable:$true] %s487_s25  ;;  %s528_s8 = int_to_ptr.vmem [resolvable:$true] %s527_s8 }
  0x38   : > { %11613 = dma.hbm_to_vmem [thread:$0]  (!%p12467_p6), %s488_s25, 32, %s490_s3, [#allocation4]  }
  0x39   : > { %s12319_s27 = smov [#allocation13]   ;;  %s581_s29 = sshll.u32 %s13364_s11, 4  ;;  %s582_s29 = int_to_ptr.hbm [resolvable:$true] %s581_s29 }
  0x3a   : > { %s553_s18 = sshll.u32 %s12319_s27, 4  ;;  %s607_s22 = sshll.u32 %s13366_s13, 4  ;;  %s554_s18 = int_to_ptr.vmem [resolvable:$true] %s553_s18  ;;  %s608_s22 = int_to_ptr.hbm [resolvable:$true] %s607_s22 }
  0x3b   : > { %s525_s10 = sshll.u32 %s13404_s5, 4  ;;  %s12320_s9 = smov [#allocation16]   ;;  %s526_s10 = int_to_ptr.hbm [resolvable:$true] %s525_s10 }
  0x3c   : > { %11622 = dma.hbm_to_vmem [thread:$0]  (!%p12467_p6), %s526_s10, 64, %s528_s8, [#allocation9]  }
  0x3d   : > { %11628 = dma.hbm_to_vmem [thread:$0]  (!%p12467_p6), %s552_s2, 16, %s554_s18, [#allocation12]  }
  0x3e   : > { %s583_s23 = sshll.u32 %s12320_s9, 4  ;;  %s12321_s10 = smov [#allocation19]   ;;  %s584_s23 = int_to_ptr.vmem [resolvable:$true] %s583_s23 }
  0x3f   : > { %11634 = dma.hbm_to_vmem [thread:$0]  (!%p12467_p6), %s582_s29, 16, %s584_s23, [#allocation15]  }
  0x40   : > { %s609_s19 = sshll.u32 %s12321_s10, 4  ;;  %s633_s2 = sshll.u32 %s13368_s15, 4  ;;  %s610_s19 = int_to_ptr.vmem [resolvable:$true] %s609_s19  ;;  %s634_s2 = int_to_ptr.hbm [resolvable:$true] %s633_s2 }
  0x41   : > { %11640 = dma.hbm_to_vmem [thread:$0]  (!%p12467_p6), %s608_s22, 16, %s610_s19, [#allocation18]  }
  0x42   : > { %s659_s4 = sshll.u32 %s13370_s17, 4  ;;  %s12322_s29 = smov [#allocation22]   ;;  %s660_s4 = int_to_ptr.hbm [resolvable:$true] %s659_s4 }
  0x43   : > { %s635_s25 = sshll.u32 %s12322_s29, 4  ;;  %s12323_s3 = smov [#allocation25]   ;;  %s636_s25 = int_to_ptr.vmem [resolvable:$true] %s635_s25 }
  0x44   : > { %11646 = dma.hbm_to_vmem [thread:$0]  (!%p12467_p6), %s634_s2, 64, %s636_s25, [#allocation21]  }
  0x45   : > { %s661_s22 = sshll.u32 %s12323_s3, 4  ;;  %s12545_s9 = sadd.s32 1, %s12302_s21   ;;  %s662_s22 = int_to_ptr.vmem [resolvable:$true] %s661_s22 }
  0x46   : > { %11652 = dma.hbm_to_vmem [thread:$0]  (!%p12467_p6), %s660_s4, 128, %s662_s22, [#allocation24]  }
  0x47   : > { %s94_s23 = sadd.s32 1, %s12298_s20  ;;  %s91_s10 = ssub.s32 %s12302_s21, %s12545_s9 }
  0x48   : > { %p101_p7 = scmp.ne.s32.totalorder %s12298_s20, %s12294_s30  ;;  %p92_p8 = scmp.eq.s32.totalorder %s91_s10, 0 }
  0x49   : > { %p102_p9 = scmp.eq.s32.totalorder %s12302_s21, 0  ;;  %p107_p10 = scmp.ne.s32.totalorder %s12294_s30, %s12290_s0 }
  0x4a   : > { %p11671_p11 = scmp.lt.s32.totalorder %s12302_s21, 2  ;;  %s681_s1 = sand.u32 1, %s12302_s21  }
  0x4b   : > { %s12557_s19 = scalar_select %p92_p8, %s12298_s20, %s94_s23  }
  0x4c   : > { %p103_p12 = por %p102_p9, %p101_p7  ;;  %p12561_p13 = por %p108_p1, %p107_p10 }
  0x4d   : > { %s683_s27 = sand.u32 1, %s12298_s20   ;;  %s11549_s18 = smul.u32 1536, %s12302_s21 }
  0x4e   : > { %s11550_s2 = smul.u32 1536, %s683_s27  ;;  %p12568_p0 = pnand %p11671_p11, %p103_p12 }
  0x4f   : > { %s13407_s0 = sld [smem:[#allocation38_spill]]  ;;  %s682_s26 = scalar_lea.sflag [#allocation6], %s681_s1 }
  0x50   : > { %s685_s22 = scalar_lea.vmem [#allocation5], %s11550_s2  ;;  %p12210_p5 = pneg %p12568_p0 }
  0x51   : > { %s694_s23 = sshll.u32 %s685_s22, 4  ;;  %s695_s23 = int_to_ptr.vmem [resolvable:$true] %s694_s23 }
  0x55   : > { %s13408_s25 = smov %s13407_s0  ;;  %s691_s3 = scalar_lea.hbm %s13407_s0, %s11549_s18 }
  0x56   : > { %s692_s10 = sshll.u32 %s691_s3, 4  ;;  %s12213_s4 = scalar_lea.hbm %s13408_s25, 3072  ;;  %s693_s10 = int_to_ptr.hbm [resolvable:$true] %s692_s10 }
  0x57   : > { %s12206_s28 = sshra.s32 %s693_s10, 4  ;;  %s12207_s28 = int_to_ptr.hbm [resolvable:$true] %s12206_s28 }
  0x58   : > { %s12208_s5 = scalar_lea.hbm %s12207_s28, 1536  ;;  %p12214_p8 = scmp.lt.s32.totalorder %s12207_s28, %s13408_s25 }
  0x59   : > { %p12209_p2 = scmp.ne.s32.totalorder %s12207_s28, %s12208_s5  ;;  %p12215_p9 = scmp.lt.s32.totalorder %s12213_s4, %s12208_s5 }
  0x5b   : > { %p12211_p6 = pnand %p12210_p5, %p12209_p2  ;;  %p12216_p10 = por %p12215_p9, %p12214_p8 }
  0x5d   : > { %p12212_p7 = pneg %p12211_p6 }
  0x5f   : > { %p12217_p11 = pnand %p12216_p10, %p12212_p7 }
  0x61   : > { %12220 = shalt.err (!%p12217_p11)
}
  0x62   : > { %s13409_s1 = smov 32   ;;  %s13410_s2 = smov 512  }
  0x63   : > { %11656 = dma.hbm_to_vmem [thread:$0]  (!%p12568_p0), %s693_s10, 24576, %s695_s23, %s682_s26, %s13410_s2, %s13410_s2, %s13409_s1  }
  0x64   : > { %706 = sbr.rel (%p12456_p4) target bundleno = 1876 (0x754), region = 92 }
  0x69   : > { %12253 = dma.done.wait (%p108_p1), [#allocation4], 32  }
  0x6a   : > { %12255 = vsyncadd (%p108_p1), [#allocation4], 4294967264  ;;  %s713_s5 = sand.u32 1, %s12450_s24   ;;  %s715_s28 = sand.u32 1, %s12294_s30  }
  0x6b   : > { %s11551_s3 = smul.u32 1536, %s715_s28  ;;  %s714_s6 = scalar_lea.sflag [#allocation6], %s713_s5 }
  0x6d   : > { %s12596_s22 = scalar_lea.vmem [#allocation5], %s11551_s3 }
  0x6e   : > { %12257 = dma.done.wait (%p12561_p13), %s714_s6, 24576  }
  0x6f   : > { %12259 = vsyncadd (%p12561_p13), %s714_s6, 4294942720 }
  0x70   : > { %12261 = dma.done.wait (%p108_p1), [#allocation6], 128  }
  0x71   : > { %12263 = vsyncadd (%p108_p1), [#allocation6], 4294967168 }
  0x72   : > { %12265 = dma.done.wait (%p108_p1), [#allocation9], 32832  }
  0x73   : > { %12267 = vsyncadd (%p108_p1), [#allocation9], 4294934464 }
  0x74   : > { %12269 = dma.done.wait (%p108_p1), [#allocation12], 4112  }
  0x75   : > { %12271 = vsyncadd (%p108_p1), [#allocation12], 4294963184 }
  0x76   : > { %12273 = dma.done.wait (%p108_p1), [#allocation15], 32  }
  0x77   : > { %12275 = vsyncadd (%p108_p1), [#allocation15], 4294967264 }
  0x78   : > { %12277 = dma.done.wait (%p108_p1), [#allocation18], 528  }
  0x79   : > { %12279 = vsyncadd (%p108_p1), [#allocation18], 4294966768 }
  0x7a   : > { %12281 = dma.done.wait (%p108_p1), [#allocation21], 4160  }
  0x7b   : > { %12283 = vsyncadd (%p108_p1), [#allocation21], 4294963136 }
  0x7c   : > { %12285 = dma.done.wait (%p108_p1), [#allocation24], 32896  }
  0x7d   : > { %12287 = vsyncadd (%p108_p1), [#allocation24], 4294934400  ;;  %s838_s26 = smul.u32 3, %s12450_s24  ;;  %s13412_s21 = sld [smem:[#allocation36_spill]] }
  0x7f   : > { %p839_p4 = scmp.lt.s32.totalorder %s838_s26, 5  ;;  %849 = sbr.rel (%p7549_p3) target bundleno = 135 (0x87), region = 156 }
  0x81   : > { %s13422_s26 = smov (!%p839_p4, %s838_s26), 5 }
  0x82   : > { %s7581_s8 = sshll.u32 %s13422_s26, 1 }
  0x83   : > { %s12634_s27 = scalar_lea.vmem %s13412_s21, %s7581_s8 }
  0x84   : > { %v12324_v0 = vmov 0.0  }
  0x85   : > { %850 = vst [vmem:[#allocation2] sm:$0xff] %v12324_v0 }
  0x86   : > { %851 = vst [vmem:[#allocation2 + $0x8] sm:$0xff] %v12324_v0 }
  0x87 PF: > { %v7809_v1 = vld [vmem:[%s12596_s22 + $0x1c0] sm:$0xf]  ;;  %v10817_v10 = vld [vmem:[%s12596_s22 + $0x1c4] sm:$0xf]  ;;  %vm2344_vm0 = vcmask 1041408   ;;  %vm2346_vm1 = vcmask 1045508  }
  0x88   : > { %v10821_v2 = vld [vmem:[%s12596_s22 + $0x1dc] sm:$0xf0]  ;;  %v7811_v11 = vld [vmem:[%s12596_s22 + $0x1e0] sm:$0xf0]  ;;  %vm2348_vm2 = vcmask 1043456   ;;  %p8351_p1 = scmp.ne.s32.totalorder %s12450_s24, 1 }
  0x89   : > { %v8065_v3 = vld [vmem:[%s12596_s22 + $0x3c0] sm:$0xf]  ;;  %v7810_v4 = vor.u32 %v10821_v2, %v7809_v1  ;;  %v7814_v13 = vor.u32 %v10817_v10, %v7811_v11  ;;  %v10809_v21 = vld [vmem:[%s12596_s22 + $0x184] sm:$0xf]  ;;  %s13413_s29 = sld [smem:[#allocation43_spill]] (!%p8351_p1)  ;;  %s12325_s1 = smov (!%p8351_p1), 64  }
  0x8a   : > { %v10885_v5 = vld [vmem:[%s12596_s22 + $0x3dc] sm:$0xf0]  ;;  %v7779_v23 = vld [vmem:[%s12596_s22 + $0x1a0] sm:$0xf0]  ;;  %s13414_s2 = sld [smem:[#allocation45_spill]] (!%p8351_p1) }
  0x8b   : > { %v8321_v6 = vld [vmem:[%s12596_s22 + $0x5c0] sm:$0xf]  ;;  %v8066_v8 = vor.u32 %v10885_v5, %v8065_v3  ;;  %2018 = vmatpush.bf16.msra.mxu0 %v7810_v4  ;;  %2057 = vmatpush.bf16.msra.mxu3 %v7814_v13  ;;  %v7782_v26 = vor.u32 %v10809_v21, %v7779_v23  ;;  %v10801_v32 = vld [vmem:[%s12596_s22 + $0x144] sm:$0xf]  ;;  %s13415_s18 = sld [smem:[#allocation46_spill]] (!%p8351_p1) }
  0x8c   : > { %v10949_v7 = vld [vmem:[%s12596_s22 + $0x5dc] sm:$0xf0]  ;;  %v7747_v33 = vld [vmem:[%s12596_s22 + $0x160] sm:$0xf0]  ;;  %s13416_s26 = sld [smem:[#allocation47_spill]] (!%p8351_p1) }
  0x8d   : > { %v8322_v9 = vor.u32 %v10949_v7, %v8321_v6  ;;  %v7777_v12 = vld [vmem:[%s12596_s22 + $0x180] sm:$0xf]  ;;  %2031 = vmatpush.bf16.msra.mxu1 %v8066_v8  ;;  %v7750_v39 = vor.u32 %v10801_v32, %v7747_v33  ;;  %v10793_v43 = vld [vmem:[%s12596_s22 + $0x104] sm:$0xf] }
  0x8e   : > { %v10813_v14 = vld [vmem:[%s12596_s22 + $0x19c] sm:$0xf0]  ;;  %v7715_v44 = vld [vmem:[%s12596_s22 + $0x120] sm:$0xf0] }
  0x8f   : > { %v8033_v15 = vld [vmem:[%s12596_s22 + $0x380] sm:$0xf]  ;;  %2044 = vmatpush.bf16.msra.mxu2 %v8322_v9  ;;  %v7778_v17 = vor.u32 %v10813_v14, %v7777_v12  ;;  %2058 = vmatpush.bf16.msra.mxu3 %v7782_v26  ;;  %v7718_v51 = vor.u32 %v10793_v43, %v7715_v44  ;;  %v10785_v55 = vld [vmem:[%s12596_s22 + $0xc4] sm:$0xf] }
  0x90   : > { %v10877_v16 = vld [vmem:[%s12596_s22 + $0x39c] sm:$0xf0]  ;;  %v7683_v56 = vld [vmem:[%s12596_s22 + $0xe0] sm:$0xf0] }
  0x91   : > { %v8034_v18 = vor.u32 %v10877_v16, %v8033_v15  ;;  %v8289_v19 = vld [vmem:[%s12596_s22 + $0x580] sm:$0xf]  ;;  %2019 = vmatpush.bf16.msra.mxu0 %v7778_v17  ;;  %v7686_v63 = vor.u32 %v10785_v55, %v7683_v56  ;;  %v10777_v3 = vld [vmem:[%s12596_s22 + $0x84] sm:$0xf] }
  0x92   : > { %v10941_v20 = vld [vmem:[%s12596_s22 + $0x59c] sm:$0xf0]  ;;  %v7651_v4 = vld [vmem:[%s12596_s22 + $0xa0] sm:$0xf0] }
  0x93   : > { %v8290_v22 = vor.u32 %v10941_v20, %v8289_v19  ;;  %v7745_v24 = vld [vmem:[%s12596_s22 + $0x140] sm:$0xf]  ;;  %2032 = vmatpush.bf16.msra.mxu1 %v8034_v18  ;;  %2059 = vmatpush.bf16.msra.mxu3 %v7750_v39  ;;  %v7654_v11 = vor.u32 %v10777_v3, %v7651_v4  ;;  %v10769_v15 = vld [vmem:[%s12596_s22 + $0x44] sm:$0xf]  ;;  %v10886_v39 = vld [vmem:[%s12596_s22 + $0x3e4] sm:$0xf0] }
  0x94   : > { %v10805_v25 = vld [vmem:[%s12596_s22 + $0x15c] sm:$0xf0]  ;;  %v7619_v16 = vld [vmem:[%s12596_s22 + $0x60] sm:$0xf0] }
  0x95   : > { %v8001_v27 = vld [vmem:[%s12596_s22 + $0x340] sm:$0xf]  ;;  %v7746_v30 = vor.u32 %v10805_v25, %v7745_v24  ;;  %2045 = vmatpush.bf16.msra.mxu2 %v8290_v22  ;;  %v7622_v25 = vor.u32 %v10769_v15, %v7619_v16  ;;  %v8323_v33 = vld [vmem:[%s12596_s22 + $0x5e0] sm:$0xf0] }
  0x96   : > { %v10869_v28 = vld [vmem:[%s12596_s22 + $0x35c] sm:$0xf0]  ;;  %v10873_v44 = vld [vmem:[%s12596_s22 + $0x384] sm:$0xf] }
  0x97   : > { %v8257_v29 = vld [vmem:[%s12596_s22 + $0x540] sm:$0xf]  ;;  %v8002_v34 = vor.u32 %v10869_v28, %v8001_v27  ;;  %2020 = vmatpush.bf16.msra.mxu0 %v7746_v30  ;;  %2060 = vmatpush.bf16.msra.mxu3 %v7718_v51  ;;  %v10761_v27 = vld [vmem:[%s12596_s22 + $0x4] sm:$0xf]  ;;  %v8041_v51 = vld [vmem:[%s12596_s22 + $0x388] sm:$0xf] }
  0x98   : > { %v10933_v31 = vld [vmem:[%s12596_s22 + $0x55c] sm:$0xf0]  ;;  %v7587_v28 = vld [vmem:[%s12596_s22 + $0x20] sm:$0xf0] }
  0x99   : > { %v8258_v35 = vor.u32 %v10933_v31, %v8257_v29  ;;  %v7713_v36 = vld [vmem:[%s12596_s22 + $0x100] sm:$0xf]  ;;  %2033 = vmatpush.bf16.msra.mxu1 %v8002_v34  ;;  %v10881_v29 = vld [vmem:[%s12596_s22 + $0x3c4] sm:$0xf]  ;;  %v7817_v34 = vld [vmem:[%s12596_s22 + $0x1c8] sm:$0xf] }
  0x9a   : > { %v10797_v37 = vld [vmem:[%s12596_s22 + $0x11c] sm:$0xf0]  ;;  %v8067_v30 = vld [vmem:[%s12596_s22 + $0x3e0] sm:$0xf0] }
  0x9b   : > { %v7969_v38 = vld [vmem:[%s12596_s22 + $0x300] sm:$0xf]  ;;  %v7714_v45 = vor.u32 %v10797_v37, %v7713_v36  ;;  %2046 = vmatpush.bf16.msra.mxu2 %v8258_v35  ;;  %2061 = vmatpush.bf16.msra.mxu3 %v7686_v63  ;;  %v10945_v31 = vld [vmem:[%s12596_s22 + $0x5c4] sm:$0xf]  ;;  %v10822_v35 = vld [vmem:[%s12596_s22 + $0x1e4] sm:$0xf0] }
  0x9c   : > { %v10861_v40 = vld [vmem:[%s12596_s22 + $0x31c] sm:$0xf0]  ;;  %v7818_v43 = vor.u32 %v10822_v35, %v7817_v34  ;;  %v10806_v63 = vld [vmem:[%s12596_s22 + $0x164] sm:$0xf0]  ;;  %v10857_v3 = vld [vmem:[%s12596_s22 + $0x304] sm:$0xf] }
  0x9d   : > { %v8225_v41 = vld [vmem:[%s12596_s22 + $0x500] sm:$0xf]  ;;  %v7970_v46 = vor.u32 %v10861_v40, %v7969_v38  ;;  %2021 = vmatpush.bf16.msra.mxu0 %v7714_v45  ;;  %v8073_v38 = vld [vmem:[%s12596_s22 + $0x3c8] sm:$0xf]  ;;  %v7590_v40 = vor.u32 %v10761_v27, %v7587_v28  ;;  %v8035_v45 = vld [vmem:[%s12596_s22 + $0x3a0] sm:$0xf0] }
  0x9e   : > { %v10925_v42 = vld [vmem:[%s12596_s22 + $0x51c] sm:$0xf0]  ;;  %v7971_v4 = vld [vmem:[%s12596_s22 + $0x320] sm:$0xf0]  ;;  %v7689_v28 = vld [vmem:[%s12596_s22 + $0xc8] sm:$0xf] }
  0x9f   : > { %v8226_v47 = vor.u32 %v10925_v42, %v8225_v41  ;;  %v7681_v48 = vld [vmem:[%s12596_s22 + $0xc0] sm:$0xf]  ;;  %2034 = vmatpush.bf16.msra.mxu1 %v7970_v46  ;;  %2062 = vmatpush.bf16.msra.mxu3 %v7654_v11  ;;  %v8070_v41 = vor.u32 %v10881_v29, %v8067_v30  ;;  %v8326_v42 = vor.u32 %v10945_v31, %v8323_v33  ;;  %v10937_v46 = vld [vmem:[%s12596_s22 + $0x584] sm:$0xf]  ;;  %v10798_v11 = vld [vmem:[%s12596_s22 + $0x124] sm:$0xf0] }
  0xa0   : > { %v10789_v49 = vld [vmem:[%s12596_s22 + $0xdc] sm:$0xf0]  ;;  %v7974_v16 = vor.u32 %v10857_v3, %v7971_v4  ;;  %v8195_v27 = vld [vmem:[%s12596_s22 + $0x4e0] sm:$0xf0]  ;;  %v10790_v29 = vld [vmem:[%s12596_s22 + $0xe4] sm:$0xf0] }
  0xa1   : > { %v7937_v50 = vld [vmem:[%s12596_s22 + $0x2c0] sm:$0xf]  ;;  %v7682_v57 = vor.u32 %v10789_v49, %v7681_v48  ;;  %2047 = vmatpush.bf16.msra.mxu2 %v8226_v47  ;;  %v8074_v47 = vor.u32 %v10886_v39, %v8073_v38  ;;  %v8291_v48 = vld [vmem:[%s12596_s22 + $0x5a0] sm:$0xf0]  ;;  %v7785_v49 = vld [vmem:[%s12596_s22 + $0x188] sm:$0xf]  ;;  %v7690_v34 = vor.u32 %v10790_v29, %v7689_v28 }
  0xa2   : > { %v10853_v52 = vld [vmem:[%s12596_s22 + $0x2dc] sm:$0xf0]  ;;  %v8294_v55 = vor.u32 %v10937_v46, %v8291_v48  ;;  %v7945_v30 = vld [vmem:[%s12596_s22 + $0x2c8] sm:$0xf]  ;;  %v10841_v35 = vld [vmem:[%s12596_s22 + $0x284] sm:$0xf] }
  0xa3   : > { %v8193_v53 = vld [vmem:[%s12596_s22 + $0x4c0] sm:$0xf]  ;;  %v7938_v58 = vor.u32 %v10853_v52, %v7937_v50  ;;  %2022 = vmatpush.bf16.msra.mxu0 %v7682_v57  ;;  %2063 = vmatpush.bf16.msra.mxu3 %v7622_v25  ;;  %v10814_v50 = vld [vmem:[%s12596_s22 + $0x1a4] sm:$0xf0]  ;;  %v10865_v57 = vld [vmem:[%s12596_s22 + $0x344] sm:$0xf] }
  0xa4   : > { %v10917_v54 = vld [vmem:[%s12596_s22 + $0x4dc] sm:$0xf0]  ;;  %v10878_v52 = vld [vmem:[%s12596_s22 + $0x3a4] sm:$0xf0]  ;;  %v7786_v56 = vor.u32 %v10814_v50, %v7785_v49  ;;  %v8163_v39 = vld [vmem:[%s12596_s22 + $0x4a0] sm:$0xf0] }
  0xa5   : > { %v8194_v59 = vor.u32 %v10917_v54, %v8193_v53  ;;  %v7649_v60 = vld [vmem:[%s12596_s22 + $0x80] sm:$0xf]  ;;  %2035 = vmatpush.bf16.msra.mxu1 %v7938_v58  ;;  %v854_v53 = vld [vmem:[%s12634_s27] sm:$0x3f]  ;;  %v8038_v54 = vor.u32 %v10873_v44, %v8035_v45  ;;  %v8043_v28 = vld [vmem:[%s12596_s22 + $0x3a8] sm:$0xf0] }
  0xa6   : > { %v10781_v61 = vld [vmem:[%s12596_s22 + $0x9c] sm:$0xf0]  ;;  %856 = vst [vmem:[#allocation1] ss:$4 sm:$0xff] %v854_v53  ;;  %v8003_v58 = vld [vmem:[%s12596_s22 + $0x360] sm:$0xf0] }
  0xa7   : > { %v7905_v62 = vld [vmem:[%s12596_s22 + $0x280] sm:$0xf]  ;;  %v7650_v5 = vor.u32 %v10781_v61, %v7649_v60  ;;  %2048 = vmatpush.bf16.msra.mxu2 %v8194_v59  ;;  %2064 = vmatpush.bf16.msra.mxu3 %v7590_v40  ;;  %v10929_v59 = vld [vmem:[%s12596_s22 + $0x544] sm:$0xf]  ;;  %v8042_v60 = vor.u32 %v10878_v52, %v8041_v51  ;;  %v10854_v31 = vld [vmem:[%s12596_s22 + $0x2e4] sm:$0xf0] }
  0xa8   : > { %v10845_v0 = vld [vmem:[%s12596_s22 + $0x29c] sm:$0xf0]  ;;  %v8259_v61 = vld [vmem:[%s12596_s22 + $0x560] sm:$0xf0]  ;;  %v7946_v38 = vor.u32 %v10854_v31, %v7945_v30  ;;  %v7657_v40 = vld [vmem:[%s12596_s22 + $0x88] sm:$0xf] }
  0xa9   : > { %v8161_v1 = vld [vmem:[%s12596_s22 + $0x480] sm:$0xf]  ;;  %v7906_v6 = vor.u32 %v10845_v0, %v7905_v62  ;;  %2023 = vmatpush.bf16.msra.mxu0 %v7650_v5  ;;  %v7753_v62 = vld [vmem:[%s12596_s22 + $0x148] sm:$0xf]  ;;  %v8262_v5 = vor.u32 %v10929_v59, %v8259_v61  ;;  %v7875_v48 = vld [vmem:[%s12596_s22 + $0x260] sm:$0xf0] }
  0xaa   : > { %v10909_v2 = vld [vmem:[%s12596_s22 + $0x49c] sm:$0xf0]  ;;  %v8009_v0 = vld [vmem:[%s12596_s22 + $0x348] sm:$0xf]  ;;  %v10897_v49 = vld [vmem:[%s12596_s22 + $0x444] sm:$0xf] }
  0xab   : > { %v8162_v7 = vor.u32 %v10909_v2, %v8161_v1  ;;  %v7617_v8 = vld [vmem:[%s12596_s22 + $0x40] sm:$0xf]  ;;  %2036 = vmatpush.bf16.msra.mxu1 %v7906_v6  ;;  %2109 = vmatpush.bf16.msrb.mxu3 %v8074_v47  ;;  %v10870_v1 = vld [vmem:[%s12596_s22 + $0x364] sm:$0xf0]  ;;  %v8006_v2 = vor.u32 %v10865_v57, %v8003_v58  ;;  %v7754_v6 = vor.u32 %v10806_v63, %v7753_v62  ;;  %v10833_v47 = vld [vmem:[%s12596_s22 + $0x244] sm:$0xf] }
  0xac   : > { %v10773_v9 = vld [vmem:[%s12596_s22 + $0x5c] sm:$0xf0]  ;;  %v8131_v51 = vld [vmem:[%s12596_s22 + $0x460] sm:$0xf0]  ;;  %v7625_v52 = vld [vmem:[%s12596_s22 + $0x48] sm:$0xf] }
  0xad   : > { %v7873_v10 = vld [vmem:[%s12596_s22 + $0x240] sm:$0xf]  ;;  %v7618_v17 = vor.u32 %v10773_v9, %v7617_v8  ;;  %2049 = vmatpush.bf16.msra.mxu2 %v8162_v7  ;;  %v10921_v7 = vld [vmem:[%s12596_s22 + $0x504] sm:$0xf]  ;;  %v7721_v9 = vld [vmem:[%s12596_s22 + $0x108] sm:$0xf]  ;;  %v8134_v59 = vor.u32 %v10897_v49, %v8131_v51 }
  0xae   : > { %v10837_v12 = vld [vmem:[%s12596_s22 + $0x25c] sm:$0xf0]  ;;  %v8227_v8 = vld [vmem:[%s12596_s22 + $0x520] sm:$0xf0]  ;;  %v10774_v53 = vld [vmem:[%s12596_s22 + $0x64] sm:$0xf0] }
  0xaf   : > { %v8129_v13 = vld [vmem:[%s12596_s22 + $0x440] sm:$0xf]  ;;  %v7874_v20 = vor.u32 %v10837_v12, %v7873_v10  ;;  %2024 = vmatpush.bf16.msra.mxu0 %v7618_v17  ;;  %2110 = vmatpush.bf16.msrb.mxu3 %v8042_v60  ;;  %v8010_v10 = vor.u32 %v10870_v1, %v8009_v0  ;;  %v7977_v12 = vld [vmem:[%s12596_s22 + $0x308] sm:$0xf]  ;;  %v10825_v57 = vld [vmem:[%s12596_s22 + $0x204] sm:$0xf]  ;;  %v7626_v60 = vor.u32 %v10774_v53, %v7625_v52 }
  0xb0   : > { %v10901_v14 = vld [vmem:[%s12596_s22 + $0x45c] sm:$0xf0]  ;;  %v858_v15 = vld.sshfl [vmem:[#allocation1 + $0x8] sm:$0xff pattern:$0x73625140] }
  0xb1   : > { %v7585_v18 = vld [vmem:[%s12596_s22] sm:$0xf]  ;;  %v8130_v21 = vor.u32 %v10901_v14, %v8129_v13  ;;  %2037 = vmatpush.bf16.msra.mxu1 %v7874_v20  ;;  %v10862_v13 = vld [vmem:[%s12596_s22 + $0x324] sm:$0xf0]  ;;  %v8230_v20 = vor.u32 %v10921_v7, %v8227_v8  ;;  %v7843_v58 = vld [vmem:[%s12596_s22 + $0x220] sm:$0xf0] }
  0xb2   : > { %v10765_v19 = vld [vmem:[%s12596_s22 + $0x1c] sm:$0xf0]  ;;  %v857_v14 = vld.sshfl [vmem:[#allocation1] sm:$0xff pattern:$0x73625140]  ;;  %v7846_v7 = vor.u32 %v10825_v57, %v7843_v58 }
  0xb3   : > { %v7841_v22 = vld [vmem:[%s12596_s22 + $0x200] sm:$0xf]  ;;  %v7586_v32 = vor.u32 %v10765_v19, %v7585_v18  ;;  %2050 = vmatpush.bf16.msra.mxu2 %v8130_v21  ;;  %v12735_v17 = vpack.c.bf16 %v857_v14, %v857_v14  ;;  %v12737_v18 = vpack.c.bf16 %v858_v15, %v858_v15  ;;  %v859_v19 = vld.sshfl [vmem:[#allocation1 + $0x10] sm:$0xff pattern:$0x73625140]  ;;  %v7722_v21 = vor.u32 %v10798_v11, %v7721_v9 }
  0xb4   : > { %v10829_v23 = vld [vmem:[%s12596_s22 + $0x21c] sm:$0xf0]  ;;  %v12742_v25 = vpack.c.bf16 %v859_v19, %v859_v19  ;;  %2111 = vmatpush.bf16.msrb.mxu3 %v8010_v10  ;;  %v10889_v61 = vld [vmem:[%s12596_s22 + $0x404] sm:$0xf]  ;;  %v7593_v63 = vld [vmem:[%s12596_s22 + $0x8] sm:$0xf] }
  0xb5   : > { %v8097_v24 = vld [vmem:[%s12596_s22 + $0x400] sm:$0xf]  ;;  %v7842_v36 = vor.u32 %v10829_v23, %v7841_v22  ;;  %2025 = vmatpush.bf16.msra.mxu0 %v7586_v32  ;;  %v10849_v22 = vld [vmem:[%s12596_s22 + $0x2c4] sm:$0xf]  ;;  %2065 = vmatmul.bf16.vlgmr.msra.gmra.mxu3 %v12735_v17  ;;  %v10766_v1 = vld [vmem:[%s12596_s22 + $0x24] sm:$0xf0] }
  0xb6   : > { %v10893_v26 = vld [vmem:[%s12596_s22 + $0x41c] sm:$0xf0]  ;;  %v7939_v23 = vld [vmem:[%s12596_s22 + $0x2e0] sm:$0xf0]  ;;  %v10830_v3 = vld [vmem:[%s12596_s22 + $0x224] sm:$0xf0] }
  0xb7   : > { %v8098_v37 = vor.u32 %v10893_v26, %v8097_v24  ;;  %2038 = vmatpush.bf16.msra.mxu1 %v7842_v36  ;;  %v10913_v24 = vld [vmem:[%s12596_s22 + $0x4c4] sm:$0xf]  ;;  %v7978_v26 = vor.u32 %v10862_v13, %v7977_v12  ;;  %v7942_v32 = vor.u32 %v10849_v22, %v7939_v23  ;;  %v8329_v4 = vld [vmem:[%s12596_s22 + $0x5c8] sm:$0xf]  ;;  %v7819_v8 = vld [vmem:[%s12596_s22 + $0x1e8] sm:$0xf0]  ;;  %v7594_v12 = vor.u32 %v10766_v1, %v7593_v63 }
  0xb8   : > { %2026 = vmatmul.bf16.vlgmr.msra.gmra.mxu0 %v12735_v17  ;;  %v8198_v33 = vor.u32 %v10913_v24, %v8195_v27  ;;  %v7907_v36 = vld [vmem:[%s12596_s22 + $0x2a0] sm:$0xf0]  ;;  %v10882_v9 = vld [vmem:[%s12596_s22 + $0x3cc] sm:$0xf]  ;;  %v10942_v22 = vld [vmem:[%s12596_s22 + $0x5a4] sm:$0xf0] }
  0xb9   : > { %2051 = vmatpush.bf16.msra.mxu2 %v8098_v37  ;;  %2070 = vmatpush.bf16.msrb.mxu0 %v8070_v41  ;;  %v10905_v37 = vld [vmem:[%s12596_s22 + $0x484] sm:$0xf]  ;;  %v10782_v41 = vld [vmem:[%s12596_s22 + $0xa4] sm:$0xf0]  ;;  %v7910_v44 = vor.u32 %v10841_v35, %v7907_v36  ;;  %v8075_v10 = vld [vmem:[%s12596_s22 + $0x3e8] sm:$0xf0] }
  0xba   : > { %2039 = vmatmul.bf16.vlgmr.msra.gmra.mxu1 %v12737_v18  ;;  %2112 = vmatpush.bf16.msrb.mxu3 %v7978_v26  ;;  %v8166_v45 = vor.u32 %v10905_v37, %v8163_v39  ;;  %v7658_v46 = vor.u32 %v10782_v41, %v7657_v40  ;;  %v8099_v62 = vld [vmem:[%s12596_s22 + $0x420] sm:$0xf0]  ;;  %v10946_v13 = vld [vmem:[%s12596_s22 + $0x5cc] sm:$0xf]  ;;  %v10934_v35 = vld [vmem:[%s12596_s22 + $0x564] sm:$0xf0] }
  0xbb   : > { %2083 = vmatpush.bf16.msrb.mxu1 %v8326_v42  ;;  %v7913_v42 = vld [vmem:[%s12596_s22 + $0x288] sm:$0xf]  ;;  %v8102_v11 = vor.u32 %v10889_v61, %v8099_v62  ;;  %v8331_v14 = vld [vmem:[%s12596_s22 + $0x5e8] sm:$0xf0] }
  0xbc   : > { %2052 = vmatmul.bf16.vlgmr.msra.gmra.mxu2 %v12742_v25  ;;  %v10810_v23 = vld [vmem:[%s12596_s22 + $0x18c] sm:$0xf]  ;;  %v8334_v24 = vor.u32 %v10946_v13, %v8331_v14  ;;  %v8201_v58 = vld [vmem:[%s12596_s22 + $0x4c8] sm:$0xf] }
  0xbd   : > { %2096 = vmatpush.bf16.msrb.mxu2 %v7818_v43  ;;  %2071 = vmatpush.bf16.msrb.mxu0 %v8038_v54  ;;  %v10846_v43 = vld [vmem:[%s12596_s22 + $0x2a4] sm:$0xf0]  ;;  %v7787_v26 = vld [vmem:[%s12596_s22 + $0x1a8] sm:$0xf0] }
  0xbe   : > { %2113 = vmatpush.bf16.msrb.mxu3 %v7946_v38  ;;  %v7914_v50 = vor.u32 %v10846_v43, %v7913_v42  ;;  %v7881_v54 = vld [vmem:[%s12596_s22 + $0x248] sm:$0xf]  ;;  %v10874_v27 = vld [vmem:[%s12596_s22 + $0x38c] sm:$0xf] }
  0xbf   : > { %2084 = vmatpush.bf16.msrb.mxu1 %v8294_v55  ;;  %v10838_v55 = vld [vmem:[%s12596_s22 + $0x264] sm:$0xf0]  ;;  %v10938_v29 = vld [vmem:[%s12596_s22 + $0x58c] sm:$0xf] }
  0xc0   : > { %v7882_v0 = vor.u32 %v10838_v55, %v7881_v54  ;;  %v8299_v30 = vld [vmem:[%s12596_s22 + $0x5a8] sm:$0xf0] }
  0xc1   : > { %2097 = vmatpush.bf16.msrb.mxu2 %v7786_v56  ;;  %2072 = vmatpush.bf16.msrb.mxu0 %v8006_v2  ;;  %v7878_v56 = vor.u32 %v10833_v47, %v7875_v48  ;;  %v7849_v2 = vld [vmem:[%s12596_s22 + $0x208] sm:$0xf]  ;;  %v10802_v36 = vld [vmem:[%s12596_s22 + $0x14c] sm:$0xf]  ;;  %v8302_v37 = vor.u32 %v10938_v29, %v8299_v30 }
  0xc2   : > { %2114 = vmatpush.bf16.msrb.mxu3 %v7914_v50  ;;  %v7850_v15 = vor.u32 %v10830_v3, %v7849_v2  ;;  %v7755_v38 = vld [vmem:[%s12596_s22 + $0x168] sm:$0xf0]  ;;  %v10926_v47 = vld [vmem:[%s12596_s22 + $0x524] sm:$0xf0] }
  0xc3   : > { %2085 = vmatpush.bf16.msrb.mxu1 %v8262_v5  ;;  %v10950_v5 = vld [vmem:[%s12596_s22 + $0x5e4] sm:$0xf0]  ;;  %v10866_v39 = vld [vmem:[%s12596_s22 + $0x34c] sm:$0xf] }
  0xc4   : > { %v8011_v40 = vld [vmem:[%s12596_s22 + $0x368] sm:$0xf0] }
  0xc5   : > { %2098 = vmatpush.bf16.msrb.mxu2 %v7754_v6  ;;  %2073 = vmatpush.bf16.msrb.mxu0 %v7974_v16  ;;  %v10818_v6 = vld [vmem:[%s12596_s22 + $0x1cc] sm:$0xf]  ;;  %v8330_v16 = vor.u32 %v10950_v5, %v8329_v4 }
  0xc6   : > { %2115 = vmatpush.bf16.msrb.mxu3 %v7882_v0  ;;  %v7822_v19 = vor.u32 %v10818_v6, %v7819_v8  ;;  %v10930_v41 = vld [vmem:[%s12596_s22 + $0x54c] sm:$0xf]  ;;  %v8169_v6 = vld [vmem:[%s12596_s22 + $0x488] sm:$0xf] }
  0xc7   : > { %2086 = vmatpush.bf16.msrb.mxu1 %v8230_v20  ;;  %v8078_v20 = vor.u32 %v10882_v9, %v8075_v10  ;;  %v8267_v42 = vld [vmem:[%s12596_s22 + $0x568] sm:$0xf0] }
  0xc8   : > { %v10794_v48 = vld [vmem:[%s12596_s22 + $0x10c] sm:$0xf]  ;;  %v8270_v49 = vor.u32 %v10930_v41, %v8267_v42  ;;  %v7825_v42 = vld [vmem:[%s12596_s22 + $0x1d0] sm:$0xf] }
  0xc9   : > { %2099 = vmatpush.bf16.msrb.mxu2 %v7722_v21  ;;  %2074 = vmatpush.bf16.msrb.mxu0 %v7942_v32  ;;  %v8297_v21 = vld [vmem:[%s12596_s22 + $0x588] sm:$0xf]  ;;  %v7790_v32 = vor.u32 %v10810_v23, %v7787_v26  ;;  %v7723_v50 = vld [vmem:[%s12596_s22 + $0x128] sm:$0xf0] }
  0xca   : > { %2116 = vmatpush.bf16.msrb.mxu3 %v7850_v15  ;;  %v8298_v31 = vor.u32 %v10942_v22, %v8297_v21  ;;  %v10858_v51 = vld [vmem:[%s12596_s22 + $0x30c] sm:$0xf]  ;;  %v10902_v21 = vld [vmem:[%s12596_s22 + $0x464] sm:$0xf0] }
  0xcb   : > { %2087 = vmatpush.bf16.msrb.mxu1 %v8198_v33  ;;  %v8046_v33 = vor.u32 %v10874_v27, %v8043_v28  ;;  %v7979_v52 = vld [vmem:[%s12596_s22 + $0x328] sm:$0xf0] }
  0xcc   : > { %v10922_v53 = vld [vmem:[%s12596_s22 + $0x50c] sm:$0xf]  ;;  %v7982_v57 = vor.u32 %v10858_v51, %v7979_v52  ;;  %v10819_v51 = vld [vmem:[%s12596_s22 + $0x1d4] sm:$0xf] }
  0xcd   : > { %2100 = vmatpush.bf16.msrb.mxu2 %v7690_v34  ;;  %2075 = vmatpush.bf16.msrb.mxu0 %v7910_v44  ;;  %v8265_v34 = vld [vmem:[%s12596_s22 + $0x548] sm:$0xf]  ;;  %v7758_v44 = vor.u32 %v10802_v36, %v7755_v38  ;;  %v8235_v54 = vld [vmem:[%s12596_s22 + $0x528] sm:$0xf0]  ;;  %v7827_v52 = vld [vmem:[%s12596_s22 + $0x1f0] sm:$0xf0] }
  0xce   : > { %2161 = vmatpush.bf16.msra.mxu3 %v8334_v24  ;;  %v8266_v43 = vor.u32 %v10934_v35, %v8265_v34  ;;  %v8238_v61 = vor.u32 %v10922_v53, %v8235_v54  ;;  %v7691_v62 = vld [vmem:[%s12596_s22 + $0xe8] sm:$0xf0] }
  0xcf   : > { %2088 = vmatpush.bf16.msrb.mxu1 %v8166_v45  ;;  %2117 = vmatmul.bf16.vlgmr.msrb.gmra.mxu3 %v12737_v18  ;;  %v8014_v45 = vor.u32 %v10866_v39, %v8011_v40  ;;  %v10850_v63 = vld [vmem:[%s12596_s22 + $0x2cc] sm:$0xf] }
  0xd0   : > { %v7947_v0 = vld [vmem:[%s12596_s22 + $0x2e8] sm:$0xf0] }
  0xd1   : > { %2101 = vmatpush.bf16.msrb.mxu2 %v7658_v46  ;;  %2076 = vmatpush.bf16.msrb.mxu0 %v7878_v56  ;;  %v8233_v46 = vld [vmem:[%s12596_s22 + $0x508] sm:$0xf]  ;;  %v7726_v56 = vor.u32 %v10794_v48, %v7723_v50  ;;  %v10914_v1 = vld [vmem:[%s12596_s22 + $0x4cc] sm:$0xf]  ;;  %v7950_v5 = vor.u32 %v10850_v63, %v7947_v0  ;;  %v10951_v48 = vld [vmem:[%s12596_s22 + $0x5ec] sm:$0xf0] }
  0xd2   : > { %2162 = vmatpush.bf16.msra.mxu3 %v8302_v37  ;;  %v8234_v55 = vor.u32 %v10926_v47, %v8233_v46  ;;  %v8203_v2 = vld [vmem:[%s12596_s22 + $0x4e8] sm:$0xf0]  ;;  %v10887_v46 = vld [vmem:[%s12596_s22 + $0x3ec] sm:$0xf0]  ;;  %v10811_v0 = vld [vmem:[%s12596_s22 + $0x194] sm:$0xf] }
  0xd3   : > { %2089 = vmatpush.bf16.msrb.mxu1 %v8134_v59  ;;  %v10918_v59 = vld [vmem:[%s12596_s22 + $0x4e4] sm:$0xf0]  ;;  %v10778_v8 = vld [vmem:[%s12596_s22 + $0x8c] sm:$0xf]  ;;  %v8206_v9 = vor.u32 %v10914_v1, %v8203_v2  ;;  %v8337_v47 = vld [vmem:[%s12596_s22 + $0x5d0] sm:$0xf] }
  0xd4   : > { %v8202_v3 = vor.u32 %v10918_v59, %v8201_v58  ;;  %v7659_v10 = vld [vmem:[%s12596_s22 + $0xa8] sm:$0xf0]  ;;  %v10815_v58 = vld [vmem:[%s12596_s22 + $0x1ac] sm:$0xf0]  ;;  %v7795_v1 = vld [vmem:[%s12596_s22 + $0x1b0] sm:$0xf0] }
  0xd5   : > { %2102 = vmatpush.bf16.msrb.mxu2 %v7626_v60  ;;  %2077 = vmatpush.bf16.msrb.mxu0 %v7846_v7  ;;  %v10786_v60 = vld [vmem:[%s12596_s22 + $0xcc] sm:$0xf]  ;;  %v10910_v7 = vld [vmem:[%s12596_s22 + $0x4a4] sm:$0xf0]  ;;  %v8049_v59 = vld [vmem:[%s12596_s22 + $0x390] sm:$0xf] }
  0xd6   : > { %2163 = vmatpush.bf16.msra.mxu3 %v8270_v49  ;;  %v7694_v4 = vor.u32 %v10786_v60, %v7691_v62  ;;  %v10906_v13 = vld [vmem:[%s12596_s22 + $0x48c] sm:$0xf]  ;;  %v8170_v15 = vor.u32 %v10910_v7, %v8169_v6  ;;  %v7830_v60 = vor.u32 %v10819_v51, %v7827_v52  ;;  %v8305_v62 = vld [vmem:[%s12596_s22 + $0x590] sm:$0xf]  ;;  %v10779_v51 = vld [vmem:[%s12596_s22 + $0x94] sm:$0xf] }
  0xd7   : > { %2090 = vmatpush.bf16.msrb.mxu1 %v8102_v11  ;;  %v10842_v11 = vld [vmem:[%s12596_s22 + $0x28c] sm:$0xf]  ;;  %v10943_v63 = vld [vmem:[%s12596_s22 + $0x5ac] sm:$0xf0]  ;;  %v7667_v52 = vld [vmem:[%s12596_s22 + $0xb0] sm:$0xf0] }
  0xd8   : > { %2078 = vmatmul.bf16.vlgmr.msrb.gmra.mxu0 %v12737_v18  ;;  %v8171_v14 = vld [vmem:[%s12596_s22 + $0x4a8] sm:$0xf0]  ;;  %v10807_v6 = vld [vmem:[%s12596_s22 + $0x16c] sm:$0xf0] }
  0xd9   : > { %2103 = vmatpush.bf16.msrb.mxu2 %v7594_v12  ;;  %2122 = vmatpush.bf16.msra.mxu0 %v8330_v16  ;;  %v7915_v12 = vld [vmem:[%s12596_s22 + $0x2a8] sm:$0xf0]  ;;  %v7662_v16 = vor.u32 %v10778_v8, %v7659_v10  ;;  %v8174_v23 = vor.u32 %v10906_v13, %v8171_v14  ;;  %v8017_v7 = vld [vmem:[%s12596_s22 + $0x350] sm:$0xf]  ;;  %v7798_v8 = vor.u32 %v10811_v0, %v7795_v1  ;;  %v7763_v13 = vld [vmem:[%s12596_s22 + $0x170] sm:$0xf0] }
  0xda   : > { %2091 = vmatmul.bf16.vlgmr.msrb.gmra.mxu1 %v12742_v25  ;;  %2164 = vmatpush.bf16.msra.mxu3 %v8238_v61  ;;  %v10770_v22 = vld [vmem:[%s12596_s22 + $0x4c] sm:$0xf]  ;;  %v10879_v61 = vld [vmem:[%s12596_s22 + $0x3ac] sm:$0xf0]  ;;  %v7635_v0 = vld [vmem:[%s12596_s22 + $0x70] sm:$0xf0] }
  0xdb   : > { %2135 = vmatpush.bf16.msra.mxu1 %v7822_v19  ;;  %v7918_v19 = vor.u32 %v10842_v11, %v7915_v12  ;;  %v7627_v24 = vld [vmem:[%s12596_s22 + $0x68] sm:$0xf0]  ;;  %v8273_v10 = vld [vmem:[%s12596_s22 + $0x550] sm:$0xf]  ;;  %v10803_v12 = vld [vmem:[%s12596_s22 + $0x154] sm:$0xf] }
  0xdc   : > { %2104 = vmatmul.bf16.vlgmr.msrb.gmra.mxu2 %v12735_v17  ;;  %v10834_v26 = vld [vmem:[%s12596_s22 + $0x24c] sm:$0xf]  ;;  %v10935_v11 = vld [vmem:[%s12596_s22 + $0x56c] sm:$0xf0] }
  0xdd   : > { %2148 = vmatpush.bf16.msra.mxu2 %v8078_v20  ;;  %2123 = vmatpush.bf16.msra.mxu0 %v8298_v31  ;;  %v8137_v20 = vld [vmem:[%s12596_s22 + $0x448] sm:$0xf]  ;;  %v7883_v27 = vld [vmem:[%s12596_s22 + $0x268] sm:$0xf0] }
  0xde   : > { %2165 = vmatpush.bf16.msra.mxu3 %v8206_v9  ;;  %v10898_v28 = vld [vmem:[%s12596_s22 + $0x44c] sm:$0xf]  ;;  %v8138_v30 = vor.u32 %v10902_v21, %v8137_v20  ;;  %v8105_v31 = vld [vmem:[%s12596_s22 + $0x408] sm:$0xf]  ;;  %v7886_v34 = vor.u32 %v10834_v26, %v7883_v27  ;;  %v10871_v9 = vld [vmem:[%s12596_s22 + $0x36c] sm:$0xf0] }
  0xdf   : > { %2136 = vmatpush.bf16.msra.mxu1 %v7790_v32  ;;  %v8139_v29 = vld [vmem:[%s12596_s22 + $0x468] sm:$0xf0]  ;;  %v10894_v32 = vld [vmem:[%s12596_s22 + $0x424] sm:$0xf0]  ;;  %v10799_v20 = vld [vmem:[%s12596_s22 + $0x12c] sm:$0xf0] }
  0xe0   : > { %v10762_v35 = vld [vmem:[%s12596_s22 + $0xc] sm:$0xf]  ;;  %v8142_v38 = vor.u32 %v10898_v28, %v8139_v29  ;;  %v7985_v21 = vld [vmem:[%s12596_s22 + $0x310] sm:$0xf]  ;;  %v10795_v27 = vld [vmem:[%s12596_s22 + $0x114] sm:$0xf] }
  0xe1   : > { %2149 = vmatpush.bf16.msra.mxu2 %v8046_v33  ;;  %2124 = vmatpush.bf16.msra.mxu0 %v8266_v43  ;;  %v7630_v33 = vor.u32 %v10770_v22, %v7627_v24  ;;  %v7595_v36 = vld [vmem:[%s12596_s22 + $0x28] sm:$0xf0]  ;;  %v10823_v43 = vld [vmem:[%s12596_s22 + $0x1ec] sm:$0xf0]  ;;  %v7766_v22 = vor.u32 %v10803_v12, %v7763_v13  ;;  %v7731_v28 = vld [vmem:[%s12596_s22 + $0x130] sm:$0xf0] }
  0xe2   : > { %v10826_v37 = vld [vmem:[%s12596_s22 + $0x20c] sm:$0xf]  ;;  %2166 = vmatpush.bf16.msra.mxu3 %v8174_v23  ;;  %v7598_v49 = vor.u32 %v10762_v35, %v7595_v36  ;;  %v7826_v54 = vor.u32 %v10823_v43, %v7825_v42  ;;  %v10863_v23 = vld [vmem:[%s12596_s22 + $0x32c] sm:$0xf0]  ;;  %v7734_v35 = vor.u32 %v10795_v27, %v7731_v28  ;;  %v7603_v12 = vld [vmem:[%s12596_s22 + $0x30] sm:$0xf0] }
  0xe3   : > { %2137 = vmatpush.bf16.msra.mxu1 %v7758_v44  ;;  %v7851_v39 = vld [vmem:[%s12596_s22 + $0x228] sm:$0xf0]  ;;  %v8081_v44 = vld [vmem:[%s12596_s22 + $0x3d0] sm:$0xf]  ;;  %v10883_v13 = vld [vmem:[%s12596_s22 + $0x3d4] sm:$0xf] }
  0xe4   : > { %v10890_v40 = vld [vmem:[%s12596_s22 + $0x40c] sm:$0xf]  ;;  %v7854_v50 = vor.u32 %v10826_v37, %v7851_v39  ;;  %v8241_v24 = vld [vmem:[%s12596_s22 + $0x510] sm:$0xf]  ;;  %v10787_v39 = vld [vmem:[%s12596_s22 + $0xd4] sm:$0xf] }
  0xe5   : > { %2150 = vmatpush.bf16.msra.mxu2 %v8014_v45  ;;  %2125 = vmatpush.bf16.msra.mxu0 %v8234_v55  ;;  %v8107_v41 = vld [vmem:[%s12596_s22 + $0x428] sm:$0xf0]  ;;  %v8106_v45 = vor.u32 %v10894_v32, %v8105_v31  ;;  %v8082_v55 = vor.u32 %v10887_v46, %v8081_v44  ;;  %v10927_v26 = vld [vmem:[%s12596_s22 + $0x52c] sm:$0xf0] }
  0xe6   : > { %2167 = vmatpush.bf16.msra.mxu3 %v8142_v38  ;;  %v8110_v53 = vor.u32 %v10890_v40, %v8107_v41  ;;  %v8242_v31 = vor.u32 %v10927_v26, %v8241_v24  ;;  %v7697_v32 = vld [vmem:[%s12596_s22 + $0xd0] sm:$0xf]  ;;  %v7699_v40 = vld [vmem:[%s12596_s22 + $0xf0] sm:$0xf0]  ;;  %v8089_v24 = vld [vmem:[%s12596_s22 + $0x3d8] sm:$0xf] }
  0xe7   : > { %2138 = vmatpush.bf16.msra.mxu1 %v7726_v56  ;;  %v8338_v56 = vor.u32 %v10951_v48, %v8337_v47  ;;  %v10855_v36 = vld [vmem:[%s12596_s22 + $0x2ec] sm:$0xf0]  ;;  %v7702_v47 = vor.u32 %v10787_v39, %v7699_v40  ;;  %v10888_v26 = vld [vmem:[%s12596_s22 + $0x3f4] sm:$0xf0] }
  0xe8   : > { %v8209_v37 = vld [vmem:[%s12596_s22 + $0x4d0] sm:$0xf]  ;;  %v10880_v39 = vld [vmem:[%s12596_s22 + $0x3b4] sm:$0xf0] }
  0xe9   : > { %2151 = vmatpush.bf16.msra.mxu2 %v7982_v57  ;;  %2126 = vmatpush.bf16.msra.mxu0 %v8202_v3  ;;  %v7793_v57 = vld [vmem:[%s12596_s22 + $0x190] sm:$0xf]  ;;  %v8050_v3 = vor.u32 %v10879_v61, %v8049_v59  ;;  %v7670_v59 = vor.u32 %v10779_v51, %v7667_v52  ;;  %v10872_v51 = vld [vmem:[%s12596_s22 + $0x374] sm:$0xf0] }
  0xea   : > { %2168 = vmatpush.bf16.msra.mxu3 %v8110_v53  ;;  %v7794_v2 = vor.u32 %v10815_v58, %v7793_v57  ;;  %v10919_v38 = vld [vmem:[%s12596_s22 + $0x4ec] sm:$0xf0] }
  0xeb   : > { %2139 = vmatpush.bf16.msra.mxu1 %v7694_v4  ;;  %v8306_v4 = vor.u32 %v10943_v63, %v8305_v62  ;;  %v8210_v43 = vor.u32 %v10919_v38, %v8209_v37  ;;  %v7665_v44 = vld [vmem:[%s12596_s22 + $0x90] sm:$0xf]  ;;  %v10771_v63 = vld [vmem:[%s12596_s22 + $0x54] sm:$0xf]  ;;  %v10816_v37 = vld [vmem:[%s12596_s22 + $0x1b4] sm:$0xf0] }
  0xec   : > { %v7921_v46 = vld [vmem:[%s12596_s22 + $0x290] sm:$0xf]  ;;  %v8057_v38 = vld [vmem:[%s12596_s22 + $0x398] sm:$0xf] }
  0xed   : > { %2152 = vmatpush.bf16.msra.mxu2 %v7950_v5  ;;  %2127 = vmatpush.bf16.msra.mxu0 %v8170_v15  ;;  %v7761_v5 = vld [vmem:[%s12596_s22 + $0x150] sm:$0xf]  ;;  %v8018_v15 = vor.u32 %v10871_v9, %v8017_v7  ;;  %v7638_v9 = vor.u32 %v10771_v63, %v7635_v0  ;;  %v10864_v63 = vld [vmem:[%s12596_s22 + $0x334] sm:$0xf0] }
  0xee   : > { %2213 = vmatpush.bf16.msrb.mxu3 %v7830_v60  ;;  %v7762_v14 = vor.u32 %v10807_v6, %v7761_v5  ;;  %v10847_v48 = vld [vmem:[%s12596_s22 + $0x2ac] sm:$0xf0] }
  0xef   : > { %2140 = vmatpush.bf16.msra.mxu1 %v7662_v16  ;;  %2169 = vmatmul.bf16.vlgmr.msra.gmra.mxu3 %v12742_v25  ;;  %v8274_v16 = vor.u32 %v10935_v11, %v8273_v10  ;;  %v10775_v57 = vld [vmem:[%s12596_s22 + $0x6c] sm:$0xf0]  ;;  %v10763_v11 = vld [vmem:[%s12596_s22 + $0x14] sm:$0xf] }
  0xf0   : > { %v7889_v58 = vld [vmem:[%s12596_s22 + $0x250] sm:$0xf]  ;;  %v7606_v27 = vor.u32 %v10763_v11, %v7603_v12  ;;  %v10856_v11 = vld [vmem:[%s12596_s22 + $0x2f4] sm:$0xf0] }
  0xf1   : > { %2153 = vmatpush.bf16.msra.mxu2 %v7918_v19  ;;  %2128 = vmatpush.bf16.msra.mxu0 %v8138_v30  ;;  %v7729_v19 = vld [vmem:[%s12596_s22 + $0x110] sm:$0xf]  ;;  %v7986_v30 = vor.u32 %v10863_v23, %v7985_v21  ;;  %v10824_v21 = vld [vmem:[%s12596_s22 + $0x1f4] sm:$0xf0] }
  0xf2   : > { %2214 = vmatpush.bf16.msrb.mxu3 %v7798_v8  ;;  %v7730_v29 = vor.u32 %v10799_v20, %v7729_v19  ;;  %v10839_v60 = vld [vmem:[%s12596_s22 + $0x26c] sm:$0xf0]  ;;  %v8339_v19 = vld [vmem:[%s12596_s22 + $0x5f0] sm:$0xf0]  ;;  %v7833_v20 = vld [vmem:[%s12596_s22 + $0x1d8] sm:$0xf] }
  0xf3   : > { %2141 = vmatpush.bf16.msra.mxu1 %v7630_v33  ;;  %v10791_v33 = vld [vmem:[%s12596_s22 + $0xec] sm:$0xf0] }
  0xf4   : > { %v7698_v41 = vor.u32 %v10791_v33, %v7697_v32  ;;  %v8145_v61 = vld [vmem:[%s12596_s22 + $0x450] sm:$0xf]  ;;  %v8051_v32 = vld [vmem:[%s12596_s22 + $0x3b0] sm:$0xf0] }
  0xf5   : > { %2154 = vmatpush.bf16.msra.mxu2 %v7886_v34  ;;  %2129 = vmatpush.bf16.msra.mxu0 %v8106_v45  ;;  %v7953_v34 = vld [vmem:[%s12596_s22 + $0x2d0] sm:$0xf]  ;;  %v10939_v33 = vld [vmem:[%s12596_s22 + $0x594] sm:$0xf] }
  0xf6   : > { %2215 = vmatpush.bf16.msrb.mxu3 %v7766_v22  ;;  %v7954_v42 = vor.u32 %v10855_v36, %v7953_v34  ;;  %v10783_v45 = vld [vmem:[%s12596_s22 + $0xac] sm:$0xf0]  ;;  %v8090_v34 = vor.u32 %v10888_v26, %v8089_v24  ;;  %v7801_v36 = vld [vmem:[%s12596_s22 + $0x198] sm:$0xf] }
  0xf7   : > { %2142 = vmatpush.bf16.msra.mxu1 %v7598_v49  ;;  %v8177_v49 = vld [vmem:[%s12596_s22 + $0x490] sm:$0xf]  ;;  %v7666_v53 = vor.u32 %v10783_v45, %v7665_v44  ;;  %v8019_v44 = vld [vmem:[%s12596_s22 + $0x370] sm:$0xf0]  ;;  %v7929_v24 = vld [vmem:[%s12596_s22 + $0x298] sm:$0xf] }
  0xf8   : > { %2130 = vmatmul.bf16.vlgmr.msra.gmra.mxu0 %v12742_v25  ;;  %v10903_v62 = vld [vmem:[%s12596_s22 + $0x46c] sm:$0xf0]  ;;  %v10931_v45 = vld [vmem:[%s12596_s22 + $0x554] sm:$0xf]  ;;  %v10848_v26 = vld [vmem:[%s12596_s22 + $0x2b4] sm:$0xf0] }
  0xf9   : > { %2155 = vmatpush.bf16.msra.mxu2 %v7854_v50  ;;  %2174 = vmatpush.bf16.msrb.mxu0 %v7826_v54  ;;  %v10911_v50 = vld [vmem:[%s12596_s22 + $0x4ac] sm:$0xf0]  ;;  %v7922_v54 = vor.u32 %v10847_v48, %v7921_v46  ;;  %v8146_v5 = vor.u32 %v10903_v62, %v8145_v61  ;;  %v8058_v46 = vor.u32 %v10880_v39, %v8057_v38  ;;  %v7769_v48 = vld [vmem:[%s12596_s22 + $0x158] sm:$0xf] }
  0xfa   : > { %2143 = vmatmul.bf16.vlgmr.msra.gmra.mxu1 %v12735_v17  ;;  %2216 = vmatpush.bf16.msrb.mxu3 %v7734_v35  ;;  %v7857_v6 = vld [vmem:[%s12596_s22 + $0x210] sm:$0xf]  ;;  %v8307_v35 = vld [vmem:[%s12596_s22 + $0x5b0] sm:$0xf0]  ;;  %v10800_v61 = vld [vmem:[%s12596_s22 + $0x134] sm:$0xf0] }
  0xfb   : > { %2187 = vmatpush.bf16.msrb.mxu1 %v8082_v55  ;;  %v8178_v55 = vor.u32 %v10911_v50, %v8177_v49  ;;  %v10831_v7 = vld [vmem:[%s12596_s22 + $0x22c] sm:$0xf0]  ;;  %v10808_v49 = vld [vmem:[%s12596_s22 + $0x174] sm:$0xf0] }
  0xfc   : > { %2156 = vmatmul.bf16.vlgmr.msra.gmra.mxu2 %v12737_v18  ;;  %v8113_v8 = vld [vmem:[%s12596_s22 + $0x410] sm:$0xf]  ;;  %v7858_v22 = vor.u32 %v10831_v7, %v7857_v6  ;;  %v8025_v50 = vld [vmem:[%s12596_s22 + $0x358] sm:$0xf]  ;;  %v8211_v7 = vld [vmem:[%s12596_s22 + $0x4f0] sm:$0xf0] }
  0xfd   : > { %2200 = vmatpush.bf16.msrb.mxu2 %v8338_v56  ;;  %2175 = vmatpush.bf16.msrb.mxu0 %v7794_v2  ;;  %v7633_v56 = vld [vmem:[%s12596_s22 + $0x50] sm:$0xf]  ;;  %v7993_v62 = vld [vmem:[%s12596_s22 + $0x318] sm:$0xf] }
  0xfe   : > { %2217 = vmatpush.bf16.msrb.mxu3 %v7702_v47  ;;  %v7634_v1 = vor.u32 %v10775_v57, %v7633_v56  ;;  %v7601_v2 = vld [vmem:[%s12596_s22 + $0x10] sm:$0xf]  ;;  %v8275_v47 = vld [vmem:[%s12596_s22 + $0x570] sm:$0xf0]  ;;  %v7994_v6 = vor.u32 %v10864_v63, %v7993_v62  ;;  %v10840_v38 = vld [vmem:[%s12596_s22 + $0x274] sm:$0xf0] }
  0xff   : > { %2188 = vmatpush.bf16.msrb.mxu1 %v8050_v3  ;;  %v10767_v3 = vld [vmem:[%s12596_s22 + $0x2c] sm:$0xf0]  ;;  %v7987_v56 = vld [vmem:[%s12596_s22 + $0x330] sm:$0xf0] }
 0x100   : > { %v10895_v10 = vld [vmem:[%s12596_s22 + $0x42c] sm:$0xf0]  ;;  %v10923_v57 = vld [vmem:[%s12596_s22 + $0x514] sm:$0xf] }
 0x101   : > { %2201 = vmatpush.bf16.msrb.mxu2 %v8306_v4  ;;  %2176 = vmatpush.bf16.msrb.mxu0 %v7762_v14  ;;  %v7890_v4 = vor.u32 %v10839_v60, %v7889_v58  ;;  %v8083_v14 = vld [vmem:[%s12596_s22 + $0x3f0] sm:$0xf0]  ;;  %v8114_v23 = vor.u32 %v10895_v10, %v8113_v8  ;;  %v8026_v58 = vor.u32 %v10872_v51, %v8025_v50  ;;  %v7737_v60 = vld [vmem:[%s12596_s22 + $0x118] sm:$0xf] }
 0x102   : > { %2218 = vmatpush.bf16.msrb.mxu3 %v7670_v59  ;;  %v8086_v28 = vor.u32 %v10883_v13, %v8083_v14  ;;  %v8243_v59 = vld [vmem:[%s12596_s22 + $0x530] sm:$0xf0]  ;;  %v7705_v8 = vld [vmem:[%s12596_s22 + $0xd8] sm:$0xf] }
 0x103   : > { %2189 = vmatpush.bf16.msrb.mxu1 %v8018_v15  ;;  %v10947_v15 = vld [vmem:[%s12596_s22 + $0x5d4] sm:$0xf]  ;;  %v7961_v10 = vld [vmem:[%s12596_s22 + $0x2d8] sm:$0xf] }
 0x104   : > { %v10832_v50 = vld [vmem:[%s12596_s22 + $0x234] sm:$0xf0] }
 0x105   : > { %2202 = vmatpush.bf16.msrb.mxu2 %v8274_v16  ;;  %2177 = vmatpush.bf16.msrb.mxu0 %v7730_v29  ;;  %v7602_v16 = vor.u32 %v10767_v3, %v7601_v2  ;;  %v8342_v29 = vor.u32 %v10947_v15, %v8339_v19  ;;  %v7738_v2 = vor.u32 %v10800_v61, %v7737_v60  ;;  %v10851_v3 = vld [vmem:[%s12596_s22 + $0x2d4] sm:$0xf]  ;;  %v8345_v51 = vld [vmem:[%s12596_s22 + $0x5d8] sm:$0xf]  ;;  %v10948_v60 = vld [vmem:[%s12596_s22 + $0x5dc] sm:$0xf] }
 0x106   : > { %2219 = vmatpush.bf16.msrb.mxu3 %v7638_v9  ;;  %v10792_v9 = vld [vmem:[%s12596_s22 + $0xf4] sm:$0xf0]  ;;  %v10843_v15 = vld [vmem:[%s12596_s22 + $0x294] sm:$0xf]  ;;  %v8347_v61 = vld [vmem:[%s12596_s22 + $0x5f8] sm:$0xf0] }
 0x107   : > { %2190 = vmatpush.bf16.msrb.mxu1 %v7986_v30  ;;  %v7834_v30 = vor.u32 %v10824_v21, %v7833_v20  ;;  %v7706_v14 = vor.u32 %v10792_v9, %v7705_v8  ;;  %v10907_v19 = vld [vmem:[%s12596_s22 + $0x494] sm:$0xf]  ;;  %v7962_v20 = vor.u32 %v10856_v11, %v7961_v10  ;;  %v8059_v8 = vld [vmem:[%s12596_s22 + $0x3b8] sm:$0xf0] }
 0x108   : > { %v8179_v21 = vld [vmem:[%s12596_s22 + $0x4b0] sm:$0xf0]  ;;  %v10940_v9 = vld [vmem:[%s12596_s22 + $0x59c] sm:$0xf] }
 0x109   : > { %2203 = vmatpush.bf16.msrb.mxu2 %v8242_v31  ;;  %2178 = vmatpush.bf16.msrb.mxu0 %v7698_v41  ;;  %v10875_v31 = vld [vmem:[%s12596_s22 + $0x394] sm:$0xf]  ;;  %v8310_v41 = vor.u32 %v10939_v33, %v8307_v35  ;;  %v7930_v33 = vor.u32 %v10848_v26, %v7929_v24  ;;  %v7641_v35 = vld [vmem:[%s12596_s22 + $0x58] sm:$0xf]  ;;  %v8315_v10 = vld [vmem:[%s12596_s22 + $0x5b8] sm:$0xf0] }
 0x10a   : > { %2220 = vmatpush.bf16.msrb.mxu3 %v7606_v27  ;;  %v8054_v40 = vor.u32 %v10875_v31, %v8051_v32  ;;  %v7891_v31 = vld [vmem:[%s12596_s22 + $0x270] sm:$0xf0]  ;;  %v8283_v24 = vld [vmem:[%s12596_s22 + $0x578] sm:$0xf0] }
 0x10b   : > { %2191 = vmatpush.bf16.msrb.mxu1 %v7954_v42  ;;  %v7802_v42 = vor.u32 %v10816_v37, %v7801_v36  ;;  %v10899_v32 = vld [vmem:[%s12596_s22 + $0x454] sm:$0xf]  ;;  %v10776_v36 = vld [vmem:[%s12596_s22 + $0x74] sm:$0xf0] }
 0x10c   : > { %v7897_v37 = vld [vmem:[%s12596_s22 + $0x258] sm:$0xf] }
 0x10d   : > { %2204 = vmatpush.bf16.msrb.mxu2 %v8210_v43  ;;  %2179 = vmatpush.bf16.msrb.mxu0 %v7666_v53  ;;  %v10867_v43 = vld [vmem:[%s12596_s22 + $0x354] sm:$0xf]  ;;  %v8278_v53 = vor.u32 %v10931_v45, %v8275_v47  ;;  %v7898_v47 = vor.u32 %v10840_v38, %v7897_v37  ;;  %v8251_v37 = vld [vmem:[%s12596_s22 + $0x538] sm:$0xf0] }
 0x10e   : > { %2265 = vmatpush.bf16.msra.mxu3 %v8090_v34  ;;  %v8022_v52 = vor.u32 %v10867_v43, %v8019_v44  ;;  %v8147_v34 = vld [vmem:[%s12596_s22 + $0x470] sm:$0xf0]  ;;  %v7642_v43 = vor.u32 %v10776_v36, %v7641_v35  ;;  %v7995_v35 = vld [vmem:[%s12596_s22 + $0x338] sm:$0xf0] }
 0x10f   : > { %2192 = vmatpush.bf16.msrb.mxu1 %v7922_v54  ;;  %2221 = vmatmul.bf16.vlgmr.msrb.gmra.mxu3 %v12735_v17  ;;  %v7770_v54 = vor.u32 %v10808_v49, %v7769_v48  ;;  %v10891_v44 = vld [vmem:[%s12596_s22 + $0x414] sm:$0xf]  ;;  %v10768_v48 = vld [vmem:[%s12596_s22 + $0x34] sm:$0xf0]  ;;  %v10924_v36 = vld [vmem:[%s12596_s22 + $0x51c] sm:$0xf] }
 0x110   : > { %v8115_v45 = vld [vmem:[%s12596_s22 + $0x430] sm:$0xf0]  ;;  %v7865_v49 = vld [vmem:[%s12596_s22 + $0x218] sm:$0xf] }
 0x111   : > { %2205 = vmatpush.bf16.msrb.mxu2 %v8178_v55  ;;  %2180 = vmatpush.bf16.msrb.mxu0 %v7634_v1  ;;  %v10859_v55 = vld [vmem:[%s12596_s22 + $0x314] sm:$0xf]  ;;  %v8246_v1 = vor.u32 %v10923_v57, %v8243_v59  ;;  %v8091_v57 = vld [vmem:[%s12596_s22 + $0x3f8] sm:$0xf0]  ;;  %v7866_v62 = vor.u32 %v10832_v50, %v7865_v49 }
 0x112   : > { %2266 = vmatpush.bf16.msra.mxu3 %v8058_v46  ;;  %v7990_v0 = vor.u32 %v10859_v55, %v7987_v56  ;;  %v7609_v46 = vld [vmem:[%s12596_s22 + $0x18] sm:$0xf]  ;;  %v7835_v55 = vld [vmem:[%s12596_s22 + $0x1f8] sm:$0xf0] }
 0x113   : > { %2193 = vmatpush.bf16.msrb.mxu1 %v7890_v4  ;;  %v7955_v4 = vld [vmem:[%s12596_s22 + $0x2f0] sm:$0xf0]  ;;  %v10884_v56 = vld [vmem:[%s12596_s22 + $0x3dc] sm:$0xf]  ;;  %v7610_v59 = vor.u32 %v10768_v48, %v7609_v46 }
 0x114   : > { %v7958_v12 = vor.u32 %v10851_v3, %v7955_v4  ;;  %v10944_v3 = vld [vmem:[%s12596_s22 + $0x5b4] sm:$0xf0]  ;;  %v10812_v4 = vld [vmem:[%s12596_s22 + $0x19c] sm:$0xf] }
 0x115   : > { %2206 = vmatpush.bf16.msrb.mxu2 %v8146_v5  ;;  %2181 = vmatpush.bf16.msrb.mxu0 %v7602_v16  ;;  %v10915_v5 = vld [vmem:[%s12596_s22 + $0x4d4] sm:$0xf]  ;;  %v10852_v46 = vld [vmem:[%s12596_s22 + $0x2dc] sm:$0xf] }
 0x116   : > { %2267 = vmatpush.bf16.msra.mxu3 %v8026_v58  ;;  %v8214_v13 = vor.u32 %v10915_v5, %v8211_v7  ;;  %v7923_v16 = vld [vmem:[%s12596_s22 + $0x2b0] sm:$0xf0]  ;;  %v8118_v58 = vor.u32 %v10891_v44, %v8115_v45  ;;  %v8350_v5 = vor.u32 %v10948_v60, %v8347_v61  ;;  %v10876_v7 = vld [vmem:[%s12596_s22 + $0x39c] sm:$0xf]  ;;  %v8254_v44 = vor.u32 %v10924_v36, %v8251_v37 }
 0x117   : > { %2194 = vmatpush.bf16.msrb.mxu1 %v7858_v22  ;;  %v7673_v22 = vld [vmem:[%s12596_s22 + $0x98] sm:$0xf]  ;;  %v7926_v27 = vor.u32 %v10843_v15, %v7923_v16  ;;  %v10804_v16 = vld [vmem:[%s12596_s22 + $0x15c] sm:$0xf] }
 0x118   : > { %2182 = vmatmul.bf16.vlgmr.msrb.gmra.mxu0 %v12735_v17  ;;  %v10936_v15 = vld [vmem:[%s12596_s22 + $0x574] sm:$0xf0]  ;;  %v7707_v45 = vld [vmem:[%s12596_s22 + $0xf8] sm:$0xf0] }
 0x119   : > { %2207 = vmatpush.bf16.msrb.mxu2 %v8114_v23  ;;  %2226 = vmatpush.bf16.msra.mxu0 %v8086_v28  ;;  %v10784_v23 = vld [vmem:[%s12596_s22 + $0xb4] sm:$0xf0]  ;;  %v8182_v28 = vor.u32 %v10907_v19, %v8179_v21  ;;  %v8318_v19 = vor.u32 %v10940_v9, %v8315_v10  ;;  %v10868_v21 = vld [vmem:[%s12596_s22 + $0x35c] sm:$0xf] }
 0x11a   : > { %2195 = vmatmul.bf16.vlgmr.msrb.gmra.mxu1 %v12737_v18  ;;  %2268 = vmatpush.bf16.msra.mxu3 %v7994_v6  ;;  %v7803_v6 = vld [vmem:[%s12596_s22 + $0x1b8] sm:$0xf0] }
 0x11b   : > { %2239 = vmatpush.bf16.msra.mxu1 %v8342_v29  ;;  %v7674_v29 = vor.u32 %v10784_v23, %v7673_v22  ;;  %v8027_v22 = vld [vmem:[%s12596_s22 + $0x378] sm:$0xf0] }
 0x11c   : > { %2208 = vmatmul.bf16.vlgmr.msrb.gmra.mxu2 %v12742_v25  ;;  %v10932_v23 = vld [vmem:[%s12596_s22 + $0x55c] sm:$0xf] }
 0x11d   : > { %2252 = vmatpush.bf16.msra.mxu2 %v7834_v30  ;;  %2227 = vmatpush.bf16.msra.mxu0 %v8054_v40  ;;  %v10835_v30 = vld [vmem:[%s12596_s22 + $0x254] sm:$0xf]  ;;  %v10916_v48 = vld [vmem:[%s12596_s22 + $0x4dc] sm:$0xf] }
 0x11e   : > { %2269 = vmatpush.bf16.msra.mxu3 %v7962_v20  ;;  %v7894_v39 = vor.u32 %v10835_v30, %v7891_v31  ;;  %v10827_v40 = vld [vmem:[%s12596_s22 + $0x214] sm:$0xf]  ;;  %v7771_v20 = vld [vmem:[%s12596_s22 + $0x178] sm:$0xf0]  ;;  %v10928_v30 = vld [vmem:[%s12596_s22 + $0x534] sm:$0xf0] }
 0x11f   : > { %2240 = vmatpush.bf16.msra.mxu1 %v8310_v41  ;;  %v7859_v41 = vld [vmem:[%s12596_s22 + $0x230] sm:$0xf0]  ;;  %v10796_v31 = vld [vmem:[%s12596_s22 + $0x11c] sm:$0xf] }
 0x120   : > { %v8219_v49 = vld [vmem:[%s12596_s22 + $0x4f8] sm:$0xf0] }
 0x121   : > { %2253 = vmatpush.bf16.msra.mxu2 %v7802_v42  ;;  %2228 = vmatpush.bf16.msra.mxu0 %v8022_v52  ;;  %v8150_v42 = vor.u32 %v10899_v32, %v8147_v34  ;;  %v10952_v52 = vld [vmem:[%s12596_s22 + $0x5f4] sm:$0xf0]  ;;  %v8286_v32 = vor.u32 %v10932_v23, %v8283_v24  ;;  %v10860_v34 = vld [vmem:[%s12596_s22 + $0x31c] sm:$0xf] }
 0x122   : > { %2270 = vmatpush.bf16.msra.mxu3 %v7930_v33  ;;  %v8346_v63 = vor.u32 %v10952_v52, %v8345_v51  ;;  %v7739_v33 = vld [vmem:[%s12596_s22 + $0x138] sm:$0xf0] }
 0x123   : > { %2241 = vmatpush.bf16.msra.mxu1 %v8278_v53  ;;  %v10820_v53 = vld [vmem:[%s12596_s22 + $0x1dc] sm:$0xf] }
 0x124   : > { %v10908_v60 = vld [vmem:[%s12596_s22 + $0x49c] sm:$0xf] }
 0x125   : > { %2254 = vmatpush.bf16.msra.mxu2 %v7770_v54  ;;  %2229 = vmatpush.bf16.msra.mxu0 %v7990_v0  ;;  %v7862_v54 = vor.u32 %v10827_v40, %v7859_v41  ;;  %v7838_v0 = vor.u32 %v10820_v53, %v7835_v55  ;;  %v7998_v40 = vor.u32 %v10860_v34, %v7995_v35  ;;  %v8217_v41 = vld [vmem:[%s12596_s22 + $0x4d8] sm:$0xf]  ;;  %v10780_v55 = vld [vmem:[%s12596_s22 + $0x9c] sm:$0xf] }
 0x126   : > { %2271 = vmatpush.bf16.msra.mxu3 %v7898_v47  ;;  %v7963_v47 = vld [vmem:[%s12596_s22 + $0x2f8] sm:$0xf0]  ;;  %v8185_v53 = vld [vmem:[%s12596_s22 + $0x498] sm:$0xf] }
 0x127   : > { %2242 = vmatpush.bf16.msra.mxu1 %v8246_v1  ;;  %v8094_v1 = vor.u32 %v10884_v56, %v8091_v57  ;;  %v7966_v52 = vor.u32 %v10852_v46, %v7963_v47  ;;  %v8222_v56 = vor.u32 %v10916_v48, %v8219_v49  ;;  %v7675_v57 = vld [vmem:[%s12596_s22 + $0xb8] sm:$0xf0] }
 0x128   : > { %v8187_v61 = vld [vmem:[%s12596_s22 + $0x4b8] sm:$0xf0] }
 0x129   : > { %2255 = vmatpush.bf16.msra.mxu2 %v7738_v2  ;;  %2230 = vmatpush.bf16.msra.mxu0 %v7958_v12  ;;  %v8313_v2 = vld [vmem:[%s12596_s22 + $0x598] sm:$0xf]  ;;  %v7806_v12 = vor.u32 %v10812_v4, %v7803_v6  ;;  %v8190_v6 = vor.u32 %v10908_v60, %v8187_v61  ;;  %v7899_v9 = vld [vmem:[%s12596_s22 + $0x278] sm:$0xf0] }
 0x12a   : > { %2272 = vmatpush.bf16.msra.mxu3 %v7866_v62  ;;  %v8314_v11 = vor.u32 %v10944_v3, %v8313_v2  ;;  %v8153_v3 = vld [vmem:[%s12596_s22 + $0x458] sm:$0xf]  ;;  %v10900_v10 = vld [vmem:[%s12596_s22 + $0x45c] sm:$0xf] }
 0x12b   : > { %2243 = vmatpush.bf16.msra.mxu1 %v8214_v13  ;;  %v8062_v13 = vor.u32 %v10876_v7, %v8059_v8  ;;  %v10904_v4 = vld [vmem:[%s12596_s22 + $0x474] sm:$0xf0]  ;;  %v7643_v7 = vld [vmem:[%s12596_s22 + $0x78] sm:$0xf0] }
 0x12c   : > { %v10836_v8 = vld [vmem:[%s12596_s22 + $0x25c] sm:$0xf] }
 0x12d   : > { %2256 = vmatpush.bf16.msra.mxu2 %v7706_v14  ;;  %2231 = vmatpush.bf16.msra.mxu0 %v7926_v27  ;;  %v8281_v14 = vld [vmem:[%s12596_s22 + $0x558] sm:$0xf]  ;;  %v7774_v27 = vor.u32 %v10804_v16, %v7771_v20  ;;  %v7867_v23 = vld [vmem:[%s12596_s22 + $0x238] sm:$0xf0] }
 0x12e   : > { %2317 = vmatpush.bf16.msrb.mxu3 %v8350_v5  ;;  %v8282_v26 = vor.u32 %v10936_v15, %v8281_v14  ;;  %v10772_v5 = vld [vmem:[%s12596_s22 + $0x5c] sm:$0xf]  ;;  %v7902_v14 = vor.u32 %v10836_v8, %v7899_v9  ;;  %v8121_v15 = vld [vmem:[%s12596_s22 + $0x418] sm:$0xf] }
 0x12f   : > { %2244 = vmatpush.bf16.msra.mxu1 %v8182_v28  ;;  %2273 = vmatmul.bf16.vlgmr.msra.gmra.mxu3 %v12737_v18  ;;  %v8030_v28 = vor.u32 %v10868_v21, %v8027_v22  ;;  %v10896_v16 = vld [vmem:[%s12596_s22 + $0x434] sm:$0xf0]  ;;  %v7611_v21 = vld [vmem:[%s12596_s22 + $0x38] sm:$0xf0] }
 0x130   : > { %v10828_v22 = vld [vmem:[%s12596_s22 + $0x21c] sm:$0xf] }
 0x131   : > { %2257 = vmatpush.bf16.msra.mxu2 %v7674_v29  ;;  %2232 = vmatpush.bf16.msra.mxu0 %v7894_v39  ;;  %v8249_v29 = vld [vmem:[%s12596_s22 + $0x518] sm:$0xf]  ;;  %v7742_v39 = vor.u32 %v10796_v31, %v7739_v33  ;;  %v7870_v33 = vor.u32 %v10828_v22, %v7867_v23 }
 0x132   : > { %2318 = vmatpush.bf16.msrb.mxu3 %v8318_v19  ;;  %v8250_v38 = vor.u32 %v10928_v30, %v8249_v29  ;;  %v10764_v19 = vld [vmem:[%s12596_s22 + $0x1c] sm:$0xf]  ;;  %v8122_v30 = vor.u32 %v10896_v16, %v8121_v15 }
 0x133   : > { %2245 = vmatpush.bf16.msra.mxu1 %v8150_v42  ;;  %v10920_v42 = vld [vmem:[%s12596_s22 + $0x4f4] sm:$0xf0] }
 0x134   : > { %v8218_v50 = vor.u32 %v10920_v42, %v8217_v41 }
 0x135   : > { %2258 = vmatpush.bf16.msra.mxu2 %v7642_v43  ;;  %2233 = vmatpush.bf16.msra.mxu0 %v7862_v54  ;;  %v10788_v43 = vld [vmem:[%s12596_s22 + $0xdc] sm:$0xf]  ;;  %v10912_v54 = vld [vmem:[%s12596_s22 + $0x4b4] sm:$0xf0]  ;;  %v13033_v62 = vpop.f32.mrf.mxu0 }
 0x136   : > { %2319 = vmatpush.bf16.msrb.mxu3 %v8286_v32  ;;  %v7710_v51 = vor.u32 %v10788_v43, %v7707_v45  ;;  %v7614_v32 = vor.u32 %v10764_v19, %v7611_v21 }
 0x137   : > { %2246 = vmatpush.bf16.msra.mxu1 %v8118_v58  ;;  %v10844_v58 = vld [vmem:[%s12596_s22 + $0x29c] sm:$0xf] }
 0x138   : > { %2234 = vmatmul.bf16.vlgmr.msra.gmra.mxu0 %v12737_v18  ;;  %v2066_v29 = vpop.f32.mrf.mxu3 }
 0x139   : > { %2259 = vmatpush.bf16.msra.mxu2 %v7610_v59  ;;  %2278 = vmatpush.bf16.msrb.mxu0 %v8346_v63  ;;  %v7931_v59 = vld [vmem:[%s12596_s22 + $0x2b8] sm:$0xf0]  ;;  %v8186_v63 = vor.u32 %v10912_v54, %v8185_v53 }
 0x13a   : > { %2247 = vmatmul.bf16.vlgmr.msra.gmra.mxu1 %v12742_v25  ;;  %2320 = vmatpush.bf16.msrb.mxu3 %v8254_v44  ;;  %v7934_v2 = vor.u32 %v10844_v58, %v7931_v59  ;;  %v852_v59 = vld [vmem:[#allocation2] sm:$0xff] }
 0x13b   : > { %2291 = vmatpush.bf16.msrb.mxu1 %v7838_v0  ;;  %v13035_v0 = vpop.f32.mrf.mxu1 }
 0x13c   : > { %2260 = vmatmul.bf16.vlgmr.msra.gmra.mxu2 %v12735_v17  ;;  %v2041_v49 = vadd.f32 %v13035_v0, %v13033_v62 }
 0x13d   : > { %2304 = vmatpush.bf16.msrb.mxu2 %v8094_v1  ;;  %2279 = vmatpush.bf16.msrb.mxu0 %v8314_v11  ;;  %v7678_v1 = vor.u32 %v10780_v55, %v7675_v57  ;;  %v8155_v11 = vld [vmem:[%s12596_s22 + $0x478] sm:$0xf0] }
 0x13e   : > { %2321 = vmatpush.bf16.msrb.mxu3 %v8222_v56  ;;  %v8158_v20 = vor.u32 %v10900_v10, %v8155_v11 }
 0x13f   : > { %2292 = vmatpush.bf16.msrb.mxu1 %v7806_v12  ;;  %v8154_v12 = vor.u32 %v10904_v4, %v8153_v3  ;;  %v2053_v24 = vpop.f32.mrf.mxu2 }
 0x140   : > { %v2068_v36 = vpop.f32.mrf.mxu3 }
 0x141   : > { %2305 = vmatpush.bf16.msrb.mxu2 %v8062_v13  ;;  %2280 = vmatpush.bf16.msrb.mxu0 %v8282_v26  ;;  %v7646_v13 = vor.u32 %v10772_v5, %v7643_v7  ;;  %v10892_v26 = vld [vmem:[%s12596_s22 + $0x41c] sm:$0xf] }
 0x142   : > { %2322 = vmatpush.bf16.msrb.mxu3 %v8190_v6 }
 0x143   : > { %2293 = vmatpush.bf16.msrb.mxu1 %v7774_v27  ;;  %v8123_v27 = vld [vmem:[%s12596_s22 + $0x438] sm:$0xf0]  ;;  %v2042_v31 = vpop.f32.mrf.mxu1 }
 0x144   : > { %v8126_v34 = vor.u32 %v10892_v26, %v8123_v27 }
 0x145   : > { %2306 = vmatpush.bf16.msrb.mxu2 %v8030_v28  ;;  %2281 = vmatpush.bf16.msrb.mxu0 %v8250_v38  ;;  %v2029_v28 = vpop.f32.mrf.mxu0 }
 0x146   : > { %2323 = vmatpush.bf16.msrb.mxu3 %v8158_v20 }
 0x147   : > { %2294 = vmatpush.bf16.msrb.mxu1 %v7742_v39  ;;  %v2055_v35 = vpop.f32.mrf.mxu2 }
 0x149   : > { %2307 = vmatpush.bf16.msrb.mxu2 %v7998_v40  ;;  %2282 = vmatpush.bf16.msrb.mxu0 %v8218_v50 }
 0x14a   : > { %2324 = vmatpush.bf16.msrb.mxu3 %v8126_v34 }
 0x14b   : > { %2295 = vmatpush.bf16.msrb.mxu1 %v7710_v51 }
 0x14d   : > { %2308 = vmatpush.bf16.msrb.mxu2 %v7966_v52  ;;  %2283 = vmatpush.bf16.msrb.mxu0 %v8186_v63  ;;  %v2054_v52 = vadd.f32 %v2053_v24, %v2041_v49 }
 0x14e   : > { %2325 = vmatmul.bf16.vlgmr.msrb.gmra.mxu3 %v12742_v25 }
 0x14f   : > { %2296 = vmatpush.bf16.msrb.mxu1 %v7678_v1 }
 0x151   : > { %2309 = vmatpush.bf16.msrb.mxu2 %v7934_v2  ;;  %2284 = vmatpush.bf16.msrb.mxu0 %v8154_v12 }
 0x152   : > { %v2118_v40 = vpop.f32.mrf.mxu3 }
 0x153   : > { %2297 = vmatpush.bf16.msrb.mxu1 %v7646_v13 }
 0x155   : > { %2310 = vmatpush.bf16.msrb.mxu2 %v7902_v14  ;;  %2285 = vmatpush.bf16.msrb.mxu0 %v8122_v30  ;;  %v2079_v37 = vpop.f32.mrf.mxu0 }
 0x156   : > { %v2080_v45 = vadd.f32 %v2079_v37, %v2066_v29 }
 0x157   : > { %2298 = vmatpush.bf16.msrb.mxu1 %v7614_v32  ;;  %v2092_v38 = vpop.f32.mrf.mxu1 }
 0x158   : > { %2286 = vmatmul.bf16.vlgmr.msrb.gmra.mxu0 %v12742_v25 }
 0x159   : > { %2311 = vmatpush.bf16.msrb.mxu2 %v7870_v33 }
 0x15a   : > { %2299 = vmatmul.bf16.vlgmr.msrb.gmra.mxu1 %v12735_v17  ;;  %v2120_v44 = vpop.f32.mrf.mxu3  ;;  %v2093_v17 = vadd.f32 %v2092_v38, %v2080_v45  ;;  %v853_v38 = vld [vmem:[#allocation2 + $0x8] sm:$0xff] }
 0x15c   : > { %2312 = vmatmul.bf16.vlgmr.msrb.gmra.mxu2 %v12737_v18  ;;  %v2338_v53 = vrot.slane %v2093_v17, 6 }
 0x15d   : > { %v2081_v41 = vpop.f32.mrf.mxu0 }
 0x15e   : > { %v2345_v60 = vsel %vm2344_vm0, %v2054_v52, %v2338_v53 }
 0x15f   : > { %v2105_v39 = vpop.f32.mrf.mxu2  ;;  %v2094_v42 = vpop.f32.mrf.mxu1 }
 0x160   : > { %v2119_v48 = vadd.f32 %v2118_v40, %v2105_v39 }
 0x167   : > { %v2107_v43 = vpop.f32.mrf.mxu2 }
 0x172   : > { %v2170_v25 = vpop.f32.mrf.mxu3 }
 0x175   : > { %v2131_v46 = vpop.f32.mrf.mxu0 }
 0x176   : > { %v2132_v18 = vadd.f32 %v2131_v46, %v2119_v48 }
 0x177   : > { %v2144_v47 = vpop.f32.mrf.mxu1 }
 0x178   : > { %v2339_v57 = vrot.slane %v2132_v18, 4 }
 0x17a   : > { %v2172_v1 = vpop.f32.mrf.mxu3 }
 0x17d   : > { %v2133_v55 = vpop.f32.mrf.mxu0 }
 0x17f   : > { %v2157_v50 = vpop.f32.mrf.mxu2  ;;  %v2146_v56 = vpop.f32.mrf.mxu1 }
 0x180   : > { %v2158_v51 = vadd.f32 %v2157_v50, %v2144_v47 }
 0x182   : > { %v2171_v54 = vadd.f32 %v2170_v25, %v2158_v51 }
 0x184   : > { %v2340_v58 = vrot.slane %v2171_v54, 2 }
 0x186   : > { %v2347_v61 = vsel %vm2346_vm1, %v2339_v57, %v2340_v58 }
 0x187   : > { %v2349_v62 = vsel %vm2348_vm2, %v2345_v60, %v2347_v61  ;;  %v2159_v63 = vpop.f32.mrf.mxu2 }
 0x188   : > { %v2355_v0 = vadd.f32 %v2349_v62, %v852_v59 }
 0x18a   : > { %2357 = vst [vmem:[#allocation2] sm:$0xff] %v2355_v0 }
 0x192   : > { %v2222_v7 = vpop.f32.mrf.mxu3 }
 0x195   : > { %v2183_v2 = vpop.f32.mrf.mxu0 }
 0x197   : > { %v2196_v3 = vpop.f32.mrf.mxu1 }
 0x198   : > { %v2197_v4 = vadd.f32 %v2196_v3, %v2183_v2 }
 0x19a   : > { %v2224_v10 = vpop.f32.mrf.mxu3 }
 0x19d   : > { %v2185_v6 = vpop.f32.mrf.mxu0 }
 0x19f   : > { %v2209_v5 = vpop.f32.mrf.mxu2  ;;  %v2198_v8 = vpop.f32.mrf.mxu1 }
 0x1a0   : > { %v2210_v33 = vadd.f32 %v2209_v5, %v2197_v4 }
 0x1a7   : > { %v2211_v9 = vpop.f32.mrf.mxu2 }
 0x1b2   : > { %v2274_v14 = vpop.f32.mrf.mxu3 }
 0x1b5   : > { %v2235_v11 = vpop.f32.mrf.mxu0 }
 0x1b6   : > { %v2236_v23 = vadd.f32 %v2235_v11, %v2222_v7 }
 0x1b7   : > { %v2248_v12 = vpop.f32.mrf.mxu1 }
 0x1b8   : > { %v2249_v24 = vadd.f32 %v2248_v12, %v2236_v23 }
 0x1ba   : > { %v2276_v20 = vpop.f32.mrf.mxu3  ;;  %v2341_v34 = vrot.slane %v2249_v24, 6 }
 0x1bc   : > { %v2350_v39 = vsel %vm2344_vm0, %v2210_v33, %v2341_v34 }
 0x1bd   : > { %v2237_v15 = vpop.f32.mrf.mxu0 }
 0x1bf   : > { %v2261_v13 = vpop.f32.mrf.mxu2  ;;  %v2250_v16 = vpop.f32.mrf.mxu1 }
 0x1c0   : > { %v2275_v26 = vadd.f32 %v2274_v14, %v2261_v13 }
 0x1c7   : > { %v2263_v19 = vpop.f32.mrf.mxu2 }
 0x1d1   : > { %v2326_v30 = vpop.f32.mrf.mxu3 }
 0x1d5   : > { %v2287_v21 = vpop.f32.mrf.mxu0 }
 0x1d6   : > { %v2288_v28 = vadd.f32 %v2287_v21, %v2275_v26 }
 0x1d7   : > { %v2300_v22 = vpop.f32.mrf.mxu1 }
 0x1d8   : > { %v2342_v36 = vrot.slane %v2288_v28, 4 }
 0x1d9   : > { %v2328_v44 = vpop.f32.mrf.mxu3 }
 0x1dd   : > { %v2289_v31 = vpop.f32.mrf.mxu0 }
 0x1df   : > { %v2313_v27 = vpop.f32.mrf.mxu2  ;;  %v2302_v32 = vpop.f32.mrf.mxu1 }
 0x1e0   : > { %v2314_v29 = vadd.f32 %v2313_v27, %v2300_v22 }
 0x1e2   : > { %v2327_v35 = vadd.f32 %v2326_v30, %v2314_v29 }
 0x1e4   : > { %v2343_v37 = vrot.slane %v2327_v35, 2 }
 0x1e6   : > { %v2351_v40 = vsel %vm2346_vm1, %v2342_v36, %v2343_v37  ;;  %2362 = sbr.rel (%p8351_p1) target bundleno = 1876 (0x754), region = 160 }
 0x1e7   : > { %v2352_v41 = vsel %vm2348_vm2, %v2350_v39, %v2351_v40  ;;  %v2315_v42 = vpop.f32.mrf.mxu2 }
 0x1e8   : > { %v2356_v43 = vadd.f32 %v2352_v41, %v853_v38 }
 0x1ea   : > { %2358 = vst [vmem:[#allocation2 + $0x8] sm:$0xff] %v2356_v43 }
 0x1eb   : > { %v8468_v45 = vld [vmem:[#allocation8 + $0xe0] sm:$0xf]  ;;  %v10983_v46 = vld [vmem:[#allocation8 + $0xec] sm:$0xf0]  ;;  %vm7310_vm10 = vcmask 517120   ;;  %vm4960_vm11 = vcmask 523264  }
 0x1ec   : > { %v8596_v47 = vld [vmem:[#allocation8 + $0x1e0] sm:$0xf]  ;;  %v8469_v48 = vor.u32 %v10983_v46, %v8468_v45  ;;  %v11015_v49 = vld [vmem:[#allocation8 + $0x1ec] sm:$0xf0]  ;;  %vm7316_vm12 = vcmask 1041920  }
 0x1ed   : > { %v8724_v17 = vld [vmem:[#allocation8 + $0x2e0] sm:$0xf]  ;;  %v11047_v50 = vld [vmem:[#allocation8 + $0x2ec] sm:$0xf0]  ;;  %v8597_v18 = vor.u32 %v11015_v49, %v8596_v47 }
 0x1ee   : > { %v8725_v51 = vor.u32 %v11047_v50, %v8724_v17  ;;  %v8852_v25 = vld [vmem:[#allocation8 + $0x3e0] sm:$0xf]  ;;  %v11079_v52 = vld [vmem:[#allocation8 + $0x3ec] sm:$0xf0]  ;;  %3982 = vmatpush.bf16.msra.mxu0 %v8469_v48 }
 0x1ef   : > { %v8452_v53 = vld [vmem:[#allocation8 + $0xc0] sm:$0xf]  ;;  %v8853_v54 = vor.u32 %v11079_v52, %v8852_v25  ;;  %v10979_v55 = vld [vmem:[#allocation8 + $0xcc] sm:$0xf0]  ;;  %3995 = vmatpush.bf16.msra.mxu1 %v8597_v18 }
 0x1f0   : > { %v8580_v56 = vld [vmem:[#allocation8 + $0x1c0] sm:$0xf]  ;;  %v11011_v57 = vld [vmem:[#allocation8 + $0x1cc] sm:$0xf0]  ;;  %4008 = vmatpush.bf16.msra.mxu2 %v8725_v51  ;;  %v8453_v58 = vor.u32 %v10979_v55, %v8452_v53 }
 0x1f1   : > { %v8581_v59 = vor.u32 %v11011_v57, %v8580_v56  ;;  %v8708_v60 = vld [vmem:[#allocation8 + $0x2c0] sm:$0xf]  ;;  %v11043_v61 = vld [vmem:[#allocation8 + $0x2cc] sm:$0xf0]  ;;  %4021 = vmatpush.bf16.msra.mxu3 %v8853_v54 }
 0x1f2   : > { %v8836_v62 = vld [vmem:[#allocation8 + $0x3c0] sm:$0xf]  ;;  %v8709_v63 = vor.u32 %v11043_v61, %v8708_v60  ;;  %v11075_v0 = vld [vmem:[#allocation8 + $0x3cc] sm:$0xf0]  ;;  %3983 = vmatpush.bf16.msra.mxu0 %v8453_v58 }
 0x1f3   : > { %v8436_v1 = vld [vmem:[#allocation8 + $0xa0] sm:$0xf]  ;;  %v10975_v2 = vld [vmem:[#allocation8 + $0xac] sm:$0xf0]  ;;  %v8837_v3 = vor.u32 %v11075_v0, %v8836_v62  ;;  %3996 = vmatpush.bf16.msra.mxu1 %v8581_v59 }
 0x1f4   : > { %v8564_v4 = vld [vmem:[#allocation8 + $0x1a0] sm:$0xf]  ;;  %v11007_v5 = vld [vmem:[#allocation8 + $0x1ac] sm:$0xf0]  ;;  %v8437_v7 = vor.u32 %v10975_v2, %v8436_v1  ;;  %4009 = vmatpush.bf16.msra.mxu2 %v8709_v63 }
 0x1f5   : > { %v8692_v6 = vld [vmem:[#allocation8 + $0x2a0] sm:$0xf]  ;;  %v11039_v8 = vld [vmem:[#allocation8 + $0x2ac] sm:$0xf0]  ;;  %v8565_v11 = vor.u32 %v11007_v5, %v8564_v4  ;;  %4022 = vmatpush.bf16.msra.mxu3 %v8837_v3 }
 0x1f6   : > { %v8820_v9 = vld [vmem:[#allocation8 + $0x3a0] sm:$0xf]  ;;  %v11071_v10 = vld [vmem:[#allocation8 + $0x3ac] sm:$0xf0]  ;;  %v8693_v12 = vor.u32 %v11039_v8, %v8692_v6  ;;  %3984 = vmatpush.bf16.msra.mxu0 %v8437_v7 }
 0x1f7   : > { %v8420_v13 = vld [vmem:[#allocation8 + $0x80] sm:$0xf]  ;;  %v10971_v14 = vld [vmem:[#allocation8 + $0x8c] sm:$0xf0]  ;;  %v8821_v16 = vor.u32 %v11071_v10, %v8820_v9  ;;  %3997 = vmatpush.bf16.msra.mxu1 %v8565_v11 }
 0x1f8   : > { %v8548_v15 = vld [vmem:[#allocation8 + $0x180] sm:$0xf]  ;;  %v11003_v19 = vld [vmem:[#allocation8 + $0x18c] sm:$0xf0]  ;;  %v8421_v24 = vor.u32 %v10971_v14, %v8420_v13  ;;  %4010 = vmatpush.bf16.msra.mxu2 %v8693_v12 }
 0x1f9   : > { %v8676_v20 = vld [vmem:[#allocation8 + $0x280] sm:$0xf]  ;;  %v11035_v21 = vld [vmem:[#allocation8 + $0x28c] sm:$0xf0]  ;;  %v8549_v26 = vor.u32 %v11003_v19, %v8548_v15  ;;  %4023 = vmatpush.bf16.msra.mxu3 %v8821_v16 }
 0x1fa   : > { %v8804_v22 = vld [vmem:[#allocation8 + $0x380] sm:$0xf]  ;;  %v11067_v23 = vld [vmem:[#allocation8 + $0x38c] sm:$0xf0]  ;;  %v8677_v27 = vor.u32 %v11035_v21, %v8676_v20  ;;  %3985 = vmatpush.bf16.msra.mxu0 %v8421_v24 }
 0x1fb   : > { %v8404_v28 = vld [vmem:[#allocation8 + $0x60] sm:$0xf]  ;;  %v10967_v29 = vld [vmem:[#allocation8 + $0x6c] sm:$0xf0]  ;;  %v8805_v31 = vor.u32 %v11067_v23, %v8804_v22  ;;  %3998 = vmatpush.bf16.msra.mxu1 %v8549_v26 }
 0x1fc   : > { %v8532_v30 = vld [vmem:[#allocation8 + $0x160] sm:$0xf]  ;;  %v10999_v32 = vld [vmem:[#allocation8 + $0x16c] sm:$0xf0]  ;;  %v8405_v37 = vor.u32 %v10967_v29, %v8404_v28  ;;  %4011 = vmatpush.bf16.msra.mxu2 %v8677_v27 }
 0x1fd   : > { %v8660_v33 = vld [vmem:[#allocation8 + $0x260] sm:$0xf]  ;;  %v11031_v34 = vld [vmem:[#allocation8 + $0x26c] sm:$0xf0]  ;;  %v8533_v38 = vor.u32 %v10999_v32, %v8532_v30  ;;  %4024 = vmatpush.bf16.msra.mxu3 %v8805_v31 }
 0x1fe   : > { %v8788_v35 = vld [vmem:[#allocation8 + $0x360] sm:$0xf]  ;;  %v11063_v36 = vld [vmem:[#allocation8 + $0x36c] sm:$0xf0]  ;;  %v8661_v39 = vor.u32 %v11031_v34, %v8660_v33  ;;  %3986 = vmatpush.bf16.msra.mxu0 %v8405_v37 }
 0x1ff   : > { %v8388_v40 = vld [vmem:[#allocation8 + $0x40] sm:$0xf]  ;;  %v10963_v41 = vld [vmem:[#allocation8 + $0x4c] sm:$0xf0]  ;;  %v8789_v43 = vor.u32 %v11063_v36, %v8788_v35  ;;  %3999 = vmatpush.bf16.msra.mxu1 %v8533_v38  ;;  %v13066_v36 = vld [vmem:[#allocation7] sm:$0xff] }
 0x200   : > { %v8516_v42 = vld [vmem:[#allocation8 + $0x140] sm:$0xf]  ;;  %v10995_v44 = vld [vmem:[#allocation8 + $0x14c] sm:$0xf0]  ;;  %v8389_v49 = vor.u32 %v10963_v41, %v8388_v40  ;;  %4012 = vmatpush.bf16.msra.mxu2 %v8661_v39  ;;  %v2367_v38 = vperm.slane %v13066_v36, 0  ;;  %v2368_v39 = vperm.slane %v13066_v36, 1 }
 0x201   : > { %v8644_v45 = vld [vmem:[#allocation8 + $0x240] sm:$0xf]  ;;  %v11027_v46 = vld [vmem:[#allocation8 + $0x24c] sm:$0xf0]  ;;  %v8517_v17 = vor.u32 %v10995_v44, %v8516_v42  ;;  %4025 = vmatpush.bf16.msra.mxu3 %v8789_v43  ;;  %v2369_v40 = vperm.slane %v13066_v36, 2  ;;  %v2370_v41 = vperm.slane %v13066_v36, 3 }
 0x202   : > { %v8772_v47 = vld [vmem:[#allocation8 + $0x340] sm:$0xf]  ;;  %v11059_v48 = vld [vmem:[#allocation8 + $0x34c] sm:$0xf0]  ;;  %v8645_v50 = vor.u32 %v11027_v46, %v8644_v45  ;;  %3987 = vmatpush.bf16.msra.mxu0 %v8389_v49 }
 0x203   : > { %v8372_v18 = vld [vmem:[#allocation8 + $0x20] sm:$0xf]  ;;  %v10959_v51 = vld [vmem:[#allocation8 + $0x2c] sm:$0xf0]  ;;  %v8773_v52 = vor.u32 %v11059_v48, %v8772_v47  ;;  %4000 = vmatpush.bf16.msra.mxu1 %v8517_v17  ;;  %v2375_v48 = vrot.slane %v2368_v39, 6  ;;  %v2376_v49 = vrot.slane %v2369_v40, 4 }
 0x204   : > { %v8500_v25 = vld [vmem:[#allocation8 + $0x120] sm:$0xf]  ;;  %v10991_v53 = vld [vmem:[#allocation8 + $0x12c] sm:$0xf0]  ;;  %v8373_v58 = vor.u32 %v10959_v51, %v8372_v18  ;;  %4013 = vmatpush.bf16.msra.mxu2 %v8645_v50  ;;  %v2377_v17 = vrot.slane %v2370_v41, 2  ;;  %v2363_v51 = vld [vmem:[#allocation2] sm:$0xff] }
 0x205   : > { %v8628_v54 = vld [vmem:[#allocation8 + $0x220] sm:$0xf]  ;;  %v11023_v55 = vld [vmem:[#allocation8 + $0x22c] sm:$0xf0]  ;;  %v8501_v61 = vor.u32 %v10991_v53, %v8500_v25  ;;  %4026 = vmatpush.bf16.msra.mxu3 %v8773_v52  ;;  %v2381_v52 = vsel %vm2344_vm0, %v2367_v38, %v2375_v48 }
 0x206   : > { %v8756_v56 = vld [vmem:[#allocation8 + $0x320] sm:$0xf]  ;;  %v11055_v57 = vld [vmem:[#allocation8 + $0x32c] sm:$0xf0]  ;;  %v8629_v62 = vor.u32 %v11023_v55, %v8628_v54  ;;  %3988 = vmatpush.bf16.msra.mxu0 %v8373_v58  ;;  %v2382_v53 = vsel %vm2346_vm1, %v2376_v49, %v2377_v17 }
 0x207   : > { %v8356_v59 = vld [vmem:[#allocation8] sm:$0xf]  ;;  %v10955_v60 = vld [vmem:[#allocation8 + $0xc] sm:$0xf0]  ;;  %v8757_v2 = vor.u32 %v11055_v57, %v8756_v56  ;;  %4001 = vmatpush.bf16.msra.mxu1 %v8501_v61 }
 0x208   : > { %v8484_v63 = vld [vmem:[#allocation8 + $0x100] sm:$0xf]  ;;  %v10987_v0 = vld [vmem:[#allocation8 + $0x10c] sm:$0xf0]  ;;  %v8357_v9 = vor.u32 %v10955_v60, %v8356_v59  ;;  %4014 = vmatpush.bf16.msra.mxu2 %v8629_v62  ;;  %v2383_v59 = vsel %vm2348_vm2, %v2381_v52, %v2382_v53 }
 0x209   : > { %v8612_v1 = vld [vmem:[#allocation8 + $0x200] sm:$0xf]  ;;  %v11019_v3 = vld [vmem:[#allocation8 + $0x20c] sm:$0xf0]  ;;  %v8485_v13 = vor.u32 %v10987_v0, %v8484_v63  ;;  %4027 = vmatpush.bf16.msra.mxu3 %v8757_v2  ;;  %v13075_v0 = vadd.f32 %v2383_v59, %v2363_v51 }
 0x20a   : > { %v8740_v4 = vld [vmem:[#allocation8 + $0x300] sm:$0xf]  ;;  %v11051_v5 = vld [vmem:[#allocation8 + $0x30c] sm:$0xf0]  ;;  %v8613_v14 = vor.u32 %v11019_v3, %v8612_v1  ;;  %3989 = vmatpush.bf16.msra.mxu0 %v8357_v9 }
 0x20b   : > { %v8980_v6 = vld [vmem:[#allocation8 + $0x4e0] sm:$0xf]  ;;  %v11111_v7 = vld [vmem:[#allocation8 + $0x4ec] sm:$0xf0]  ;;  %v8741_v19 = vor.u32 %v11051_v5, %v8740_v4  ;;  %4002 = vmatpush.bf16.msra.mxu1 %v8485_v13  ;;  %v2391_v4 = vmin.f32 %v13075_v0, 0.0  ;;  %vm2401_vm3 = vcmp.gt.f32.partialorder %v13075_v0, 0.0 }
 0x20c   : > { %v9108_v8 = vld [vmem:[#allocation8 + $0x5e0] sm:$0xf]  ;;  %v11143_v10 = vld [vmem:[#allocation8 + $0x5ec] sm:$0xf0]  ;;  %v8981_v20 = vor.u32 %v11111_v7, %v8980_v6  ;;  %4015 = vmatpush.bf16.msra.mxu2 %v8613_v14 }
 0x20d   : > { %v9236_v11 = vld [vmem:[#allocation8 + $0x6e0] sm:$0xf]  ;;  %v11175_v12 = vld [vmem:[#allocation8 + $0x6ec] sm:$0xf0]  ;;  %v9109_v23 = vor.u32 %v11143_v10, %v9108_v8  ;;  %4028 = vmatpush.bf16.msra.mxu3 %v8741_v19  ;;  %v2371_v19 = vperm.slane %v13066_v36, 4 }
 0x20e   : > { %v9364_v15 = vld [vmem:[#allocation8 + $0x7e0] sm:$0xf]  ;;  %v11207_v16 = vld [vmem:[#allocation8 + $0x7ec] sm:$0xf0]  ;;  %v9237_v24 = vor.u32 %v11175_v12, %v9236_v11  ;;  %4034 = vmatpush.bf16.msrb.mxu0 %v8981_v20  ;;  %v2393_v12 = vmul.f32 1.442695, %v2391_v4 }
 0x20f   : > { %v8964_v21 = vld [vmem:[#allocation8 + $0x4c0] sm:$0xf]  ;;  %v11107_v22 = vld [vmem:[#allocation8 + $0x4cc] sm:$0xf0]  ;;  %v9365_v29 = vor.u32 %v11207_v16, %v9364_v15  ;;  %4047 = vmatpush.bf16.msrb.mxu1 %v9109_v23  ;;  %v2372_v20 = vperm.slane %v13066_v36, 5  ;;  %v2374_v23 = vperm.slane %v13066_v36, 7 }
 0x210   : > { %v9092_v26 = vld [vmem:[#allocation8 + $0x5c0] sm:$0xf]  ;;  %v11139_v27 = vld [vmem:[#allocation8 + $0x5cc] sm:$0xf0]  ;;  %v8965_v33 = vor.u32 %v11107_v22, %v8964_v21  ;;  %4060 = vmatpush.bf16.msrb.mxu2 %v9237_v24  ;;  %11744 = vpow2.f32 %v2393_v12  ;;  %v2373_v22 = vperm.slane %v13066_v36, 6 }
 0x211   : > { %v9220_v28 = vld [vmem:[#allocation8 + $0x6c0] sm:$0xf]  ;;  %v11171_v30 = vld [vmem:[#allocation8 + $0x6cc] sm:$0xf0]  ;;  %v9093_v42 = vor.u32 %v11139_v27, %v9092_v26  ;;  %4073 = vmatpush.bf16.msrb.mxu3 %v9365_v29  ;;  %v2378_v36 = vrot.slane %v2372_v20, 6 }
 0x212   : > { %v9348_v31 = vld [vmem:[#allocation8 + $0x7c0] sm:$0xf]  ;;  %v11203_v32 = vld [vmem:[#allocation8 + $0x7cc] sm:$0xf0]  ;;  %v9221_v43 = vor.u32 %v11171_v30, %v9220_v28  ;;  %4035 = vmatpush.bf16.msrb.mxu0 %v8965_v33  ;;  %v2379_v41 = vrot.slane %v2373_v22, 4 }
 0x213   : > { %v8948_v34 = vld [vmem:[#allocation8 + $0x4a0] sm:$0xf]  ;;  %v11103_v35 = vld [vmem:[#allocation8 + $0x4ac] sm:$0xf0]  ;;  %v9349_v46 = vor.u32 %v11203_v32, %v9348_v31  ;;  %4048 = vmatpush.bf16.msrb.mxu1 %v9093_v42  ;;  %v11077_v20 = vld [vmem:[#allocation8 + $0x3e4] sm:$0xf] }
 0x214   : > { %v9076_v37 = vld [vmem:[#allocation8 + $0x5a0] sm:$0xf]  ;;  %v11135_v44 = vld [vmem:[#allocation8 + $0x5ac] sm:$0xf0]  ;;  %v8949_v25 = vor.u32 %v11103_v35, %v8948_v34  ;;  %4061 = vmatpush.bf16.msrb.mxu2 %v9221_v43 }
 0x215   : > { %v9204_v45 = vld [vmem:[#allocation8 + $0x6a0] sm:$0xf]  ;;  %v11167_v47 = vld [vmem:[#allocation8 + $0x6ac] sm:$0xf0]  ;;  %v9077_v54 = vor.u32 %v11135_v44, %v9076_v37  ;;  %4074 = vmatpush.bf16.msrb.mxu3 %v9349_v46 }
 0x216   : > { %v9332_v50 = vld [vmem:[#allocation8 + $0x7a0] sm:$0xf]  ;;  %v11199_v18 = vld [vmem:[#allocation8 + $0x7ac] sm:$0xf0]  ;;  %v9205_v55 = vor.u32 %v11167_v47, %v9204_v45  ;;  %4036 = vmatpush.bf16.msrb.mxu0 %v8949_v25  ;;  %v2380_v45 = vrot.slane %v2374_v23, 2  ;;  %v11745_v46 = vpop.eup %11744 }
 0x217   : > { %v8932_v56 = vld [vmem:[#allocation8 + $0x480] sm:$0xf]  ;;  %v11099_v57 = vld [vmem:[#allocation8 + $0x48c] sm:$0xf0]  ;;  %v9333_v60 = vor.u32 %v11199_v18, %v9332_v50  ;;  %4049 = vmatpush.bf16.msrb.mxu1 %v9077_v54  ;;  %v2384_v50 = vsel %vm2344_vm0, %v2371_v19, %v2378_v36  ;;  %v8352_v18 = vadd.f32 -1.0, %v11745_v46 }
 0x218   : > { %v9060_v58 = vld [vmem:[#allocation8 + $0x580] sm:$0xf]  ;;  %v11131_v61 = vld [vmem:[#allocation8 + $0x58c] sm:$0xf0]  ;;  %v8933_v3 = vor.u32 %v11099_v57, %v8932_v56  ;;  %4062 = vmatpush.bf16.msrb.mxu2 %v9205_v55  ;;  %v2385_v52 = vsel %vm2346_vm1, %v2379_v41, %v2380_v45  ;;  %v8726_v19 = vld [vmem:[#allocation8 + $0x2f0] sm:$0xf0] }
 0x219   : > { %v9188_v62 = vld [vmem:[#allocation8 + $0x680] sm:$0xf]  ;;  %v11163_v63 = vld [vmem:[#allocation8 + $0x68c] sm:$0xf0]  ;;  %v9061_v6 = vor.u32 %v11131_v61, %v9060_v58  ;;  %4075 = vmatpush.bf16.msrb.mxu3 %v9333_v60  ;;  %v2386_v55 = vsel %vm2348_vm2, %v2384_v50, %v2385_v52  ;;  %v2399_v56 = vmul.f32 1.6732632, %v8352_v18 }
 0x21a   : > { %v9316_v1 = vld [vmem:[#allocation8 + $0x780] sm:$0xf]  ;;  %v11195_v2 = vld [vmem:[#allocation8 + $0x78c] sm:$0xf0]  ;;  %v9189_v7 = vor.u32 %v11163_v63, %v9188_v62  ;;  %4037 = vmatpush.bf16.msrb.mxu0 %v8933_v3  ;;  %v11041_v41 = vld [vmem:[#allocation8 + $0x2c4] sm:$0xf] }
 0x21b   : > { %v8916_v5 = vld [vmem:[#allocation8 + $0x460] sm:$0xf]  ;;  %v11095_v8 = vld [vmem:[#allocation8 + $0x46c] sm:$0xf0]  ;;  %v9317_v11 = vor.u32 %v11195_v2, %v9316_v1  ;;  %4050 = vmatpush.bf16.msrb.mxu1 %v9061_v6  ;;  %v2403_v3 = vsel %vm2401_vm3, %v13075_v0, %v2399_v56  ;;  %v10981_v0 = vld [vmem:[#allocation8 + $0xe4] sm:$0xf] }
 0x21c   : > { %v9044_v9 = vld [vmem:[#allocation8 + $0x560] sm:$0xf]  ;;  %v11127_v10 = vld [vmem:[#allocation8 + $0x56c] sm:$0xf0]  ;;  %v8917_v21 = vor.u32 %v11095_v8, %v8916_v5  ;;  %4063 = vmatpush.bf16.msrb.mxu2 %v9189_v7  ;;  %v2405_v7 = vmul.f32 1.050701, %v2403_v3 }
 0x21d   : > { %v9172_v13 = vld [vmem:[#allocation8 + $0x660] sm:$0xf]  ;;  %v11159_v14 = vld [vmem:[#allocation8 + $0x66c] sm:$0xf0]  ;;  %v9045_v24 = vor.u32 %v11127_v10, %v9044_v9  ;;  %4076 = vmatpush.bf16.msrb.mxu3 %v9317_v11  ;;  %v11037_v52 = vld [vmem:[#allocation8 + $0x2a4] sm:$0xf] }
 0x21e   : > { %v9300_v15 = vld [vmem:[#allocation8 + $0x760] sm:$0xf]  ;;  %v11191_v16 = vld [vmem:[#allocation8 + $0x76c] sm:$0xf0]  ;;  %v9173_v26 = vor.u32 %v11159_v14, %v9172_v13  ;;  %4038 = vmatpush.bf16.msrb.mxu0 %v8917_v21  ;;  %2409 = vst [vmem:[#allocation1] ss:$4 sm:$0xff] %v2405_v7 }
 0x21f   : > { %v8900_v27 = vld [vmem:[#allocation8 + $0x440] sm:$0xf]  ;;  %v11091_v28 = vld [vmem:[#allocation8 + $0x44c] sm:$0xf0]  ;;  %v9301_v30 = vor.u32 %v11191_v16, %v9300_v15  ;;  %4051 = vmatpush.bf16.msrb.mxu1 %v9045_v24  ;;  %v8470_v13 = vld [vmem:[#allocation8 + $0xf0] sm:$0xf0] }
 0x220   : > { %v9028_v29 = vld [vmem:[#allocation8 + $0x540] sm:$0xf]  ;;  %v11123_v31 = vld [vmem:[#allocation8 + $0x54c] sm:$0xf0]  ;;  %v8901_v38 = vor.u32 %v11091_v28, %v8900_v27  ;;  %4064 = vmatpush.bf16.msrb.mxu2 %v9173_v26  ;;  %v11013_v14 = vld [vmem:[#allocation8 + $0x1e4] sm:$0xf]  ;;  %v8473_v26 = vor.u32 %v10981_v0, %v8470_v13 }
 0x221   : > { %v9156_v32 = vld [vmem:[#allocation8 + $0x640] sm:$0xf]  ;;  %v11155_v33 = vld [vmem:[#allocation8 + $0x64c] sm:$0xf0]  ;;  %v9029_v42 = vor.u32 %v11123_v31, %v9028_v29  ;;  %4077 = vmatpush.bf16.msrb.mxu3 %v9301_v30  ;;  %v8598_v15 = vld [vmem:[#allocation8 + $0x1f0] sm:$0xf0] }
 0x222   : > { %v9284_v34 = vld [vmem:[#allocation8 + $0x740] sm:$0xf]  ;;  %v11187_v35 = vld [vmem:[#allocation8 + $0x74c] sm:$0xf0]  ;;  %v9157_v43 = vor.u32 %v11155_v33, %v9156_v32  ;;  %4039 = vmatpush.bf16.msrb.mxu0 %v8901_v38  ;;  %v11045_v16 = vld [vmem:[#allocation8 + $0x2e4] sm:$0xf] }
 0x223   : > { %v8884_v37 = vld [vmem:[#allocation8 + $0x420] sm:$0xf]  ;;  %v11087_v39 = vld [vmem:[#allocation8 + $0x42c] sm:$0xf0]  ;;  %v9285_v47 = vor.u32 %v11187_v35, %v9284_v34  ;;  %4052 = vmatpush.bf16.msrb.mxu1 %v9029_v42  ;;  %v8854_v21 = vld [vmem:[#allocation8 + $0x3f0] sm:$0xf0]  ;;  %v8601_v35 = vor.u32 %v11013_v14, %v8598_v15 }
 0x224   : > { %v9012_v40 = vld [vmem:[#allocation8 + $0x520] sm:$0xf]  ;;  %v2364_v44 = vld [vmem:[#allocation2 + $0x8] sm:$0xff]  ;;  %v8885_v53 = vor.u32 %v11087_v39, %v8884_v37  ;;  %4065 = vmatpush.bf16.msrb.mxu2 %v9157_v43  ;;  %v10977_v27 = vld [vmem:[#allocation8 + $0xc4] sm:$0xf]  ;;  %v8729_v37 = vor.u32 %v11045_v16, %v8726_v19 }
 0x225   : > { %v11119_v48 = vld [vmem:[#allocation8 + $0x52c] sm:$0xf0]  ;;  %v9140_v49 = vld [vmem:[#allocation8 + $0x620] sm:$0xf]  ;;  %v13086_v61 = vadd.f32 %v2386_v55, %v2364_v44  ;;  %4078 = vmatpush.bf16.msrb.mxu3 %v9285_v47  ;;  %v8454_v28 = vld [vmem:[#allocation8 + $0xd0] sm:$0xf0] }
 0x226   : > { %v11151_v17 = vld [vmem:[#allocation8 + $0x62c] sm:$0xf0]  ;;  %v9268_v51 = vld [vmem:[#allocation8 + $0x720] sm:$0xf]  ;;  %v9013_v57 = vor.u32 %v11119_v48, %v9012_v40  ;;  %4040 = vmatpush.bf16.msrb.mxu0 %v8885_v53  ;;  %v11009_v29 = vld [vmem:[#allocation8 + $0x1c4] sm:$0xf]  ;;  %v8857_v40 = vor.u32 %v11077_v20, %v8854_v21  ;;  %v8457_v46 = vor.u32 %v10977_v27, %v8454_v28 }
 0x227   : > { %v11183_v25 = vld [vmem:[#allocation8 + $0x72c] sm:$0xf0]  ;;  %v8868_v54 = vld [vmem:[#allocation8 + $0x400] sm:$0xf]  ;;  %v9141_v58 = vor.u32 %v11151_v17, %v9140_v49  ;;  %v2392_v6 = vmin.f32 %v13086_v61, 0.0  ;;  %vm2402_vm4 = vcmp.gt.f32.partialorder %v13086_v61, 0.0 }
 0x228   : > { %v11083_v59 = vld [vmem:[#allocation8 + $0x40c] sm:$0xf0]  ;;  %v8996_v60 = vld [vmem:[#allocation8 + $0x500] sm:$0xf]  ;;  %v9269_v62 = vor.u32 %v11183_v25, %v9268_v51  ;;  %4053 = vmatpush.bf16.msrb.mxu1 %v9013_v57  ;;  %v8582_v30 = vld [vmem:[#allocation8 + $0x1d0] sm:$0xf0] }
 0x229   : > { %v11115_v63 = vld [vmem:[#allocation8 + $0x50c] sm:$0xf0]  ;;  %v9124_v1 = vld [vmem:[#allocation8 + $0x600] sm:$0xf]  ;;  %v8869_v8 = vor.u32 %v11083_v59, %v8868_v54  ;;  %4066 = vmatpush.bf16.msrb.mxu2 %v9141_v58  ;;  %v2395_v11 = vmul.f32 1.442695, %v2392_v6  ;;  %v8585_v47 = vor.u32 %v11009_v29, %v8582_v30 }
 0x22a   : > { %v11147_v2 = vld [vmem:[#allocation8 + $0x60c] sm:$0xf0]  ;;  %v9252_v4 = vld [vmem:[#allocation8 + $0x700] sm:$0xf]  ;;  %v8997_v9 = vor.u32 %v11115_v63, %v8996_v60  ;;  %4079 = vmatpush.bf16.msrb.mxu3 %v9269_v62  ;;  %v8710_v42 = vld [vmem:[#allocation8 + $0x2d0] sm:$0xf0] }
 0x22b   : > { %v11179_v5 = vld [vmem:[#allocation8 + $0x70c] sm:$0xf0]  ;;  %v9125_v10 = vor.u32 %v11147_v2, %v9124_v1  ;;  %11746 = vpow2.f32 %v2395_v11  ;;  %4041 = vmatpush.bf16.msrb.mxu0 %v8869_v8  ;;  %v2412_v24 = vld.sshfl [vmem:[#allocation1] sm:$0xff pattern:$0x73625140]  ;;  %v8713_v18 = vor.u32 %v11041_v41, %v8710_v42 }
 0x22c   : > { %v9253_v12 = vor.u32 %v11179_v5, %v9252_v4  ;;  %4054 = vmatpush.bf16.msrb.mxu1 %v8997_v9  ;;  %v2414_v23 = vld.sshfl [vmem:[#allocation1 + $0x10] sm:$0xff pattern:$0x73625140]  ;;  %v13094_v32 = vpack.c.bf16 %v2412_v24, %v2412_v24  ;;  %v2415_v33 = vld.sshfl [vmem:[#allocation1 + $0x18] sm:$0xff pattern:$0x73625140] }
 0x22d   : > { %4067 = vmatpush.bf16.msrb.mxu2 %v9125_v10  ;;  %v13092_v31 = vpack.c.bf16 %v2414_v23, %v2414_v23  ;;  %v2413_v34 = vld.sshfl [vmem:[#allocation1 + $0x8] sm:$0xff pattern:$0x73625140]  ;;  %v13096_v38 = vpack.c.bf16 %v2415_v33, %v2415_v33  ;;  %v8838_v44 = vld [vmem:[#allocation8 + $0x3d0] sm:$0xf0] }
 0x22e   : > { %4080 = vmatpush.bf16.msrb.mxu3 %v9253_v12  ;;  %v13098_v39 = vpack.c.bf16 %v2413_v34, %v2413_v34  ;;  %3990 = vmatmul.bf16.vlgmr.msra.gmra.mxu0 %v13094_v32  ;;  %v11073_v43 = vld [vmem:[#allocation8 + $0x3c4] sm:$0xf]  ;;  %v8438_v49 = vld [vmem:[#allocation8 + $0xb0] sm:$0xf0] }
 0x22f   : > { %4016 = vmatmul.bf16.vlgmr.msra.gmra.mxu2 %v13092_v31  ;;  %4029 = vmatmul.bf16.vlgmr.msra.gmra.mxu3 %v13096_v38  ;;  %v10973_v48 = vld [vmem:[#allocation8 + $0xa4] sm:$0xf]  ;;  %v8841_v51 = vor.u32 %v11073_v43, %v8838_v44  ;;  %v8566_v25 = vld [vmem:[#allocation8 + $0x1b0] sm:$0xf0] }
 0x230   : > { %4003 = vmatmul.bf16.vlgmr.msra.gmra.mxu1 %v13098_v39  ;;  %4086 = vmatpush.bf16.msra.mxu0 %v8473_v26  ;;  %v11005_v17 = vld [vmem:[#allocation8 + $0x1a4] sm:$0xf]  ;;  %v8694_v53 = vld [vmem:[#allocation8 + $0x2b0] sm:$0xf0]  ;;  %v8441_v57 = vor.u32 %v10973_v48, %v8438_v49 }
 0x231   : > { %v11747_v22 = vpop.eup %11746  ;;  %4099 = vmatpush.bf16.msra.mxu1 %v8601_v35  ;;  %4112 = vmatpush.bf16.msra.mxu2 %v8729_v37  ;;  %v11069_v55 = vld [vmem:[#allocation8 + $0x3a4] sm:$0xf]  ;;  %v8822_v56 = vld [vmem:[#allocation8 + $0x3b0] sm:$0xf0]  ;;  %v8569_v58 = vor.u32 %v11005_v17, %v8566_v25  ;;  %v8697_v62 = vor.u32 %v11037_v52, %v8694_v53 }
 0x232   : > { %v8353_v36 = vadd.f32 -1.0, %v11747_v22  ;;  %4125 = vmatpush.bf16.msra.mxu3 %v8857_v40  ;;  %v10969_v59 = vld [vmem:[#allocation8 + $0x84] sm:$0xf]  ;;  %v8422_v60 = vld [vmem:[#allocation8 + $0x90] sm:$0xf0]  ;;  %v8825_v63 = vor.u32 %v11069_v55, %v8822_v56 }
 0x233   : > { %v8550_v1 = vld [vmem:[#allocation8 + $0x190] sm:$0xf0]  ;;  %v11033_v2 = vld [vmem:[#allocation8 + $0x284] sm:$0xf]  ;;  %v8425_v7 = vor.u32 %v10969_v59, %v8422_v60 }
 0x234   : > { %v2400_v45 = vmul.f32 1.6732632, %v8353_v36  ;;  %4087 = vmatpush.bf16.msra.mxu0 %v8457_v46  ;;  %v8678_v3 = vld [vmem:[#allocation8 + $0x290] sm:$0xf0]  ;;  %v11065_v4 = vld [vmem:[#allocation8 + $0x384] sm:$0xf] }
 0x235   : > { %4100 = vmatpush.bf16.msra.mxu1 %v8585_v47  ;;  %4113 = vmatpush.bf16.msra.mxu2 %v8713_v18  ;;  %v8806_v5 = vld [vmem:[#allocation8 + $0x390] sm:$0xf0]  ;;  %v10965_v6 = vld [vmem:[#allocation8 + $0x64] sm:$0xf]  ;;  %v8681_v12 = vor.u32 %v11033_v2, %v8678_v3 }
 0x236   : > { %v2404_v50 = vsel %vm2402_vm4, %v13086_v61, %v2400_v45  ;;  %4126 = vmatpush.bf16.msra.mxu3 %v8841_v51  ;;  %v11001_v61 = vld [vmem:[#allocation8 + $0x184] sm:$0xf]  ;;  %v8406_v9 = vld [vmem:[#allocation8 + $0x70] sm:$0xf0]  ;;  %v8809_v0 = vor.u32 %v11065_v4, %v8806_v5 }
 0x237   : > { %v2406_v54 = vmul.f32 1.050701, %v2404_v50  ;;  %v8553_v8 = vor.u32 %v11001_v61, %v8550_v1  ;;  %v10997_v10 = vld [vmem:[#allocation8 + $0x164] sm:$0xf]  ;;  %v8534_v11 = vld [vmem:[#allocation8 + $0x170] sm:$0xf0]  ;;  %v8409_v21 = vor.u32 %v10965_v6, %v8406_v9 }
 0x238   : > { %4088 = vmatpush.bf16.msra.mxu0 %v8441_v57  ;;  %v11029_v13 = vld [vmem:[#allocation8 + $0x264] sm:$0xf]  ;;  %v8662_v14 = vld [vmem:[#allocation8 + $0x270] sm:$0xf0]  ;;  %v8537_v22 = vor.u32 %v10997_v10, %v8534_v11 }
 0x239   : > { %2411 = vst [vmem:[#allocation1 + $0x20] ss:$4 sm:$0xff] %v2406_v54  ;;  %4101 = vmatpush.bf16.msra.mxu1 %v8569_v58  ;;  %4114 = vmatpush.bf16.msra.mxu2 %v8697_v62  ;;  %v11061_v15 = vld [vmem:[#allocation8 + $0x364] sm:$0xf]  ;;  %v8790_v16 = vld [vmem:[#allocation8 + $0x370] sm:$0xf0]  ;;  %v8665_v30 = vor.u32 %v11029_v13, %v8662_v14 }
 0x23a   : > { %4127 = vmatpush.bf16.msra.mxu3 %v8825_v63  ;;  %v10961_v23 = vld [vmem:[#allocation8 + $0x44] sm:$0xf]  ;;  %v8390_v24 = vld [vmem:[#allocation8 + $0x50] sm:$0xf0]  ;;  %v8793_v35 = vor.u32 %v11061_v15, %v8790_v16 }
 0x23b   : > { %v10993_v37 = vld [vmem:[#allocation8 + $0x144] sm:$0xf]  ;;  %v8518_v40 = vld [vmem:[#allocation8 + $0x150] sm:$0xf0]  ;;  %v8393_v44 = vor.u32 %v10961_v23, %v8390_v24 }
 0x23c   : > { %4089 = vmatpush.bf16.msra.mxu0 %v8425_v7  ;;  %v11025_v36 = vld [vmem:[#allocation8 + $0x244] sm:$0xf]  ;;  %v8646_v41 = vld [vmem:[#allocation8 + $0x250] sm:$0xf0]  ;;  %v8521_v45 = vor.u32 %v10993_v37, %v8518_v40 }
 0x23d   : > { %4102 = vmatpush.bf16.msra.mxu1 %v8553_v8  ;;  %4115 = vmatpush.bf16.msra.mxu2 %v8681_v12  ;;  %v11057_v42 = vld [vmem:[#allocation8 + $0x344] sm:$0xf]  ;;  %v8774_v43 = vld [vmem:[#allocation8 + $0x350] sm:$0xf0]  ;;  %v8649_v48 = vor.u32 %v11025_v36, %v8646_v41 }
 0x23e   : > { %4128 = vmatpush.bf16.msra.mxu3 %v8809_v0  ;;  %v10957_v46 = vld [vmem:[#allocation8 + $0x24] sm:$0xf]  ;;  %v8374_v47 = vld [vmem:[#allocation8 + $0x30] sm:$0xf0]  ;;  %v8777_v49 = vor.u32 %v11057_v42, %v8774_v43 }
 0x23f   : > { %v10989_v17 = vld [vmem:[#allocation8 + $0x124] sm:$0xf]  ;;  %v8502_v50 = vld [vmem:[#allocation8 + $0x130] sm:$0xf0]  ;;  %v8377_v54 = vor.u32 %v10957_v46, %v8374_v47 }
 0x240   : > { %v2418_v19 = vld.sshfl [vmem:[#allocation1 + $0x30] sm:$0xff pattern:$0x73625140]  ;;  %v2416_v20 = vld.sshfl [vmem:[#allocation1 + $0x20] sm:$0xff pattern:$0x73625140]  ;;  %4090 = vmatpush.bf16.msra.mxu0 %v8409_v21  ;;  %v8505_v55 = vor.u32 %v10989_v17, %v8502_v50 }
 0x241   : > { %v13106_v26 = vpack.c.bf16 %v2418_v19, %v2418_v19  ;;  %v13108_v27 = vpack.c.bf16 %v2416_v20, %v2416_v20  ;;  %v2419_v28 = vld.sshfl [vmem:[#allocation1 + $0x38] sm:$0xff pattern:$0x73625140]  ;;  %v2417_v29 = vld.sshfl [vmem:[#allocation1 + $0x28] sm:$0xff pattern:$0x73625140]  ;;  %4103 = vmatpush.bf16.msra.mxu1 %v8537_v22  ;;  %4116 = vmatpush.bf16.msra.mxu2 %v8665_v30 }
 0x242   : > { %v13110_v33 = vpack.c.bf16 %v2419_v28, %v2419_v28  ;;  %v13112_v34 = vpack.c.bf16 %v2417_v29, %v2417_v29  ;;  %4129 = vmatpush.bf16.msra.mxu3 %v8793_v35  ;;  %v11021_v18 = vld [vmem:[#allocation8 + $0x224] sm:$0xf]  ;;  %v8630_v51 = vld [vmem:[#allocation8 + $0x230] sm:$0xf0] }
 0x243   : > { %4068 = vmatmul.bf16.vlgmr.msrb.gmra.mxu2 %v13106_v26  ;;  %4042 = vmatmul.bf16.vlgmr.msrb.gmra.mxu0 %v13108_v27  ;;  %v11053_v25 = vld [vmem:[#allocation8 + $0x324] sm:$0xf]  ;;  %v8758_v52 = vld [vmem:[#allocation8 + $0x330] sm:$0xf0]  ;;  %v8633_v59 = vor.u32 %v11021_v18, %v8630_v51 }
 0x244   : > { %4081 = vmatmul.bf16.vlgmr.msrb.gmra.mxu3 %v13110_v33  ;;  %4055 = vmatmul.bf16.vlgmr.msrb.gmra.mxu1 %v13112_v34  ;;  %v10953_v53 = vld [vmem:[#allocation8 + $0x4] sm:$0xf]  ;;  %v8358_v56 = vld [vmem:[#allocation8 + $0x10] sm:$0xf0]  ;;  %v8761_v60 = vor.u32 %v11053_v25, %v8758_v52 }
 0x245   : > { %4091 = vmatpush.bf16.msra.mxu0 %v8393_v44  ;;  %4104 = vmatpush.bf16.msra.mxu1 %v8521_v45  ;;  %v10985_v57 = vld [vmem:[#allocation8 + $0x104] sm:$0xf]  ;;  %v8486_v58 = vld [vmem:[#allocation8 + $0x110] sm:$0xf0]  ;;  %v8361_v7 = vor.u32 %v10953_v53, %v8358_v56 }
 0x246   : > { %4117 = vmatpush.bf16.msra.mxu2 %v8649_v48  ;;  %4130 = vmatpush.bf16.msra.mxu3 %v8777_v49  ;;  %v11017_v62 = vld [vmem:[#allocation8 + $0x204] sm:$0xf]  ;;  %v8614_v63 = vld [vmem:[#allocation8 + $0x210] sm:$0xf0]  ;;  %v8489_v8 = vor.u32 %v10985_v57, %v8486_v58 }
 0x247   : > { %v11049_v61 = vld [vmem:[#allocation8 + $0x304] sm:$0xf]  ;;  %v8742_v1 = vld [vmem:[#allocation8 + $0x310] sm:$0xf0]  ;;  %v8617_v12 = vor.u32 %v11017_v62, %v8614_v63 }
 0x248   : > { %v11109_v2 = vld [vmem:[#allocation8 + $0x4e4] sm:$0xf]  ;;  %v8982_v3 = vld [vmem:[#allocation8 + $0x4f0] sm:$0xf0]  ;;  %v8745_v0 = vor.u32 %v11049_v61, %v8742_v1 }
 0x249   : > { %v11141_v4 = vld [vmem:[#allocation8 + $0x5e4] sm:$0xf]  ;;  %v9110_v5 = vld [vmem:[#allocation8 + $0x5f0] sm:$0xf0]  ;;  %4092 = vmatpush.bf16.msra.mxu0 %v8377_v54  ;;  %4105 = vmatpush.bf16.msra.mxu1 %v8505_v55  ;;  %v8985_v13 = vor.u32 %v11109_v2, %v8982_v3 }
 0x24a   : > { %v11173_v6 = vld [vmem:[#allocation8 + $0x6e4] sm:$0xf]  ;;  %v9238_v9 = vld [vmem:[#allocation8 + $0x6f0] sm:$0xf0]  ;;  %4118 = vmatpush.bf16.msra.mxu2 %v8633_v59  ;;  %4131 = vmatpush.bf16.msra.mxu3 %v8761_v60  ;;  %v9113_v14 = vor.u32 %v11141_v4, %v9110_v5 }
 0x24b   : > { %v11205_v10 = vld [vmem:[#allocation8 + $0x7e4] sm:$0xf]  ;;  %v9366_v11 = vld [vmem:[#allocation8 + $0x7f0] sm:$0xf0]  ;;  %v9241_v19 = vor.u32 %v11173_v6, %v9238_v9 }
 0x24c   : > { %v11105_v15 = vld [vmem:[#allocation8 + $0x4c4] sm:$0xf]  ;;  %v8966_v16 = vld [vmem:[#allocation8 + $0x4d0] sm:$0xf0]  ;;  %v9369_v20 = vor.u32 %v11205_v10, %v9366_v11 }
 0x24d   : > { %v11137_v21 = vld [vmem:[#allocation8 + $0x5c4] sm:$0xf]  ;;  %v9094_v22 = vld [vmem:[#allocation8 + $0x5d0] sm:$0xf0]  ;;  %4093 = vmatpush.bf16.msra.mxu0 %v8361_v7  ;;  %4106 = vmatpush.bf16.msra.mxu1 %v8489_v8  ;;  %v8969_v30 = vor.u32 %v11105_v15, %v8966_v16 }
 0x24e   : > { %v11169_v23 = vld [vmem:[#allocation8 + $0x6c4] sm:$0xf]  ;;  %v9222_v24 = vld [vmem:[#allocation8 + $0x6d0] sm:$0xf0]  ;;  %4119 = vmatpush.bf16.msra.mxu2 %v8617_v12  ;;  %4132 = vmatpush.bf16.msra.mxu3 %v8745_v0  ;;  %v9097_v35 = vor.u32 %v11137_v21, %v9094_v22 }
 0x24f   : > { %v11201_v28 = vld [vmem:[#allocation8 + $0x7c4] sm:$0xf]  ;;  %v9350_v29 = vld [vmem:[#allocation8 + $0x7d0] sm:$0xf0]  ;;  %v9225_v36 = vor.u32 %v11169_v23, %v9222_v24 }
 0x250   : > { %v11101_v37 = vld [vmem:[#allocation8 + $0x4a4] sm:$0xf]  ;;  %v8950_v40 = vld [vmem:[#allocation8 + $0x4b0] sm:$0xf0]  ;;  %v9353_v41 = vor.u32 %v11201_v28, %v9350_v29 }
 0x251   : > { %4138 = vmatpush.bf16.msrb.mxu0 %v8985_v13  ;;  %4151 = vmatpush.bf16.msrb.mxu1 %v9113_v14  ;;  %v11133_v42 = vld [vmem:[#allocation8 + $0x5a4] sm:$0xf]  ;;  %v9078_v43 = vld [vmem:[#allocation8 + $0x5b0] sm:$0xf0]  ;;  %v8953_v48 = vor.u32 %v11101_v37, %v8950_v40 }
 0x252   : > { %4164 = vmatpush.bf16.msrb.mxu2 %v9241_v19  ;;  %4177 = vmatpush.bf16.msrb.mxu3 %v9369_v20  ;;  %v11165_v44 = vld [vmem:[#allocation8 + $0x6a4] sm:$0xf]  ;;  %v9206_v45 = vld [vmem:[#allocation8 + $0x6b0] sm:$0xf0]  ;;  %v9081_v49 = vor.u32 %v11133_v42, %v9078_v43 }
 0x253   : > { %v11197_v46 = vld [vmem:[#allocation8 + $0x7a4] sm:$0xf]  ;;  %v9334_v47 = vld [vmem:[#allocation8 + $0x7b0] sm:$0xf0]  ;;  %4120 = vmatmul.bf16.vlgmr.msra.gmra.mxu2 %v13092_v31  ;;  %4094 = vmatmul.bf16.vlgmr.msra.gmra.mxu0 %v13094_v32  ;;  %v9209_v18 = vor.u32 %v11165_v44, %v9206_v45 }
 0x254   : > { %4133 = vmatmul.bf16.vlgmr.msra.gmra.mxu3 %v13096_v38  ;;  %4107 = vmatmul.bf16.vlgmr.msra.gmra.mxu1 %v13098_v39  ;;  %v11097_v17 = vld [vmem:[#allocation8 + $0x484] sm:$0xf]  ;;  %v8934_v50 = vld [vmem:[#allocation8 + $0x490] sm:$0xf0]  ;;  %v9337_v51 = vor.u32 %v11197_v46, %v9334_v47 }
 0x255   : > { %4139 = vmatpush.bf16.msrb.mxu0 %v8969_v30  ;;  %4152 = vmatpush.bf16.msrb.mxu1 %v9097_v35  ;;  %v11129_v25 = vld [vmem:[#allocation8 + $0x584] sm:$0xf]  ;;  %v9062_v52 = vld [vmem:[#allocation8 + $0x590] sm:$0xf0]  ;;  %v8937_v57 = vor.u32 %v11097_v17, %v8934_v50 }
 0x256   : > { %4165 = vmatpush.bf16.msrb.mxu2 %v9225_v36  ;;  %4178 = vmatpush.bf16.msrb.mxu3 %v9353_v41  ;;  %v11161_v53 = vld [vmem:[#allocation8 + $0x684] sm:$0xf]  ;;  %v9190_v54 = vld [vmem:[#allocation8 + $0x690] sm:$0xf0]  ;;  %v9065_v58 = vor.u32 %v11129_v25, %v9062_v52  ;;  %v8604_v25 = vld [vmem:[#allocation8 + $0x1e8] sm:$0xf] }
 0x257   : > { %v11193_v55 = vld [vmem:[#allocation8 + $0x784] sm:$0xf]  ;;  %v9318_v56 = vld [vmem:[#allocation8 + $0x790] sm:$0xf0]  ;;  %v9193_v62 = vor.u32 %v11161_v53, %v9190_v54  ;;  %v11016_v52 = vld [vmem:[#allocation8 + $0x1f4] sm:$0xf0] }
 0x258   : > { %v11093_v59 = vld [vmem:[#allocation8 + $0x464] sm:$0xf]  ;;  %v8918_v60 = vld [vmem:[#allocation8 + $0x470] sm:$0xf0]  ;;  %v9321_v63 = vor.u32 %v11193_v55, %v9318_v56  ;;  %v8732_v53 = vld [vmem:[#allocation8 + $0x2e8] sm:$0xf] }
 0x259   : > { %4140 = vmatpush.bf16.msrb.mxu0 %v8953_v48  ;;  %4153 = vmatpush.bf16.msrb.mxu1 %v9081_v49  ;;  %v11125_v61 = vld [vmem:[#allocation8 + $0x564] sm:$0xf]  ;;  %v9046_v1 = vld [vmem:[#allocation8 + $0x570] sm:$0xf0]  ;;  %v8921_v6 = vor.u32 %v11093_v59, %v8918_v60  ;;  %v11048_v56 = vld [vmem:[#allocation8 + $0x2f4] sm:$0xf0] }
 0x25a   : > { %4166 = vmatpush.bf16.msrb.mxu2 %v9209_v18  ;;  %4179 = vmatpush.bf16.msrb.mxu3 %v9337_v51  ;;  %v11157_v2 = vld [vmem:[#allocation8 + $0x664] sm:$0xf]  ;;  %v9174_v3 = vld [vmem:[#allocation8 + $0x670] sm:$0xf0]  ;;  %v9049_v7 = vor.u32 %v11125_v61, %v9046_v1  ;;  %v8476_v18 = vld [vmem:[#allocation8 + $0xe8] sm:$0xf] }
 0x25b   : > { %v11189_v4 = vld [vmem:[#allocation8 + $0x764] sm:$0xf]  ;;  %v9302_v5 = vld [vmem:[#allocation8 + $0x770] sm:$0xf0]  ;;  %v9177_v10 = vor.u32 %v11157_v2, %v9174_v3  ;;  %v10984_v51 = vld [vmem:[#allocation8 + $0xf4] sm:$0xf0]  ;;  %v8733_v2 = vor.u32 %v11048_v56, %v8732_v53 }
 0x25c   : > { %v11089_v8 = vld [vmem:[#allocation8 + $0x444] sm:$0xf]  ;;  %v8902_v9 = vld [vmem:[#allocation8 + $0x450] sm:$0xf0]  ;;  %v9305_v11 = vor.u32 %v11189_v4, %v9302_v5  ;;  %v8460_v61 = vld [vmem:[#allocation8 + $0xc8] sm:$0xf] }
 0x25d   : > { %4141 = vmatpush.bf16.msrb.mxu0 %v8937_v57  ;;  %4154 = vmatpush.bf16.msrb.mxu1 %v9065_v58  ;;  %v11121_v12 = vld [vmem:[#allocation8 + $0x544] sm:$0xf]  ;;  %v9030_v0 = vld [vmem:[#allocation8 + $0x550] sm:$0xf0]  ;;  %v8905_v19 = vor.u32 %v11089_v8, %v8902_v9  ;;  %v8860_v57 = vld [vmem:[#allocation8 + $0x3e8] sm:$0xf] }
 0x25e   : > { %4167 = vmatpush.bf16.msrb.mxu2 %v9193_v62  ;;  %4180 = vmatpush.bf16.msrb.mxu3 %v9321_v63  ;;  %v11153_v13 = vld [vmem:[#allocation8 + $0x644] sm:$0xf]  ;;  %v9158_v14 = vld [vmem:[#allocation8 + $0x650] sm:$0xf0]  ;;  %v9033_v20 = vor.u32 %v11121_v12, %v9030_v0  ;;  %v11080_v58 = vld [vmem:[#allocation8 + $0x3f4] sm:$0xf0]  ;;  %v8477_v62 = vor.u32 %v10984_v51, %v8476_v18  ;;  %v8605_v63 = vor.u32 %v11016_v52, %v8604_v25 }
 0x25f   : > { %v11185_v15 = vld [vmem:[#allocation8 + $0x744] sm:$0xf]  ;;  %v9286_v16 = vld [vmem:[#allocation8 + $0x750] sm:$0xf0]  ;;  %v9161_v23 = vor.u32 %v11153_v13, %v9158_v14  ;;  %v10980_v1 = vld [vmem:[#allocation8 + $0xd4] sm:$0xf0]  ;;  %v8861_v3 = vor.u32 %v11080_v58, %v8860_v57 }
 0x260   : > { %v11085_v21 = vld [vmem:[#allocation8 + $0x424] sm:$0xf]  ;;  %v8886_v22 = vld [vmem:[#allocation8 + $0x430] sm:$0xf0]  ;;  %v9289_v24 = vor.u32 %v11185_v15, %v9286_v16  ;;  %v8588_v4 = vld [vmem:[#allocation8 + $0x1c8] sm:$0xf] }
 0x261   : > { %4142 = vmatpush.bf16.msrb.mxu0 %v8921_v6  ;;  %4155 = vmatpush.bf16.msrb.mxu1 %v9049_v7  ;;  %v11117_v28 = vld [vmem:[#allocation8 + $0x524] sm:$0xf]  ;;  %v9014_v29 = vld [vmem:[#allocation8 + $0x530] sm:$0xf0]  ;;  %v8889_v41 = vor.u32 %v11085_v21, %v8886_v22  ;;  %v11012_v5 = vld [vmem:[#allocation8 + $0x1d4] sm:$0xf0] }
 0x262   : > { %4168 = vmatpush.bf16.msrb.mxu2 %v9177_v10  ;;  %4181 = vmatpush.bf16.msrb.mxu3 %v9305_v11  ;;  %v11149_v30 = vld [vmem:[#allocation8 + $0x624] sm:$0xf]  ;;  %v9142_v35 = vld [vmem:[#allocation8 + $0x630] sm:$0xf0]  ;;  %v9017_v42 = vor.u32 %v11117_v28, %v9014_v29  ;;  %v8716_v6 = vld [vmem:[#allocation8 + $0x2c8] sm:$0xf]  ;;  %v8461_v10 = vor.u32 %v10980_v1, %v8460_v61  ;;  %v8589_v11 = vor.u32 %v11012_v5, %v8588_v4 }
 0x263   : > { %v11181_v37 = vld [vmem:[#allocation8 + $0x724] sm:$0xf]  ;;  %v9270_v40 = vld [vmem:[#allocation8 + $0x730] sm:$0xf0]  ;;  %v9145_v46 = vor.u32 %v11149_v30, %v9142_v35  ;;  %v11044_v7 = vld [vmem:[#allocation8 + $0x2d4] sm:$0xf0] }
 0x264   : > { %v11081_v36 = vld [vmem:[#allocation8 + $0x404] sm:$0xf]  ;;  %v8870_v43 = vld [vmem:[#allocation8 + $0x410] sm:$0xf0]  ;;  %v9273_v47 = vor.u32 %v11181_v37, %v9270_v40  ;;  %v8844_v8 = vld [vmem:[#allocation8 + $0x3c8] sm:$0xf]  ;;  %v8717_v13 = vor.u32 %v11044_v7, %v8716_v6 }
 0x265   : > { %4143 = vmatpush.bf16.msrb.mxu0 %v8905_v19  ;;  %4156 = vmatpush.bf16.msrb.mxu1 %v9033_v20  ;;  %v11113_v44 = vld [vmem:[#allocation8 + $0x504] sm:$0xf]  ;;  %v8998_v45 = vld [vmem:[#allocation8 + $0x510] sm:$0xf0]  ;;  %v8873_v54 = vor.u32 %v11081_v36, %v8870_v43  ;;  %v11076_v9 = vld [vmem:[#allocation8 + $0x3d4] sm:$0xf0] }
 0x266   : > { %4169 = vmatpush.bf16.msrb.mxu2 %v9161_v23  ;;  %4182 = vmatpush.bf16.msrb.mxu3 %v9289_v24  ;;  %v11145_v48 = vld [vmem:[#allocation8 + $0x604] sm:$0xf]  ;;  %v9126_v49 = vld [vmem:[#allocation8 + $0x610] sm:$0xf0]  ;;  %v9001_v55 = vor.u32 %v11113_v44, %v8998_v45  ;;  %v8444_v12 = vld [vmem:[#allocation8 + $0xa8] sm:$0xf]  ;;  %v8845_v14 = vor.u32 %v11076_v9, %v8844_v8 }
 0x267   : > { %v11177_v17 = vld [vmem:[#allocation8 + $0x704] sm:$0xf]  ;;  %v9254_v50 = vld [vmem:[#allocation8 + $0x710] sm:$0xf0]  ;;  %v9129_v59 = vor.u32 %v11145_v48, %v9126_v49  ;;  %v10976_v0 = vld [vmem:[#allocation8 + $0xb4] sm:$0xf0] }
 0x268   : > { %v9257_v60 = vor.u32 %v11177_v17, %v9254_v50  ;;  %v8572_v15 = vld [vmem:[#allocation8 + $0x1a8] sm:$0xf]  ;;  %v11008_v16 = vld [vmem:[#allocation8 + $0x1b4] sm:$0xf0]  ;;  %v8445_v23 = vor.u32 %v10976_v0, %v8444_v12 }
 0x269   : > { %4144 = vmatpush.bf16.msrb.mxu0 %v8889_v41  ;;  %4157 = vmatpush.bf16.msrb.mxu1 %v9017_v42  ;;  %v8700_v19 = vld [vmem:[#allocation8 + $0x2a8] sm:$0xf]  ;;  %v11040_v20 = vld [vmem:[#allocation8 + $0x2b4] sm:$0xf0]  ;;  %v8573_v24 = vor.u32 %v11008_v16, %v8572_v15 }
 0x26a   : > { %4170 = vmatpush.bf16.msrb.mxu2 %v9145_v46  ;;  %4183 = vmatpush.bf16.msrb.mxu3 %v9273_v47  ;;  %v8828_v21 = vld [vmem:[#allocation8 + $0x3a8] sm:$0xf]  ;;  %v11072_v22 = vld [vmem:[#allocation8 + $0x3b4] sm:$0xf0]  ;;  %v8701_v30 = vor.u32 %v11040_v20, %v8700_v19 }
 0x26b   : > { %v8428_v28 = vld [vmem:[#allocation8 + $0x88] sm:$0xf]  ;;  %v10972_v29 = vld [vmem:[#allocation8 + $0x94] sm:$0xf0]  ;;  %v8829_v35 = vor.u32 %v11072_v22, %v8828_v21 }
 0x26c   : > { %v8556_v37 = vld [vmem:[#allocation8 + $0x188] sm:$0xf]  ;;  %v11004_v40 = vld [vmem:[#allocation8 + $0x194] sm:$0xf0]  ;;  %v8429_v44 = vor.u32 %v10972_v29, %v8428_v28 }
 0x26d   : > { %4145 = vmatpush.bf16.msrb.mxu0 %v8873_v54  ;;  %4158 = vmatpush.bf16.msrb.mxu1 %v9001_v55  ;;  %v8684_v36 = vld [vmem:[#allocation8 + $0x288] sm:$0xf]  ;;  %v11036_v41 = vld [vmem:[#allocation8 + $0x294] sm:$0xf0]  ;;  %v8557_v45 = vor.u32 %v11004_v40, %v8556_v37 }
 0x26e   : > { %4171 = vmatpush.bf16.msrb.mxu2 %v9129_v59  ;;  %4184 = vmatpush.bf16.msrb.mxu3 %v9257_v60  ;;  %v8812_v42 = vld [vmem:[#allocation8 + $0x388] sm:$0xf]  ;;  %v11068_v43 = vld [vmem:[#allocation8 + $0x394] sm:$0xf0]  ;;  %v8685_v48 = vor.u32 %v11036_v41, %v8684_v36 }
 0x26f   : > { %v8412_v46 = vld [vmem:[#allocation8 + $0x68] sm:$0xf]  ;;  %v10968_v47 = vld [vmem:[#allocation8 + $0x74] sm:$0xf0]  ;;  %v8813_v49 = vor.u32 %v11068_v43, %v8812_v42 }
 0x270   : > { %4146 = vmatmul.bf16.vlgmr.msrb.gmra.mxu0 %v13108_v27  ;;  %4159 = vmatmul.bf16.vlgmr.msrb.gmra.mxu1 %v13112_v34  ;;  %v8540_v17 = vld [vmem:[#allocation8 + $0x168] sm:$0xf]  ;;  %v11000_v50 = vld [vmem:[#allocation8 + $0x174] sm:$0xf0]  ;;  %v8413_v53 = vor.u32 %v10968_v47, %v8412_v46 }
 0x271   : > { %4190 = vmatpush.bf16.msra.mxu0 %v8477_v62  ;;  %4203 = vmatpush.bf16.msra.mxu1 %v8605_v63  ;;  %v8668_v18 = vld [vmem:[#allocation8 + $0x268] sm:$0xf]  ;;  %v11032_v51 = vld [vmem:[#allocation8 + $0x274] sm:$0xf0]  ;;  %v8541_v54 = vor.u32 %v11000_v50, %v8540_v17 }
 0x272   : > { %4216 = vmatpush.bf16.msra.mxu2 %v8733_v2  ;;  %4229 = vmatpush.bf16.msra.mxu3 %v8861_v3  ;;  %v8796_v25 = vld [vmem:[#allocation8 + $0x368] sm:$0xf]  ;;  %v11064_v52 = vld [vmem:[#allocation8 + $0x374] sm:$0xf0]  ;;  %v8669_v57 = vor.u32 %v11032_v51, %v8668_v18 }
 0x273   : > { %4172 = vmatmul.bf16.vlgmr.msrb.gmra.mxu2 %v13106_v26  ;;  %4185 = vmatmul.bf16.vlgmr.msrb.gmra.mxu3 %v13110_v33  ;;  %v8396_v55 = vld [vmem:[#allocation8 + $0x48] sm:$0xf]  ;;  %v10964_v56 = vld [vmem:[#allocation8 + $0x54] sm:$0xf0]  ;;  %v8797_v58 = vor.u32 %v11064_v52, %v8796_v25 }
 0x274   : > { %v8524_v59 = vld [vmem:[#allocation8 + $0x148] sm:$0xf]  ;;  %v10996_v60 = vld [vmem:[#allocation8 + $0x154] sm:$0xf0]  ;;  %v8397_v2 = vor.u32 %v10964_v56, %v8396_v55 }
 0x275   : > { %4191 = vmatpush.bf16.msra.mxu0 %v8461_v10  ;;  %4204 = vmatpush.bf16.msra.mxu1 %v8589_v11  ;;  %v8652_v62 = vld [vmem:[#allocation8 + $0x248] sm:$0xf]  ;;  %v11028_v63 = vld [vmem:[#allocation8 + $0x254] sm:$0xf0]  ;;  %v8525_v3 = vor.u32 %v10996_v60, %v8524_v59 }
 0x276   : > { %4217 = vmatpush.bf16.msra.mxu2 %v8717_v13  ;;  %4230 = vmatpush.bf16.msra.mxu3 %v8845_v14  ;;  %v8780_v61 = vld [vmem:[#allocation8 + $0x348] sm:$0xf]  ;;  %v11060_v1 = vld [vmem:[#allocation8 + $0x354] sm:$0xf0]  ;;  %v8653_v6 = vor.u32 %v11028_v63, %v8652_v62 }
 0x277   : > { %v8380_v4 = vld [vmem:[#allocation8 + $0x28] sm:$0xf]  ;;  %v10960_v5 = vld [vmem:[#allocation8 + $0x34] sm:$0xf0]  ;;  %v8781_v7 = vor.u32 %v11060_v1, %v8780_v61 }
 0x278   : > { %v8508_v8 = vld [vmem:[#allocation8 + $0x128] sm:$0xf]  ;;  %v10992_v9 = vld [vmem:[#allocation8 + $0x134] sm:$0xf0]  ;;  %v8381_v14 = vor.u32 %v10960_v5, %v8380_v4 }
 0x279   : > { %4192 = vmatpush.bf16.msra.mxu0 %v8445_v23  ;;  %4205 = vmatpush.bf16.msra.mxu1 %v8573_v24  ;;  %v8636_v10 = vld [vmem:[#allocation8 + $0x228] sm:$0xf]  ;;  %v11024_v11 = vld [vmem:[#allocation8 + $0x234] sm:$0xf0]  ;;  %v8509_v15 = vor.u32 %v10992_v9, %v8508_v8 }
 0x27a   : > { %4218 = vmatpush.bf16.msra.mxu2 %v8701_v30  ;;  %4231 = vmatpush.bf16.msra.mxu3 %v8829_v35  ;;  %v8764_v12 = vld [vmem:[#allocation8 + $0x328] sm:$0xf]  ;;  %v11056_v0 = vld [vmem:[#allocation8 + $0x334] sm:$0xf0]  ;;  %v8637_v21 = vor.u32 %v11024_v11, %v8636_v10 }
 0x27b   : > { %v8364_v13 = vld [vmem:[#allocation8 + $0x8] sm:$0xf]  ;;  %v10956_v16 = vld [vmem:[#allocation8 + $0x14] sm:$0xf0]  ;;  %v8765_v22 = vor.u32 %v11056_v0, %v8764_v12 }
 0x27c   : > { %v8492_v19 = vld [vmem:[#allocation8 + $0x108] sm:$0xf]  ;;  %v10988_v20 = vld [vmem:[#allocation8 + $0x114] sm:$0xf0]  ;;  %v8365_v41 = vor.u32 %v10956_v16, %v8364_v13 }
 0x27d   : > { %4193 = vmatpush.bf16.msra.mxu0 %v8429_v44  ;;  %4206 = vmatpush.bf16.msra.mxu1 %v8557_v45  ;;  %v8620_v23 = vld [vmem:[#allocation8 + $0x208] sm:$0xf]  ;;  %v11020_v24 = vld [vmem:[#allocation8 + $0x214] sm:$0xf0]  ;;  %v8493_v42 = vor.u32 %v10988_v20, %v8492_v19 }
 0x27e   : > { %4219 = vmatpush.bf16.msra.mxu2 %v8685_v48  ;;  %4232 = vmatpush.bf16.msra.mxu3 %v8813_v49  ;;  %v8748_v28 = vld [vmem:[#allocation8 + $0x308] sm:$0xf]  ;;  %v11052_v29 = vld [vmem:[#allocation8 + $0x314] sm:$0xf0]  ;;  %v8621_v46 = vor.u32 %v11020_v24, %v8620_v23 }
 0x27f   : > { %v8988_v30 = vld [vmem:[#allocation8 + $0x4e8] sm:$0xf]  ;;  %v11112_v35 = vld [vmem:[#allocation8 + $0x4f4] sm:$0xf0]  ;;  %v8749_v47 = vor.u32 %v11052_v29, %v8748_v28 }
 0x280   : > { %v9116_v37 = vld [vmem:[#allocation8 + $0x5e8] sm:$0xf]  ;;  %v11144_v40 = vld [vmem:[#allocation8 + $0x5f4] sm:$0xf0]  ;;  %v8989_v48 = vor.u32 %v11112_v35, %v8988_v30 }
 0x281   : > { %4194 = vmatpush.bf16.msra.mxu0 %v8413_v53  ;;  %4207 = vmatpush.bf16.msra.mxu1 %v8541_v54  ;;  %v9244_v36 = vld [vmem:[#allocation8 + $0x6e8] sm:$0xf]  ;;  %v11176_v43 = vld [vmem:[#allocation8 + $0x6f4] sm:$0xf0]  ;;  %v9117_v49 = vor.u32 %v11144_v40, %v9116_v37 }
 0x282   : > { %4220 = vmatpush.bf16.msra.mxu2 %v8669_v57  ;;  %4233 = vmatpush.bf16.msra.mxu3 %v8797_v58  ;;  %v9372_v44 = vld [vmem:[#allocation8 + $0x7e8] sm:$0xf]  ;;  %v11208_v45 = vld [vmem:[#allocation8 + $0x7f4] sm:$0xf0]  ;;  %v9245_v18 = vor.u32 %v11176_v43, %v9244_v36 }
 0x283   : > { %v8972_v17 = vld [vmem:[#allocation8 + $0x4c8] sm:$0xf]  ;;  %v11108_v50 = vld [vmem:[#allocation8 + $0x4d4] sm:$0xf0]  ;;  %v9373_v51 = vor.u32 %v11208_v45, %v9372_v44 }
 0x284   : > { %v9100_v25 = vld [vmem:[#allocation8 + $0x5c8] sm:$0xf]  ;;  %v11140_v52 = vld [vmem:[#allocation8 + $0x5d4] sm:$0xf0]  ;;  %v8973_v57 = vor.u32 %v11108_v50, %v8972_v17 }
 0x285   : > { %4195 = vmatpush.bf16.msra.mxu0 %v8397_v2  ;;  %4208 = vmatpush.bf16.msra.mxu1 %v8525_v3  ;;  %v9228_v53 = vld [vmem:[#allocation8 + $0x6c8] sm:$0xf]  ;;  %v11172_v54 = vld [vmem:[#allocation8 + $0x6d4] sm:$0xf0]  ;;  %v9101_v58 = vor.u32 %v11140_v52, %v9100_v25 }
 0x286   : > { %4221 = vmatpush.bf16.msra.mxu2 %v8653_v6  ;;  %4234 = vmatpush.bf16.msra.mxu3 %v8781_v7  ;;  %v9356_v55 = vld [vmem:[#allocation8 + $0x7c8] sm:$0xf]  ;;  %v11204_v56 = vld [vmem:[#allocation8 + $0x7d4] sm:$0xf0]  ;;  %v9229_v62 = vor.u32 %v11172_v54, %v9228_v53 }
 0x287   : > { %v8956_v59 = vld [vmem:[#allocation8 + $0x4a8] sm:$0xf]  ;;  %v11104_v60 = vld [vmem:[#allocation8 + $0x4b4] sm:$0xf0]  ;;  %v9357_v63 = vor.u32 %v11204_v56, %v9356_v55 }
 0x288   : > { %v9084_v61 = vld [vmem:[#allocation8 + $0x5a8] sm:$0xf]  ;;  %v11136_v1 = vld [vmem:[#allocation8 + $0x5b4] sm:$0xf0]  ;;  %v8957_v6 = vor.u32 %v11104_v60, %v8956_v59 }
 0x289   : > { %4196 = vmatpush.bf16.msra.mxu0 %v8381_v14  ;;  %4209 = vmatpush.bf16.msra.mxu1 %v8509_v15  ;;  %v9212_v2 = vld [vmem:[#allocation8 + $0x6a8] sm:$0xf]  ;;  %v11168_v3 = vld [vmem:[#allocation8 + $0x6b4] sm:$0xf0]  ;;  %v9085_v7 = vor.u32 %v11136_v1, %v9084_v61 }
 0x28a   : > { %4222 = vmatpush.bf16.msra.mxu2 %v8637_v21  ;;  %4235 = vmatpush.bf16.msra.mxu3 %v8765_v22  ;;  %v9340_v4 = vld [vmem:[#allocation8 + $0x7a8] sm:$0xf]  ;;  %v11200_v5 = vld [vmem:[#allocation8 + $0x7b4] sm:$0xf0]  ;;  %v9213_v10 = vor.u32 %v11168_v3, %v9212_v2 }
 0x28b   : > { %v8940_v8 = vld [vmem:[#allocation8 + $0x488] sm:$0xf]  ;;  %v11100_v9 = vld [vmem:[#allocation8 + $0x494] sm:$0xf0]  ;;  %v9341_v11 = vor.u32 %v11200_v5, %v9340_v4 }
 0x28c   : > { %v9068_v12 = vld [vmem:[#allocation8 + $0x588] sm:$0xf]  ;;  %v11132_v0 = vld [vmem:[#allocation8 + $0x594] sm:$0xf0]  ;;  %v8941_v19 = vor.u32 %v11100_v9, %v8940_v8 }
 0x28d   : > { %4197 = vmatpush.bf16.msra.mxu0 %v8365_v41  ;;  %4210 = vmatpush.bf16.msra.mxu1 %v8493_v42  ;;  %v9196_v13 = vld [vmem:[#allocation8 + $0x688] sm:$0xf]  ;;  %v11164_v14 = vld [vmem:[#allocation8 + $0x694] sm:$0xf0]  ;;  %v9069_v20 = vor.u32 %v11132_v0, %v9068_v12  ;;  %v11014_v12 = vld [vmem:[#allocation8 + $0x1ec] sm:$0xf] }
 0x28e   : > { %4223 = vmatpush.bf16.msra.mxu2 %v8621_v46  ;;  %4236 = vmatpush.bf16.msra.mxu3 %v8749_v47  ;;  %v9324_v15 = vld [vmem:[#allocation8 + $0x788] sm:$0xf]  ;;  %v11196_v16 = vld [vmem:[#allocation8 + $0x794] sm:$0xf0]  ;;  %v9197_v23 = vor.u32 %v11164_v14, %v9196_v13  ;;  %v8606_v0 = vld [vmem:[#allocation8 + $0x1f8] sm:$0xf0] }
 0x28f   : > { %v8924_v21 = vld [vmem:[#allocation8 + $0x468] sm:$0xf]  ;;  %v11096_v22 = vld [vmem:[#allocation8 + $0x474] sm:$0xf0]  ;;  %v9325_v24 = vor.u32 %v11196_v16, %v9324_v15  ;;  %v11046_v13 = vld [vmem:[#allocation8 + $0x2ec] sm:$0xf] }
 0x290   : > { %4198 = vmatmul.bf16.vlgmr.msra.gmra.mxu0 %v13094_v32  ;;  %4211 = vmatmul.bf16.vlgmr.msra.gmra.mxu1 %v13098_v39  ;;  %v9052_v28 = vld [vmem:[#allocation8 + $0x568] sm:$0xf]  ;;  %v11128_v29 = vld [vmem:[#allocation8 + $0x574] sm:$0xf0]  ;;  %v8925_v36 = vor.u32 %v11096_v22, %v8924_v21  ;;  %v8734_v16 = vld [vmem:[#allocation8 + $0x2f8] sm:$0xf0] }
 0x291   : > { %4242 = vmatpush.bf16.msrb.mxu0 %v8989_v48  ;;  %4255 = vmatpush.bf16.msrb.mxu1 %v9117_v49  ;;  %v9180_v30 = vld [vmem:[#allocation8 + $0x668] sm:$0xf]  ;;  %v11160_v35 = vld [vmem:[#allocation8 + $0x674] sm:$0xf0]  ;;  %v9053_v41 = vor.u32 %v11128_v29, %v9052_v28  ;;  %v10978_v28 = vld [vmem:[#allocation8 + $0xcc] sm:$0xf] }
 0x292   : > { %4268 = vmatpush.bf16.msrb.mxu2 %v9245_v18  ;;  %4281 = vmatpush.bf16.msrb.mxu3 %v9373_v51  ;;  %v9308_v37 = vld [vmem:[#allocation8 + $0x768] sm:$0xf]  ;;  %v11192_v40 = vld [vmem:[#allocation8 + $0x774] sm:$0xf0]  ;;  %v9181_v44 = vor.u32 %v11160_v35, %v9180_v30  ;;  %v8462_v29 = vld [vmem:[#allocation8 + $0xd8] sm:$0xf0]  ;;  %v8737_v30 = vor.u32 %v11046_v13, %v8734_v16 }
 0x293   : > { %4224 = vmatmul.bf16.vlgmr.msra.gmra.mxu2 %v13092_v31  ;;  %4237 = vmatmul.bf16.vlgmr.msra.gmra.mxu3 %v13096_v38  ;;  %v8908_v42 = vld [vmem:[#allocation8 + $0x448] sm:$0xf]  ;;  %v11092_v43 = vld [vmem:[#allocation8 + $0x454] sm:$0xf0]  ;;  %v9309_v45 = vor.u32 %v11192_v40, %v9308_v37  ;;  %v11010_v37 = vld [vmem:[#allocation8 + $0x1cc] sm:$0xf] }
 0x294   : > { %v9036_v46 = vld [vmem:[#allocation8 + $0x548] sm:$0xf]  ;;  %v11124_v47 = vld [vmem:[#allocation8 + $0x554] sm:$0xf0]  ;;  %v8909_v18 = vor.u32 %v11092_v43, %v8908_v42  ;;  %v8590_v40 = vld [vmem:[#allocation8 + $0x1d8] sm:$0xf0] }
 0x295   : > { %4243 = vmatpush.bf16.msrb.mxu0 %v8973_v57  ;;  %4256 = vmatpush.bf16.msrb.mxu1 %v9101_v58  ;;  %v9164_v48 = vld [vmem:[#allocation8 + $0x648] sm:$0xf]  ;;  %v11156_v49 = vld [vmem:[#allocation8 + $0x654] sm:$0xf0]  ;;  %v9037_v51 = vor.u32 %v11124_v47, %v9036_v46  ;;  %v11074_v42 = vld [vmem:[#allocation8 + $0x3cc] sm:$0xf] }
 0x296   : > { %4269 = vmatpush.bf16.msrb.mxu2 %v9229_v62  ;;  %4282 = vmatpush.bf16.msrb.mxu3 %v9357_v63  ;;  %v9292_v17 = vld [vmem:[#allocation8 + $0x748] sm:$0xf]  ;;  %v11188_v50 = vld [vmem:[#allocation8 + $0x754] sm:$0xf0]  ;;  %v9165_v53 = vor.u32 %v11156_v49, %v9164_v48  ;;  %v8846_v43 = vld [vmem:[#allocation8 + $0x3d8] sm:$0xf0] }
 0x297   : > { %v8892_v25 = vld [vmem:[#allocation8 + $0x428] sm:$0xf]  ;;  %v11088_v52 = vld [vmem:[#allocation8 + $0x434] sm:$0xf0]  ;;  %v9293_v54 = vor.u32 %v11188_v50, %v9292_v17  ;;  %v10974_v46 = vld [vmem:[#allocation8 + $0xac] sm:$0xf]  ;;  %v8849_v49 = vor.u32 %v11074_v42, %v8846_v43 }
 0x298   : > { %v9020_v55 = vld [vmem:[#allocation8 + $0x528] sm:$0xf]  ;;  %v11120_v56 = vld [vmem:[#allocation8 + $0x534] sm:$0xf0]  ;;  %v8893_v63 = vor.u32 %v11088_v52, %v8892_v25  ;;  %v8446_v47 = vld [vmem:[#allocation8 + $0xb8] sm:$0xf0] }
 0x299   : > { %4244 = vmatpush.bf16.msrb.mxu0 %v8957_v6  ;;  %4257 = vmatpush.bf16.msrb.mxu1 %v9085_v7  ;;  %v9148_v57 = vld [vmem:[#allocation8 + $0x628] sm:$0xf]  ;;  %v11152_v58 = vld [vmem:[#allocation8 + $0x634] sm:$0xf0]  ;;  %v9021_v61 = vor.u32 %v11120_v56, %v9020_v55  ;;  %v11006_v17 = vld [vmem:[#allocation8 + $0x1ac] sm:$0xf]  ;;  %v8449_v55 = vor.u32 %v10974_v46, %v8446_v47 }
 0x29a   : > { %4270 = vmatpush.bf16.msrb.mxu2 %v9213_v10  ;;  %4283 = vmatpush.bf16.msrb.mxu3 %v9341_v11  ;;  %v9276_v59 = vld [vmem:[#allocation8 + $0x728] sm:$0xf]  ;;  %v11184_v60 = vld [vmem:[#allocation8 + $0x734] sm:$0xf0]  ;;  %v9149_v4 = vor.u32 %v11152_v58, %v9148_v57  ;;  %v10982_v10 = vld [vmem:[#allocation8 + $0xec] sm:$0xf] }
 0x29b   : > { %v8876_v62 = vld [vmem:[#allocation8 + $0x408] sm:$0xf]  ;;  %v11084_v1 = vld [vmem:[#allocation8 + $0x414] sm:$0xf0]  ;;  %v9277_v5 = vor.u32 %v11184_v60, %v9276_v59  ;;  %v8478_v11 = vld [vmem:[#allocation8 + $0xf8] sm:$0xf0] }
 0x29c   : > { %v9004_v2 = vld [vmem:[#allocation8 + $0x508] sm:$0xf]  ;;  %v11116_v3 = vld [vmem:[#allocation8 + $0x514] sm:$0xf0]  ;;  %v8877_v14 = vor.u32 %v11084_v1, %v8876_v62  ;;  %v8574_v50 = vld [vmem:[#allocation8 + $0x1b8] sm:$0xf0] }
 0x29d   : > { %4245 = vmatpush.bf16.msrb.mxu0 %v8941_v19  ;;  %4258 = vmatpush.bf16.msrb.mxu1 %v9069_v20  ;;  %v9132_v6 = vld [vmem:[#allocation8 + $0x608] sm:$0xf]  ;;  %v11148_v7 = vld [vmem:[#allocation8 + $0x614] sm:$0xf0]  ;;  %v9005_v15 = vor.u32 %v11116_v3, %v9004_v2  ;;  %v11078_v19 = vld [vmem:[#allocation8 + $0x3ec] sm:$0xf]  ;;  %v8577_v56 = vor.u32 %v11006_v17, %v8574_v50 }
 0x29e   : > { %4271 = vmatpush.bf16.msrb.mxu2 %v9197_v23  ;;  %4284 = vmatpush.bf16.msrb.mxu3 %v9325_v24  ;;  %v9260_v8 = vld [vmem:[#allocation8 + $0x708] sm:$0xf]  ;;  %v11180_v9 = vld [vmem:[#allocation8 + $0x714] sm:$0xf0]  ;;  %v8862_v20 = vld [vmem:[#allocation8 + $0x3f8] sm:$0xf0]  ;;  %v9133_v21 = vor.u32 %v11148_v7, %v9132_v6  ;;  %v8481_v23 = vor.u32 %v10982_v10, %v8478_v11  ;;  %v8609_v24 = vor.u32 %v11014_v12, %v8606_v0 }
 0x29f   : > { %v9261_v22 = vor.u32 %v11180_v9, %v9260_v8  ;;  %v8865_v35 = vor.u32 %v11078_v19, %v8862_v20  ;;  %v11070_v25 = vld [vmem:[#allocation8 + $0x3ac] sm:$0xf]  ;;  %v8830_v52 = vld [vmem:[#allocation8 + $0x3b8] sm:$0xf0]  ;;  %v13142_v42 = vld [vmem:[#allocation10] sm:$0xf] }
 0x2a0   : > { %v10970_v57 = vld [vmem:[#allocation8 + $0x8c] sm:$0xf]  ;;  %v8430_v58 = vld [vmem:[#allocation8 + $0x98] sm:$0xf0]  ;;  %v8833_v60 = vor.u32 %v11070_v25, %v8830_v52 }
 0x2a1   : > { %4246 = vmatpush.bf16.msrb.mxu0 %v8925_v36  ;;  %4259 = vmatpush.bf16.msrb.mxu1 %v9053_v41  ;;  %v11042_v36 = vld [vmem:[#allocation8 + $0x2cc] sm:$0xf]  ;;  %v8718_v41 = vld [vmem:[#allocation8 + $0x2d8] sm:$0xf0] }
 0x2a2   : > { %4272 = vmatpush.bf16.msrb.mxu2 %v9181_v44  ;;  %4285 = vmatpush.bf16.msrb.mxu3 %v9309_v45  ;;  %v8465_v44 = vor.u32 %v10978_v28, %v8462_v29  ;;  %v8593_v45 = vor.u32 %v11010_v37, %v8590_v40  ;;  %v8721_v48 = vor.u32 %v11042_v36, %v8718_v41  ;;  %v11002_v62 = vld [vmem:[#allocation8 + $0x18c] sm:$0xf]  ;;  %v8686_v1 = vld [vmem:[#allocation8 + $0x298] sm:$0xf0] }
 0x2a3   : > { %v11066_v2 = vld [vmem:[#allocation8 + $0x38c] sm:$0xf]  ;;  %v8814_v3 = vld [vmem:[#allocation8 + $0x398] sm:$0xf0] }
 0x2a4   : > { %v10966_v6 = vld [vmem:[#allocation8 + $0x6c] sm:$0xf]  ;;  %v8414_v7 = vld [vmem:[#allocation8 + $0x78] sm:$0xf0]  ;;  %v8817_v10 = vor.u32 %v11066_v2, %v8814_v3 }
 0x2a5   : > { %4247 = vmatpush.bf16.msrb.mxu0 %v8909_v18  ;;  %4260 = vmatpush.bf16.msrb.mxu1 %v9037_v51  ;;  %v11038_v18 = vld [vmem:[#allocation8 + $0x2ac] sm:$0xf]  ;;  %v8702_v51 = vld [vmem:[#allocation8 + $0x2b8] sm:$0xf0] }
 0x2a6   : > { %4273 = vmatpush.bf16.msrb.mxu2 %v9165_v53  ;;  %4286 = vmatpush.bf16.msrb.mxu3 %v9293_v54  ;;  %v8705_v59 = vor.u32 %v11038_v18, %v8702_v51  ;;  %v10998_v11 = vld [vmem:[#allocation8 + $0x16c] sm:$0xf]  ;;  %v8542_v12 = vld [vmem:[#allocation8 + $0x178] sm:$0xf0] }
 0x2a7   : > { %v11030_v0 = vld [vmem:[#allocation8 + $0x26c] sm:$0xf]  ;;  %v8798_v16 = vld [vmem:[#allocation8 + $0x378] sm:$0xf0] }
 0x2a8   : > { %v11026_v37 = vld [vmem:[#allocation8 + $0x24c] sm:$0xf]  ;;  %v8654_v40 = vld [vmem:[#allocation8 + $0x258] sm:$0xf0] }
 0x2a9   : > { %4248 = vmatpush.bf16.msrb.mxu0 %v8893_v63  ;;  %4261 = vmatpush.bf16.msrb.mxu1 %v9021_v61  ;;  %v8558_v63 = vld [vmem:[#allocation8 + $0x198] sm:$0xf0]  ;;  %v11034_v61 = vld [vmem:[#allocation8 + $0x28c] sm:$0xf] }
 0x2aa   : > { %4274 = vmatpush.bf16.msrb.mxu2 %v9149_v4  ;;  %4287 = vmatpush.bf16.msrb.mxu3 %v9277_v5  ;;  %v8433_v4 = vor.u32 %v10970_v57, %v8430_v58  ;;  %v8561_v5 = vor.u32 %v11002_v62, %v8558_v63  ;;  %v8689_v9 = vor.u32 %v11034_v61, %v8686_v1  ;;  %v11058_v36 = vld [vmem:[#allocation8 + $0x34c] sm:$0xf]  ;;  %v8782_v41 = vld [vmem:[#allocation8 + $0x358] sm:$0xf0] }
 0x2ab   : > { %v13132_v53 = vpop.f32.mrf.mxu0  ;;  %v8382_v46 = vld [vmem:[#allocation8 + $0x38] sm:$0xf0]  ;;  %v10990_v17 = vld [vmem:[#allocation8 + $0x12c] sm:$0xf] }
 0x2ac   : > { %v8510_v50 = vld [vmem:[#allocation8 + $0x138] sm:$0xf0]  ;;  %v11022_v18 = vld [vmem:[#allocation8 + $0x22c] sm:$0xf] }
 0x2ad   : > { %4249 = vmatpush.bf16.msrb.mxu0 %v8877_v14  ;;  %4262 = vmatpush.bf16.msrb.mxu1 %v9005_v15  ;;  %v13136_v54 = vpop.f32.mrf.mxu1  ;;  %v8670_v14 = vld [vmem:[#allocation8 + $0x278] sm:$0xf0]  ;;  %v11062_v15 = vld [vmem:[#allocation8 + $0x36c] sm:$0xf]  ;;  %v8513_v62 = vor.u32 %v10990_v17, %v8510_v50 }
 0x2ae   : > { %4275 = vmatpush.bf16.msrb.mxu2 %v9133_v21  ;;  %4288 = vmatpush.bf16.msrb.mxu3 %v9261_v22  ;;  %v8417_v21 = vor.u32 %v10966_v6, %v8414_v7  ;;  %v8545_v22 = vor.u32 %v10998_v11, %v8542_v12  ;;  %v8673_v28 = vor.u32 %v11030_v0, %v8670_v14  ;;  %v8638_v25 = vld [vmem:[#allocation8 + $0x238] sm:$0xf0]  ;;  %v11054_v52 = vld [vmem:[#allocation8 + $0x32c] sm:$0xf] }
 0x2af   : > { %v8801_v29 = vor.u32 %v11062_v15, %v8798_v16  ;;  %v10954_v58 = vld [vmem:[#allocation8 + $0xc] sm:$0xf]  ;;  %v8366_v63 = vld [vmem:[#allocation8 + $0x18] sm:$0xf0]  ;;  %v8641_v2 = vor.u32 %v11022_v18, %v8638_v25 }
 0x2b0   : > { %4250 = vmatmul.bf16.vlgmr.msrb.gmra.mxu0 %v13108_v27  ;;  %4263 = vmatmul.bf16.vlgmr.msrb.gmra.mxu1 %v13112_v34  ;;  %v10986_v61 = vld [vmem:[#allocation8 + $0x10c] sm:$0xf]  ;;  %v8494_v1 = vld [vmem:[#allocation8 + $0x118] sm:$0xf0]  ;;  %v8369_v14 = vor.u32 %v10954_v58, %v8366_v63 }
 0x2b1   : > { %4294 = vmatpush.bf16.msra.mxu0 %v8481_v23  ;;  %4307 = vmatpush.bf16.msra.mxu1 %v8609_v24  ;;  %v10962_v23 = vld [vmem:[#allocation8 + $0x4c] sm:$0xf]  ;;  %v8398_v24 = vld [vmem:[#allocation8 + $0x58] sm:$0xf0]  ;;  %v8497_v15 = vor.u32 %v10986_v61, %v8494_v1 }
 0x2b2   : > { %4320 = vmatpush.bf16.msra.mxu2 %v8737_v30  ;;  %4333 = vmatpush.bf16.msra.mxu3 %v8865_v35  ;;  %v13138_v8 = vpop.f32.mrf.mxu2  ;;  %v13140_v13 = vpop.f32.mrf.mxu3  ;;  %v10994_v30 = vld [vmem:[#allocation8 + $0x14c] sm:$0xf]  ;;  %v8526_v35 = vld [vmem:[#allocation8 + $0x158] sm:$0xf0]  ;;  %v8401_v43 = vor.u32 %v10962_v23, %v8398_v24 }
 0x2b3   : > { %4276 = vmatmul.bf16.vlgmr.msrb.gmra.mxu2 %v13106_v26  ;;  %4289 = vmatmul.bf16.vlgmr.msrb.gmra.mxu3 %v13110_v33  ;;  %v3993_v19 = vpop.f32.mrf.mxu0  ;;  %v11050_v6 = vld [vmem:[#allocation8 + $0x30c] sm:$0xf]  ;;  %v8750_v7 = vld [vmem:[#allocation8 + $0x318] sm:$0xf0] }
 0x2b4   : > { %v11142_v11 = vld [vmem:[#allocation8 + $0x5ec] sm:$0xf]  ;;  %v9118_v12 = vld [vmem:[#allocation8 + $0x5f8] sm:$0xf0]  ;;  %v8753_v24 = vor.u32 %v11050_v6, %v8750_v7 }
 0x2b5   : > { %4295 = vmatpush.bf16.msra.mxu0 %v8465_v44  ;;  %4308 = vmatpush.bf16.msra.mxu1 %v8593_v45  ;;  %v4006_v20 = vpop.f32.mrf.mxu1  ;;  %v8529_v44 = vor.u32 %v10994_v30, %v8526_v35  ;;  %v10958_v45 = vld [vmem:[#allocation8 + $0x2c] sm:$0xf]  ;;  %v9246_v16 = vld [vmem:[#allocation8 + $0x6f8] sm:$0xf0]  ;;  %v9121_v30 = vor.u32 %v11142_v11, %v9118_v12 }
 0x2b6   : > { %4321 = vmatpush.bf16.msra.mxu2 %v8721_v48  ;;  %4334 = vmatpush.bf16.msra.mxu3 %v8849_v49  ;;  %v8657_v48 = vor.u32 %v11026_v37, %v8654_v40  ;;  %v8785_v49 = vor.u32 %v11058_v36, %v8782_v41  ;;  %v11174_v0 = vld [vmem:[#allocation8 + $0x6ec] sm:$0xf]  ;;  %v9374_v20 = vld [vmem:[#allocation8 + $0x7f8] sm:$0xf0] }
 0x2b7   : > { %v11206_v19 = vld [vmem:[#allocation8 + $0x7ec] sm:$0xf]  ;;  %v8974_v37 = vld [vmem:[#allocation8 + $0x4d8] sm:$0xf0]  ;;  %v9249_v40 = vor.u32 %v11174_v0, %v9246_v16 }
 0x2b8   : > { %v11106_v35 = vld [vmem:[#allocation8 + $0x4cc] sm:$0xf]  ;;  %v9377_v36 = vor.u32 %v11206_v19, %v9374_v20 }
 0x2b9   : > { %4296 = vmatpush.bf16.msra.mxu0 %v8449_v55  ;;  %4309 = vmatpush.bf16.msra.mxu1 %v8577_v56  ;;  %v8766_v55 = vld [vmem:[#allocation8 + $0x338] sm:$0xf0]  ;;  %v2694_v56 = vperm.slane %v13142_v42, 0  ;;  %v11138_v41 = vld [vmem:[#allocation8 + $0x5cc] sm:$0xf]  ;;  %v8977_v17 = vor.u32 %v11106_v35, %v8974_v37 }
 0x2ba   : > { %4322 = vmatpush.bf16.msra.mxu2 %v8705_v59  ;;  %4335 = vmatpush.bf16.msra.mxu3 %v8833_v60  ;;  %v4019_v47 = vpop.f32.mrf.mxu2  ;;  %v4032_v51 = vpop.f32.mrf.mxu3  ;;  %v8385_v60 = vor.u32 %v10958_v45, %v8382_v46  ;;  %v8769_v3 = vor.u32 %v11054_v52, %v8766_v55  ;;  %v11202_v46 = vld [vmem:[#allocation8 + $0x7cc] sm:$0xf] }
 0x2bb   : > { %v9358_v47 = vld [vmem:[#allocation8 + $0x7d8] sm:$0xf0]  ;;  %v11102_v18 = vld [vmem:[#allocation8 + $0x4ac] sm:$0xf] }
 0x2bc   : > { %v8958_v51 = vld [vmem:[#allocation8 + $0x4b8] sm:$0xf0]  ;;  %v9361_v52 = vor.u32 %v11202_v46, %v9358_v47  ;;  %v11134_v55 = vld [vmem:[#allocation8 + $0x5ac] sm:$0xf] }
 0x2bd   : > { %4297 = vmatpush.bf16.msra.mxu0 %v8433_v4  ;;  %4310 = vmatpush.bf16.msra.mxu1 %v8561_v5  ;;  %v11018_v4 = vld [vmem:[#allocation8 + $0x20c] sm:$0xf]  ;;  %v8622_v5 = vld [vmem:[#allocation8 + $0x218] sm:$0xf0]  ;;  %v8961_v1 = vor.u32 %v11102_v18, %v8958_v51 }
 0x2be   : > { %4323 = vmatpush.bf16.msra.mxu2 %v8689_v9  ;;  %4336 = vmatpush.bf16.msra.mxu3 %v8817_v10  ;;  %v11110_v9 = vld [vmem:[#allocation8 + $0x4ec] sm:$0xf]  ;;  %v8990_v10 = vld [vmem:[#allocation8 + $0x4f8] sm:$0xf0]  ;;  %v8625_v23 = vor.u32 %v11018_v4, %v8622_v5 }
 0x2bf   : > { %v11166_v58 = vld [vmem:[#allocation8 + $0x6ac] sm:$0xf]  ;;  %v8942_v4 = vld [vmem:[#allocation8 + $0x498] sm:$0xf0] }
 0x2c0   : > { %v13145_v57 = vpop.f32.mrf.mxu0  ;;  %v11130_v7 = vld [vmem:[#allocation8 + $0x58c] sm:$0xf] }
 0x2c1   : > { %4298 = vmatpush.bf16.msra.mxu0 %v8417_v21  ;;  %4311 = vmatpush.bf16.msra.mxu1 %v8545_v22  ;;  %v13147_v59 = vpop.f32.mrf.mxu1  ;;  %v3992_v21 = vadd.f32 %v13132_v53, %v2694_v56  ;;  %v9230_v53 = vld [vmem:[#allocation8 + $0x6d8] sm:$0xf0]  ;;  %v11154_v46 = vld [vmem:[#allocation8 + $0x64c] sm:$0xf] }
 0x2c2   : > { %4324 = vmatpush.bf16.msra.mxu2 %v8673_v28  ;;  %4337 = vmatpush.bf16.msra.mxu3 %v8801_v29  ;;  %v8993_v29 = vor.u32 %v11110_v9, %v8990_v10  ;;  %v9086_v56 = vld [vmem:[#allocation8 + $0x5b8] sm:$0xf0]  ;;  %v11162_v9 = vld [vmem:[#allocation8 + $0x68c] sm:$0xf] }
 0x2c3   : > { %v11194_v10 = vld [vmem:[#allocation8 + $0x78c] sm:$0xf] }
 0x2c5   : > { %4299 = vmatpush.bf16.msra.mxu0 %v8401_v43  ;;  %4312 = vmatpush.bf16.msra.mxu1 %v8529_v44  ;;  %v9102_v43 = vld [vmem:[#allocation8 + $0x5d8] sm:$0xf0]  ;;  %v11170_v44 = vld [vmem:[#allocation8 + $0x6cc] sm:$0xf] }
 0x2c6   : > { %4325 = vmatpush.bf16.msra.mxu2 %v8657_v48  ;;  %4338 = vmatpush.bf16.msra.mxu3 %v8785_v49  ;;  %v13150_v22 = vpop.f32.mrf.mxu2  ;;  %v4005_v49 = vadd.f32 %v13136_v54, %v3992_v21  ;;  %v9105_v50 = vor.u32 %v11138_v41, %v9102_v43  ;;  %v9233_v25 = vor.u32 %v11170_v44, %v9230_v53  ;;  %v9342_v54 = vld [vmem:[#allocation8 + $0x7b8] sm:$0xf0]  ;;  %v11126_v21 = vld [vmem:[#allocation8 + $0x56c] sm:$0xf] }
 0x2c7   : > { %v13152_v28 = vpop.f32.mrf.mxu3  ;;  %v8910_v41 = vld [vmem:[#allocation8 + $0x458] sm:$0xf0] }
 0x2c8   : > { %v4045_v45 = vpop.f32.mrf.mxu0  ;;  %v4018_v63 = vadd.f32 %v13138_v8, %v4005_v49  ;;  %v9198_v8 = vld [vmem:[#allocation8 + $0x698] sm:$0xf0]  ;;  %v11186_v49 = vld [vmem:[#allocation8 + $0x74c] sm:$0xf] }
 0x2c9   : > { %4300 = vmatpush.bf16.msra.mxu0 %v8385_v60  ;;  %4313 = vmatpush.bf16.msra.mxu1 %v8513_v62  ;;  %v4058_v48 = vpop.f32.mrf.mxu1  ;;  %v9214_v60 = vld [vmem:[#allocation8 + $0x6b8] sm:$0xf0]  ;;  %v11198_v62 = vld [vmem:[#allocation8 + $0x7ac] sm:$0xf]  ;;  %v9201_v19 = vor.u32 %v11162_v9, %v9198_v8 }
 0x2ca   : > { %4326 = vmatpush.bf16.msra.mxu2 %v8641_v2  ;;  %4339 = vmatpush.bf16.msra.mxu3 %v8769_v3  ;;  %v9089_v2 = vor.u32 %v11134_v55, %v9086_v56  ;;  %v11098_v3 = vld [vmem:[#allocation8 + $0x48c] sm:$0xf]  ;;  %v9345_v6 = vor.u32 %v11198_v62, %v9342_v54  ;;  %v9038_v53 = vld [vmem:[#allocation8 + $0x558] sm:$0xf0] }
 0x2cb   : > { %v8945_v12 = vor.u32 %v11098_v3, %v8942_v4  ;;  %v11122_v45 = vld [vmem:[#allocation8 + $0x54c] sm:$0xf]  ;;  %v9166_v48 = vld [vmem:[#allocation8 + $0x658] sm:$0xf0] }
 0x2cc   : > { %v8894_v55 = vld [vmem:[#allocation8 + $0x438] sm:$0xf0]  ;;  %v11118_v56 = vld [vmem:[#allocation8 + $0x52c] sm:$0xf] }
 0x2cd   : > { %4301 = vmatpush.bf16.msra.mxu0 %v8369_v14  ;;  %4314 = vmatpush.bf16.msra.mxu1 %v8497_v15  ;;  %v11094_v14 = vld [vmem:[#allocation8 + $0x46c] sm:$0xf]  ;;  %v8926_v15 = vld [vmem:[#allocation8 + $0x478] sm:$0xf0] }
 0x2ce   : > { %4327 = vmatpush.bf16.msra.mxu2 %v8625_v23  ;;  %4340 = vmatpush.bf16.msra.mxu3 %v8753_v24  ;;  %v4071_v61 = vpop.f32.mrf.mxu2  ;;  %v9054_v23 = vld [vmem:[#allocation8 + $0x578] sm:$0xf0]  ;;  %v11158_v24 = vld [vmem:[#allocation8 + $0x66c] sm:$0xf]  ;;  %v8929_v37 = vor.u32 %v11094_v14, %v8926_v15 }
 0x2cf   : > { %v4084_v5 = vpop.f32.mrf.mxu3  ;;  %v9022_v54 = vld [vmem:[#allocation8 + $0x538] sm:$0xf0]  ;;  %v11114_v9 = vld [vmem:[#allocation8 + $0x50c] sm:$0xf] }
 0x2d0   : > { %4302 = vmatmul.bf16.vlgmr.msra.gmra.mxu0 %v13094_v32  ;;  %4315 = vmatmul.bf16.vlgmr.msra.gmra.mxu1 %v13098_v39  ;;  %v9070_v32 = vld [vmem:[#allocation8 + $0x598] sm:$0xf0]  ;;  %v4031_v39 = vadd.f32 %v13140_v13, %v4018_v63  ;;  %v13161_v11 = vpop.f32.mrf.mxu0  ;;  %v11150_v63 = vld [vmem:[#allocation8 + $0x62c] sm:$0xf]  ;;  %v9025_v5 = vor.u32 %v11118_v56, %v9022_v54 }
 0x2d1   : > { %4346 = vmatpush.bf16.msrb.mxu0 %v8993_v29  ;;  %4359 = vmatpush.bf16.msrb.mxu1 %v9121_v30  ;;  %v9073_v0 = vor.u32 %v11130_v7, %v9070_v32  ;;  %v13163_v16 = vpop.f32.mrf.mxu1  ;;  %v9182_v29 = vld [vmem:[#allocation8 + $0x678] sm:$0xf0]  ;;  %v11190_v30 = vld [vmem:[#allocation8 + $0x76c] sm:$0xf] }
 0x2d2   : > { %4372 = vmatpush.bf16.msrb.mxu2 %v9249_v40  ;;  %4385 = vmatpush.bf16.msrb.mxu3 %v9377_v36  ;;  %v9310_v13 = vld [vmem:[#allocation8 + $0x778] sm:$0xf0]  ;;  %v4044_v35 = vadd.f32 %v13145_v57, %v4031_v39  ;;  %v9057_v40 = vor.u32 %v11126_v21, %v9054_v23  ;;  %v11090_v36 = vld [vmem:[#allocation8 + $0x44c] sm:$0xf]  ;;  %v9185_v43 = vor.u32 %v11158_v24, %v9182_v29 }
 0x2d3   : > { %4328 = vmatmul.bf16.vlgmr.msra.gmra.mxu2 %v13092_v31  ;;  %4341 = vmatmul.bf16.vlgmr.msra.gmra.mxu3 %v13096_v38  ;;  %v9217_v31 = vor.u32 %v11166_v58, %v9214_v60  ;;  %v9326_v38 = vld [vmem:[#allocation8 + $0x798] sm:$0xf0]  ;;  %v9313_v44 = vor.u32 %v11190_v30, %v9310_v13  ;;  %v8913_v51 = vor.u32 %v11090_v36, %v8910_v41  ;;  %v11215_v13 = vld [vmem:[#allocation11 + $0x30] sm:$0xff]  ;;  %v11222_v36 = vld [vmem:[#allocation11 + $0x68] sm:$0xff] }
 0x2d4   : > { %v9329_v20 = vor.u32 %v11194_v10, %v9326_v38  ;;  %v4057_v57 = vadd.f32 %v13147_v59, %v4044_v35  ;;  %v9169_v60 = vor.u32 %v11154_v46, %v9166_v48  ;;  %v9150_v61 = vld [vmem:[#allocation8 + $0x638] sm:$0xf0]  ;;  %v2695_v59 = vperm.slane %v13142_v42, 1  ;;  %v11146_v10 = vld [vmem:[#allocation8 + $0x60c] sm:$0xf]  ;;  %v11223_v35 = vld [vmem:[#allocation11 + $0x70] sm:$0xff] }
 0x2d5   : > { %4347 = vmatpush.bf16.msrb.mxu0 %v8977_v17  ;;  %4360 = vmatpush.bf16.msrb.mxu1 %v9105_v50  ;;  %v9294_v17 = vld [vmem:[#allocation8 + $0x758] sm:$0xf0]  ;;  %v9153_v7 = vor.u32 %v11150_v63, %v9150_v61  ;;  %v11210_v56 = vld [vmem:[#allocation11 + $0x8] sm:$0xff]  ;;  %v11209_v61 = vld [vmem:[#allocation11] sm:$0xff] }
 0x2d6   : > { %4373 = vmatpush.bf16.msrb.mxu2 %v9233_v25  ;;  %4386 = vmatpush.bf16.msrb.mxu3 %v9361_v52  ;;  %v13166_v47 = vpop.f32.mrf.mxu2  ;;  %v9041_v25 = vor.u32 %v11122_v45, %v9038_v53  ;;  %v11086_v52 = vld [vmem:[#allocation8 + $0x42c] sm:$0xf]  ;;  %v9297_v62 = vor.u32 %v11186_v49, %v9294_v17  ;;  %v4070_v3 = vadd.f32 %v13150_v22, %v4057_v57  ;;  %v9006_v8 = vld [vmem:[#allocation8 + $0x518] sm:$0xf0]  ;;  %v11211_v57 = vld [vmem:[#allocation11 + $0x10] sm:$0xff] }
 0x2d7   : > { %v13168_v50 = vpop.f32.mrf.mxu3  ;;  %v8897_v4 = vor.u32 %v11086_v52, %v8894_v55  ;;  %v4096_v39 = vadd.f32 %v13161_v11, %v2695_v59  ;;  %v9262_v14 = vld [vmem:[#allocation8 + $0x718] sm:$0xf0] }
 0x2d8   : > { %v4097_v18 = vpop.f32.mrf.mxu0  ;;  %v13175_v15 = vadd.f32 %v13152_v28, %v4070_v3  ;;  %v11216_v29 = vld [vmem:[#allocation11 + $0x38] sm:$0xff] }
 0x2d9   : > { %4348 = vmatpush.bf16.msrb.mxu0 %v8961_v1  ;;  %4361 = vmatpush.bf16.msrb.mxu1 %v9089_v2  ;;  %v4110_v58 = vpop.f32.mrf.mxu1  ;;  %v11182_v1 = vld [vmem:[#allocation8 + $0x72c] sm:$0xf]  ;;  %v9278_v2 = vld [vmem:[#allocation8 + $0x738] sm:$0xf0]  ;;  %v4109_v24 = vadd.f32 %v13163_v16, %v4096_v39  ;;  %v11219_v18 = vld [vmem:[#allocation11 + $0x50] sm:$0xff] }
 0x2da   : > { %4374 = vmatpush.bf16.msrb.mxu2 %v9217_v31  ;;  %4387 = vmatpush.bf16.msrb.mxu3 %v9345_v6  ;;  %v11082_v31 = vld [vmem:[#allocation8 + $0x40c] sm:$0xf]  ;;  %v8878_v6 = vld [vmem:[#allocation8 + $0x418] sm:$0xf0]  ;;  %v9281_v32 = vor.u32 %v11182_v1, %v9278_v2  ;;  %v4398_v11 = vmin.f32 %v13175_v15, 0.0  ;;  %vm4418_vm5 = vcmp.gt.f32.partialorder %v13175_v15, 0.0 }
 0x2db   : > { %v11224_v30 = vld [vmem:[#allocation11 + $0x78] sm:$0xff]  ;;  %v4122_v28 = vadd.f32 %v13166_v47, %v4109_v24  ;;  %v11218_v58 = vld [vmem:[#allocation11 + $0x48] sm:$0xff]  ;;  %v11217_v1 = vld [vmem:[#allocation11 + $0x40] sm:$0xff] }
 0x2dd   : > { %4349 = vmatpush.bf16.msrb.mxu0 %v8945_v12  ;;  %4362 = vmatpush.bf16.msrb.mxu1 %v9073_v0  ;;  %v9134_v12 = vld [vmem:[#allocation8 + $0x618] sm:$0xf0]  ;;  %v11178_v0 = vld [vmem:[#allocation8 + $0x70c] sm:$0xf]  ;;  %v4135_v16 = vadd.f32 %v13168_v50, %v4122_v28 }
 0x2de   : > { %4375 = vmatpush.bf16.msrb.mxu2 %v9201_v19  ;;  %4388 = vmatpush.bf16.msrb.mxu3 %v9329_v20  ;;  %v4123_v38 = vpop.f32.mrf.mxu2  ;;  %v8881_v19 = vor.u32 %v11082_v31, %v8878_v6  ;;  %v9009_v20 = vor.u32 %v11114_v9, %v9006_v8  ;;  %v9137_v21 = vor.u32 %v11146_v10, %v9134_v12  ;;  %v11231_v8 = vld [vmem:[#allocation11 + $0xb0] sm:$0xff] }
 0x2df   : > { %v4136_v22 = vpop.f32.mrf.mxu3  ;;  %v9265_v23 = vor.u32 %v11178_v0, %v9262_v14  ;;  %v2696_v0 = vperm.slane %v13142_v42, 2  ;;  %v11230_v14 = vld [vmem:[#allocation11 + $0xa8] sm:$0xff] }
 0x2e1   : > { %4350 = vmatpush.bf16.msrb.mxu0 %v8929_v37  ;;  %4363 = vmatpush.bf16.msrb.mxu1 %v9057_v40  ;;  %v4402_v37 = vmul.f32 1.442695, %v4398_v11  ;;  %v11214_v40 = vld [vmem:[#allocation11 + $0x28] sm:$0xff] }
 0x2e2   : > { %4376 = vmatpush.bf16.msrb.mxu2 %v9185_v43  ;;  %4389 = vmatpush.bf16.msrb.mxu3 %v9313_v44  ;;  %v11213_v43 = vld [vmem:[#allocation11 + $0x20] sm:$0xff]  ;;  %v11226_v11 = vld [vmem:[#allocation11 + $0x88] sm:$0xff] }
 0x2e3   : > { %11748 = vpow2.f32 %v4402_v37 }
 0x2e5   : > { %4351 = vmatpush.bf16.msrb.mxu0 %v8913_v51  ;;  %4364 = vmatpush.bf16.msrb.mxu1 %v9041_v25 }
 0x2e6   : > { %4377 = vmatpush.bf16.msrb.mxu2 %v9169_v60  ;;  %4390 = vmatpush.bf16.msrb.mxu3 %v9297_v62  ;;  %v11232_v60 = vld [vmem:[#allocation11 + $0xb8] sm:$0xff] }
 0x2e9   : > { %4352 = vmatpush.bf16.msrb.mxu0 %v8897_v4  ;;  %4365 = vmatpush.bf16.msrb.mxu1 %v9025_v5 }
 0x2ea   : > { %4378 = vmatpush.bf16.msrb.mxu2 %v9153_v7  ;;  %4391 = vmatpush.bf16.msrb.mxu3 %v9281_v32 }
 0x2ed   : > { %4353 = vmatpush.bf16.msrb.mxu0 %v8881_v19  ;;  %4366 = vmatpush.bf16.msrb.mxu1 %v9009_v20  ;;  %v4147_v41 = vpop.f32.mrf.mxu0  ;;  %v4160_v45 = vpop.f32.mrf.mxu1  ;;  %v11229_v20 = vld [vmem:[#allocation11 + $0xa0] sm:$0xff] }
 0x2ee   : > { %4379 = vmatpush.bf16.msrb.mxu2 %v9137_v21  ;;  %4392 = vmatpush.bf16.msrb.mxu3 %v9265_v23  ;;  %v4148_v44 = vadd.f32 %v4147_v41, %v4135_v16  ;;  %v11228_v23 = vld [vmem:[#allocation11 + $0x98] sm:$0xff] }
 0x2f0   : > { %4354 = vmatmul.bf16.vlgmr.msrb.gmra.mxu0 %v13108_v27  ;;  %4367 = vmatmul.bf16.vlgmr.msrb.gmra.mxu1 %v13112_v34  ;;  %v11221_v27 = vld [vmem:[#allocation11 + $0x60] sm:$0xff]  ;;  %v4161_v53 = vadd.f32 %v4160_v45, %v4148_v44  ;;  %v11749_v34 = vpop.eup %11748 }
 0x2f1   : > { %4694 = vmatpush.bf16.msra.mxu0 %v11216_v29  ;;  %4707 = vmatpush.bf16.msra.mxu1 %v11224_v30  ;;  %v9378_v47 = vadd.f32 -1.0, %v11749_v34  ;;  %v11227_v29 = vld [vmem:[#allocation11 + $0x90] sm:$0xff] }
 0x2f2   : > { %4380 = vmatmul.bf16.vlgmr.msrb.gmra.mxu2 %v13106_v26  ;;  %4393 = vmatmul.bf16.vlgmr.msrb.gmra.mxu3 %v13110_v33  ;;  %v11212_v26 = vld [vmem:[#allocation11 + $0x18] sm:$0xff] }
 0x2f3   : > { %v11220_v33 = vld [vmem:[#allocation11 + $0x58] sm:$0xff]  ;;  %v4414_v25 = vmul.f32 1.6732632, %v9378_v47  ;;  %4720 = vmatpush.bf16.msra.mxu2 %v11232_v60  ;;  %v2697_v60 = vperm.slane %v13142_v42, 3 }
 0x2f5   : > { %4695 = vmatpush.bf16.msra.mxu0 %v11215_v13  ;;  %4708 = vmatpush.bf16.msra.mxu1 %v11223_v35  ;;  %v4149_v17 = vpop.f32.mrf.mxu0  ;;  %v4162_v51 = vpop.f32.mrf.mxu1  ;;  %v4422_v54 = vsel %vm4418_vm5, %v13175_v15, %v4414_v25  ;;  %v11225_v13 = vld [vmem:[#allocation11 + $0x80] sm:$0xff] }
 0x2f6   : > { %v4173_v46 = vpop.f32.mrf.mxu2  ;;  %v4186_v49 = vpop.f32.mrf.mxu3  ;;  %v4426_v2 = vmul.f32 1.050701, %v4422_v54  ;;  %v11239_v51 = vld [vmem:[#allocation11 + $0xf0] sm:$0xff]  ;;  %v11237_v54 = vld [vmem:[#allocation11 + $0xe0] sm:$0xff] }
 0x2f7   : > { %v4174_v48 = vadd.f32 %v4173_v46, %v4161_v53  ;;  %4721 = vmatpush.bf16.msra.mxu2 %v11231_v8 }
 0x2f8   : > { %v4430_v3 = vpack.c.bf16 %v4426_v2, %v4426_v2 }
 0x2f9   : > { %4696 = vmatpush.bf16.msra.mxu0 %v11214_v40  ;;  %4709 = vmatpush.bf16.msra.mxu1 %v11222_v36  ;;  %v4187_v50 = vadd.f32 %v4186_v49, %v4174_v48 }
 0x2fb   : > { %v4399_v52 = vmin.f32 %v4187_v50, 0.0  ;;  %vm4419_vm6 = vcmp.gt.f32.partialorder %v4187_v50, 0.0  ;;  %4722 = vmatpush.bf16.msra.mxu2 %v11230_v14 }
 0x2fd   : > { %4697 = vmatpush.bf16.msra.mxu0 %v11213_v43  ;;  %4710 = vmatpush.bf16.msra.mxu1 %v11221_v27  ;;  %v4404_v55 = vmul.f32 1.442695, %v4399_v52 }
 0x2fe   : > { %v4175_v62 = vpop.f32.mrf.mxu2  ;;  %v4188_v63 = vpop.f32.mrf.mxu3 }
 0x2ff   : > { %11750 = vpow2.f32 %v4404_v55  ;;  %4723 = vmatpush.bf16.msra.mxu2 %v11229_v20 }
 0x301   : > { %4698 = vmatpush.bf16.msra.mxu0 %v11212_v26  ;;  %4711 = vmatpush.bf16.msra.mxu1 %v11220_v33 }
 0x303   : > { %4724 = vmatpush.bf16.msra.mxu2 %v11228_v23 }
 0x305   : > { %4699 = vmatpush.bf16.msra.mxu0 %v11211_v57  ;;  %4712 = vmatpush.bf16.msra.mxu1 %v11219_v18  ;;  %v11751_v59 = vpop.eup %11750  ;;  %v11240_v57 = vld [vmem:[#allocation11 + $0xf8] sm:$0xff] }
 0x306   : > { %v9379_v4 = vadd.f32 -1.0, %v11751_v59  ;;  %4733 = vmatpush.bf16.msra.mxu3 %v11240_v57  ;;  %v11235_v59 = vld [vmem:[#allocation11 + $0xd0] sm:$0xff]  ;;  %v11249_v57 = vld [vmem:[%s13414_s2] sm:$0xff] }
 0x307   : > { %4725 = vmatpush.bf16.msra.mxu2 %v11227_v29 }
 0x308   : > { %v4415_v5 = vmul.f32 1.6732632, %v9379_v4  ;;  %v11234_v4 = vld [vmem:[#allocation11 + $0xc8] sm:$0xff] }
 0x309   : > { %4700 = vmatpush.bf16.msra.mxu0 %v11210_v56  ;;  %4713 = vmatpush.bf16.msra.mxu1 %v11218_v58  ;;  %v11238_v58 = vld [vmem:[#allocation11 + $0xe8] sm:$0xff] }
 0x30a   : > { %v4423_v31 = vsel %vm4419_vm6, %v4187_v50, %v4415_v5  ;;  %4734 = vmatpush.bf16.msra.mxu3 %v11239_v51  ;;  %v11233_v5 = vld [vmem:[#allocation11 + $0xc0] sm:$0xff] }
 0x30b   : > { %v4427_v6 = vmul.f32 1.050701, %v4423_v31  ;;  %4726 = vmatpush.bf16.msra.mxu2 %v11226_v11  ;;  %v11740_v11 = vld [vmem:[#allocation13] ss:$0 sm:$0xff] }
 0x30d   : > { %4701 = vmatpush.bf16.msra.mxu0 %v11209_v61  ;;  %4714 = vmatpush.bf16.msra.mxu1 %v11217_v1  ;;  %v4431_v7 = vpack.c.bf16 %v4427_v6, %v4427_v6  ;;  %v4199_v32 = vpop.f32.mrf.mxu0  ;;  %v4212_v9 = vpop.f32.mrf.mxu1  ;;  %v11236_v1 = vld [vmem:[#allocation11 + $0xd8] sm:$0xff] }
 0x30e   : > { %v4200_v15 = vadd.f32 %v4199_v32, %v2696_v0  ;;  %4735 = vmatpush.bf16.msra.mxu3 %v11238_v58 }
 0x30f   : > { %4727 = vmatpush.bf16.msra.mxu2 %v11225_v13 }
 0x310   : > { %4702 = vmatmul.bf16.vlgmr.msra.gmra.mxu0 %v4430_v3  ;;  %4715 = vmatmul.bf16.vlgmr.msra.gmra.mxu1 %v4431_v7  ;;  %v4213_v21 = vadd.f32 %v4212_v9, %v4200_v15 }
 0x312   : > { %4736 = vmatpush.bf16.msra.mxu3 %v11237_v54 }
 0x315   : > { %v4201_v39 = vpop.f32.mrf.mxu0  ;;  %v4214_v12 = vpop.f32.mrf.mxu1 }
 0x316   : > { %v4225_v10 = vpop.f32.mrf.mxu2  ;;  %v4238_v38 = vpop.f32.mrf.mxu3  ;;  %4737 = vmatpush.bf16.msra.mxu3 %v11236_v1  ;;  %v11260_v1 = vld [vmem:[#allocation17 + $0x18] sm:$0xff] }
 0x317   : > { %v4226_v24 = vadd.f32 %v4225_v10, %v4213_v21  ;;  %4968 = vmatpush.bf16.msrb.mxu2 %v11260_v1 }
 0x319   : > { %v4239_v30 = vadd.f32 %v4238_v38, %v4226_v24 }
 0x31a   : > { %4738 = vmatpush.bf16.msra.mxu3 %v11235_v59  ;;  %v11258_v59 = vld [vmem:[#allocation17 + $0x8] sm:$0xff] }
 0x31e   : > { %v4227_v22 = vpop.f32.mrf.mxu2  ;;  %v4240_v19 = vpop.f32.mrf.mxu3  ;;  %4739 = vmatpush.bf16.msra.mxu3 %v11234_v4  ;;  %v11741_v4 = vld [vmem:[#allocation14] ss:$0 sm:$0xff] }
 0x322   : > { %4740 = vmatpush.bf16.msra.mxu3 %v11233_v5  ;;  %v11742_v5 = vld [vmem:[#allocation16] ss:$0 sm:$0xff] }
 0x32d   : > { %v4251_v28 = vpop.f32.mrf.mxu0  ;;  %v4264_v37 = vpop.f32.mrf.mxu1 }
 0x32e   : > { %v4252_v35 = vadd.f32 %v4251_v28, %v4239_v30 }
 0x330   : > { %v4265_v16 = vadd.f32 %v4264_v37, %v4252_v35 }
 0x335   : > { %v4253_v43 = vpop.f32.mrf.mxu0  ;;  %v4266_v45 = vpop.f32.mrf.mxu1 }
 0x336   : > { %v4277_v40 = vpop.f32.mrf.mxu2  ;;  %v4290_v41 = vpop.f32.mrf.mxu3  ;;  %v11255_v43 = vld [vmem:[%s13414_s2 + $0x30] sm:$0xff] }
 0x337   : > { %v4278_v36 = vadd.f32 %v4277_v40, %v4265_v16  ;;  %v11248_v40 = vld [vmem:[%s13413_s29 + $0x38] sm:$0xff] }
 0x338   : > { %4823 = vmatpush.bf16.msrb.mxu0 %v11248_v40  ;;  %v9693_v40 = vld [vmem:[#allocation20 + $0xd0] sm:$0xf0] }
 0x339   : > { %v4291_v44 = vadd.f32 %v4290_v41, %v4278_v36  ;;  %v11256_v36 = vld [vmem:[%s13414_s2 + $0x38] sm:$0xff]  ;;  %v11247_v41 = vld [vmem:[%s13413_s29 + $0x30] sm:$0xff] }
 0x33a   : > { %4904 = vmatpush.bf16.msrb.mxu1 %v11256_v36 }
 0x33b   : > { %v4400_v27 = vmin.f32 %v4291_v44, 0.0  ;;  %vm4420_vm7 = vcmp.gt.f32.partialorder %v4291_v44, 0.0 }
 0x33c   : > { %4824 = vmatpush.bf16.msrb.mxu0 %v11247_v41 }
 0x33d   : > { %v4406_v53 = vmul.f32 1.442695, %v4400_v27  ;;  %v11246_v27 = vld [vmem:[%s13413_s29 + $0x28] sm:$0xff] }
 0x33e   : > { %v4279_v34 = vpop.f32.mrf.mxu2  ;;  %v4292_v26 = vpop.f32.mrf.mxu3  ;;  %4905 = vmatpush.bf16.msrb.mxu1 %v11255_v43  ;;  %v9699_v43 = vld [vmem:[#allocation20 + $0xc8] sm:$0xf] }
 0x33f   : > { %11752 = vpow2.f32 %v4406_v53  ;;  %v11254_v53 = vld [vmem:[%s13414_s2 + $0x28] sm:$0xff]  ;;  %v11245_v34 = vld [vmem:[%s13413_s29 + $0x20] sm:$0xff] }
 0x340   : > { %4825 = vmatpush.bf16.msrb.mxu0 %v11246_v27  ;;  %v11253_v26 = vld [vmem:[%s13414_s2 + $0x20] sm:$0xff] }
 0x342   : > { %4906 = vmatpush.bf16.msrb.mxu1 %v11254_v53  ;;  %v9701_v53 = vld [vmem:[#allocation20 + $0xd8] sm:$0xf0] }
 0x344   : > { %4826 = vmatpush.bf16.msrb.mxu0 %v11245_v34 }
 0x345   : > { %v11753_v33 = vpop.eup %11752 }
 0x346   : > { %v9380_v46 = vadd.f32 -1.0, %v11753_v33  ;;  %4907 = vmatpush.bf16.msrb.mxu1 %v11253_v26  ;;  %v11244_v33 = vld [vmem:[%s13413_s29 + $0x18] sm:$0xff] }
 0x348   : > { %v4416_v47 = vmul.f32 1.6732632, %v9380_v46  ;;  %v11252_v46 = vld [vmem:[%s13414_s2 + $0x18] sm:$0xff]  ;;  %4827 = vmatpush.bf16.msrb.mxu0 %v11244_v33  ;;  %v9675_v33 = vld [vmem:[#allocation20 + $0xa0] sm:$0xf] }
 0x34a   : > { %v4424_v48 = vsel %vm4420_vm7, %v4291_v44, %v4416_v47  ;;  %4908 = vmatpush.bf16.msrb.mxu1 %v11252_v46  ;;  %v11243_v47 = vld [vmem:[%s13413_s29 + $0x10] sm:$0xff]  ;;  %v11283_v46 = vld [vmem:[#allocation20 + $0xac] sm:$0xf0] }
 0x34b   : > { %v4428_v49 = vmul.f32 1.050701, %v4424_v48  ;;  %v11251_v48 = vld [vmem:[%s13414_s2 + $0x10] sm:$0xff] }
 0x34c   : > { %4828 = vmatpush.bf16.msrb.mxu0 %v11243_v47  ;;  %v11281_v47 = vld [vmem:[#allocation20 + $0xa4] sm:$0xf] }
 0x34d   : > { %v4432_v17 = vpack.c.bf16 %v4428_v49, %v4428_v49  ;;  %v4303_v50 = vpop.f32.mrf.mxu0  ;;  %v4316_v18 = vpop.f32.mrf.mxu1  ;;  %v11242_v49 = vld [vmem:[%s13413_s29 + $0x8] sm:$0xff] }
 0x34e   : > { %v4304_v61 = vadd.f32 %v4303_v50, %v2697_v60  ;;  %4909 = vmatpush.bf16.msrb.mxu1 %v11251_v48  ;;  %v11241_v50 = vld [vmem:[%s13413_s29] sm:$0xff]  ;;  %v9676_v48 = vor.u32 %v11283_v46, %v9675_v33 }
 0x34f   : > { %4728 = vmatmul.bf16.vlgmr.msra.gmra.mxu2 %v4432_v17  ;;  %v11250_v17 = vld [vmem:[%s13414_s2 + $0x8] sm:$0xff] }
 0x350   : > { %v4317_v2 = vadd.f32 %v4316_v18, %v4304_v61  ;;  %4829 = vmatpush.bf16.msrb.mxu0 %v11242_v49  ;;  %v9677_v49 = vld [vmem:[#allocation20 + $0xb0] sm:$0xf0] }
 0x352   : > { %4910 = vmatpush.bf16.msrb.mxu1 %v11250_v17  ;;  %v9683_v17 = vld [vmem:[#allocation20 + $0xa8] sm:$0xf] }
 0x354   : > { %4830 = vmatpush.bf16.msrb.mxu0 %v11241_v50  ;;  %v11284_v50 = vld [vmem:[#allocation20 + $0xb4] sm:$0xf0] }
 0x355   : > { %v4305_v55 = vpop.f32.mrf.mxu0  ;;  %v4318_v56 = vpop.f32.mrf.mxu1 }
 0x356   : > { %v4329_v25 = vpop.f32.mrf.mxu2  ;;  %v4342_v52 = vpop.f32.mrf.mxu3  ;;  %4911 = vmatpush.bf16.msrb.mxu1 %v11249_v57  ;;  %v9680_v57 = vor.u32 %v11281_v47, %v9677_v49  ;;  %v9603_v47 = vld [vmem:[#allocation20 + $0x8] sm:$0xf]  ;;  %v11262_v49 = vld [vmem:[#allocation20 + $0xc] sm:$0xf] }
 0x357   : > { %v4330_v3 = vadd.f32 %v4329_v25, %v4317_v2  ;;  %v11259_v2 = vld [vmem:[#allocation17 + $0x10] sm:$0xff] }
 0x358   : > { %4969 = vmatpush.bf16.msrb.mxu2 %v11259_v2  ;;  %v11278_v2 = vld [vmem:[#allocation20 + $0x8c] sm:$0xf] }
 0x359   : > { %v4343_v31 = vadd.f32 %v4342_v52, %v4330_v3  ;;  %v11257_v3 = vld [vmem:[#allocation17] sm:$0xff] }
 0x35c   : > { %4970 = vmatpush.bf16.msrb.mxu2 %v11258_v59  ;;  %v9669_v59 = vld [vmem:[#allocation20 + $0x98] sm:$0xf0] }
 0x35e   : > { %v4331_v62 = vpop.f32.mrf.mxu2  ;;  %v4344_v63 = vpop.f32.mrf.mxu3 }
 0x360   : > { %4971 = vmatpush.bf16.msrb.mxu2 %v11257_v3  ;;  %v9672_v3 = vor.u32 %v11278_v2, %v9669_v59  ;;  %v10207_v2 = vld [vmem:[#allocation23 + $0x3c0] sm:$0xf] }
 0x36d   : > { %v4355_v6 = vpop.f32.mrf.mxu0  ;;  %v4368_v7 = vpop.f32.mrf.mxu1 }
 0x36e   : > { %v4356_v32 = vadd.f32 %v4355_v6, %v4343_v31 }
 0x370   : > { %v4369_v42 = vadd.f32 %v4368_v7, %v4356_v32 }
 0x375   : > { %v4381_v9 = vpop.f32.mrf.mxu2  ;;  %v4394_v8 = vpop.f32.mrf.mxu3 }
 0x376   : > { %v4382_v10 = vadd.f32 %v4381_v9, %v4369_v42  ;;  %v4357_v38 = vpop.f32.mrf.mxu0  ;;  %v4370_v39 = vpop.f32.mrf.mxu1 }
 0x377   : > { %v4917_v38 = vld [vmem:[#allocation3] sm:$0x3] }
 0x378   : > { %v4395_v12 = vadd.f32 %v4394_v8, %v4382_v10 }
 0x37a   : > { %v4401_v0 = vmin.f32 %v4395_v12, 0.0  ;;  %vm4421_vm8 = vcmp.gt.f32.partialorder %v4395_v12, 0.0 }
 0x37c   : > { %v4408_v14 = vmul.f32 1.442695, %v4401_v0 }
 0x37d   : > { %v4383_v22 = vpop.f32.mrf.mxu2  ;;  %v4396_v15 = vpop.f32.mrf.mxu3 }
 0x37e   : > { %11754 = vpow2.f32 %v4408_v14  ;;  %v9707_v22 = vld [vmem:[#allocation20 + $0xe0] sm:$0xf]  ;;  %v11291_v15 = vld [vmem:[#allocation20 + $0xec] sm:$0xf0] }
 0x384   : > { %v11755_v19 = vpop.eup %11754 }
 0x385   : > { %v9381_v20 = vadd.f32 -1.0, %v11755_v19  ;;  %v11289_v19 = vld [vmem:[#allocation20 + $0xe4] sm:$0xf] }
 0x387   : > { %v4417_v21 = vmul.f32 1.6732632, %v9381_v20  ;;  %v9708_v20 = vor.u32 %v11291_v15, %v9707_v22  ;;  %v9629_v15 = vld [vmem:[#allocation20 + $0x50] sm:$0xf0] }
 0x389   : > { %v4425_v23 = vsel %vm4421_vm8, %v4395_v12, %v4417_v21  ;;  %v9709_v21 = vld [vmem:[#allocation20 + $0xf0] sm:$0xf0]  ;;  %5188 = vmatpush.bf16.msrb.mxu3 %v9708_v20  ;;  %v11272_v20 = vld [vmem:[#allocation20 + $0x54] sm:$0xf0] }
 0x38a   : > { %v4429_v24 = vmul.f32 1.050701, %v4425_v23  ;;  %v9715_v23 = vld [vmem:[#allocation20 + $0xe8] sm:$0xf] }
 0x38c   : > { %v4433_v29 = vpack.c.bf16 %v4429_v24, %v4429_v24  ;;  %v11292_v24 = vld [vmem:[#allocation20 + $0xf4] sm:$0xf0] }
 0x38d   : > { %v4703_v30 = vpop.f32.mrf.mxu0  ;;  %v4716_v13 = vpop.f32.mrf.mxu1 }
 0x38e   : > { %4741 = vmatmul.bf16.vlgmr.msra.gmra.mxu3 %v4433_v29  ;;  %v4704_v28 = vadd.f32 %v11740_v11, %v4703_v30  ;;  %v9712_v29 = vor.u32 %v11289_v19, %v9709_v21  ;;  %v9716_v30 = vor.u32 %v11292_v24, %v9715_v23  ;;  %v11290_v11 = vld [vmem:[#allocation20 + $0xec] sm:$0xf]  ;;  %v9635_v19 = vld [vmem:[#allocation20 + $0x48] sm:$0xf] }
 0x38f   : > { %v9636_v23 = vor.u32 %v11272_v20, %v9635_v19  ;;  %v11270_v24 = vld [vmem:[#allocation20 + $0x4c] sm:$0xf]  ;;  %v11337_v19 = vld [vmem:[#allocation23 + $0x15c] sm:$0xf0] }
 0x390   : > { %v4717_v37 = vadd.f32 %v4716_v13, %v4704_v28  ;;  %v9717_v28 = vld [vmem:[#allocation20 + $0xf8] sm:$0xf0]  ;;  %v9691_v13 = vld [vmem:[#allocation20 + $0xc0] sm:$0xf]  ;;  %5201 = vmatpush.bf16.msra.mxu2 %v9712_v29  ;;  %5214 = vmatpush.bf16.msra.mxu0 %v9716_v30 }
 0x391   : > { %v9637_v29 = vld [vmem:[#allocation20 + $0x58] sm:$0xf0] }
 0x392   : > { %v9640_v30 = vor.u32 %v11270_v24, %v9637_v29  ;;  %v10143_v24 = vld [vmem:[#allocation23 + $0x340] sm:$0xf] }
 0x393   : > { %v11401_v29 = vld [vmem:[#allocation23 + $0x35c] sm:$0xf0] }
 0x395   : > { %v4705_v35 = vpop.f32.mrf.mxu0  ;;  %v4718_v16 = vpop.f32.mrf.mxu1 }
 0x396   : > { %v9720_v35 = vor.u32 %v11290_v11, %v9717_v28  ;;  %v11285_v16 = vld [vmem:[#allocation20 + $0xc4] sm:$0xf]  ;;  %v9611_v11 = vld [vmem:[#allocation20 + $0x20] sm:$0xf]  ;;  %v11267_v28 = vld [vmem:[#allocation20 + $0x2c] sm:$0xf0] }
 0x397   : > { %v9696_v41 = vor.u32 %v11285_v16, %v9693_v40  ;;  %v9619_v16 = vld [vmem:[#allocation20 + $0x28] sm:$0xf]  ;;  %v11268_v40 = vld [vmem:[#allocation20 + $0x34] sm:$0xf0] }
 0x398   : > { %5227 = vmatpush.bf16.msra.mxu1 %v9720_v35  ;;  %v9612_v35 = vor.u32 %v11267_v28, %v9611_v11  ;;  %v11521_v11 = vld [vmem:[#allocation23 + $0x71c] sm:$0xf0] }
 0x399   : > { %5202 = vmatpush.bf16.msra.mxu2 %v9696_v41  ;;  %v9620_v41 = vor.u32 %v11268_v40, %v9619_v16  ;;  %v11329_v16 = vld [vmem:[#allocation23 + $0x11c] sm:$0xf0] }
 0x39d   : > { %5203 = vmatpush.bf16.msra.mxu2 %v9680_v57  ;;  %v10463_v57 = vld [vmem:[#allocation23 + $0x5c0] sm:$0xf] }
 0x3d2   : > { %v4729_v44 = vpop.f32.mrf.mxu2 }
 0x3d3   : > { %v4730_v18 = vadd.f32 %v4729_v44, %v4717_v37  ;;  %v11287_v37 = vld [vmem:[#allocation20 + $0xcc] sm:$0xf0]  ;;  %v11288_v44 = vld [vmem:[#allocation20 + $0xd4] sm:$0xf0] }
 0x3d4   : > { %v9692_v36 = vor.u32 %v11287_v37, %v9691_v13  ;;  %v9700_v27 = vor.u32 %v11288_v44, %v9699_v43  ;;  %v11265_v13 = vld [vmem:[#allocation20 + $0x24] sm:$0xf]  ;;  %v9613_v37 = vld [vmem:[#allocation20 + $0x30] sm:$0xf0]  ;;  %v11266_v43 = vld [vmem:[#allocation20 + $0x2c] sm:$0xf] }
 0x3d5   : > { %v9621_v44 = vld [vmem:[#allocation20 + $0x38] sm:$0xf0] }
 0x3d6   : > { %5189 = vmatpush.bf16.msrb.mxu3 %v9692_v36  ;;  %5215 = vmatpush.bf16.msra.mxu0 %v9700_v27  ;;  %v9616_v36 = vor.u32 %v11265_v13, %v9613_v37  ;;  %v9624_v27 = vor.u32 %v11266_v43, %v9621_v44  ;;  %v9855_v37 = vld [vmem:[#allocation23 + $0x100] sm:$0xf] }
 0x3da   : > { %v4731_v45 = vpop.f32.mrf.mxu2  ;;  %5190 = vmatpush.bf16.msrb.mxu3 %v9676_v48  ;;  %v11264_v48 = vld [vmem:[#allocation20 + $0x14] sm:$0xf0] }
 0x3db   : > { %v11286_v45 = vld [vmem:[#allocation20 + $0xcc] sm:$0xf] }
 0x3dc   : > { %v9704_v34 = vor.u32 %v11286_v45, %v9701_v53  ;;  %v9595_v45 = vld [vmem:[#allocation20] sm:$0xf]  ;;  %v11263_v53 = vld [vmem:[#allocation20 + $0xc] sm:$0xf0] }
 0x3dd   : > { %v9596_v33 = vor.u32 %v11263_v53, %v9595_v45  ;;  %v10335_v45 = vld [vmem:[#allocation23 + $0x4c0] sm:$0xf] }
 0x3de   : > { %5228 = vmatpush.bf16.msra.mxu1 %v9704_v34  ;;  %v11261_v34 = vld [vmem:[#allocation20 + $0x4] sm:$0xf] }
 0x3df   : > { %v10591_v53 = vld [vmem:[#allocation23 + $0x6c0] sm:$0xf] }
 0x411   : > { %v4742_v51 = vpop.f32.mrf.mxu3 }
 0x412   : > { %v4743_v25 = vadd.f32 %v4742_v51, %v4730_v18  ;;  %v9684_v18 = vor.u32 %v11284_v50, %v9683_v17  ;;  %v11282_v51 = vld [vmem:[#allocation20 + $0xac] sm:$0xf]  ;;  %v9604_v17 = vor.u32 %v11264_v48, %v9603_v47  ;;  %v9605_v50 = vld [vmem:[#allocation20 + $0x18] sm:$0xf0]  ;;  %v11321_v47 = vld [vmem:[#allocation23 + $0xdc] sm:$0xf0] }
 0x414   : > { %v4746_v52 = vmin.f32 %v4743_v25, 0.0  ;;  %vm4751_vm9 = vcmp.gt.f32.partialorder %v4743_v25, 0.0  ;;  %5216 = vmatpush.bf16.msra.mxu0 %v9684_v18  ;;  %v11481_v18 = vld [vmem:[#allocation23 + $0x5dc] sm:$0xf0] }
 0x416   : > { %v4747_v55 = vmul.f32 1.442695, %v4746_v52 }
 0x418   : > { %11756 = vpow2.f32 %v4747_v55  ;;  %v9659_v55 = vld [vmem:[#allocation20 + $0x80] sm:$0xf] }
 0x419   : > { %v4744_v56 = vpop.f32.mrf.mxu3 }
 0x41a   : > { %v11279_v56 = vld [vmem:[#allocation20 + $0x8c] sm:$0xf0] }
 0x41e   : > { %v11757_v58 = vpop.eup %11756 }
 0x41f   : > { %v9510_v60 = vadd.f32 -1.0, %v11757_v58  ;;  %v11277_v58 = vld [vmem:[#allocation20 + $0x84] sm:$0xf] }
 0x421   : > { %v4750_v62 = vmul.f32 1.6732632, %v9510_v60  ;;  %v9660_v60 = vor.u32 %v11279_v56, %v9659_v55  ;;  %v11545_v55 = vld [vmem:[#allocation23 + $0x7dc] sm:$0xf0] }
 0x422   : > { %v10431_v56 = vld [vmem:[#allocation23 + $0x580] sm:$0xf] }
 0x423   : > { %v4752_v54 = vsel %vm4751_vm9, %v4743_v25, %v4750_v62  ;;  %v9685_v25 = vld [vmem:[#allocation20 + $0xb8] sm:$0xf0]  ;;  %v9661_v62 = vld [vmem:[#allocation20 + $0x90] sm:$0xf0]  ;;  %5191 = vmatpush.bf16.msrb.mxu3 %v9660_v60  ;;  %v11473_v60 = vld [vmem:[#allocation23 + $0x59c] sm:$0xf0] }
 0x424   : > { %v4753_v63 = vmul.f32 1.050701, %v4752_v54  ;;  %v9688_v52 = vor.u32 %v11282_v51, %v9685_v25  ;;  %v9667_v54 = vld [vmem:[#allocation20 + $0x88] sm:$0xf]  ;;  %v9608_v51 = vor.u32 %v11262_v49, %v9605_v50  ;;  %v10464_v25 = vor.u32 %v11481_v18, %v10463_v57  ;;  %v11385_v50 = vld [vmem:[#allocation23 + $0x2dc] sm:$0xf0] }
 0x425   : > { %v10432_v59 = vor.u32 %v11473_v60, %v10431_v56  ;;  %v10303_v18 = vld [vmem:[#allocation23 + $0x480] sm:$0xf]  ;;  %vm7334_vm9 = vcmask 1040384  }
 0x426   : > { %v4754_v61 = vpack.c.bf16 %v4753_v63, %v4753_v63  ;;  %5229 = vmatpush.bf16.msra.mxu1 %v9688_v52  ;;  %v11280_v63 = vld [vmem:[#allocation20 + $0x94] sm:$0xf0]  ;;  %v10719_v52 = vld [vmem:[#allocation23 + $0x7c0] sm:$0xf] }
 0x427   : > { %v9668_v1 = vor.u32 %v11280_v63, %v9667_v54  ;;  %v11537_v54 = vld [vmem:[#allocation23 + $0x79c] sm:$0xf0]  ;;  %v11743_v63 = vld [vmem:[#allocation19] ss:$0 sm:$0xff] }
 0x428   : > { %4831 = vmatmul.bf16.vlgmr.msrb.gmra.mxu0 %v4754_v61  ;;  %4912 = vmatmul.bf16.vlgmr.msrb.gmra.mxu1 %v4754_v61  ;;  %v9664_v61 = vor.u32 %v11277_v58, %v9661_v62  ;;  %v10720_v58 = vor.u32 %v11545_v55, %v10719_v52  ;;  %v10687_v62 = vld [vmem:[#allocation23 + $0x780] sm:$0xf] }
 0x429   : > { %5217 = vmatpush.bf16.msra.mxu0 %v9668_v1  ;;  %v11353_v1 = vld [vmem:[#allocation23 + $0x1dc] sm:$0xf0] }
 0x42a   : > { %5204 = vmatpush.bf16.msra.mxu2 %v9664_v61  ;;  %5230 = vmatpush.bf16.msra.mxu1 %v9672_v3  ;;  %v9951_v61 = vld [vmem:[#allocation23 + $0x1c0] sm:$0xf] }
 0x42b   : > { %v9952_v3 = vor.u32 %v11353_v1, %v9951_v61  ;;  %v11505_v52 = vld [vmem:[#allocation23 + $0x69c] sm:$0xf0] }
 0x42c   : > { %v11313_v60 = vld [vmem:[#allocation23 + $0x9c] sm:$0xf0] }
 0x4a5   : > { %v4832_v31 = vpop.f32.mrf.mxu0  ;;  %v4913_v6 = vpop.f32.mrf.mxu1 }
 0x4a6   : > { %v4833_v7 = vadd.f32 %v11741_v4, %v4832_v31  ;;  %v4914_v32 = vadd.f32 %v11742_v5, %v4913_v6  ;;  %v9643_v4 = vld [vmem:[#allocation20 + $0x60] sm:$0xf]  ;;  %v11275_v5 = vld [vmem:[#allocation20 + $0x6c] sm:$0xf0]  ;;  %v11273_v31 = vld [vmem:[#allocation20 + $0x64] sm:$0xf] }
 0x4a7   : > { %v9644_v6 = vor.u32 %v11275_v5, %v9643_v4  ;;  %v11417_v4 = vld [vmem:[#allocation23 + $0x3dc] sm:$0xf0] }
 0x4a8   : > { %7311 = vst.msk [vmem:[%s13415_s18] sm:$0x3] %vm7310_vm10, %v4833_v7  ;;  %v4918_v42 = vmul.f32 0.5, %v4914_v32  ;;  %7313 = vrot.lane.b32.xlu0 %v4914_v32, %s12325_s1  ;;  %v9651_v32 = vld [vmem:[#allocation20 + $0x68] sm:$0xf] }
 0x4a9   : > { %5192 = vmatpush.bf16.msrb.mxu3 %v9644_v6  ;;  %v10399_v5 = vld [vmem:[#allocation23 + $0x540] sm:$0xf]  ;;  %v10688_v6 = vor.u32 %v11537_v54, %v10687_v62 }
 0x4aa   : > { %v4919_v9 = vmul.f32 1.442695, %v4918_v42  ;;  %v11276_v42 = vld [vmem:[#allocation20 + $0x74] sm:$0xf0]  ;;  %v10047_v54 = vld [vmem:[#allocation23 + $0x280] sm:$0xf] }
 0x4ac   : > { %11758 = vpow2.f32 %v4919_v9 }
 0x4ad   : > { %v4834_v8 = vpop.f32.mrf.mxu0  ;;  %v4915_v10 = vpop.f32.mrf.mxu1 }
 0x4ae   : > { %v9652_v8 = vor.u32 %v11276_v42, %v9651_v32  ;;  %v11274_v10 = vld [vmem:[#allocation20 + $0x6c] sm:$0xf]  ;;  %v10655_v32 = vld [vmem:[#allocation23 + $0x740] sm:$0xf] }
 0x4af   : > { %v11529_v42 = vld [vmem:[#allocation23 + $0x75c] sm:$0xf0] }
 0x4b0   : > { %5218 = vmatpush.bf16.msra.mxu0 %v9652_v8  ;;  %v11345_v8 = vld [vmem:[#allocation23 + $0x19c] sm:$0xf0] }
 0x4b2   : > { %v11759_v39 = vpop.eup %11758 }
 0x4b3   : > { %v4921_v12 = vmul.f32 %v11759_v39, %v4917_v38  ;;  %v9653_v38 = vld [vmem:[#allocation20 + $0x78] sm:$0xf0] }
 0x4b4   : > { %v9656_v39 = vor.u32 %v11274_v10, %v9653_v38  ;;  %5219 = vmatpush.bf16.msra.mxu0 %v9636_v23  ;;  %v10175_v10 = vld [vmem:[#allocation23 + $0x380] sm:$0xf] }
 0x4b5   : > { %v4922_v0 = vadd.f32 %v4921_v12, %v4833_v7  ;;  %v9645_v7 = vld [vmem:[#allocation20 + $0x70] sm:$0xf0]  ;;  %v9627_v12 = vld [vmem:[#allocation20 + $0x40] sm:$0xf]  ;;  %v11409_v38 = vld [vmem:[#allocation23 + $0x39c] sm:$0xf0] }
 0x4b6   : > { %v9648_v9 = vor.u32 %v11273_v31, %v9645_v7  ;;  %5231 = vmatpush.bf16.msra.mxu1 %v9656_v39  ;;  %v11465_v31 = vld [vmem:[#allocation23 + $0x55c] sm:$0xf0]  ;;  %v10208_v7 = vor.u32 %v11417_v4, %v10207_v2 }
 0x4b7   : > { %7318 = vst.msk [vmem:[%s13415_s18 + $0x2] sm:$0x3] %vm7310_vm10, %v4922_v0  ;;  %v4923_v14 = vpack.c.bf16 %v4922_v0, %v4922_v0  ;;  %v11271_v0 = vld [vmem:[#allocation20 + $0x4c] sm:$0xf0]  ;;  %v11457_v23 = vld [vmem:[#allocation23 + $0x51c] sm:$0xf0] }
 0x4b8   : > { %5205 = vmatpush.bf16.msra.mxu2 %v9648_v9  ;;  %v9628_v22 = vor.u32 %v11271_v0, %v9627_v12  ;;  %5220 = vmatpush.bf16.msra.mxu0 %v9620_v41  ;;  %v9919_v9 = vld [vmem:[#allocation23 + $0x180] sm:$0xf]  ;;  %v10176_v12 = vor.u32 %v11409_v38, %v10175_v10  ;;  %vm7338_vm10 = vcmask 1042434  }
 0x4b9   : > { %9591 = vmatmul.msk.bf16.vlgmr.msrb.gmra.mxu2 %vm4960_vm11, %v4923_v14  ;;  %v11269_v14 = vld [vmem:[#allocation20 + $0x44] sm:$0xf]  ;;  %v9920_v39 = vor.u32 %v11345_v8, %v9919_v9 }
 0x4ba   : > { %v9632_v21 = vor.u32 %v11269_v14, %v9629_v15  ;;  %5193 = vmatpush.bf16.msrb.mxu3 %v9628_v22  ;;  %5232 = vmatpush.bf16.msra.mxu1 %v9640_v30  ;;  %v10400_v14 = vor.u32 %v11465_v31, %v10399_v5  ;;  %v10367_v22 = vld [vmem:[#allocation23 + $0x500] sm:$0xf] }
 0x4bb   : > { %v9887_v15 = vld [vmem:[#allocation23 + $0x140] sm:$0xf]  ;;  %v10368_v40 = vor.u32 %v11457_v23, %v10367_v22  ;;  %v10465_v22 = vld [vmem:[#allocation23 + $0x5e0] sm:$0xf0] }
 0x4bc   : > { %5206 = vmatpush.bf16.msra.mxu2 %v9632_v21  ;;  %5221 = vmatpush.bf16.msra.mxu0 %v9604_v17  ;;  %v10656_v21 = vor.u32 %v11529_v42, %v10655_v32  ;;  %v10623_v30 = vld [vmem:[#allocation23 + $0x700] sm:$0xf]  ;;  %v9888_v28 = vor.u32 %v11337_v19, %v9887_v15  ;;  %v11541_v15 = vld [vmem:[#allocation23 + $0x7c4] sm:$0xf] }
 0x4bd   : > { %v11393_v41 = vld [vmem:[#allocation23 + $0x31c] sm:$0xf0]  ;;  %v10624_v44 = vor.u32 %v11521_v11, %v10623_v30  ;;  %v10721_v23 = vld [vmem:[#allocation23 + $0x7e0] sm:$0xf0] }
 0x4be   : > { %5194 = vmatpush.bf16.msrb.mxu3 %v9612_v35  ;;  %5233 = vmatpush.bf16.msra.mxu1 %v9624_v27  ;;  %v10144_v35 = vor.u32 %v11401_v29, %v10143_v24  ;;  %v11449_v27 = vld [vmem:[#allocation23 + $0x4dc] sm:$0xf0] }
 0x4bf   : > { %v10336_v49 = vor.u32 %v11449_v27, %v10335_v45  ;;  %v10079_v17 = vld [vmem:[#allocation23 + $0x2c0] sm:$0xf] }
 0x4c0   : > { %5207 = vmatpush.bf16.msra.mxu2 %v9616_v36  ;;  %6856 = vmatpush.bf16.msrb.mxu0 %v10464_v25  ;;  %v10111_v36 = vld [vmem:[#allocation23 + $0x300] sm:$0xf]  ;;  %v10080_v56 = vor.u32 %v11385_v50, %v10079_v17  ;;  %v11461_v50 = vld [vmem:[#allocation23 + $0x544] sm:$0xf] }
 0x4c1   : > { %v10559_v25 = vld [vmem:[#allocation23 + $0x680] sm:$0xf] }
 0x4c2   : > { %5195 = vmatpush.bf16.msrb.mxu3 %v9596_v33  ;;  %5234 = vmatpush.bf16.msra.mxu1 %v9608_v51  ;;  %v10112_v33 = vor.u32 %v11393_v41, %v10111_v36  ;;  %v11441_v51 = vld [vmem:[#allocation23 + $0x49c] sm:$0xf0]  ;;  %v10560_v1 = vor.u32 %v11505_v52, %v10559_v25  ;;  %v10433_v36 = vld [vmem:[#allocation23 + $0x5a0] sm:$0xf0] }
 0x4c3   : > { %v10304_v62 = vor.u32 %v11441_v51, %v10303_v18  ;;  %v10271_v2 = vld [vmem:[#allocation23 + $0x440] sm:$0xf]  ;;  %v11533_v41 = vld [vmem:[#allocation23 + $0x784] sm:$0xf] }
 0x4c4   : > { %6857 = vmatpush.bf16.msrb.mxu0 %v10432_v59  ;;  %v11433_v59 = vld [vmem:[#allocation23 + $0x45c] sm:$0xf0]  ;;  %v11525_v51 = vld [vmem:[#allocation23 + $0x744] sm:$0xf] }
 0x4c5   : > { %v10527_v4 = vld [vmem:[#allocation23 + $0x640] sm:$0xf]  ;;  %v10272_v9 = vor.u32 %v11433_v59, %v10271_v2  ;;  %v10657_v25 = vld [vmem:[#allocation23 + $0x760] sm:$0xf0] }
 0x4c6   : > { %6869 = vmatpush.bf16.msrb.mxu1 %v10720_v58  ;;  %6830 = vmatpush.bf16.msra.mxu3 %v9952_v3  ;;  %v9791_v58 = vld [vmem:[#allocation23 + $0x80] sm:$0xf]  ;;  %v10660_v52 = vor.u32 %v11525_v51, %v10657_v25  ;;  %v10625_v59 = vld [vmem:[#allocation23 + $0x720] sm:$0xf0] }
 0x4c7   : > { %v11497_v5 = vld [vmem:[#allocation23 + $0x65c] sm:$0xf0]  ;;  %v9792_v31 = vor.u32 %v11313_v60, %v9791_v58  ;;  %v11405_v58 = vld [vmem:[#allocation23 + $0x384] sm:$0xf] }
 0x4c8   : > { %6858 = vmatpush.bf16.msrb.mxu0 %v10400_v14  ;;  %v11305_v32 = vld [vmem:[#allocation23 + $0x5c] sm:$0xf0]  ;;  %v10528_v10 = vor.u32 %v11497_v5, %v10527_v4  ;;  %v11477_v14 = vld [vmem:[#allocation23 + $0x5c4] sm:$0xf] }
 0x4c9   : > { %v10239_v8 = vld [vmem:[#allocation23 + $0x400] sm:$0xf]  ;;  %v11333_v4 = vld [vmem:[#allocation23 + $0x144] sm:$0xf] }
 0x4ca   : > { %6870 = vmatpush.bf16.msrb.mxu1 %v10688_v6  ;;  %6831 = vmatpush.bf16.msra.mxu3 %v9920_v39  ;;  %v11425_v38 = vld [vmem:[#allocation23 + $0x41c] sm:$0xf0]  ;;  %v9889_v5 = vld [vmem:[#allocation23 + $0x160] sm:$0xf0] }
 0x4cb   : > { %v10495_v39 = vld [vmem:[#allocation23 + $0x600] sm:$0xf]  ;;  %v11301_v51 = vld [vmem:[#allocation23 + $0x44] sm:$0xf] }
 0x4cc   : > { %6859 = vmatpush.bf16.msrb.mxu0 %v10368_v40  ;;  %v10015_v24 = vld [vmem:[#allocation23 + $0x240] sm:$0xf]  ;;  %v9761_v25 = vld [vmem:[#allocation23 + $0x60] sm:$0xf0] }
 0x4cd   : > { %v11369_v29 = vld [vmem:[#allocation23 + $0x25c] sm:$0xf0] }
 0x4ce   : > { %6871 = vmatpush.bf16.msrb.mxu1 %v10656_v21  ;;  %6832 = vmatpush.bf16.msra.mxu3 %v9888_v28  ;;  %v9727_v30 = vld [vmem:[#allocation23] sm:$0xf]  ;;  %v10016_v40 = vor.u32 %v11369_v29, %v10015_v24  ;;  %v11501_v24 = vld [vmem:[#allocation23 + $0x684] sm:$0xf] }
 0x4cf   : > { %v11297_v11 = vld [vmem:[#allocation23 + $0x1c] sm:$0xf0] }
 0x4d0   : > { %6860 = vmatpush.bf16.msrb.mxu0 %v10336_v49  ;;  %v9983_v45 = vld [vmem:[#allocation23 + $0x200] sm:$0xf]  ;;  %v10209_v49 = vld [vmem:[#allocation23 + $0x3e0] sm:$0xf0] }
 0x4d1   : > { %v11361_v27 = vld [vmem:[#allocation23 + $0x21c] sm:$0xf0] }
 0x4d2   : > { %6872 = vmatpush.bf16.msrb.mxu1 %v10624_v44  ;;  %v9728_v44 = vor.u32 %v11297_v11, %v9727_v30  ;;  %v10561_v30 = vld [vmem:[#allocation23 + $0x6a0] sm:$0xf0] }
 0x4d3   : > { %v10564_v11 = vor.u32 %v11501_v24, %v10561_v30 }
 0x4d4   : > { %6861 = vmatpush.bf16.msrb.mxu0 %v10304_v62  ;;  %v10177_v62 = vld [vmem:[#allocation23 + $0x3a0] sm:$0xf0] }
 0x4d8   : > { %6862 = vmatpush.bf16.msrb.mxu0 %v10272_v9  ;;  %v10337_v9 = vld [vmem:[#allocation23 + $0x4e0] sm:$0xf0] }
 0x51a   : > { %v7314_v26 = vpop.permute.xlu0 %7313 }
 0x51b   : > { %7317 = vst.msk [vmem:[%s13415_s18] sm:$0x3] %vm7316_vm12, %v7314_v26  ;;  %v9597_v26 = vld [vmem:[#allocation20 + $0x10] sm:$0xf0] }
 0x51c   : > { %v9600_v46 = vor.u32 %v11261_v34, %v9597_v26  ;;  %v11513_v34 = vld [vmem:[#allocation23 + $0x6dc] sm:$0xf0]  ;;  %v9856_v26 = vor.u32 %v11329_v16, %v9855_v37  ;;  %v10468_v37 = vor.u32 %v11477_v14, %v10465_v22  ;;  %v10724_v16 = vor.u32 %v11541_v15, %v10721_v23  ;;  %v11389_v14 = vld [vmem:[#allocation23 + $0x304] sm:$0xf] }
 0x51d   : > { %v10592_v57 = vor.u32 %v11513_v34, %v10591_v53  ;;  %v10113_v15 = vld [vmem:[#allocation23 + $0x320] sm:$0xf0] }
 0x51e   : > { %5208 = vmatpush.bf16.msra.mxu2 %v9600_v46  ;;  %v9823_v46 = vld [vmem:[#allocation23 + $0xc0] sm:$0xf]  ;;  %6833 = vmatpush.bf16.msra.mxu3 %v9856_v26  ;;  %v9984_v26 = vor.u32 %v11361_v27, %v9983_v45  ;;  %v10305_v23 = vld [vmem:[#allocation23 + $0x4a0] sm:$0xf0] }
 0x51f   : > { %v9824_v55 = vor.u32 %v11321_v47, %v9823_v46  ;;  %6873 = vmatpush.bf16.msrb.mxu1 %v10592_v57  ;;  %v9953_v46 = vld [vmem:[#allocation23 + $0x1e0] sm:$0xf0] }
 0x520   : > { %v11413_v47 = vld [vmem:[#allocation23 + $0x3c4] sm:$0xf] }
 0x521   : > { %v10212_v17 = vor.u32 %v11413_v47, %v10209_v49  ;;  %v10401_v57 = vld [vmem:[#allocation23 + $0x560] sm:$0xf0] }
 0x522   : > { %6843 = vmatpush.bf16.msrb.mxu2 %v10208_v7  ;;  %6834 = vmatpush.bf16.msra.mxu3 %v9824_v55  ;;  %v9759_v7 = vld [vmem:[#allocation23 + $0x40] sm:$0xf]  ;;  %v10404_v18 = vor.u32 %v11461_v50, %v10401_v57  ;;  %v11341_v55 = vld [vmem:[#allocation23 + $0x184] sm:$0xf]  ;;  %v5018_v57 = vld [vmem:[#allocation22] sm:$0xf] }
 0x523   : > { %6874 = vmatpush.bf16.msrb.mxu1 %v10560_v1  ;;  %v9760_v19 = vor.u32 %v11305_v32, %v9759_v7  ;;  %v11517_v1 = vld [vmem:[#allocation23 + $0x704] sm:$0xf] }
 0x524   : > { %v10145_v7 = vld [vmem:[#allocation23 + $0x360] sm:$0xf0] }
 0x525   : > { %v11309_v27 = vld [vmem:[#allocation23 + $0x84] sm:$0xf] }
 0x526   : > { %6844 = vmatpush.bf16.msrb.mxu2 %v10176_v12  ;;  %v11489_v12 = vld [vmem:[#allocation23 + $0x61c] sm:$0xf0]  ;;  %6835 = vmatpush.bf16.msra.mxu3 %v9792_v31  ;;  %v9892_v31 = vor.u32 %v11333_v4, %v9889_v5  ;;  %v11421_v47 = vld [vmem:[#allocation23 + $0x404] sm:$0xf] }
 0x527   : > { %6875 = vmatpush.bf16.msrb.mxu1 %v10528_v10  ;;  %v11485_v49 = vld [vmem:[#allocation23 + $0x604] sm:$0xf] }
 0x528   : > { %v10497_v50 = vld [vmem:[#allocation23 + $0x620] sm:$0xf0] }
 0x52a   : > { %6845 = vmatpush.bf16.msrb.mxu2 %v10144_v35  ;;  %v10496_v35 = vor.u32 %v11489_v12, %v10495_v39  ;;  %6836 = vmatpush.bf16.msra.mxu3 %v9760_v19  ;;  %v11325_v12 = vld [vmem:[#allocation23 + $0x104] sm:$0xf]  ;;  %v10116_v19 = vor.u32 %v11389_v14, %v10113_v15 }
 0x52c   : > { %6876 = vmatpush.bf16.msrb.mxu1 %v10496_v35  ;;  %v11381_v35 = vld [vmem:[#allocation23 + $0x2c4] sm:$0xf] }
 0x52e   : > { %6846 = vmatpush.bf16.msrb.mxu2 %v10112_v33  ;;  %6837 = vmatpush.bf16.msra.mxu3 %v9728_v44  ;;  %v11349_v33 = vld [vmem:[#allocation23 + $0x1c4] sm:$0xf] }
 0x52f   : > { %v10529_v44 = vld [vmem:[#allocation23 + $0x660] sm:$0xf0] }
 0x532   : > { %6847 = vmatpush.bf16.msrb.mxu2 %v10080_v56  ;;  %v9921_v56 = vld [vmem:[#allocation23 + $0x1a0] sm:$0xf0] }
 0x533   : > { %v9924_v60 = vor.u32 %v11341_v55, %v9921_v56  ;;  %v10017_v55 = vld [vmem:[#allocation23 + $0x260] sm:$0xf0]  ;;  %v9764_v56 = vor.u32 %v11301_v51, %v9761_v25  ;;  %v11354_v25 = vld [vmem:[#allocation23 + $0x1e4] sm:$0xf0] }
 0x53c   : > { %v4973_v0 = vpop.f32.mrf.mxu2 }
 0x53d   : > { %v13248_v20 = vadd.f32 %v11743_v63, %v4973_v0  ;;  %v11377_v63 = vld [vmem:[#allocation23 + $0x29c] sm:$0xf0] }
 0x53e   : > { %v10048_v6 = vor.u32 %v11377_v63, %v10047_v54  ;;  %v10180_v54 = vor.u32 %v11405_v58, %v10177_v62  ;;  %v11453_v63 = vld [vmem:[#allocation23 + $0x504] sm:$0xf]  ;;  %v5023_v62 = vperm.slane %v5018_v57, 3 }
 0x53f   : > { %v4977_v13 = vmin.f32 %v13248_v20, 0.0  ;;  %vm4982_vm13 = vcmp.gt.f32.partialorder %v13248_v20, 0.0 }
 0x540   : > { %6848 = vmatpush.bf16.msrb.mxu2 %v10048_v6  ;;  %v11397_v6 = vld [vmem:[#allocation23 + $0x344] sm:$0xf] }
 0x541   : > { %v4978_v43 = vmul.f32 1.442695, %v4977_v13  ;;  %v10240_v13 = vor.u32 %v11425_v38, %v10239_v8  ;;  %v10148_v32 = vor.u32 %v11397_v6, %v10145_v7  ;;  %v11509_v8 = vld [vmem:[#allocation23 + $0x6c4] sm:$0xf]  ;;  %v5020_v6 = vperm.slane %v5018_v57, 0 }
 0x542   : > { %v10593_v38 = vld [vmem:[#allocation23 + $0x6e0] sm:$0xf0]  ;;  %v5021_v7 = vperm.slane %v5018_v57, 1 }
 0x543   : > { %11760 = vpow2.f32 %v4978_v43  ;;  %v10689_v43 = vld [vmem:[#allocation23 + $0x7a0] sm:$0xf0]  ;;  %6863 = vmatpush.bf16.msrb.mxu0 %v10240_v13  ;;  %v10596_v39 = vor.u32 %v11509_v8, %v10593_v38 }
 0x544   : > { %v4975_v48 = vpop.f32.mrf.mxu2  ;;  %v10692_v34 = vor.u32 %v11533_v41, %v10689_v43  ;;  %6849 = vmatpush.bf16.msrb.mxu2 %v10016_v40  ;;  %v9825_v13 = vld [vmem:[#allocation23 + $0xe0] sm:$0xf0] }
 0x545   : > { %v9956_v48 = vor.u32 %v11349_v33, %v9953_v46  ;;  %v11429_v40 = vld [vmem:[#allocation23 + $0x444] sm:$0xf] }
 0x546   : > { %v11493_v41 = vld [vmem:[#allocation23 + $0x644] sm:$0xf] }
 0x547   : > { %v10532_v45 = vor.u32 %v11493_v41, %v10529_v44  ;;  %v10049_v33 = vld [vmem:[#allocation23 + $0x2a0] sm:$0xf0]  ;;  %v11546_v41 = vld [vmem:[#allocation23 + $0x7e4] sm:$0xf0] }
 0x548   : > { %6850 = vmatpush.bf16.msrb.mxu2 %v9984_v26 }
 0x549   : > { %v11761_v61 = vpop.eup %11760 }
 0x54a   : > { %v9592_v3 = vadd.f32 -1.0, %v11761_v61  ;;  %v10369_v61 = vld [vmem:[#allocation23 + $0x520] sm:$0xf0] }
 0x54b   : > { %v10372_v2 = vor.u32 %v11453_v63, %v10369_v61  ;;  %v9729_v63 = vld [vmem:[#allocation23 + $0x20] sm:$0xf0] }
 0x54c   : > { %v4981_v42 = vmul.f32 1.6732632, %v9592_v3  ;;  %v10628_v3 = vor.u32 %v11517_v1, %v10625_v59  ;;  %v11357_v1 = vld [vmem:[#allocation23 + $0x204] sm:$0xf] }
 0x54e   : > { %v4983_v0 = vsel %vm4982_vm13, %v13248_v20, %v4981_v42  ;;  %v11469_v20 = vld [vmem:[#allocation23 + $0x584] sm:$0xf] }
 0x54f   : > { %v4984_v21 = vmul.f32 1.050701, %v4983_v0  ;;  %v10436_v53 = vor.u32 %v11469_v20, %v10433_v36  ;;  %v11445_v42 = vld [vmem:[#allocation23 + $0x4c4] sm:$0xf] }
 0x550   : > { %v10340_v10 = vor.u32 %v11445_v42, %v10337_v9  ;;  %v9857_v0 = vld [vmem:[#allocation23 + $0x120] sm:$0xf0] }
 0x551   : > { %v4985_v28 = vpack.c.bf16 %v4984_v21, %v4984_v21  ;;  %v9860_v22 = vor.u32 %v11325_v12, %v9857_v0  ;;  %v11437_v21 = vld [vmem:[#allocation23 + $0x484] sm:$0xf] }
 0x552   : > { %v10308_v29 = vor.u32 %v11437_v21, %v10305_v23  ;;  %v10273_v36 = vld [vmem:[#allocation23 + $0x460] sm:$0xf0] }
 0x553   : > { %5196 = vmatmul.bf16.vlgmr.msrb.gmra.mxu3 %v4985_v28  ;;  %5209 = vmatmul.bf16.vlgmr.msra.gmra.mxu2 %v4985_v28  ;;  %v10276_v43 = vor.u32 %v11429_v40, %v10273_v36  ;;  %v10727_v36 = vld [vmem:[#allocation23 + $0x7c8] sm:$0xf] }
 0x554   : > { %5222 = vmatmul.bf16.vlgmr.msra.gmra.mxu0 %v4985_v28  ;;  %5235 = vmatmul.bf16.vlgmr.msra.gmra.mxu1 %v4985_v28  ;;  %v11317_v28 = vld [vmem:[#allocation23 + $0xc4] sm:$0xf] }
 0x555   : > { %6908 = vmatpush.bf16.msra.mxu0 %v10468_v37  ;;  %6921 = vmatpush.bf16.msra.mxu1 %v10724_v16  ;;  %v9828_v37 = vor.u32 %v11317_v28, %v9825_v13  ;;  %v10081_v16 = vld [vmem:[#allocation23 + $0x2e0] sm:$0xf0] }
 0x556   : > { %6882 = vmatpush.bf16.msrb.mxu3 %v9956_v48  ;;  %6895 = vmatpush.bf16.msra.mxu2 %v10212_v17  ;;  %v10084_v20 = vor.u32 %v11381_v35, %v10081_v16  ;;  %v10241_v48 = vld [vmem:[#allocation23 + $0x420] sm:$0xf0]  ;;  %v10471_v35 = vld [vmem:[#allocation23 + $0x5c8] sm:$0xf] }
 0x557   : > { %v10244_v17 = vor.u32 %v11421_v47, %v10241_v48  ;;  %v11482_v16 = vld [vmem:[#allocation23 + $0x5e4] sm:$0xf0] }
 0x558   : > { %v10695_v47 = vld [vmem:[#allocation23 + $0x788] sm:$0xf] }
 0x559   : > { %6909 = vmatpush.bf16.msra.mxu0 %v10436_v53  ;;  %6922 = vmatpush.bf16.msra.mxu1 %v10692_v34  ;;  %v9793_v53 = vld [vmem:[#allocation23 + $0xa0] sm:$0xf0] }
 0x55a   : > { %6883 = vmatpush.bf16.msrb.mxu3 %v9924_v60  ;;  %6896 = vmatpush.bf16.msra.mxu2 %v10180_v54  ;;  %v11373_v34 = vld [vmem:[#allocation23 + $0x284] sm:$0xf]  ;;  %v9796_v26 = vor.u32 %v11309_v27, %v9793_v53  ;;  %v5022_v60 = vperm.slane %v5018_v57, 2  ;;  %v10439_v53 = vld [vmem:[#allocation23 + $0x588] sm:$0xf] }
 0x55b   : > { %v10052_v46 = vor.u32 %v11373_v34, %v10049_v33  ;;  %v11293_v54 = vld [vmem:[#allocation23 + $0x4] sm:$0xf]  ;;  %v11474_v34 = vld [vmem:[#allocation23 + $0x5a4] sm:$0xf0] }
 0x55c   : > { %v9732_v61 = vor.u32 %v11293_v54, %v9729_v63  ;;  %v9959_v57 = vld [vmem:[#allocation23 + $0x1c8] sm:$0xf] }
 0x55d   : > { %6910 = vmatpush.bf16.msra.mxu0 %v10404_v18  ;;  %6923 = vmatpush.bf16.msra.mxu1 %v10660_v52  ;;  %v10500_v18 = vor.u32 %v11485_v49, %v10497_v50  ;;  %v11365_v52 = vld [vmem:[#allocation23 + $0x244] sm:$0xf]  ;;  %v11538_v50 = vld [vmem:[#allocation23 + $0x7a4] sm:$0xf0] }
 0x55e   : > { %6884 = vmatpush.bf16.msrb.mxu3 %v9892_v31  ;;  %6897 = vmatpush.bf16.msra.mxu2 %v10148_v32  ;;  %v10020_v58 = vor.u32 %v11365_v52, %v10017_v55  ;;  %v10215_v55 = vld [vmem:[#allocation23 + $0x3c8] sm:$0xf]  ;;  %v10696_v63 = vor.u32 %v11538_v50, %v10695_v47 }
 0x55f   : > { %v11386_v47 = vld [vmem:[#allocation23 + $0x2e4] sm:$0xf0] }
 0x560   : > { %v10279_v50 = vld [vmem:[#allocation23 + $0x448] sm:$0xf] }
 0x561   : > { %6911 = vmatpush.bf16.msra.mxu0 %v10372_v2  ;;  %6924 = vmatpush.bf16.msra.mxu1 %v10628_v3  ;;  %v9985_v2 = vld [vmem:[#allocation23 + $0x220] sm:$0xf0] }
 0x562   : > { %6885 = vmatpush.bf16.msrb.mxu3 %v9860_v22  ;;  %6898 = vmatpush.bf16.msra.mxu2 %v10116_v19  ;;  %v9988_v59 = vor.u32 %v11357_v1, %v9985_v2  ;;  %v11466_v1 = vld [vmem:[#allocation23 + $0x564] sm:$0xf0] }
 0x565   : > { %6912 = vmatpush.bf16.msra.mxu0 %v10340_v10  ;;  %6925 = vmatpush.bf16.msra.mxu1 %v10596_v39 }
 0x566   : > { %6886 = vmatpush.bf16.msrb.mxu3 %v9828_v37  ;;  %6899 = vmatpush.bf16.msra.mxu2 %v10084_v20 }
 0x569   : > { %6913 = vmatpush.bf16.msra.mxu0 %v10308_v29  ;;  %6926 = vmatpush.bf16.msra.mxu1 %v10564_v11 }
 0x56a   : > { %6887 = vmatpush.bf16.msrb.mxu3 %v9796_v26  ;;  %6900 = vmatpush.bf16.msra.mxu2 %v10052_v46  ;;  %v10472_v46 = vor.u32 %v11482_v16, %v10471_v35  ;;  %v11514_v35 = vld [vmem:[#allocation23 + $0x6e4] sm:$0xf0] }
 0x56b   : > { %v11330_v16 = vld [vmem:[#allocation23 + $0x124] sm:$0xf0] }
 0x56d   : > { %6914 = vmatpush.bf16.msra.mxu0 %v10276_v43  ;;  %6927 = vmatpush.bf16.msra.mxu1 %v10532_v45 }
 0x56e   : > { %6888 = vmatpush.bf16.msrb.mxu3 %v9764_v56  ;;  %6901 = vmatpush.bf16.msra.mxu2 %v10020_v58  ;;  %v11418_v56 = vld [vmem:[#allocation23 + $0x3e4] sm:$0xf0] }
 0x571   : > { %6915 = vmatpush.bf16.msra.mxu0 %v10244_v17  ;;  %6928 = vmatpush.bf16.msra.mxu1 %v10500_v18  ;;  %v10728_v17 = vor.u32 %v11546_v41, %v10727_v36 }
 0x572   : > { %6889 = vmatpush.bf16.msrb.mxu3 %v9732_v61  ;;  %6902 = vmatpush.bf16.msra.mxu2 %v9988_v59  ;;  %v10407_v61 = vld [vmem:[#allocation23 + $0x548] sm:$0xf]  ;;  %v9960_v59 = vor.u32 %v11354_v25, %v9959_v57 }
 0x573   : > { %v11434_v57 = vld [vmem:[#allocation23 + $0x464] sm:$0xf0] }
 0x5d1   : > { %v5223_v3 = vpop.f32.mrf.mxu0  ;;  %v5236_v4 = vpop.f32.mrf.mxu1 }
 0x5d2   : > { %v5224_v5 = vadd.f32 %v5223_v3, %v5022_v60  ;;  %v5237_v31 = vadd.f32 %v5236_v4, %v5023_v62  ;;  %v10440_v62 = vor.u32 %v11474_v34, %v10439_v53  ;;  %v10216_v3 = vor.u32 %v11418_v56, %v10215_v55  ;;  %v10663_v4 = vld [vmem:[#allocation23 + $0x748] sm:$0xf] }
 0x5d3   : > { %v10567_v53 = vld [vmem:[#allocation23 + $0x688] sm:$0xf] }
 0x5d4   : > { %v5242_v32 = vmin.f32 %v5224_v5, 0.0  ;;  %v5243_v42 = vmin.f32 %v5237_v31, 0.0  ;;  %vm5262_vm14 = vcmp.gt.f32.partialorder %v5224_v5, 0.0  ;;  %vm5263_vm15 = vcmp.gt.f32.partialorder %v5237_v31, 0.0  ;;  %v11506_v34 = vld [vmem:[#allocation23 + $0x6a4] sm:$0xf0] }
 0x5d5   : > { %v11498_v55 = vld [vmem:[#allocation23 + $0x664] sm:$0xf0] }
 0x5d6   : > { %v5248_v9 = vmul.f32 1.442695, %v5242_v32  ;;  %v5250_v8 = vmul.f32 1.442695, %v5243_v42  ;;  %v5197_v10 = vpop.f32.mrf.mxu3  ;;  %v5210_v38 = vpop.f32.mrf.mxu2  ;;  %v10183_v32 = vld [vmem:[#allocation23 + $0x388] sm:$0xf] }
 0x5d7   : > { %v5198_v39 = vadd.f32 %v5197_v10, %v5020_v6  ;;  %v5211_v12 = vadd.f32 %v5210_v38, %v5021_v7  ;;  %v11346_v7 = vld [vmem:[#allocation23 + $0x1a4] sm:$0xf0] }
 0x5d8   : > { %11762 = vpow2.f32 %v5248_v9  ;;  %v11410_v42 = vld [vmem:[#allocation23 + $0x3a4] sm:$0xf0]  ;;  %v10408_v9 = vor.u32 %v11466_v1, %v10407_v61 }
 0x5d9   : > { %11764 = vpow2.f32 %v5250_v8  ;;  %v5240_v0 = vmin.f32 %v5198_v39, 0.0  ;;  %v5241_v14 = vmin.f32 %v5211_v12, 0.0  ;;  %v5225_v22 = vpop.f32.mrf.mxu0  ;;  %v5238_v15 = vpop.f32.mrf.mxu1  ;;  %vm5260_vm3 = vcmp.gt.f32.partialorder %v5198_v39, 0.0  ;;  %v10375_v10 = vld [vmem:[#allocation23 + $0x508] sm:$0xf] }
 0x5da   : > { %vm5261_vm4 = vcmp.gt.f32.partialorder %v5211_v12, 0.0  ;;  %v11458_v38 = vld [vmem:[#allocation23 + $0x524] sm:$0xf0] }
 0x5db   : > { %v5244_v19 = vmul.f32 1.442695, %v5240_v0  ;;  %v5246_v21 = vmul.f32 1.442695, %v5241_v14  ;;  %v10631_v0 = vld [vmem:[#allocation23 + $0x708] sm:$0xf] }
 0x5dc   : > { %v11522_v14 = vld [vmem:[#allocation23 + $0x724] sm:$0xf0] }
 0x5dd   : > { %11766 = vpow2.f32 %v5244_v19  ;;  %v9895_v22 = vld [vmem:[#allocation23 + $0x148] sm:$0xf] }
 0x5de   : > { %v11763_v23 = vpop.eup %11762  ;;  %11768 = vpow2.f32 %v5246_v21  ;;  %v5199_v24 = vpop.f32.mrf.mxu3  ;;  %v11338_v15 = vld [vmem:[#allocation23 + $0x164] sm:$0xf0] }
 0x5df   : > { %v5212_v29 = vpop.f32.mrf.mxu2  ;;  %v11765_v30 = vpop.eup %11764  ;;  %v9723_v11 = vadd.f32 -1.0, %v11763_v23  ;;  %v10151_v19 = vld [vmem:[#allocation23 + $0x348] sm:$0xf]  ;;  %v10376_v23 = vor.u32 %v11458_v38, %v10375_v10  ;;  %v10632_v24 = vor.u32 %v11522_v14, %v10631_v0  ;;  %v11470_v14 = vld [vmem:[#allocation23 + $0x58c] sm:$0xf] }
 0x5e0   : > { %v9724_v28 = vadd.f32 -1.0, %v11765_v30  ;;  %v11402_v21 = vld [vmem:[#allocation23 + $0x364] sm:$0xf0] }
 0x5e1   : > { %v5258_v13 = vmul.f32 1.6732632, %v9723_v11  ;;  %v10343_v29 = vld [vmem:[#allocation23 + $0x4c8] sm:$0xf]  ;;  %v9896_v11 = vor.u32 %v11338_v15, %v9895_v22 }
 0x5e2   : > { %v5259_v37 = vmul.f32 1.6732632, %v9724_v28  ;;  %v11450_v30 = vld [vmem:[#allocation23 + $0x4e4] sm:$0xf0]  ;;  %v10152_v28 = vor.u32 %v11402_v21, %v10151_v19  ;;  %v10441_v19 = vld [vmem:[#allocation23 + $0x5a8] sm:$0xf0] }
 0x5e3   : > { %v11767_v20 = vpop.eup %11766  ;;  %v5266_v40 = vsel %vm5262_vm14, %v5224_v5, %v5258_v13  ;;  %v11530_v5 = vld [vmem:[#allocation23 + $0x764] sm:$0xf0]  ;;  %v10344_v36 = vor.u32 %v11450_v30, %v10343_v29  ;;  %v11534_v21 = vld [vmem:[#allocation23 + $0x78c] sm:$0xf]  ;;  %vm7343_vm14 = vcmask 1044484  }
 0x5e4   : > { %v11769_v43 = vpop.eup %11768  ;;  %v5270_v44 = vmul.f32 1.050701, %v5266_v40  ;;  %v5267_v45 = vsel %vm5263_vm15, %v5237_v31, %v5259_v37  ;;  %v9721_v27 = vadd.f32 -1.0, %v11767_v20  ;;  %v9927_v31 = vld [vmem:[#allocation23 + $0x188] sm:$0xf]  ;;  %v10664_v8 = vor.u32 %v11530_v5, %v10663_v4 }
 0x5e5   : > { %v5271_v26 = vmul.f32 1.050701, %v5267_v45  ;;  %v9722_v33 = vadd.f32 -1.0, %v11769_v43  ;;  %v10599_v13 = vld [vmem:[#allocation23 + $0x6c8] sm:$0xf]  ;;  %vm7347_vm15 = vcmask 1046534  }
 0x5e6   : > { %v13253_v48 = vpack.c.bf16 %v5270_v44, %v5270_v44  ;;  %v5256_v49 = vmul.f32 1.6732632, %v9721_v27  ;;  %v9863_v37 = vld [vmem:[#allocation23 + $0x108] sm:$0xf]  ;;  %v10600_v41 = vor.u32 %v11514_v35, %v10599_v13  ;;  %v11350_v13 = vld [vmem:[#allocation23 + $0x1cc] sm:$0xf] }
 0x5e7   : > { %v13255_v18 = vpack.c.bf16 %v5271_v26, %v5271_v26  ;;  %v5257_v51 = vmul.f32 1.6732632, %v9722_v33  ;;  %v10119_v20 = vld [vmem:[#allocation23 + $0x308] sm:$0xf]  ;;  %v9864_v45 = vor.u32 %v11330_v16, %v9863_v37  ;;  %v9961_v35 = vld [vmem:[#allocation23 + $0x1e8] sm:$0xf0]  ;;  %v10444_v37 = vor.u32 %v11470_v14, %v10441_v19 }
 0x5e8   : > { %v5264_v52 = vsel %vm5260_vm3, %v5198_v39, %v5256_v49  ;;  %6864 = vmatmul.bf16.vlgmr.msrb.gmra.mxu0 %v13253_v48  ;;  %v9928_v39 = vor.u32 %v11346_v7, %v9927_v31  ;;  %v11394_v40 = vld [vmem:[#allocation23 + $0x324] sm:$0xf0]  ;;  %v11478_v31 = vld [vmem:[#allocation23 + $0x5cc] sm:$0xf] }
 0x5e9   : > { %v5268_v58 = vmul.f32 1.050701, %v5264_v52  ;;  %v5265_v60 = vsel %vm5261_vm4, %v5211_v12, %v5257_v51  ;;  %6877 = vmatmul.bf16.vlgmr.msrb.gmra.mxu1 %v13255_v18  ;;  %6960 = vmatpush.bf16.msrb.mxu0 %v10472_v46  ;;  %v10184_v12 = vor.u32 %v11410_v42, %v10183_v32  ;;  %v10311_v43 = vld [vmem:[#allocation23 + $0x488] sm:$0xf]  ;;  %v10120_v27 = vor.u32 %v11394_v40, %v10119_v20  ;;  %v10473_v7 = vld [vmem:[#allocation23 + $0x5e8] sm:$0xf0] }
 0x5ea   : > { %v5269_v54 = vmul.f32 1.050701, %v5265_v60  ;;  %6973 = vmatpush.bf16.msrb.mxu1 %v10728_v17  ;;  %v11442_v44 = vld [vmem:[#allocation23 + $0x4a4] sm:$0xf0]  ;;  %v10568_v17 = vor.u32 %v11506_v34, %v10567_v53  ;;  %v11542_v32 = vld [vmem:[#allocation23 + $0x7cc] sm:$0xf]  ;;  %v10476_v0 = vor.u32 %v11478_v31, %v10473_v7 }
 0x5eb   : > { %v13259_v2 = vpack.c.bf16 %v5268_v58, %v5268_v58  ;;  %v9831_v26 = vld [vmem:[#allocation23 + $0xc8] sm:$0xf]  ;;  %v10312_v49 = vor.u32 %v11442_v44, %v10311_v43  ;;  %v10729_v42 = vld [vmem:[#allocation23 + $0x7e8] sm:$0xf0] }
 0x5ec   : > { %v13261_v6 = vpack.c.bf16 %v5269_v54, %v5269_v54  ;;  %v11322_v33 = vld [vmem:[#allocation23 + $0xe4] sm:$0xf0]  ;;  %v10280_v54 = vor.u32 %v11434_v57, %v10279_v50  ;;  %v10732_v22 = vor.u32 %v11542_v32, %v10729_v42  ;;  %v11414_v16 = vld [vmem:[#allocation23 + $0x3cc] sm:$0xf] }
 0x5ed   : > { %6961 = vmatpush.bf16.msrb.mxu0 %v10440_v62  ;;  %6838 = vmatmul.bf16.vlgmr.msra.gmra.mxu3 %v13259_v2  ;;  %v10087_v46 = vld [vmem:[#allocation23 + $0x2c8] sm:$0xf]  ;;  %v9832_v51 = vor.u32 %v11322_v33, %v9831_v26  ;;  %v10217_v20 = vld [vmem:[#allocation23 + $0x3e8] sm:$0xf0] }
 0x5ee   : > { %6974 = vmatpush.bf16.msrb.mxu1 %v10696_v63  ;;  %6851 = vmatmul.bf16.vlgmr.msrb.gmra.mxu2 %v13261_v6  ;;  %v10088_v25 = vor.u32 %v11386_v47, %v10087_v46  ;;  %v10535_v52 = vld [vmem:[#allocation23 + $0x648] sm:$0xf]  ;;  %v10409_v43 = vld [vmem:[#allocation23 + $0x568] sm:$0xf0]  ;;  %v10220_v34 = vor.u32 %v11414_v16, %v10217_v20 }
 0x5ef   : > { %6934 = vmatpush.bf16.msra.mxu3 %v9960_v59  ;;  %6947 = vmatpush.bf16.msrb.mxu2 %v10216_v3  ;;  %v9799_v56 = vld [vmem:[#allocation23 + $0x88] sm:$0xf]  ;;  %v10536_v61 = vor.u32 %v11498_v55, %v10535_v52  ;;  %v10665_v53 = vld [vmem:[#allocation23 + $0x768] sm:$0xf0] }
 0x5f0   : > { %v11314_v58 = vld [vmem:[#allocation23 + $0xa4] sm:$0xf0]  ;;  %v11342_v26 = vld [vmem:[#allocation23 + $0x18c] sm:$0xf] }
 0x5f1   : > { %6962 = vmatpush.bf16.msrb.mxu0 %v10408_v9  ;;  %v10055_v60 = vld [vmem:[#allocation23 + $0x288] sm:$0xf]  ;;  %v9800_v4 = vor.u32 %v11314_v58, %v9799_v56  ;;  %v9929_v33 = vld [vmem:[#allocation23 + $0x1a8] sm:$0xf0] }
 0x5f2   : > { %6975 = vmatpush.bf16.msrb.mxu1 %v10664_v8  ;;  %v11378_v62 = vld [vmem:[#allocation23 + $0x2a4] sm:$0xf0]  ;;  %v11406_v47 = vld [vmem:[#allocation23 + $0x38c] sm:$0xf] }
 0x5f3   : > { %6935 = vmatpush.bf16.msra.mxu3 %v9928_v39  ;;  %6948 = vmatpush.bf16.msrb.mxu2 %v10184_v12  ;;  %v10247_v63 = vld [vmem:[#allocation23 + $0x408] sm:$0xf]  ;;  %v10056_v5 = vor.u32 %v11378_v62, %v10055_v60  ;;  %v11454_v50 = vld [vmem:[#allocation23 + $0x50c] sm:$0xf] }
 0x5f4   : > { %v11426_v1 = vld [vmem:[#allocation23 + $0x424] sm:$0xf0]  ;;  %v10377_v57 = vld [vmem:[#allocation23 + $0x528] sm:$0xf0] }
 0x5f5   : > { %6963 = vmatpush.bf16.msrb.mxu0 %v10376_v23  ;;  %v10503_v59 = vld [vmem:[#allocation23 + $0x608] sm:$0xf]  ;;  %v10248_v10 = vor.u32 %v11426_v1, %v10247_v63  ;;  %v10697_v23 = vld [vmem:[#allocation23 + $0x7a8] sm:$0xf0]  ;;  %v10380_v60 = vor.u32 %v11454_v50, %v10377_v57 }
 0x5f6   : > { %6976 = vmatpush.bf16.msrb.mxu1 %v10632_v24  ;;  %v11490_v3 = vld [vmem:[#allocation23 + $0x624] sm:$0xf0]  ;;  %v10700_v40 = vor.u32 %v11534_v21, %v10697_v23  ;;  %v10633_v52 = vld [vmem:[#allocation23 + $0x728] sm:$0xf0] }
 0x5f7   : > { %6936 = vmatpush.bf16.msra.mxu3 %v9896_v11  ;;  %6949 = vmatpush.bf16.msrb.mxu2 %v10152_v28  ;;  %v9767_v9 = vld [vmem:[#allocation23 + $0x48] sm:$0xf]  ;;  %v10504_v12 = vor.u32 %v11490_v3, %v10503_v59  ;;  %v11334_v56 = vld [vmem:[#allocation23 + $0x14c] sm:$0xf] }
 0x5f8   : > { %6916 = vmatmul.bf16.vlgmr.msra.gmra.mxu0 %v13253_v48  ;;  %v11306_v8 = vld [vmem:[#allocation23 + $0x64] sm:$0xf0]  ;;  %v9897_v58 = vld [vmem:[#allocation23 + $0x168] sm:$0xf0] }
 0x5f9   : > { %6929 = vmatmul.bf16.vlgmr.msra.gmra.mxu1 %v13255_v18  ;;  %6964 = vmatpush.bf16.msrb.mxu0 %v10344_v36  ;;  %v10023_v38 = vld [vmem:[#allocation23 + $0x248] sm:$0xf]  ;;  %v9768_v15 = vor.u32 %v11306_v8, %v9767_v9  ;;  %v11398_v62 = vld [vmem:[#allocation23 + $0x34c] sm:$0xf]  ;;  %v9900_v59 = vor.u32 %v11334_v56, %v9897_v58 }
 0x5fa   : > { %6977 = vmatpush.bf16.msrb.mxu1 %v10600_v41  ;;  %v11370_v39 = vld [vmem:[#allocation23 + $0x264] sm:$0xf0]  ;;  %v11462_v41 = vld [vmem:[#allocation23 + $0x54c] sm:$0xf] }
 0x5fb   : > { %6937 = vmatpush.bf16.msra.mxu3 %v9864_v45  ;;  %6950 = vmatpush.bf16.msrb.mxu2 %v10120_v27  ;;  %v10024_v24 = vor.u32 %v11370_v39, %v10023_v38  ;;  %v9735_v29 = vld [vmem:[#allocation23 + $0x8] sm:$0xf]  ;;  %v9964_v45 = vor.u32 %v11350_v13, %v9961_v35  ;;  %v11526_v27 = vld [vmem:[#allocation23 + $0x74c] sm:$0xf]  ;;  %v10412_v46 = vor.u32 %v11462_v41, %v10409_v43 }
 0x5fc   : > { %v11298_v30 = vld [vmem:[#allocation23 + $0x24] sm:$0xf0]  ;;  %v10345_v1 = vld [vmem:[#allocation23 + $0x4e8] sm:$0xf0] }
 0x5fd   : > { %6965 = vmatpush.bf16.msrb.mxu0 %v10312_v49  ;;  %6890 = vmatmul.bf16.vlgmr.msrb.gmra.mxu3 %v13259_v2  ;;  %v9991_v11 = vld [vmem:[#allocation23 + $0x208] sm:$0xf]  ;;  %v9736_v36 = vor.u32 %v11298_v30, %v9735_v29  ;;  %v10185_v49 = vld [vmem:[#allocation23 + $0x3a8] sm:$0xf0] }
 0x5fe   : > { %6978 = vmatpush.bf16.msrb.mxu1 %v10568_v17  ;;  %6903 = vmatmul.bf16.vlgmr.msra.gmra.mxu2 %v13261_v6  ;;  %v11362_v28 = vld [vmem:[#allocation23 + $0x224] sm:$0xf0]  ;;  %v10668_v17 = vor.u32 %v11526_v27, %v10665_v53  ;;  %v10188_v55 = vor.u32 %v11406_v47, %v10185_v49  ;;  %v11510_v3 = vld [vmem:[#allocation23 + $0x6cc] sm:$0xf]  ;;  %v11547_v47 = vld [vmem:[#allocation23 + $0x7ec] sm:$0xf0] }
 0x5ff   : > { %6938 = vmatpush.bf16.msra.mxu3 %v9832_v51  ;;  %6951 = vmatpush.bf16.msrb.mxu2 %v10088_v25  ;;  %v9992_v44 = vor.u32 %v11362_v28, %v9991_v11  ;;  %v9932_v51 = vor.u32 %v11342_v26, %v9929_v33  ;;  %v11518_v25 = vld [vmem:[#allocation23 + $0x70c] sm:$0xf]  ;;  %v11483_v26 = vld [vmem:[#allocation23 + $0x5ec] sm:$0xf0] }
 0x600   : > { %v10636_v63 = vor.u32 %v11518_v25, %v10633_v52  ;;  %v11326_v31 = vld [vmem:[#allocation23 + $0x10c] sm:$0xf]  ;;  %v10735_v33 = vld [vmem:[#allocation23 + $0x7d0] sm:$0xf] }
 0x601   : > { %6966 = vmatpush.bf16.msrb.mxu0 %v10280_v54  ;;  %v10153_v54 = vld [vmem:[#allocation23 + $0x368] sm:$0xf0]  ;;  %v10736_v56 = vor.u32 %v11547_v47, %v10735_v33  ;;  %v11331_v33 = vld [vmem:[#allocation23 + $0x12c] sm:$0xf0] }
 0x602   : > { %6979 = vmatpush.bf16.msrb.mxu1 %v10536_v61  ;;  %v11446_v61 = vld [vmem:[#allocation23 + $0x4cc] sm:$0xf]  ;;  %v10127_v47 = vld [vmem:[#allocation23 + $0x310] sm:$0xf] }
 0x603   : > { %6939 = vmatpush.bf16.msra.mxu3 %v9800_v4  ;;  %6952 = vmatpush.bf16.msrb.mxu2 %v10056_v5  ;;  %v10601_v4 = vld [vmem:[#allocation23 + $0x6e8] sm:$0xf0]  ;;  %v10156_v5 = vor.u32 %v11398_v62, %v10153_v54  ;;  %v10348_v32 = vor.u32 %v11446_v61, %v10345_v1  ;;  %v10703_v62 = vld [vmem:[#allocation23 + $0x790] sm:$0xf] }
 0x604   : > { %v9865_v7 = vld [vmem:[#allocation23 + $0x128] sm:$0xf0]  ;;  %v10604_v8 = vor.u32 %v11510_v3, %v10601_v4  ;;  %v11539_v54 = vld [vmem:[#allocation23 + $0x7ac] sm:$0xf0] }
 0x605   : > { %6967 = vmatpush.bf16.msrb.mxu0 %v10248_v10  ;;  %v11390_v42 = vld [vmem:[#allocation23 + $0x30c] sm:$0xf]  ;;  %v9868_v39 = vor.u32 %v11326_v31, %v9865_v7  ;;  %v9967_v4 = vld [vmem:[#allocation23 + $0x1d0] sm:$0xf] }
 0x606   : > { %6980 = vmatpush.bf16.msrb.mxu1 %v10504_v12  ;;  %v10121_v9 = vld [vmem:[#allocation23 + $0x328] sm:$0xf0]  ;;  %v10223_v7 = vld [vmem:[#allocation23 + $0x3d0] sm:$0xf] }
 0x607   : > { %6940 = vmatpush.bf16.msra.mxu3 %v9768_v15  ;;  %6953 = vmatpush.bf16.msrb.mxu2 %v10024_v24  ;;  %v11438_v10 = vld [vmem:[#allocation23 + $0x48c] sm:$0xf]  ;;  %v10124_v14 = vor.u32 %v11390_v42, %v10121_v9  ;;  %v10704_v42 = vor.u32 %v11539_v54, %v10703_v62  ;;  %v10095_v62 = vld [vmem:[#allocation23 + $0x2d0] sm:$0xf] }
 0x608   : > { %6968 = vmatmul.bf16.vlgmr.msrb.gmra.mxu0 %v13253_v48  ;;  %v10313_v38 = vld [vmem:[#allocation23 + $0x4a8] sm:$0xf0]  ;;  %v11387_v54 = vld [vmem:[#allocation23 + $0x2ec] sm:$0xf0] }
 0x609   : > { %7012 = vmatpush.bf16.msra.mxu0 %v10476_v0  ;;  %6981 = vmatmul.bf16.vlgmr.msrb.gmra.mxu1 %v13255_v18  ;;  %v11502_v12 = vld [vmem:[#allocation23 + $0x68c] sm:$0xf]  ;;  %v10316_v19 = vor.u32 %v11438_v10, %v10313_v38  ;;  %v11467_v10 = vld [vmem:[#allocation23 + $0x56c] sm:$0xf0] }
 0x60a   : > { %7025 = vmatpush.bf16.msra.mxu1 %v10732_v22  ;;  %v10569_v0 = vld [vmem:[#allocation23 + $0x6a8] sm:$0xf0] }
 0x60b   : > { %6941 = vmatpush.bf16.msra.mxu3 %v9736_v36  ;;  %6954 = vmatpush.bf16.msrb.mxu2 %v9992_v44  ;;  %v11318_v22 = vld [vmem:[#allocation23 + $0xcc] sm:$0xf]  ;;  %v10572_v24 = vor.u32 %v11502_v12, %v10569_v0  ;;  %v10671_v12 = vld [vmem:[#allocation23 + $0x750] sm:$0xf] }
 0x60c   : > { %v9833_v15 = vld [vmem:[#allocation23 + $0xe8] sm:$0xf0]  ;;  %v11531_v0 = vld [vmem:[#allocation23 + $0x76c] sm:$0xf0] }
 0x60d   : > { %7013 = vmatpush.bf16.msra.mxu0 %v10444_v37  ;;  %v11382_v21 = vld [vmem:[#allocation23 + $0x2cc] sm:$0xf]  ;;  %v9836_v11 = vor.u32 %v11318_v22, %v9833_v15  ;;  %v9935_v22 = vld [vmem:[#allocation23 + $0x190] sm:$0xf] }
 0x60e   : > { %7026 = vmatpush.bf16.msra.mxu1 %v10700_v40  ;;  %6942 = vmatmul.bf16.vlgmr.msra.gmra.mxu3 %v13259_v2  ;;  %v10089_v23 = vld [vmem:[#allocation23 + $0x2e8] sm:$0xf0]  ;;  %v11347_v15 = vld [vmem:[#allocation23 + $0x1ac] sm:$0xf0] }
 0x60f   : > { %6986 = vmatpush.bf16.msrb.mxu3 %v9964_v45  ;;  %6999 = vmatpush.bf16.msra.mxu2 %v10220_v34  ;;  %v11430_v29 = vld [vmem:[#allocation23 + $0x44c] sm:$0xf]  ;;  %v10092_v35 = vor.u32 %v11382_v21, %v10089_v23  ;;  %v10479_v34 = vld [vmem:[#allocation23 + $0x5d0] sm:$0xf] }
 0x610   : > { %6955 = vmatmul.bf16.vlgmr.msrb.gmra.mxu2 %v13261_v6  ;;  %v10281_v30 = vld [vmem:[#allocation23 + $0x468] sm:$0xf0]  ;;  %v10480_v52 = vor.u32 %v11483_v26, %v10479_v34  ;;  %v10191_v21 = vld [vmem:[#allocation23 + $0x390] sm:$0xf] }
 0x611   : > { %7014 = vmatpush.bf16.msra.mxu0 %v10412_v46  ;;  %v11494_v28 = vld [vmem:[#allocation23 + $0x64c] sm:$0xf]  ;;  %v10284_v20 = vor.u32 %v11430_v29, %v10281_v30  ;;  %v11411_v23 = vld [vmem:[#allocation23 + $0x3ac] sm:$0xf0] }
 0x612   : > { %7027 = vmatpush.bf16.msra.mxu1 %v10668_v17  ;;  %v10537_v13 = vld [vmem:[#allocation23 + $0x668] sm:$0xf0]  ;;  %v10383_v29 = vld [vmem:[#allocation23 + $0x510] sm:$0xf] }
 0x613   : > { %6987 = vmatpush.bf16.msrb.mxu3 %v9932_v51  ;;  %7000 = vmatpush.bf16.msra.mxu2 %v10188_v55  ;;  %v11310_v37 = vld [vmem:[#allocation23 + $0x8c] sm:$0xf]  ;;  %v10540_v43 = vor.u32 %v11494_v28, %v10537_v13  ;;  %v10447_v55 = vld [vmem:[#allocation23 + $0x590] sm:$0xf] }
 0x614   : > { %v9801_v16 = vld [vmem:[#allocation23 + $0xa8] sm:$0xf0]  ;;  %v11459_v30 = vld [vmem:[#allocation23 + $0x52c] sm:$0xf0] }
 0x615   : > { %7015 = vmatpush.bf16.msra.mxu0 %v10380_v60  ;;  %v11374_v40 = vld [vmem:[#allocation23 + $0x28c] sm:$0xf]  ;;  %v9804_v53 = vor.u32 %v11310_v37, %v9801_v16  ;;  %v11475_v60 = vld [vmem:[#allocation23 + $0x5ac] sm:$0xf0] }
 0x616   : > { %7028 = vmatpush.bf16.msra.mxu1 %v10636_v63  ;;  %v10057_v36 = vld [vmem:[#allocation23 + $0x2a8] sm:$0xf0]  ;;  %v10448_v31 = vor.u32 %v11475_v60, %v10447_v55  ;;  %v10639_v28 = vld [vmem:[#allocation23 + $0x710] sm:$0xf] }
 0x617   : > { %6988 = vmatpush.bf16.msrb.mxu3 %v9900_v59  ;;  %7001 = vmatpush.bf16.msra.mxu2 %v10156_v5  ;;  %v11422_v41 = vld [vmem:[#allocation23 + $0x40c] sm:$0xf]  ;;  %v10060_v46 = vor.u32 %v11374_v40, %v10057_v36  ;;  %v11355_v5 = vld [vmem:[#allocation23 + $0x1ec] sm:$0xf0] }
 0x618   : > { %v10249_v44 = vld [vmem:[#allocation23 + $0x428] sm:$0xf0]  ;;  %v11523_v13 = vld [vmem:[#allocation23 + $0x72c] sm:$0xf0] }
 0x619   : > { %7016 = vmatpush.bf16.msra.mxu0 %v10348_v32  ;;  %v11486_v45 = vld [vmem:[#allocation23 + $0x60c] sm:$0xf]  ;;  %v10252_v50 = vor.u32 %v11422_v41, %v10249_v44  ;;  %v11419_v32 = vld [vmem:[#allocation23 + $0x3ec] sm:$0xf0]  ;;  %v10640_v41 = vor.u32 %v11523_v13, %v10639_v28 }
 0x61a   : > { %7029 = vmatpush.bf16.msra.mxu1 %v10604_v8  ;;  %v10505_v27 = vld [vmem:[#allocation23 + $0x628] sm:$0xf0]  ;;  %v10415_v8 = vld [vmem:[#allocation23 + $0x550] sm:$0xf] }
 0x61b   : > { %6989 = vmatpush.bf16.msrb.mxu3 %v9868_v39  ;;  %7002 = vmatpush.bf16.msra.mxu2 %v10124_v14  ;;  %v11302_v49 = vld [vmem:[#allocation23 + $0x4c] sm:$0xf]  ;;  %v10508_v25 = vor.u32 %v11486_v45, %v10505_v27  ;;  %v9968_v39 = vor.u32 %v11355_v5, %v9967_v4  ;;  %v10224_v14 = vor.u32 %v11419_v32, %v10223_v7  ;;  %v9903_v37 = vld [vmem:[#allocation23 + $0x150] sm:$0xf] }
 0x61c   : > { %v9769_v17 = vld [vmem:[#allocation23 + $0x68] sm:$0xf0]  ;;  %v11339_v16 = vld [vmem:[#allocation23 + $0x16c] sm:$0xf0]  ;;  %v10096_v5 = vor.u32 %v11387_v54, %v10095_v62  ;;  %v11407_v62 = vld [vmem:[#allocation23 + $0x394] sm:$0xf] }
 0x61d   : > { %7017 = vmatpush.bf16.msra.mxu0 %v10316_v19  ;;  %v11366_v57 = vld [vmem:[#allocation23 + $0x24c] sm:$0xf]  ;;  %v9772_v58 = vor.u32 %v11302_v49, %v9769_v17  ;;  %v10416_v19 = vor.u32 %v11467_v10, %v10415_v8  ;;  %v10159_v40 = vld [vmem:[#allocation23 + $0x350] sm:$0xf]  ;;  %v9904_v45 = vor.u32 %v11339_v16, %v9903_v37  ;;  %v10193_v54 = vld [vmem:[#allocation23 + $0x3b0] sm:$0xf0] }
 0x61e   : > { %7030 = vmatpush.bf16.msra.mxu1 %v10572_v24  ;;  %v10025_v51 = vld [vmem:[#allocation23 + $0x268] sm:$0xf0]  ;;  %v10672_v24 = vor.u32 %v11531_v0, %v10671_v12  ;;  %v11403_v36 = vld [vmem:[#allocation23 + $0x36c] sm:$0xf0] }
 0x61f   : > { %6990 = vmatpush.bf16.msrb.mxu3 %v9836_v11  ;;  %7003 = vmatpush.bf16.msra.mxu2 %v10092_v35  ;;  %v10028_v63 = vor.u32 %v11366_v57, %v10025_v51  ;;  %v11294_v61 = vld [vmem:[#allocation23 + $0xc] sm:$0xf]  ;;  %v9936_v11 = vor.u32 %v11347_v15, %v9935_v22  ;;  %v10192_v35 = vor.u32 %v11411_v23, %v10191_v21  ;;  %v11451_v44 = vld [vmem:[#allocation23 + $0x4ec] sm:$0xf0]  ;;  %v10481_v22 = vld [vmem:[#allocation23 + $0x5f0] sm:$0xf0] }
 0x620   : > { %v9737_v1 = vld [vmem:[#allocation23 + $0x28] sm:$0xf0]  ;;  %v10607_v27 = vld [vmem:[#allocation23 + $0x6d0] sm:$0xf]  ;;  %v10160_v34 = vor.u32 %v11403_v36, %v10159_v40  ;;  %v11543_v15 = vld [vmem:[#allocation23 + $0x7d4] sm:$0xf] }
 0x621   : > { %7018 = vmatpush.bf16.msra.mxu0 %v10284_v20  ;;  %v11358_v59 = vld [vmem:[#allocation23 + $0x20c] sm:$0xf]  ;;  %v9740_v9 = vor.u32 %v11294_v61, %v9737_v1  ;;  %v10384_v20 = vor.u32 %v11459_v30, %v10383_v29  ;;  %v9871_v26 = vld [vmem:[#allocation23 + $0x110] sm:$0xf]  ;;  %v10737_v21 = vld [vmem:[#allocation23 + $0x7f0] sm:$0xf0] }
 0x622   : > { %7031 = vmatpush.bf16.msra.mxu1 %v10540_v43  ;;  %v9993_v3 = vld [vmem:[#allocation23 + $0x228] sm:$0xf0]  ;;  %v10351_v43 = vld [vmem:[#allocation23 + $0x4d0] sm:$0xf]  ;;  %v9872_v51 = vor.u32 %v11331_v33, %v9871_v26  ;;  %v10740_v37 = vor.u32 %v11543_v15, %v10737_v21  ;;  %v11535_v40 = vld [vmem:[#allocation23 + $0x794] sm:$0xf] }
 0x623   : > { %6991 = vmatpush.bf16.msrb.mxu3 %v9804_v53  ;;  %7004 = vmatpush.bf16.msra.mxu2 %v10060_v46  ;;  %v9996_v38 = vor.u32 %v11358_v59, %v9993_v3  ;;  %v11515_v53 = vld [vmem:[#allocation23 + $0x6ec] sm:$0xf0]  ;;  %v10352_v46 = vor.u32 %v11451_v44, %v10351_v43  ;;  %v10705_v36 = vld [vmem:[#allocation23 + $0x7b0] sm:$0xf0] }
 0x624   : > { %v11395_v49 = vld [vmem:[#allocation23 + $0x32c] sm:$0xf0]  ;;  %v10608_v17 = vor.u32 %v11515_v53, %v10607_v27  ;;  %v11351_v53 = vld [vmem:[#allocation23 + $0x1d4] sm:$0xf] }
 0x625   : > { %7019 = vmatpush.bf16.msra.mxu0 %v10252_v50  ;;  %v10319_v50 = vld [vmem:[#allocation23 + $0x490] sm:$0xf]  ;;  %v10128_v55 = vor.u32 %v11395_v49, %v10127_v47  ;;  %v11415_v33 = vld [vmem:[#allocation23 + $0x3d4] sm:$0xf]  ;;  %v10708_v47 = vor.u32 %v11535_v40, %v10705_v36 }
 0x626   : > { %7032 = vmatpush.bf16.msra.mxu1 %v10508_v25  ;;  %v11443_v57 = vld [vmem:[#allocation23 + $0x4ac] sm:$0xf0]  ;;  %v9873_v15 = vld [vmem:[#allocation23 + $0x130] sm:$0xf0] }
 0x627   : > { %6992 = vmatpush.bf16.msrb.mxu3 %v9772_v58  ;;  %7005 = vmatpush.bf16.msra.mxu2 %v10028_v63  ;;  %v10575_v25 = vld [vmem:[#allocation23 + $0x690] sm:$0xf]  ;;  %v10320_v60 = vor.u32 %v11443_v57, %v10319_v50  ;;  %v10417_v50 = vld [vmem:[#allocation23 + $0x570] sm:$0xf0] }
 0x628   : > { %7020 = vmatmul.bf16.vlgmr.msra.gmra.mxu0 %v13253_v48  ;;  %v11323_v58 = vld [vmem:[#allocation23 + $0xec] sm:$0xf0]  ;;  %v11391_v21 = vld [vmem:[#allocation23 + $0x314] sm:$0xf] }
 0x629   : > { %7064 = vmatpush.bf16.msrb.mxu0 %v10480_v52  ;;  %7033 = vmatmul.bf16.vlgmr.msra.gmra.mxu1 %v13255_v18  ;;  %v11507_v52 = vld [vmem:[#allocation23 + $0x6ac] sm:$0xf0]  ;;  %v11383_v40 = vld [vmem:[#allocation23 + $0x2d4] sm:$0xf] }
 0x62a   : > { %7077 = vmatpush.bf16.msrb.mxu1 %v10736_v56  ;;  %v9839_v56 = vld [vmem:[#allocation23 + $0xd0] sm:$0xf]  ;;  %v10576_v63 = vor.u32 %v11507_v52, %v10575_v25  ;;  %v11527_v25 = vld [vmem:[#allocation23 + $0x754] sm:$0xf] }
 0x62b   : > { %6993 = vmatpush.bf16.msrb.mxu3 %v9740_v9  ;;  %7006 = vmatpush.bf16.msra.mxu2 %v9996_v38  ;;  %v10287_v61 = vld [vmem:[#allocation23 + $0x450] sm:$0xf]  ;;  %v9840_v59 = vor.u32 %v11323_v58, %v9839_v56  ;;  %v10673_v52 = vld [vmem:[#allocation23 + $0x770] sm:$0xf0] }
 0x62c   : > { %v11435_v1 = vld [vmem:[#allocation23 + $0x46c] sm:$0xf0]  ;;  %v11343_v56 = vld [vmem:[#allocation23 + $0x194] sm:$0xf] }
 0x62d   : > { %7065 = vmatpush.bf16.msrb.mxu0 %v10448_v31  ;;  %v10543_v3 = vld [vmem:[#allocation23 + $0x650] sm:$0xf]  ;;  %v10288_v32 = vor.u32 %v11435_v1, %v10287_v61  ;;  %v9937_v58 = vld [vmem:[#allocation23 + $0x1b0] sm:$0xf0] }
 0x62e   : > { %7078 = vmatpush.bf16.msrb.mxu1 %v10704_v42  ;;  %6994 = vmatmul.bf16.vlgmr.msrb.gmra.mxu3 %v13259_v2  ;;  %v11499_v4 = vld [vmem:[#allocation23 + $0x66c] sm:$0xf0]  ;;  %v11455_v61 = vld [vmem:[#allocation23 + $0x514] sm:$0xf] }
 0x62f   : > { %7038 = vmatpush.bf16.msra.mxu3 %v9968_v39  ;;  %7051 = vmatpush.bf16.msrb.mxu2 %v10224_v14  ;;  %v9807_v31 = vld [vmem:[#allocation23 + $0x90] sm:$0xf]  ;;  %v10544_v10 = vor.u32 %v11499_v4, %v10543_v3  ;;  %v11479_v14 = vld [vmem:[#allocation23 + $0x5d4] sm:$0xf] }
 0x630   : > { %7007 = vmatmul.bf16.vlgmr.msra.gmra.mxu2 %v13261_v6  ;;  %v11315_v7 = vld [vmem:[#allocation23 + $0xac] sm:$0xf0]  ;;  %v10484_v13 = vor.u32 %v11479_v14, %v10481_v22  ;;  %v10385_v1 = vld [vmem:[#allocation23 + $0x530] sm:$0xf0] }
 0x631   : > { %7066 = vmatpush.bf16.msrb.mxu0 %v10416_v19  ;;  %v10063_v42 = vld [vmem:[#allocation23 + $0x290] sm:$0xf]  ;;  %v9808_v0 = vor.u32 %v11315_v7, %v9807_v31  ;;  %v11519_v3 = vld [vmem:[#allocation23 + $0x714] sm:$0xf] }
 0x632   : > { %7079 = vmatpush.bf16.msrb.mxu1 %v10672_v24  ;;  %v11379_v9 = vld [vmem:[#allocation23 + $0x2ac] sm:$0xf0]  ;;  %v10641_v4 = vld [vmem:[#allocation23 + $0x730] sm:$0xf0] }
 0x633   : > { %7039 = vmatpush.bf16.msra.mxu3 %v9936_v11  ;;  %7052 = vmatpush.bf16.msrb.mxu2 %v10192_v35  ;;  %v10255_v8 = vld [vmem:[#allocation23 + $0x410] sm:$0xf]  ;;  %v10064_v19 = vor.u32 %v11379_v9, %v10063_v42  ;;  %v11471_v35 = vld [vmem:[#allocation23 + $0x594] sm:$0xf] }
 0x634   : > { %v11427_v38 = vld [vmem:[#allocation23 + $0x42c] sm:$0xf0]  ;;  %v11335_v31 = vld [vmem:[#allocation23 + $0x154] sm:$0xf] }
 0x635   : > { %7067 = vmatpush.bf16.msrb.mxu0 %v10384_v20  ;;  %v10511_v39 = vld [vmem:[#allocation23 + $0x610] sm:$0xf]  ;;  %v10256_v29 = vor.u32 %v11427_v38, %v10255_v8  ;;  %v10449_v20 = vld [vmem:[#allocation23 + $0x5b0] sm:$0xf0]  ;;  %v10644_v8 = vor.u32 %v11519_v3, %v10641_v4 }
 0x636   : > { %7080 = vmatpush.bf16.msrb.mxu1 %v10640_v41  ;;  %v11491_v12 = vld [vmem:[#allocation23 + $0x62c] sm:$0xf0]  ;;  %v10452_v26 = vor.u32 %v11471_v35, %v10449_v20  ;;  %v9905_v7 = vld [vmem:[#allocation23 + $0x170] sm:$0xf0] }
 0x637   : > { %7040 = vmatpush.bf16.msra.mxu3 %v9904_v45  ;;  %7053 = vmatpush.bf16.msrb.mxu2 %v10160_v34  ;;  %v9775_v23 = vld [vmem:[#allocation23 + $0x50] sm:$0xf]  ;;  %v10512_v28 = vor.u32 %v11491_v12, %v10511_v39  ;;  %v9969_v34 = vld [vmem:[#allocation23 + $0x1f0] sm:$0xf0]  ;;  %v9908_v39 = vor.u32 %v11335_v31, %v9905_v7 }
 0x638   : > { %v11307_v24 = vld [vmem:[#allocation23 + $0x6c] sm:$0xf0]  ;;  %v11399_v42 = vld [vmem:[#allocation23 + $0x354] sm:$0xf] }
 0x639   : > { %7068 = vmatpush.bf16.msrb.mxu0 %v10352_v46  ;;  %v10031_v30 = vld [vmem:[#allocation23 + $0x250] sm:$0xf]  ;;  %v9776_v16 = vor.u32 %v11307_v24, %v9775_v23  ;;  %v10225_v46 = vld [vmem:[#allocation23 + $0x3f0] sm:$0xf0] }
 0x63a   : > { %7081 = vmatpush.bf16.msrb.mxu1 %v10608_v17  ;;  %v11371_v11 = vld [vmem:[#allocation23 + $0x26c] sm:$0xf0]  ;;  %v11463_v17 = vld [vmem:[#allocation23 + $0x554] sm:$0xf] }
 0x63b   : > { %7041 = vmatpush.bf16.msra.mxu3 %v9872_v51  ;;  %7054 = vmatpush.bf16.msrb.mxu2 %v10128_v55  ;;  %v10032_v41 = vor.u32 %v11371_v11, %v10031_v30  ;;  %v9743_v43 = vld [vmem:[#allocation23 + $0x10] sm:$0xf]  ;;  %v9972_v51 = vor.u32 %v11351_v53, %v9969_v34  ;;  %v10228_v55 = vor.u32 %v11415_v33, %v10225_v46  ;;  %v10161_v9 = vld [vmem:[#allocation23 + $0x370] sm:$0xf0] }
 0x63c   : > { %v11299_v44 = vld [vmem:[#allocation23 + $0x2c] sm:$0xf0]  ;;  %v10353_v38 = vld [vmem:[#allocation23 + $0x4f0] sm:$0xf0]  ;;  %v10164_v14 = vor.u32 %v11399_v42, %v10161_v9  ;;  %v10711_v42 = vld [vmem:[#allocation23 + $0x798] sm:$0xf] }
 0x63d   : > { %7069 = vmatpush.bf16.msrb.mxu0 %v10320_v60  ;;  %v9999_v45 = vld [vmem:[#allocation23 + $0x210] sm:$0xf]  ;;  %v9744_v49 = vor.u32 %v11299_v44, %v9743_v43  ;;  %v10420_v60 = vor.u32 %v11463_v17, %v10417_v50  ;;  %v11511_v12 = vld [vmem:[#allocation23 + $0x6d4] sm:$0xf]  ;;  %v11540_v9 = vld [vmem:[#allocation23 + $0x7b4] sm:$0xf0] }
 0x63e   : > { %7082 = vmatpush.bf16.msrb.mxu1 %v10576_v63  ;;  %v11363_v27 = vld [vmem:[#allocation23 + $0x22c] sm:$0xf0]  ;;  %v10676_v63 = vor.u32 %v11527_v25, %v10673_v52  ;;  %v11327_v22 = vld [vmem:[#allocation23 + $0x114] sm:$0xf] }
 0x63f   : > { %7042 = vmatpush.bf16.msra.mxu3 %v9840_v59  ;;  %7055 = vmatpush.bf16.msrb.mxu2 %v10096_v5  ;;  %v10000_v57 = vor.u32 %v11363_v27, %v9999_v45  ;;  %v9940_v59 = vor.u32 %v11343_v56, %v9937_v58  ;;  %v10196_v5 = vor.u32 %v11407_v62, %v10193_v54  ;;  %v10129_v23 = vld [vmem:[#allocation23 + $0x330] sm:$0xf0]  ;;  %v11484_v56 = vld [vmem:[#allocation23 + $0x5f4] sm:$0xf0] }
 0x640   : > { %v10321_v30 = vld [vmem:[#allocation23 + $0x4b0] sm:$0xf0]  ;;  %v9876_v11 = vor.u32 %v11327_v22, %v9873_v15  ;;  %v10132_v35 = vor.u32 %v11391_v21, %v10129_v23  ;;  %v10743_v58 = vld [vmem:[#allocation23 + $0x7d8] sm:$0xf]  ;;  %v10712_v21 = vor.u32 %v11540_v9, %v10711_v42 }
 0x641   : > { %7070 = vmatpush.bf16.msrb.mxu0 %v10288_v32  ;;  %v10388_v32 = vor.u32 %v11455_v61, %v10385_v1  ;;  %v10097_v36 = vld [vmem:[#allocation23 + $0x2f0] sm:$0xf0]  ;;  %v11548_v62 = vld [vmem:[#allocation23 + $0x7f4] sm:$0xf0] }
 0x642   : > { %7083 = vmatpush.bf16.msrb.mxu1 %v10544_v10  ;;  %v11447_v10 = vld [vmem:[#allocation23 + $0x4d4] sm:$0xf]  ;;  %v10100_v34 = vor.u32 %v11383_v40, %v10097_v36  ;;  %v10744_v31 = vor.u32 %v11548_v62, %v10743_v58  ;;  %v10231_v15 = vld [vmem:[#allocation23 + $0x3d8] sm:$0xf] }
 0x643   : > { %7043 = vmatpush.bf16.msra.mxu3 %v9808_v0  ;;  %7056 = vmatpush.bf16.msrb.mxu2 %v10064_v19  ;;  %v10609_v0 = vld [vmem:[#allocation23 + $0x6f0] sm:$0xf0]  ;;  %v10356_v19 = vor.u32 %v11447_v10, %v10353_v38  ;;  %v10199_v40 = vld [vmem:[#allocation23 + $0x398] sm:$0xf] }
 0x644   : > { %v10612_v24 = vor.u32 %v11511_v12, %v10609_v0  ;;  %v11431_v43 = vld [vmem:[#allocation23 + $0x454] sm:$0xf]  ;;  %v9975_v0 = vld [vmem:[#allocation23 + $0x1d8] sm:$0xf] }
 0x645   : > { %7071 = vmatpush.bf16.msrb.mxu0 %v10256_v29  ;;  %v11439_v29 = vld [vmem:[#allocation23 + $0x494] sm:$0xf]  ;;  %v11412_v36 = vld [vmem:[#allocation23 + $0x3b4] sm:$0xf0] }
 0x646   : > { %7084 = vmatpush.bf16.msrb.mxu1 %v10512_v28  ;;  %v11503_v28 = vld [vmem:[#allocation23 + $0x694] sm:$0xf]  ;;  %v10324_v20 = vor.u32 %v11439_v29, %v10321_v30  ;;  %v11468_v29 = vld [vmem:[#allocation23 + $0x574] sm:$0xf0] }
 0x647   : > { %7044 = vmatpush.bf16.msra.mxu3 %v9776_v16  ;;  %7057 = vmatpush.bf16.msrb.mxu2 %v10032_v41  ;;  %v9841_v16 = vld [vmem:[#allocation23 + $0xf0] sm:$0xf0]  ;;  %v11332_v62 = vld [vmem:[#allocation23 + $0x134] sm:$0xf0] }
 0x648   : > { %7072 = vmatmul.bf16.vlgmr.msrb.gmra.mxu0 %v13253_v48  ;;  %v10289_v44 = vld [vmem:[#allocation23 + $0x470] sm:$0xf0]  ;;  %v9847_v42 = vld [vmem:[#allocation23 + $0xd8] sm:$0xf] }
 0x649   : > { %7116 = vmatpush.bf16.msra.mxu0 %v10484_v13  ;;  %7085 = vmatmul.bf16.vlgmr.msrb.gmra.mxu1 %v13255_v18  ;;  %v10577_v13 = vld [vmem:[#allocation23 + $0x6b0] sm:$0xf0]  ;;  %v10292_v46 = vor.u32 %v11431_v43, %v10289_v44  ;;  %v10391_v43 = vld [vmem:[#allocation23 + $0x518] sm:$0xf] }
 0x64a   : > { %7129 = vmatpush.bf16.msra.mxu1 %v10740_v37  ;;  %v11319_v37 = vld [vmem:[#allocation23 + $0xd4] sm:$0xf]  ;;  %v10580_v41 = vor.u32 %v11503_v28, %v10577_v13  ;;  %v10679_v28 = vld [vmem:[#allocation23 + $0x758] sm:$0xf] }
 0x64b   : > { %7045 = vmatpush.bf16.msra.mxu3 %v9744_v49  ;;  %7058 = vmatpush.bf16.msrb.mxu2 %v10000_v57  ;;  %v9844_v45 = vor.u32 %v11319_v37, %v9841_v16  ;;  %v11495_v27 = vld [vmem:[#allocation23 + $0x654] sm:$0xf]  ;;  %v11532_v13 = vld [vmem:[#allocation23 + $0x774] sm:$0xf0] }
 0x64c   : > { %v10545_v53 = vld [vmem:[#allocation23 + $0x670] sm:$0xf0]  ;;  %v9943_v37 = vld [vmem:[#allocation23 + $0x198] sm:$0xf] }
 0x64d   : > { %7117 = vmatpush.bf16.msra.mxu0 %v10452_v26  ;;  %v11311_v26 = vld [vmem:[#allocation23 + $0x94] sm:$0xf]  ;;  %v10548_v50 = vor.u32 %v11495_v27, %v10545_v53  ;;  %v11348_v16 = vld [vmem:[#allocation23 + $0x1b4] sm:$0xf0] }
 0x64e   : > { %7130 = vmatpush.bf16.msra.mxu1 %v10708_v47  ;;  %7046 = vmatmul.bf16.vlgmr.msra.gmra.mxu3 %v13259_v2  ;;  %v9809_v33 = vld [vmem:[#allocation23 + $0xb0] sm:$0xf0]  ;;  %v11460_v44 = vld [vmem:[#allocation23 + $0x534] sm:$0xf0] }
 0x64f   : > { %7090 = vmatpush.bf16.msrb.mxu3 %v9972_v51  ;;  %7103 = vmatpush.bf16.msra.mxu2 %v10228_v55  ;;  %v11375_v47 = vld [vmem:[#allocation23 + $0x294] sm:$0xf]  ;;  %v9812_v52 = vor.u32 %v11311_v26, %v9809_v33  ;;  %v10487_v55 = vld [vmem:[#allocation23 + $0x5d8] sm:$0xf] }
 0x650   : > { %7059 = vmatmul.bf16.vlgmr.msrb.gmra.mxu2 %v13261_v6  ;;  %v10065_v49 = vld [vmem:[#allocation23 + $0x2b0] sm:$0xf0]  ;;  %v10488_v4 = vor.u32 %v11484_v56, %v10487_v55  ;;  %v10647_v27 = vld [vmem:[#allocation23 + $0x718] sm:$0xf] }
 0x651   : > { %7118 = vmatpush.bf16.msra.mxu0 %v10420_v60  ;;  %v11423_v17 = vld [vmem:[#allocation23 + $0x414] sm:$0xf]  ;;  %v10068_v60 = vor.u32 %v11375_v47, %v10065_v49  ;;  %v11524_v53 = vld [vmem:[#allocation23 + $0x734] sm:$0xf0]  ;;  %v10392_v47 = vor.u32 %v11460_v44, %v10391_v43 }
 0x652   : > { %7131 = vmatpush.bf16.msra.mxu1 %v10676_v63  ;;  %v10257_v57 = vld [vmem:[#allocation23 + $0x430] sm:$0xf0]  ;;  %v9911_v26 = vld [vmem:[#allocation23 + $0x158] sm:$0xf] }
 0x653   : > { %7091 = vmatpush.bf16.msrb.mxu3 %v9940_v59  ;;  %7104 = vmatpush.bf16.msra.mxu2 %v10196_v5  ;;  %v11487_v51 = vld [vmem:[#allocation23 + $0x614] sm:$0xf]  ;;  %v10260_v61 = vor.u32 %v11423_v17, %v10257_v57  ;;  %v10455_v5 = vld [vmem:[#allocation23 + $0x598] sm:$0xf]  ;;  %v10648_v57 = vor.u32 %v11524_v53, %v10647_v27  ;;  %v11480_v27 = vld [vmem:[#allocation23 + $0x5dc] sm:$0xf] }
 0x654   : > { %v10513_v25 = vld [vmem:[#allocation23 + $0x630] sm:$0xf0]  ;;  %v11340_v33 = vld [vmem:[#allocation23 + $0x174] sm:$0xf0]  ;;  %v10489_v53 = vld [vmem:[#allocation23 + $0x5f8] sm:$0xf0] }
 0x655   : > { %7119 = vmatpush.bf16.msra.mxu0 %v10388_v32  ;;  %v11303_v54 = vld [vmem:[#allocation23 + $0x54] sm:$0xf]  ;;  %v10516_v3 = vor.u32 %v11487_v51, %v10513_v25  ;;  %v11476_v32 = vld [vmem:[#allocation23 + $0x5b4] sm:$0xf0] }
 0x656   : > { %7132 = vmatpush.bf16.msra.mxu1 %v10644_v8  ;;  %v9777_v63 = vld [vmem:[#allocation23 + $0x70] sm:$0xf0]  ;;  %v10456_v22 = vor.u32 %v11476_v32, %v10455_v5  ;;  %v10167_v49 = vld [vmem:[#allocation23 + $0x358] sm:$0xf] }
 0x657   : > { %7092 = vmatpush.bf16.msrb.mxu3 %v9908_v39  ;;  %7105 = vmatpush.bf16.msra.mxu2 %v10164_v14  ;;  %v11367_v1 = vld [vmem:[#allocation23 + $0x254] sm:$0xf]  ;;  %v9780_v7 = vor.u32 %v11303_v54, %v9777_v63  ;;  %v11356_v14 = vld [vmem:[#allocation23 + $0x1f4] sm:$0xf0] }
 0x658   : > { %v10033_v59 = vld [vmem:[#allocation23 + $0x270] sm:$0xf0]  ;;  %v11404_v17 = vld [vmem:[#allocation23 + $0x374] sm:$0xf0] }
 0x659   : > { %7120 = vmatpush.bf16.msra.mxu0 %v10356_v19  ;;  %v10036_v8 = vor.u32 %v11367_v1, %v10033_v59  ;;  %v11295_v10 = vld [vmem:[#allocation23 + $0x14] sm:$0xf]  ;;  %v11420_v19 = vld [vmem:[#allocation23 + $0x3f4] sm:$0xf0]  ;;  %v10168_v58 = vor.u32 %v11404_v17, %v10167_v49 }
 0x65a   : > { %7133 = vmatpush.bf16.msra.mxu1 %v10612_v24  ;;  %v9745_v38 = vld [vmem:[#allocation23 + $0x30] sm:$0xf0]  ;;  %v10423_v24 = vld [vmem:[#allocation23 + $0x558] sm:$0xf] }
 0x65b   : > { %7093 = vmatpush.bf16.msrb.mxu3 %v9876_v11  ;;  %7106 = vmatpush.bf16.msra.mxu2 %v10132_v35  ;;  %v11359_v39 = vld [vmem:[#allocation23 + $0x214] sm:$0xf]  ;;  %v9748_v23 = vor.u32 %v11295_v10, %v9745_v38  ;;  %v9976_v11 = vor.u32 %v11356_v14, %v9975_v0  ;;  %v10232_v35 = vor.u32 %v11420_v19, %v10231_v15  ;;  %v10359_v51 = vld [vmem:[#allocation23 + $0x4d8] sm:$0xf] }
 0x65c   : > { %v10001_v12 = vld [vmem:[#allocation23 + $0x230] sm:$0xf0]  ;;  %v11452_v25 = vld [vmem:[#allocation23 + $0x4f4] sm:$0xf0] }
 0x65d   : > { %7121 = vmatpush.bf16.msra.mxu0 %v10324_v20  ;;  %v10004_v30 = vor.u32 %v11359_v39, %v10001_v12  ;;  %v10424_v20 = vor.u32 %v11468_v29, %v10423_v24  ;;  %v10615_v55 = vld [vmem:[#allocation23 + $0x6d8] sm:$0xf]  ;;  %v10360_v54 = vor.u32 %v11452_v25, %v10359_v51 }
 0x65e   : > { %7134 = vmatpush.bf16.msra.mxu1 %v10580_v41  ;;  %v10680_v41 = vor.u32 %v11532_v13, %v10679_v28  ;;  %v11516_v56 = vld [vmem:[#allocation23 + $0x6f4] sm:$0xf0] }
 0x65f   : > { %7094 = vmatpush.bf16.msrb.mxu3 %v9844_v45  ;;  %7107 = vmatpush.bf16.msra.mxu2 %v10100_v34  ;;  %v9944_v45 = vor.u32 %v11348_v16, %v9943_v37  ;;  %v10200_v34 = vor.u32 %v11412_v36, %v10199_v40  ;;  %v10135_v63 = vld [vmem:[#allocation23 + $0x318] sm:$0xf]  ;;  %v10616_v1 = vor.u32 %v11516_v56, %v10615_v55 }
 0x660   : > { %v10327_v59 = vld [vmem:[#allocation23 + $0x498] sm:$0xf] }
 0x661   : > { %7122 = vmatpush.bf16.msra.mxu0 %v10292_v46  ;;  %v11324_v9 = vld [vmem:[#allocation23 + $0xf4] sm:$0xf0] }
 0x662   : > { %7135 = vmatpush.bf16.msra.mxu1 %v10548_v50  ;;  %v10103_v39 = vld [vmem:[#allocation23 + $0x2d8] sm:$0xf]  ;;  %v9848_v19 = vor.u32 %v11324_v9, %v9847_v42  ;;  %v11352_v9 = vld [vmem:[#allocation23 + $0x1dc] sm:$0xf] }
 0x663   : > { %7095 = vmatpush.bf16.msrb.mxu3 %v9812_v52  ;;  %7108 = vmatpush.bf16.msra.mxu2 %v10068_v60  ;;  %v9912_v52 = vor.u32 %v11340_v33, %v9911_v26  ;;  %v9879_v60 = vld [vmem:[#allocation23 + $0x118] sm:$0xf]  ;;  %v10745_v33 = vld [vmem:[#allocation23 + $0x7f8] sm:$0xf0] }
 0x664   : > { %v9880_v5 = vor.u32 %v11332_v62, %v9879_v60  ;;  %v11388_v12 = vld [vmem:[#allocation23 + $0x2f4] sm:$0xf0]  ;;  %v11472_v60 = vld [vmem:[#allocation23 + $0x59c] sm:$0xf] }
 0x665   : > { %7123 = vmatpush.bf16.msra.mxu0 %v10260_v61  ;;  %v13284_v46 = vpop.f32.mrf.mxu0  ;;  %v11396_v61 = vld [vmem:[#allocation23 + $0x334] sm:$0xf0]  ;;  %v10104_v29 = vor.u32 %v11388_v12, %v10103_v39 }
 0x666   : > { %7136 = vmatpush.bf16.msra.mxu1 %v10516_v3  ;;  %v13287_v50 = vpop.f32.mrf.mxu1  ;;  %v11444_v3 = vld [vmem:[#allocation23 + $0x4b4] sm:$0xf0]  ;;  %v10136_v32 = vor.u32 %v11396_v61, %v10135_v63  ;;  %v10457_v61 = vld [vmem:[#allocation23 + $0x5b8] sm:$0xf0] }
 0x667   : > { %7096 = vmatpush.bf16.msrb.mxu3 %v9780_v7  ;;  %7109 = vmatpush.bf16.msra.mxu2 %v10036_v8  ;;  %v11508_v7 = vld [vmem:[#allocation23 + $0x6b4] sm:$0xf0]  ;;  %v10328_v10 = vor.u32 %v11444_v3, %v10327_v59 }
 0x668   : > { %7124 = vmatmul.bf16.vlgmr.msra.gmra.mxu0 %v13253_v48  ;;  %v11436_v15 = vld [vmem:[#allocation23 + $0x474] sm:$0xf0] }
 0x669   : > { %7168 = vmatpush.bf16.msrb.mxu0 %v10488_v4  ;;  %7137 = vmatmul.bf16.vlgmr.msra.gmra.mxu1 %v13255_v18  ;;  %v13289_v4 = vld [vmem:[#allocation25] sm:$0xff]  ;;  %v10071_v37 = vld [vmem:[#allocation23 + $0x298] sm:$0xf] }
 0x66a   : > { %7181 = vmatpush.bf16.msrb.mxu1 %v10744_v31  ;;  %v10583_v31 = vld [vmem:[#allocation23 + $0x698] sm:$0xf]  ;;  %v5534_v38 = vperm.slane %v13289_v4, 0 }
 0x66b   : > { %7097 = vmatpush.bf16.msrb.mxu3 %v9748_v23  ;;  %7110 = vmatpush.bf16.msra.mxu2 %v10004_v30  ;;  %v10584_v14 = vor.u32 %v11508_v7, %v10583_v31  ;;  %v11500_v23 = vld [vmem:[#allocation23 + $0x674] sm:$0xf0] }
 0x66c   : > { %v9815_v30 = vld [vmem:[#allocation23 + $0x98] sm:$0xf] }
 0x66d   : > { %7169 = vmatpush.bf16.msrb.mxu0 %v10456_v22  ;;  %v6867_v8 = vpop.f32.mrf.mxu0  ;;  %v10295_v22 = vld [vmem:[#allocation23 + $0x458] sm:$0xf] }
 0x66e   : > { %7182 = vmatpush.bf16.msrb.mxu1 %v10712_v21  ;;  %7098 = vmatmul.bf16.vlgmr.msrb.gmra.mxu3 %v13259_v2  ;;  %v6880_v0 = vpop.f32.mrf.mxu1  ;;  %v10551_v21 = vld [vmem:[#allocation23 + $0x658] sm:$0xf]  ;;  %v9977_v8 = vld [vmem:[#allocation23 + $0x1f8] sm:$0xf0] }
 0x66f   : > { %7142 = vmatpush.bf16.msra.mxu3 %v9976_v11  ;;  %7155 = vmatpush.bf16.msrb.mxu2 %v10232_v35  ;;  %v11316_v11 = vld [vmem:[#allocation23 + $0xb4] sm:$0xf0]  ;;  %v10296_v35 = vor.u32 %v11436_v15, %v10295_v22  ;;  %v10552_v40 = vor.u32 %v11500_v23, %v10551_v21  ;;  %v11464_v0 = vld [vmem:[#allocation23 + $0x55c] sm:$0xf]  ;;  %v9980_v15 = vor.u32 %v11352_v9, %v9977_v8 }
 0x670   : > { %7111 = vmatmul.bf16.vlgmr.msra.gmra.mxu2 %v13261_v6  ;;  %v6839_v24 = vpop.f32.mrf.mxu3  ;;  %v11380_v16 = vld [vmem:[#allocation23 + $0x2b4] sm:$0xf0]  ;;  %v10681_v21 = vld [vmem:[#allocation23 + $0x778] sm:$0xf0] }
 0x671   : > { %7170 = vmatpush.bf16.msrb.mxu0 %v10424_v20  ;;  %v6840_v28 = vadd.f32 %v6839_v24, %v5534_v38  ;;  %v6852_v13 = vpop.f32.mrf.mxu2  ;;  %v10263_v20 = vld [vmem:[#allocation23 + $0x418] sm:$0xf]  ;;  %v10072_v26 = vor.u32 %v11380_v16, %v10071_v37  ;;  %v10233_v38 = vld [vmem:[#allocation23 + $0x3f8] sm:$0xf0] }
 0x672   : > { %7183 = vmatpush.bf16.msrb.mxu1 %v10680_v41  ;;  %v11428_v36 = vld [vmem:[#allocation23 + $0x434] sm:$0xf0]  ;;  %v11408_v37 = vld [vmem:[#allocation23 + $0x39c] sm:$0xf] }
 0x673   : > { %7143 = vmatpush.bf16.msra.mxu3 %v9944_v45  ;;  %7156 = vmatpush.bf16.msrb.mxu2 %v10200_v34  ;;  %v10519_v41 = vld [vmem:[#allocation23 + $0x618] sm:$0xf]  ;;  %v6853_v44 = vadd.f32 %v6852_v13, %v6840_v28  ;;  %v9816_v45 = vor.u32 %v11316_v11, %v9815_v30  ;;  %v11544_v34 = vld [vmem:[#allocation23 + $0x7dc] sm:$0xf]  ;;  %v10264_v51 = vor.u32 %v11428_v36, %v10263_v20  ;;  %v5535_v30 = vperm.slane %v13289_v4, 1 }
 0x674   : > { %v11492_v43 = vld [vmem:[#allocation23 + $0x634] sm:$0xf0]  ;;  %v11344_v11 = vld [vmem:[#allocation23 + $0x19c] sm:$0xf] }
 0x675   : > { %7171 = vmatpush.bf16.msrb.mxu0 %v10392_v47  ;;  %v9783_v47 = vld [vmem:[#allocation23 + $0x58] sm:$0xf]  ;;  %v6866_v17 = vadd.f32 %v13284_v46, %v6853_v44  ;;  %v10520_v56 = vor.u32 %v11492_v43, %v10519_v41  ;;  %v11536_v46 = vld [vmem:[#allocation23 + $0x79c] sm:$0xf] }
 0x676   : > { %7184 = vmatpush.bf16.msrb.mxu1 %v10648_v57  ;;  %v11308_v49 = vld [vmem:[#allocation23 + $0x74] sm:$0xf0]  ;;  %v13293_v57 = vpop.f32.mrf.mxu0  ;;  %v13295_v55 = vpop.f32.mrf.mxu1  ;;  %v9945_v28 = vld [vmem:[#allocation23 + $0x1b8] sm:$0xf0] }
 0x677   : > { %7144 = vmatpush.bf16.msra.mxu3 %v9912_v52  ;;  %7157 = vmatpush.bf16.msrb.mxu2 %v10168_v58  ;;  %v10039_v25 = vld [vmem:[#allocation23 + $0x258] sm:$0xf]  ;;  %v10492_v58 = vor.u32 %v11480_v27, %v10489_v53  ;;  %v13298_v62 = vadd.f32 %v13287_v50, %v6866_v17  ;;  %v9784_v63 = vor.u32 %v11308_v49, %v9783_v47  ;;  %v10201_v16 = vld [vmem:[#allocation23 + $0x3b8] sm:$0xf0] }
 0x678   : > { %v11372_v52 = vld [vmem:[#allocation23 + $0x274] sm:$0xf0]  ;;  %v6841_v59 = vpop.f32.mrf.mxu3  ;;  %v10460_v50 = vor.u32 %v11472_v60, %v10457_v61  ;;  %v10393_v36 = vld [vmem:[#allocation23 + $0x538] sm:$0xf0]  ;;  %v9948_v43 = vor.u32 %v11344_v11, %v9945_v28 }
 0x679   : > { %7172 = vmatpush.bf16.msrb.mxu0 %v10360_v54  ;;  %v10748_v54 = vor.u32 %v11544_v34, %v10745_v33  ;;  %v10040_v3 = vor.u32 %v11372_v52, %v10039_v25  ;;  %v11300_v31 = vld [vmem:[#allocation23 + $0x34] sm:$0xf0]  ;;  %v7246_v23 = vmin.f32 %v13298_v62, 0.0  ;;  %v11520_v44 = vld [vmem:[#allocation23 + $0x71c] sm:$0xf]  ;;  %vm7286_vm5 = vcmp.gt.f32.partialorder %v13298_v62, 0.0 }
 0x67a   : > { %7185 = vmatpush.bf16.msrb.mxu1 %v10616_v1  ;;  %v10713_v1 = vld [vmem:[#allocation23 + $0x7b8] sm:$0xf0]  ;;  %v10007_v7 = vld [vmem:[#allocation23 + $0x218] sm:$0xf] }
 0x67b   : > { %7145 = vmatpush.bf16.msra.mxu3 %v9880_v5  ;;  %7158 = vmatpush.bf16.msrb.mxu2 %v10136_v32  ;;  %v9751_v5 = vld [vmem:[#allocation23 + $0x18] sm:$0xf]  ;;  %v6854_v32 = vpop.f32.mrf.mxu2  ;;  %v10716_v39 = vor.u32 %v11536_v46, %v10713_v1  ;;  %v7254_v27 = vmul.f32 1.442695, %v7246_v23  ;;  %v11336_v33 = vld [vmem:[#allocation23 + $0x15c] sm:$0xf] }
 0x67c   : > { %v11364_v42 = vld [vmem:[#allocation23 + $0x234] sm:$0xf0]  ;;  %v9752_v12 = vor.u32 %v11300_v31, %v9751_v5  ;;  %v9913_v47 = vld [vmem:[#allocation23 + $0x178] sm:$0xf0] }
 0x67d   : > { %7173 = vmatpush.bf16.msrb.mxu0 %v10328_v10  ;;  %v11416_v10 = vld [vmem:[#allocation23 + $0x3dc] sm:$0xf]  ;;  %v10008_v22 = vor.u32 %v11364_v42, %v10007_v7  ;;  %v9916_v60 = vor.u32 %v11336_v33, %v9913_v47  ;;  %11770 = vpow2.f32 %v7254_v27 }
 0x67e   : > { %7186 = vmatpush.bf16.msrb.mxu1 %v10584_v14  ;;  %v10425_v14 = vld [vmem:[#allocation23 + $0x578] sm:$0xf0]  ;;  %v6919_v24 = vpop.f32.mrf.mxu0  ;;  %v6932_v13 = vpop.f32.mrf.mxu1 }
 0x67f   : > { %7146 = vmatpush.bf16.msra.mxu3 %v9848_v19  ;;  %7159 = vmatpush.bf16.msrb.mxu2 %v10104_v29  ;;  %v11528_v19 = vld [vmem:[#allocation23 + $0x75c] sm:$0xf]  ;;  %v10236_v29 = vor.u32 %v11416_v10, %v10233_v38 }
 0x680   : > { %v10684_v20 = vor.u32 %v11528_v19, %v10681_v21  ;;  %v6891_v41 = vpop.f32.mrf.mxu3  ;;  %v11400_v17 = vld [vmem:[#allocation23 + $0x35c] sm:$0xf] }
 0x681   : > { %7174 = vmatpush.bf16.msrb.mxu0 %v10296_v35  ;;  %v10428_v35 = vor.u32 %v11464_v0, %v10425_v14  ;;  %v6892_v53 = vadd.f32 %v6891_v41, %v5535_v30  ;;  %v11328_v59 = vld [vmem:[#allocation23 + $0x11c] sm:$0xf] }
 0x682   : > { %7187 = vmatpush.bf16.msrb.mxu1 %v10552_v40  ;;  %v11456_v40 = vld [vmem:[#allocation23 + $0x51c] sm:$0xf] }
 0x683   : > { %7147 = vmatpush.bf16.msra.mxu3 %v9816_v45  ;;  %7160 = vmatpush.bf16.msrb.mxu2 %v10072_v26  ;;  %v10649_v45 = vld [vmem:[#allocation23 + $0x738] sm:$0xf0]  ;;  %v6904_v34 = vpop.f32.mrf.mxu2  ;;  %v10204_v26 = vor.u32 %v11408_v37, %v10201_v16  ;;  %v10396_v49 = vor.u32 %v11456_v40, %v10393_v36  ;;  %v11771_v23 = vpop.eup %11770 }
 0x684   : > { %v6905_v25 = vadd.f32 %v6904_v34, %v6892_v53  ;;  %v10652_v52 = vor.u32 %v11520_v44, %v10649_v45  ;;  %v11392_v7 = vld [vmem:[#allocation23 + $0x31c] sm:$0xf]  ;;  %v10749_v36 = vadd.f32 -1.0, %v11771_v23 }
 0x685   : > { %7175 = vmatpush.bf16.msrb.mxu0 %v10264_v51  ;;  %v10169_v51 = vld [vmem:[#allocation23 + $0x378] sm:$0xf0] }
 0x686   : > { %7188 = vmatpush.bf16.msrb.mxu1 %v10520_v56  ;;  %v11448_v56 = vld [vmem:[#allocation23 + $0x4dc] sm:$0xf]  ;;  %v6918_v61 = vadd.f32 %v13293_v57, %v6905_v25  ;;  %v13307_v46 = vpop.f32.mrf.mxu0  ;;  %v10172_v1 = vor.u32 %v11400_v17, %v10169_v51  ;;  %v13309_v5 = vpop.f32.mrf.mxu1 }
 0x687   : > { %7148 = vmatpush.bf16.msra.mxu3 %v9784_v63  ;;  %7161 = vmatpush.bf16.msrb.mxu2 %v10040_v3  ;;  %v10617_v63 = vld [vmem:[#allocation23 + $0x6f8] sm:$0xf0] }
 0x688   : > { %7176 = vmatmul.bf16.vlgmr.msrb.gmra.mxu0 %v13253_v48  ;;  %v9881_v3 = vld [vmem:[#allocation23 + $0x138] sm:$0xf0]  ;;  %v13312_v42 = vadd.f32 %v13295_v55, %v6918_v61  ;;  %v6893_v57 = vpop.f32.mrf.mxu3 }
 0x689   : > { %7220 = vmatpush.bf16.msra.mxu0 %v10492_v58  ;;  %7189 = vmatmul.bf16.vlgmr.msrb.gmra.mxu1 %v13255_v18  ;;  %v10361_v58 = vld [vmem:[#allocation23 + $0x4f8] sm:$0xf0]  ;;  %v9884_v10 = vor.u32 %v11328_v59, %v9881_v3 }
 0x68a   : > { %7233 = vmatpush.bf16.msra.mxu1 %v10748_v54  ;;  %v11512_v54 = vld [vmem:[#allocation23 + $0x6dc] sm:$0xf]  ;;  %v10364_v31 = vor.u32 %v11448_v56, %v10361_v58  ;;  %v7278_v56 = vmul.f32 1.6732632, %v10749_v36  ;;  %vm7287_vm6 = vcmp.gt.f32.partialorder %v13312_v42, 0.0 }
 0x68b   : > { %7149 = vmatpush.bf16.msra.mxu3 %v9752_v12  ;;  %7162 = vmatpush.bf16.msrb.mxu2 %v10008_v22  ;;  %v10137_v32 = vld [vmem:[#allocation23 + $0x338] sm:$0xf0]  ;;  %v10620_v9 = vor.u32 %v11512_v54, %v10617_v63  ;;  %v7247_v12 = vmin.f32 %v13312_v42, 0.0  ;;  %v6906_v0 = vpop.f32.mrf.mxu2 }
 0x68c   : > { %v11440_v8 = vld [vmem:[#allocation23 + $0x49c] sm:$0xf]  ;;  %v10140_v14 = vor.u32 %v11392_v7, %v10137_v32 }
 0x68d   : > { %7221 = vmatpush.bf16.msra.mxu0 %v10460_v50  ;;  %v10329_v50 = vld [vmem:[#allocation23 + $0x4b8] sm:$0xf0]  ;;  %v7256_v24 = vmul.f32 1.442695, %v7247_v12 }
 0x68e   : > { %7234 = vmatpush.bf16.msra.mxu1 %v10716_v39  ;;  %7150 = vmatmul.bf16.vlgmr.msra.gmra.mxu3 %v13259_v2  ;;  %v11504_v38 = vld [vmem:[#allocation23 + $0x69c] sm:$0xf]  ;;  %v10332_v19 = vor.u32 %v11440_v8, %v10329_v50  ;;  %v6971_v37 = vpop.f32.mrf.mxu0  ;;  %v6984_v41 = vpop.f32.mrf.mxu1  ;;  %v7294_v50 = vsel %vm7286_vm5, %v13298_v62, %v7278_v56 }
 0x68f   : > { %7194 = vmatpush.bf16.msrb.mxu3 %v9980_v15  ;;  %7207 = vmatpush.bf16.msra.mxu2 %v10236_v29  ;;  %v10585_v39 = vld [vmem:[#allocation23 + $0x6b8] sm:$0xf0]  ;;  %11772 = vpow2.f32 %v7256_v24 }
 0x690   : > { %7163 = vmatmul.bf16.vlgmr.msrb.gmra.mxu2 %v13261_v6  ;;  %v11320_v22 = vld [vmem:[#allocation23 + $0xdc] sm:$0xf]  ;;  %v10588_v29 = vor.u32 %v11504_v38, %v10585_v39 }
 0x691   : > { %7222 = vmatpush.bf16.msra.mxu0 %v10428_v35  ;;  %v9849_v15 = vld [vmem:[#allocation23 + $0xf8] sm:$0xf0]  ;;  %v6943_v17 = vpop.f32.mrf.mxu3 }
 0x692   : > { %7235 = vmatpush.bf16.msra.mxu1 %v10684_v20  ;;  %v11384_v55 = vld [vmem:[#allocation23 + $0x2dc] sm:$0xf]  ;;  %v9852_v28 = vor.u32 %v11320_v22, %v9849_v15  ;;  %v7302_v22 = vmul.f32 1.050701, %v7294_v50 }
 0x693   : > { %7195 = vmatpush.bf16.msrb.mxu3 %v9948_v43  ;;  %7208 = vmatpush.bf16.msra.mxu2 %v10204_v26  ;;  %v10105_v21 = vld [vmem:[#allocation23 + $0x2f8] sm:$0xf0]  ;;  %v5536_v43 = vperm.slane %v13289_v4, 2 }
 0x694   : > { %v11432_v30 = vld [vmem:[#allocation23 + $0x45c] sm:$0xf]  ;;  %v10108_v16 = vor.u32 %v11384_v55, %v10105_v21 }
 0x695   : > { %7223 = vmatpush.bf16.msra.mxu0 %v10396_v49  ;;  %v10297_v11 = vld [vmem:[#allocation23 + $0x478] sm:$0xf0]  ;;  %v6944_v58 = vadd.f32 %v6943_v17, %v5536_v43  ;;  %v5538_v17 = vperm.slane %v13289_v4, 4 }
 0x696   : > { %7236 = vmatpush.bf16.msra.mxu1 %v10652_v52  ;;  %v11496_v13 = vld [vmem:[#allocation23 + $0x65c] sm:$0xf]  ;;  %v10300_v44 = vor.u32 %v11432_v30, %v10297_v11 }
 0x697   : > { %7196 = vmatpush.bf16.msrb.mxu3 %v9916_v60  ;;  %7209 = vmatpush.bf16.msra.mxu2 %v10172_v1  ;;  %v10553_v35 = vld [vmem:[#allocation23 + $0x678] sm:$0xf0]  ;;  %v6956_v60 = vpop.f32.mrf.mxu2  ;;  %v11773_v1 = vpop.eup %11772 }
 0x698   : > { %v11312_v20 = vld [vmem:[#allocation23 + $0x9c] sm:$0xf]  ;;  %v10556_v53 = vor.u32 %v11496_v13, %v10553_v35  ;;  %v10750_v3 = vadd.f32 -1.0, %v11773_v1 }
 0x699   : > { %7224 = vmatpush.bf16.msra.mxu0 %v10364_v31  ;;  %v9817_v40 = vld [vmem:[#allocation23 + $0xb8] sm:$0xf0]  ;;  %v6957_v31 = vadd.f32 %v6956_v60, %v6944_v58  ;;  %v6945_v62 = vpop.f32.mrf.mxu3 }
 0x69a   : > { %7237 = vmatpush.bf16.msra.mxu1 %v10620_v9  ;;  %v11376_v45 = vld [vmem:[#allocation23 + $0x29c] sm:$0xf]  ;;  %v9820_v33 = vor.u32 %v11312_v20, %v9817_v40  ;;  %v7279_v57 = vmul.f32 1.6732632, %v10750_v3 }
 0x69b   : > { %7197 = vmatpush.bf16.msrb.mxu3 %v9884_v10  ;;  %7210 = vmatpush.bf16.msra.mxu2 %v10140_v14  ;;  %v10073_v27 = vld [vmem:[#allocation23 + $0x2b8] sm:$0xf0]  ;;  %v6970_v10 = vadd.f32 %v13307_v46, %v6957_v31 }
 0x69c   : > { %v11424_v34 = vld [vmem:[#allocation23 + $0x41c] sm:$0xf]  ;;  %v10076_v51 = vor.u32 %v11376_v45, %v10073_v27  ;;  %v7295_v12 = vsel %vm7287_vm6, %v13312_v42, %v7279_v57 }
 0x69d   : > { %7225 = vmatpush.bf16.msra.mxu0 %v10332_v19  ;;  %v10265_v26 = vld [vmem:[#allocation23 + $0x438] sm:$0xf0]  ;;  %v6983_v0 = vadd.f32 %v13309_v5, %v6970_v10  ;;  %v7303_v15 = vmul.f32 1.050701, %v7295_v12 }
 0x69e   : > { %7238 = vmatpush.bf16.msra.mxu1 %v10588_v29  ;;  %v11488_v47 = vld [vmem:[#allocation23 + $0x61c] sm:$0xf]  ;;  %v10268_v54 = vor.u32 %v11424_v34, %v10265_v26  ;;  %v5537_v29 = vperm.slane %v13289_v4, 3 }
 0x69f   : > { %7198 = vmatpush.bf16.msrb.mxu3 %v9852_v28  ;;  %v10521_v49 = vld [vmem:[#allocation23 + $0x638] sm:$0xf0]  ;;  %7211 = vmatpush.bf16.msra.mxu2 %v10108_v16  ;;  %v6958_v46 = vpop.f32.mrf.mxu2  ;;  %v7319_v55 = vpack.c.bf16 %v7303_v15, %v7302_v22  ;;  %v7248_v23 = vmin.f32 %v6983_v0, 0.0  ;;  %vm7288_vm7 = vcmp.gt.f32.partialorder %v6983_v0, 0.0 }
 0x6a0   : > { %v11304_v25 = vld [vmem:[#allocation23 + $0x5c] sm:$0xf]  ;;  %v10524_v59 = vor.u32 %v11488_v47, %v10521_v49 }
 0x6a1   : > { %v9785_v52 = vld [vmem:[#allocation23 + $0x78] sm:$0xf0]  ;;  %7226 = vmatpush.bf16.msra.mxu0 %v10300_v44  ;;  %v7258_v30 = vmul.f32 1.442695, %v7248_v23 }
 0x6a2   : > { %v11368_v63 = vld [vmem:[#allocation23 + $0x25c] sm:$0xf]  ;;  %7239 = vmatpush.bf16.msra.mxu1 %v10556_v53  ;;  %v9788_v7 = vor.u32 %v11304_v25, %v9785_v52 }
 0x6a3   : > { %v10041_v61 = vld [vmem:[#allocation23 + $0x278] sm:$0xf0]  ;;  %7199 = vmatpush.bf16.msrb.mxu3 %v9820_v33  ;;  %7212 = vmatpush.bf16.msra.mxu2 %v10076_v51  ;;  %11774 = vpow2.f32 %v7258_v30  ;;  %v7327_v51 = vrot.slane %v7319_v55, 3 }
 0x6a4   : > { %v10044_v32 = vor.u32 %v11368_v63, %v10041_v61  ;;  %v11296_v9 = vld [vmem:[#allocation23 + $0x1c] sm:$0xf] }
 0x6a5   : > { %v9753_v8 = vld [vmem:[#allocation23 + $0x38] sm:$0xf0]  ;;  %7227 = vmatpush.bf16.msra.mxu0 %v10268_v54  ;;  %v7021_v5 = vpop.f32.mrf.mxu0  ;;  %v7337_v63 = vsel %vm7334_vm9, %v7319_v55, %v7327_v51 }
 0x6a6   : > { %v11360_v38 = vld [vmem:[#allocation23 + $0x21c] sm:$0xf]  ;;  %7240 = vmatpush.bf16.msra.mxu1 %v10524_v59  ;;  %v9756_v14 = vor.u32 %v11296_v9, %v9753_v8  ;;  %v7034_v42 = vpop.f32.mrf.mxu1 }
 0x6a7   : > { %v10009_v39 = vld [vmem:[#allocation23 + $0x238] sm:$0xf0]  ;;  %7200 = vmatpush.bf16.msrb.mxu3 %v9788_v7  ;;  %7213 = vmatpush.bf16.msra.mxu2 %v10044_v32 }
 0x6a8   : > { %7228 = vmatmul.bf16.vlgmr.msra.gmra.mxu0 %v13253_v48  ;;  %v10012_v19 = vor.u32 %v11360_v38, %v10009_v39  ;;  %v5539_v38 = vperm.slane %v13289_v4, 5 }
 0x6a9   : > { %7241 = vmatmul.bf16.vlgmr.msra.gmra.mxu1 %v13255_v18  ;;  %v11775_v20 = vpop.eup %11774 }
 0x6aa   : > { %v10751_v40 = vadd.f32 -1.0, %v11775_v20 }
 0x6ab   : > { %7201 = vmatpush.bf16.msrb.mxu3 %v9756_v14  ;;  %7214 = vmatpush.bf16.msra.mxu2 %v10012_v19 }
 0x6ac   : > { %v7280_v41 = vmul.f32 1.6732632, %v10751_v40  ;;  %v5540_v40 = vperm.slane %v13289_v4, 6 }
 0x6ad   : > { %v7023_v21 = vpop.f32.mrf.mxu0 }
 0x6ae   : > { %7202 = vmatmul.bf16.vlgmr.msrb.gmra.mxu3 %v13259_v2  ;;  %7215 = vmatmul.bf16.vlgmr.msra.gmra.mxu2 %v13261_v6  ;;  %v7036_v24 = vpop.f32.mrf.mxu1  ;;  %v7296_v27 = vsel %vm7288_vm7, %v6983_v0, %v7280_v41 }
 0x6af   : > { %v7304_v26 = vmul.f32 1.050701, %v7296_v27 }
 0x6b1   : > { %v6995_v48 = vpop.f32.mrf.mxu3 }
 0x6b2   : > { %v6996_v11 = vadd.f32 %v6995_v48, %v5537_v29 }
 0x6b3   : > { %v7008_v28 = vpop.f32.mrf.mxu2 }
 0x6b4   : > { %v7009_v18 = vadd.f32 %v7008_v28, %v6996_v11 }
 0x6b6   : > { %v7022_v13 = vadd.f32 %v7021_v5, %v7009_v18 }
 0x6b8   : > { %v7035_v35 = vadd.f32 %v7034_v42, %v7022_v13 }
 0x6b9   : > { %v6997_v37 = vpop.f32.mrf.mxu3 }
 0x6ba   : > { %v7249_v16 = vmin.f32 %v7035_v35, 0.0  ;;  %vm7289_vm8 = vcmp.gt.f32.partialorder %v7035_v35, 0.0 }
 0x6bb   : > { %v7010_v2 = vpop.f32.mrf.mxu2 }
 0x6bc   : > { %v7260_v6 = vmul.f32 1.442695, %v7249_v16 }
 0x6be   : > { %11776 = vpow2.f32 %v7260_v6 }
 0x6c4   : > { %v11777_v44 = vpop.eup %11776 }
 0x6c5   : > { %v7073_v36 = vpop.f32.mrf.mxu0  ;;  %v10752_v45 = vadd.f32 -1.0, %v11777_v44 }
 0x6c6   : > { %v7086_v43 = vpop.f32.mrf.mxu1 }
 0x6c7   : > { %v7281_v53 = vmul.f32 1.6732632, %v10752_v45 }
 0x6c9   : > { %v7297_v34 = vsel %vm7289_vm8, %v7035_v35, %v7281_v53 }
 0x6ca   : > { %v7305_v33 = vmul.f32 1.050701, %v7297_v34 }
 0x6cc   : > { %v7320_v25 = vpack.c.bf16 %v7305_v33, %v7304_v26 }
 0x6cd   : > { %v7075_v47 = vpop.f32.mrf.mxu0 }
 0x6ce   : > { %v7088_v49 = vpop.f32.mrf.mxu1  ;;  %v7328_v52 = vrot.slane %v7320_v25, 6  ;;  %v7329_v56 = vrot.slane %v7320_v25, 1 }
 0x6cf   : > { %v5541_v49 = vperm.slane %v13289_v4, 7 }
 0x6d0   : > { %v7341_v61 = vsel %vm7338_vm10, %v7328_v52, %v7329_v56 }
 0x6d1   : > { %v7047_v58 = vpop.f32.mrf.mxu3  ;;  %v13329_v1 = vsel %vm2344_vm0, %v7337_v63, %v7341_v61 }
 0x6d2   : > { %v7048_v60 = vadd.f32 %v7047_v58, %v5538_v17 }
 0x6d3   : > { %v7060_v54 = vpop.f32.mrf.mxu2 }
 0x6d4   : > { %v7061_v59 = vadd.f32 %v7060_v54, %v7048_v60 }
 0x6d6   : > { %v7074_v3 = vadd.f32 %v7073_v36, %v7061_v59 }
 0x6d8   : > { %v7087_v31 = vadd.f32 %v7086_v43, %v7074_v3 }
 0x6d9   : > { %v7049_v7 = vpop.f32.mrf.mxu3 }
 0x6da   : > { %v7250_v57 = vmin.f32 %v7087_v31, 0.0  ;;  %vm7290_vm0 = vcmp.gt.f32.partialorder %v7087_v31, 0.0 }
 0x6db   : > { %v7062_v32 = vpop.f32.mrf.mxu2 }
 0x6dc   : > { %v7262_v12 = vmul.f32 1.442695, %v7250_v57 }
 0x6de   : > { %11778 = vpow2.f32 %v7262_v12 }
 0x6e4   : > { %v11779_v5 = vpop.eup %11778 }
 0x6e5   : > { %v7125_v9 = vpop.f32.mrf.mxu0  ;;  %v10753_v21 = vadd.f32 -1.0, %v11779_v5 }
 0x6e6   : > { %v7138_v8 = vpop.f32.mrf.mxu1 }
 0x6e7   : > { %v7282_v24 = vmul.f32 1.6732632, %v10753_v21 }
 0x6e9   : > { %v7298_v11 = vsel %vm7290_vm0, %v7087_v31, %v7282_v24 }
 0x6ea   : > { %v7306_v13 = vmul.f32 1.050701, %v7298_v11 }
 0x6ed   : > { %v7127_v50 = vpop.f32.mrf.mxu0 }
 0x6ee   : > { %v7140_v10 = vpop.f32.mrf.mxu1 }
 0x6f1   : > { %v7099_v39 = vpop.f32.mrf.mxu3 }
 0x6f2   : > { %v7100_v0 = vadd.f32 %v7099_v39, %v5539_v38 }
 0x6f3   : > { %v7112_v14 = vpop.f32.mrf.mxu2 }
 0x6f4   : > { %v7113_v22 = vadd.f32 %v7112_v14, %v7100_v0 }
 0x6f6   : > { %v7126_v15 = vadd.f32 %v7125_v9, %v7113_v22 }
 0x6f8   : > { %v7139_v62 = vadd.f32 %v7138_v8, %v7126_v15 }
 0x6f9   : > { %v7101_v19 = vpop.f32.mrf.mxu3 }
 0x6fa   : > { %v7251_v46 = vmin.f32 %v7139_v62, 0.0  ;;  %vm7291_vm11 = vcmp.gt.f32.partialorder %v7139_v62, 0.0 }
 0x6fb   : > { %v7114_v55 = vpop.f32.mrf.mxu2 }
 0x6fc   : > { %v7264_v42 = vmul.f32 1.442695, %v7251_v46 }
 0x6fe   : > { %11780 = vpow2.f32 %v7264_v42 }
 0x704   : > { %v11781_v48 = vpop.eup %11780 }
 0x705   : > { %v7177_v23 = vpop.f32.mrf.mxu0  ;;  %v10754_v30 = vadd.f32 -1.0, %v11781_v48 }
 0x706   : > { %v7190_v29 = vpop.f32.mrf.mxu1 }
 0x707   : > { %v7283_v28 = vmul.f32 1.6732632, %v10754_v30 }
 0x709   : > { %v7299_v18 = vsel %vm7291_vm11, %v7139_v62, %v7283_v28 }
 0x70a   : > { %v7307_v35 = vmul.f32 1.050701, %v7299_v18 }
 0x70c   : > { %v7321_v2 = vpack.c.bf16 %v7307_v35, %v7306_v13 }
 0x70d   : > { %v7179_v37 = vpop.f32.mrf.mxu0 }
 0x70e   : > { %v7192_v16 = vpop.f32.mrf.mxu1  ;;  %v7330_v38 = vrot.slane %v7321_v2, 4  ;;  %v7331_v39 = vrot.slane %v7321_v2, 7 }
 0x710   : > { %v7346_v22 = vsel %vm7343_vm14, %v7330_v38, %v7331_v39 }
 0x711   : > { %v7151_v20 = vpop.f32.mrf.mxu3 }
 0x712   : > { %v7152_v43 = vadd.f32 %v7151_v20, %v5540_v40 }
 0x713   : > { %v7164_v6 = vpop.f32.mrf.mxu2 }
 0x714   : > { %v7165_v44 = vadd.f32 %v7164_v6, %v7152_v43 }
 0x716   : > { %v7178_v27 = vadd.f32 %v7177_v23, %v7165_v44 }
 0x718   : > { %v7191_v34 = vadd.f32 %v7190_v29, %v7178_v27 }
 0x719   : > { %v7153_v36 = vpop.f32.mrf.mxu3 }
 0x71a   : > { %v7252_v33 = vmin.f32 %v7191_v34, 0.0  ;;  %vm7292_vm12 = vcmp.gt.f32.partialorder %v7191_v34, 0.0 }
 0x71b   : > { %v7166_v41 = vpop.f32.mrf.mxu2 }
 0x71c   : > { %v7266_v51 = vmul.f32 1.442695, %v7252_v33 }
 0x71e   : > { %11782 = vpow2.f32 %v7266_v51 }
 0x724   : > { %v11783_v59 = vpop.eup %11782 }
 0x725   : > { %v7229_v45 = vpop.f32.mrf.mxu0  ;;  %v10755_v31 = vadd.f32 -1.0, %v11783_v59 }
 0x726   : > { %v7242_v53 = vpop.f32.mrf.mxu1 }
 0x727   : > { %v7284_v7 = vmul.f32 1.6732632, %v10755_v31 }
 0x729   : > { %v7300_v4 = vsel %vm7292_vm12, %v7191_v34, %v7284_v7 }
 0x72a   : > { %v7308_v57 = vmul.f32 1.050701, %v7300_v4 }
 0x72d   : > { %v7231_v26 = vpop.f32.mrf.mxu0 }
 0x72e   : > { %v7244_v47 = vpop.f32.mrf.mxu1 }
 0x731   : > { %v7203_v17 = vpop.f32.mrf.mxu3  ;;  %v7216_v52 = vpop.f32.mrf.mxu2 }
 0x732   : > { %v7204_v25 = vadd.f32 %v7203_v17, %v5541_v49 }
 0x734   : > { %v7217_v56 = vadd.f32 %v7216_v52, %v7204_v25 }
 0x736   : > { %v7230_v58 = vadd.f32 %v7229_v45, %v7217_v56 }
 0x738   : > { %v7243_v60 = vadd.f32 %v7242_v53, %v7230_v58 }
 0x739   : > { %v7205_v54 = vpop.f32.mrf.mxu3  ;;  %v7218_v61 = vpop.f32.mrf.mxu2 }
 0x73a   : > { %v7253_v63 = vmin.f32 %v7243_v60, 0.0  ;;  %vm7293_vm13 = vcmp.gt.f32.partialorder %v7243_v60, 0.0 }
 0x73c   : > { %v7268_v3 = vmul.f32 1.442695, %v7253_v63 }
 0x73e   : > { %11784 = vpow2.f32 %v7268_v3 }
 0x744   : > { %v11785_v32 = vpop.eup %11784 }
 0x745   : > { %v10756_v9 = vadd.f32 -1.0, %v11785_v32 }
 0x747   : > { %v7285_v8 = vmul.f32 1.6732632, %v10756_v9 }
 0x749   : > { %v7301_v50 = vsel %vm7293_vm13, %v7243_v60, %v7285_v8 }
 0x74a   : > { %v7309_v10 = vmul.f32 1.050701, %v7301_v50 }
 0x74c   : > { %v7322_v12 = vpack.c.bf16 %v7309_v10, %v7308_v57 }
 0x74e   : > { %v7332_v0 = vrot.slane %v7322_v12, 2  ;;  %v7333_v14 = vrot.slane %v7322_v12, 5 }
 0x750   : > { %v7350_v15 = vsel %vm7347_vm15, %v7332_v0, %v7333_v14 }
 0x751   : > { %v7351_v62 = vsel %vm2346_vm1, %v7346_v22, %v7350_v15 }
 0x752   : > { %v7352_v19 = vsel %vm2348_vm2, %v13329_v1, %v7351_v62 }
 0x753   : > { %7354 = vst [vmem:[%s13416_s26] sm:$0xff] %v7352_v19 }
 0x754 PF: > { %p37_p3 = scmp.ge.s32.totalorder %s12545_s9, 4   ;;  %s13417_s0 = smov %s12294_s30 }
 0x755   : > { %s13418_s30 = smov %s12298_s20  ;;  %s13419_s20 = smov %s12557_s19 }
 0x756   : > { %s13420_s21 = smov %s12545_s9  ;;  %39 = sbr.rel (!%p37_p3) target bundleno = 23 (0x17), region = 205 }
 0x75b   :  { %7372 = vsyncpa [#allocation4], 1 }
 0x75c   :  { %7374 = vsyncpa [#allocation4 + $0x1], 1 }
 0x75d   :  { %7375 = vsyncpa [#allocation6], 1 }
 0x75e   :  { %7377 = vsyncpa [#allocation6 + $0x1], 1 }
 0x75f   :  { %7378 = vsyncpa [#allocation9], 1 }
 0x760   :  { %7379 = vsyncpa [#allocation12], 1 }
 0x761   :  { %7380 = vsyncpa [#allocation15], 1 }
 0x762   :  { %7381 = vsyncpa [#allocation18], 1 }
 0x763   :  { %7382 = vsyncpa [#allocation21], 1 }
 0x764   :  { %7383 = vsyncpa [#allocation24], 1 }

</bundles_post_ra>
